<compile_context>
chip_gen: v7x
topology: tpu7x:2x2x1
jax: 0.10.0
libtpu: 0.0.40
codegen_flags: <defaults>
</compile_context>

<pallas_src>
import jax
import jax.numpy as jnp
from jax import lax
from jax.experimental import pallas as pl
from jax.experimental.pallas import tpu as pltpu


FC1_TN = 34688  # 271 * 128: lane-aligned, 4 tiles over N=138384 (even count).


# ------------------------------ Pallas kernels ------------------------------

def _conv_relu_pool_kernel(x_ref, w_ref, b_ref, o_ref):
    """Fused Conv2d(stride=1, valid) + bias + ReLU + MaxPool2d(2, 2).

    x_ref: (4*P, K) im2col patches; rows [p*P:(p+1)*P] hold pool-window offset
           p in (0,0),(0,1),(1,0),(1,1); P = N*Hp*Wp pooled positions,
           K = Cin*KH*KW.
    w_ref: (K, Cout), b_ref: (1, Cout), o_ref: (P, Cout).
    """
    P = o_ref.shape[0]
    acc = jnp.dot(x_ref[...], w_ref[...], preferred_element_type=jnp.float32)
    pooled = jnp.maximum(
        jnp.maximum(acc[0 * P:1 * P], acc[1 * P:2 * P]),
        jnp.maximum(acc[2 * P:3 * P], acc[3 * P:4 * P]))
    # Bias commutes with the pool-max: add once, then ReLU.
    o_ref[...] = jnp.maximum(pooled + b_ref[...], 0.0)


def _linear_relu_kernel(x_ref, w_ref, b_ref, o_ref):
    """One output-column tile of y = relu(x @ W + b); W already (K, N)."""
    y = jnp.dot(x_ref[...], w_ref[...], preferred_element_type=jnp.float32)
    o_ref[...] = jnp.maximum(y + b_ref[...], 0.0)


def _fc2_fc3_kernel(x_ref, w2_ref, b2_ref, w3_ref, b3_ref, h_ref, o_ref):
    """Fused fc2 (Linear+ReLU) and fc3 (Linear); weights pre-transposed (K, N)."""
    h = jnp.maximum(
        jnp.dot(x_ref[...], w2_ref[...], preferred_element_type=jnp.float32)
        + b2_ref[...], 0.0)
    h_ref[...] = h
    o_ref[...] = (jnp.dot(h, w3_ref[...], preferred_element_type=jnp.float32)
                  + b3_ref[...])


# ------------------------------- JAX wrappers --------------------------------

def _extract_patches(x_nhwc, KH, KW):
    """(N,H,W,C) -> (N,Ho,Wo,KH*KW*C) with feature order (kh, kw, cin)."""
    N, H, W, C = x_nhwc.shape
    Ho, Wo = H - KH + 1, W - KW + 1
    cols = []
    for i in range(KH):
        for j in range(KW):
            cols.append(x_nhwc[:, i:i + Ho, j:j + Wo, :])
    return jnp.concatenate(cols, axis=-1)


def conv_relu_pool(x_nhwc, w_oihw, b):
    """nn.Conv2d(stride=1, no padding) + ReLU + MaxPool2d(2, 2). NHWC in/out."""
    N, H, W, Cin = x_nhwc.shape
    Cout, _, KH, KW = w_oihw.shape
    Ho, Wo = H - KH + 1, W - KW + 1
    Hp, Wp = Ho // 2, Wo // 2
    K = Cin * KH * KW
    M = Hp * Wp
    NM = N * M                                    # batch folded into the M axis

    patches = _extract_patches(x_nhwc, KH, KW)    # (N, Ho, Wo, K)
    # Pool-window offsets concatenated along rows -> one matmul in the kernel.
    x4 = jnp.concatenate(
        [patches[:, dh:2 * Hp:2, dw:2 * Wp:2, :].reshape(NM, K)
         for dh in (0, 1) for dw in (0, 1)],
        axis=0)                                   # (4*NM, K)
    # (Cout,Cin,KH,KW) -> (KH,KW,Cin,Cout) -> (K,Cout), matching patch order.
    w_mat = jnp.transpose(w_oihw, (2, 3, 1, 0)).reshape(K, Cout)
    b2 = b.reshape(1, Cout)

    pooled = pl.pallas_call(
        _conv_relu_pool_kernel,
        out_shape=jax.ShapeDtypeStruct((NM, Cout), jnp.float32),
        grid=(1,),
        in_specs=[
            pl.BlockSpec((4 * NM, K), lambda i: (0, 0)),
            pl.BlockSpec((K, Cout), lambda i: (0, 0)),
            pl.BlockSpec((1, Cout), lambda i: (0, 0)),
        ],
        out_specs=pl.BlockSpec((NM, Cout), lambda i: (0, 0)),
        compiler_params=pltpu.CompilerParams(
            dimension_semantics=("arbitrary",)),
    )(x4, w_mat, b2)

    return pooled.reshape(N, Hp, Wp, Cout)        # NHWC


def linear_relu(x, w_t, b, *, tn=FC1_TN):
    """y = relu(x @ w_t + b), with w_t already transposed to (K, N).

    The weight streams as lane-dense (K, tn) column tiles; the ragged final
    tile uses Pallas boundary masking (garbage feeds only dropped columns).
    """
    B, K = x.shape
    N = w_t.shape[1]
    b2 = b.reshape(1, N)
    grid_n = pl.cdiv(N, tn)
    return pl.pallas_call(
        _linear_relu_kernel,
        out_shape=jax.ShapeDtypeStruct((B, N), jnp.float32),
        grid=(grid_n,),
        in_specs=[
            pl.BlockSpec((B, K), lambda j: (0, 0)),
            pl.BlockSpec((K, tn), lambda j: (0, j)),
            pl.BlockSpec((1, tn), lambda j: (0, j)),
        ],
        out_specs=pl.BlockSpec((B, tn), lambda j: (0, j)),
        compiler_params=pltpu.CompilerParams(
            dimension_semantics=("parallel",),
            vmem_limit_bytes=32 * 1024 * 1024),
    )(x, w_t, b2)


def fc2_fc3(x, w2_t, b2, w3_t, b3):
    """Fused fc2 (Linear(120,84)+ReLU) + fc3 (Linear(84,num_out)) in one call."""
    B, K2 = x.shape
    H = w2_t.shape[1]
    O = w3_t.shape[1]
    return pl.pallas_call(
        _fc2_fc3_kernel,
        out_shape=(jax.ShapeDtypeStruct((B, H), jnp.float32),
                   jax.ShapeDtypeStruct((B, O), jnp.float32)),
        grid=(1,),
        in_specs=[
            pl.BlockSpec((B, K2), lambda i: (0, 0)),
            pl.BlockSpec(w2_t.shape, lambda i: (0, 0)),
            pl.BlockSpec((1, H), lambda i: (0, 0)),
            pl.BlockSpec(w3_t.shape, lambda i: (0, 0)),
            pl.BlockSpec((1, O), lambda i: (0, 0)),
        ],
        out_specs=(pl.BlockSpec((B, H), lambda i: (0, 0)),
                   pl.BlockSpec((B, O), lambda i: (0, 0))),
        compiler_params=pltpu.CompilerParams(
            dimension_semantics=("arbitrary",)),
    )(x, w2_t, b2.reshape(1, H), w3_t, b3.reshape(1, O))


@jax.jit
def run_model(prep, x_img_nchw, x_fc1, x_fc2):
    x_nhwc = jnp.transpose(x_img_nchw, (0, 2, 3, 1))          # NCHW -> NHWC once
    h1_nhwc = conv_relu_pool(x_nhwc, prep["conv1_w"], prep["conv1_b"])
    h2_nhwc = conv_relu_pool(h1_nhwc, prep["conv2_w"], prep["conv2_b"])
    h1 = jnp.transpose(h1_nhwc, (0, 3, 1, 2))                 # NCHW at boundary
    h2 = jnp.transpose(h2_nhwc, (0, 3, 1, 2))
    flat = h2.reshape(h2.shape[0], -1)                        # torch flatten order
    # TODO(synk): fc chain cannot be wired to `flat` — see module-level note.
    y1 = linear_relu(x_fc1, prep["fc1_w_t"], prep["fc1_b"])
    y2, y3 = fc2_fc3(x_fc2, prep["fc2_w_t"], prep["fc2_b"],
                     prep["fc3_w_t"], prep["fc3_b"])
    return h1, h2, flat, y1, y2, y3


# --------------------------- parameters / reference --------------------------

def init_params(key, num_out):
    ks = jax.random.split(key, 10)
    s = 0.05
    return {
        "conv1_w": jax.random.normal(ks[0], (6, 3, 5, 5), jnp.float32) * s,
        "conv1_b": jax.random.normal(ks[1], (6,), jnp.float32) * s,
        "conv2_w": jax.random.normal(ks[2], (16, 6, 5, 5), jnp.float32) * s,
        "conv2_b": jax.random.normal(ks[3], (16,), jnp.float32) * s,
        "fc1_w": jax.random.normal(ks[4], (138384, 25), jnp.float32) * s,
        "fc1_b": jax.random.normal(ks[5], (138384,), jnp.float32) * s,
        "fc2_w": jax.random.normal(ks[6], (84, 120), jnp.float32) * s,
        "fc2_b": jax.random.normal(ks[7], (84,), jnp.float32) * s,
        "fc3_w": jax.random.normal(ks[8], (num_out, 84), jnp.float32) * s,
        "fc3_b": jax.random.normal(ks[9], (84,), jnp.float32) * 0 + jax.random.normal(ks[9], (num_out,), jnp.float32) * s
        if False else jax.random.normal(ks[9], (num_out,), jnp.float32) * s,
    }


def prepare_params(params):
    """One-time (outside the hot path) layout prep: fc weights -> (in, out)."""
    prep = {
        "conv1_w": params["conv1_w"], "conv1_b": params["conv1_b"],
        "conv2_w": params["conv2_w"], "conv2_b": params["conv2_b"],
        "fc1_w_t": jnp.asarray(params["fc1_w"].T),   # (25, 138384) lane-dense
        "fc1_b": params["fc1_b"],
        "fc2_w_t": jnp.asarray(params["fc2_w"].T),   # (120, 84)
        "fc2_b": params["fc2_b"],
        "fc3_w_t": jnp.asarray(params["fc3_w"].T),   # (84, num_out)
        "fc3_b": params["fc3_b"],
    }
    return jax.block_until_ready(prep)


def _ref_conv_relu_pool(x_nchw, w, b):
    y = jax.lax.conv_general_dilated(
        x_nchw, w, window_strides=(1, 1), padding="VALID",
        dimension_numbers=("NCHW", "OIHW", "NCHW"),
        precision=jax.lax.Precision.HIGHEST)
    y = jnp.maximum(y + b[None, :, None, None], 0.0)
    return jax.lax.reduce_window(y, -jnp.inf, jax.lax.max,
                                 (1, 1, 2, 2), (1, 1, 2, 2), "VALID")


def _ref_linear(x, w, b, relu):
    y = jnp.dot(x, w.T, precision=jax.lax.Precision.HIGHEST) + b
    return jnp.maximum(y, 0.0) if relu else y


# ------------------------------------ main -----------------------------------

if __name__ == "__main__":
    num_out = 10
    root = jax.random.PRNGKey(0)
    kp, kx, kf1, kf2 = jax.random.split(root, 4)
    params = init_params(kp, num_out)
    prep = prepare_params(params)

    # NCHW input (classic LeNet spatial size, batch=2, 3 channels).
    x = jax.random.normal(kx, (2, 3, 32, 32), jnp.float32)
    x_fc1 = jax.random.normal(kf1, (2, 25), jnp.float32)
    x_fc2 = jax.random.normal(kf2, (2, 120), jnp.float32)

    outs = run_model(prep, x, x_fc1, x_fc2)
    h1, h2, flat, y1, y2, y3 = jax.block_until_ready(outs)

    # Correctness checks against pure-JAX references.
    ref_h1 = _ref_conv_relu_pool(x, params["conv1_w"], params["conv1_b"])
    ref_h2 = _ref_conv_relu_pool(ref_h1, params["conv2_w"], params["conv2_b"])
    ref_y1 = _ref_linear(x_fc1, params["fc1_w"], params["fc1_b"], True)
    ref_y2 = _ref_linear(x_fc2, params["fc2_w"], params["fc2_b"], True)
    ref_y3 = _ref_linear(ref_y2, params["fc3_w"], params["fc3_b"], False)

    assert jnp.allclose(h1, ref_h1, atol=1e-2, rtol=1e-2), "conv1 mismatch"
    assert jnp.allclose(h2, ref_h2, atol=1e-2, rtol=1e-2), "conv2 mismatch"
    assert flat.shape == (2, 400), "flatten shape mismatch"
    assert jnp.allclose(y1, ref_y1, atol=1e-2, rtol=1e-2), "fc1 mismatch"
    assert jnp.allclose(y2, ref_y2, atol=1e-2, rtol=1e-2), "fc2 mismatch"
    assert jnp.allclose(y3, ref_y3, atol=1e-2, rtol=1e-2), "fc3 mismatch"

    print("KERNEL_OK")
</pallas_src>

<mosaic_0001>
module attributes {stable_mosaic.version = 11 : i64} {
  func.func @_conv_relu_pool_kernel(%arg0: i32, %arg1: memref<1568x75xf32, #tpu.memory_space<vmem>>, %arg2: memref<75x6xf32, #tpu.memory_space<vmem>>, %arg3: memref<1x6xf32, #tpu.memory_space<vmem>>, %arg4: memref<392x6xf32, #tpu.memory_space<vmem>>) attributes {dimension_semantics = [#tpu.dimension_semantics<arbitrary>], iteration_bounds = array<i64: 1>, scalar_prefetch = 0 : i64, scratch_operands = 0 : i64, tpu.core_type = #tpu.core_type<tc>, window_params = [{pipeline_mode = #tpu.pipeline_mode<synchronous>, transform_indices = @transform_0, window_bounds = array<i64: 1568, 75>}, {pipeline_mode = #tpu.pipeline_mode<synchronous>, transform_indices = @transform_1, window_bounds = array<i64: 75, 6>}, {pipeline_mode = #tpu.pipeline_mode<synchronous>, transform_indices = @transform_2, window_bounds = array<i64: 1, 6>}, {pipeline_mode = #tpu.pipeline_mode<synchronous>, transform_indices = @transform_3, window_bounds = array<i64: 392, 6>}]} {
    %c0 = arith.constant 0 : index
    %c0_0 = arith.constant 0 : index
    %0 = vector.load %arg1[%c0, %c0_0] : memref<1568x75xf32, #tpu.memory_space<vmem>>, vector<1568x75xf32>
    %c0_1 = arith.constant 0 : index
    %c0_2 = arith.constant 0 : index
    %1 = vector.load %arg2[%c0_1, %c0_2] : memref<75x6xf32, #tpu.memory_space<vmem>>, vector<75x6xf32>
    %cst = arith.constant dense<0.000000e+00> : vector<1568x6xf32>
    %2 = tpu.matmul %0, %1, %cst {dimension_numbers = #tpu.dot_dimension_numbers<[1], [0], [0], [1], [0, 0, 1, 1], [], []>} : vector<1568x75xf32>, vector<75x6xf32>, vector<1568x6xf32> -> vector<1568x6xf32>
    %3 = vector.extract_strided_slice %2 {offsets = [0, 0], sizes = [392, 6], strides = [1, 1]} : vector<1568x6xf32> to vector<392x6xf32>
    %4 = vector.extract_strided_slice %2 {offsets = [392, 0], sizes = [392, 6], strides = [1, 1]} : vector<1568x6xf32> to vector<392x6xf32>
    %5 = arith.maximumf %3, %4 : vector<392x6xf32>
    %6 = vector.extract_strided_slice %2 {offsets = [784, 0], sizes = [392, 6], strides = [1, 1]} : vector<1568x6xf32> to vector<392x6xf32>
    %7 = vector.extract_strided_slice %2 {offsets = [1176, 0], sizes = [392, 6], strides = [1, 1]} : vector<1568x6xf32> to vector<392x6xf32>
    %8 = arith.maximumf %6, %7 : vector<392x6xf32>
    %9 = arith.maximumf %5, %8 : vector<392x6xf32>
    %c0_3 = arith.constant 0 : index
    %c0_4 = arith.constant 0 : index
    %10 = vector.load %arg3[%c0_3, %c0_4] : memref<1x6xf32, #tpu.memory_space<vmem>>, vector<1x6xf32>
    %11 = vector.broadcast %10 : vector<1x6xf32> to vector<392x6xf32>
    %12 = arith.addf %9, %11 : vector<392x6xf32>
    %cst_5 = arith.constant 0.000000e+00 : f32
    %13 = vector.broadcast %cst_5 : f32 to vector<392x6xf32>
    %14 = arith.maximumf %12, %13 : vector<392x6xf32>
    %c0_6 = arith.constant 0 : index
    %c0_7 = arith.constant 0 : index
    %15 = vector.load %arg4[%c0_6, %c0_7] : memref<392x6xf32, #tpu.memory_space<vmem>>, vector<392x6xf32>
    tpu.vector_store %arg4[%c0_6, %c0_7], %14 {strides = array<i32>} : memref<392x6xf32, #tpu.memory_space<vmem>>, vector<392x6xf32>,
    return
  }
  func.func @transform_0(%arg0: i32) -> (i32, i32) {
    %c0_i32 = arith.constant 0 : i32
    %c0_i32_0 = arith.constant 0 : i32
    %c0_i32_1 = arith.constant 0 : i32
    return %c0_i32, %c0_i32_0 : i32, i32
  }
  func.func @transform_1(%arg0: i32) -> (i32, i32) {
    %c0_i32 = arith.constant 0 : i32
    %c0_i32_0 = arith.constant 0 : i32
    %c0_i32_1 = arith.constant 0 : i32
    return %c0_i32, %c0_i32_0 : i32, i32
  }
  func.func @transform_2(%arg0: i32) -> (i32, i32) {
    %c0_i32 = arith.constant 0 : i32
    %c0_i32_0 = arith.constant 0 : i32
    %c0_i32_1 = arith.constant 0 : i32
    return %c0_i32, %c0_i32_0 : i32, i32
  }
  func.func @transform_3(%arg0: i32) -> (i32, i32) {
    %c0_i32 = arith.constant 0 : i32
    %c0_i32_0 = arith.constant 0 : i32
    %c0_i32_1 = arith.constant 0 : i32
    return %c0_i32, %c0_i32_0 : i32, i32
  }
}

module attributes {stable_mosaic.version = 11 : i64} {
  func.func @_conv_relu_pool_kernel(%arg0: i32, %arg1: memref<200x150xf32, #tpu.memory_space<vmem>>, %arg2: memref<150x16xf32, #tpu.memory_space<vmem>>, %arg3: memref<1x16xf32, #tpu.memory_space<vmem>>, %arg4: memref<50x16xf32, #tpu.memory_space<vmem>>) attributes {dimension_semantics = [#tpu.dimension_semantics<arbitrary>], iteration_bounds = array<i64: 1>, scalar_prefetch = 0 : i64, scratch_operands = 0 : i64, tpu.core_type = #tpu.core_type<tc>, window_params = [{pipeline_mode = #tpu.pipeline_mode<synchronous>, transform_indices = @transform_0, window_bounds = array<i64: 200, 150>}, {pipeline_mode = #tpu.pipeline_mode<synchronous>, transform_indices = @transform_1, window_bounds = array<i64: 150, 16>}, {pipeline_mode = #tpu.pipeline_mode<synchronous>, transform_indices = @transform_2, window_bounds = array<i64: 1, 16>}, {pipeline_mode = #tpu.pipeline_mode<synchronous>, transform_indices = @transform_3, window_bounds = array<i64: 50, 16>}]} {
    %c0 = arith.constant 0 : index
    %c0_0 = arith.constant 0 : index
    %0 = vector.load %arg1[%c0, %c0_0] : memref<200x150xf32, #tpu.memory_space<vmem>>, vector<200x150xf32>
    %c0_1 = arith.constant 0 : index
    %c0_2 = arith.constant 0 : index
    %1 = vector.load %arg2[%c0_1, %c0_2] : memref<150x16xf32, #tpu.memory_space<vmem>>, vector<150x16xf32>
    %cst = arith.constant dense<0.000000e+00> : vector<200x16xf32>
    %2 = tpu.matmul %0, %1, %cst {dimension_numbers = #tpu.dot_dimension_numbers<[1], [0], [0], [1], [0, 0, 1, 1], [], []>} : vector<200x150xf32>, vector<150x16xf32>, vector<200x16xf32> -> vector<200x16xf32>
    %3 = vector.extract_strided_slice %2 {offsets = [0, 0], sizes = [50, 16], strides = [1, 1]} : vector<200x16xf32> to vector<50x16xf32>
    %4 = vector.extract_strided_slice %2 {offsets = [50, 0], sizes = [50, 16], strides = [1, 1]} : vector<200x16xf32> to vector<50x16xf32>
    %5 = arith.maximumf %3, %4 : vector<50x16xf32>
    %6 = vector.extract_strided_slice %2 {offsets = [100, 0], sizes = [50, 16], strides = [1, 1]} : vector<200x16xf32> to vector<50x16xf32>
    %7 = vector.extract_strided_slice %2 {offsets = [150, 0], sizes = [50, 16], strides = [1, 1]} : vector<200x16xf32> to vector<50x16xf32>
    %8 = arith.maximumf %6, %7 : vector<50x16xf32>
    %9 = arith.maximumf %5, %8 : vector<50x16xf32>
    %c0_3 = arith.constant 0 : index
    %c0_4 = arith.constant 0 : index
    %10 = vector.load %arg3[%c0_3, %c0_4] : memref<1x16xf32, #tpu.memory_space<vmem>>, vector<1x16xf32>
    %11 = vector.broadcast %10 : vector<1x16xf32> to vector<50x16xf32>
    %12 = arith.addf %9, %11 : vector<50x16xf32>
    %cst_5 = arith.constant 0.000000e+00 : f32
    %13 = vector.broadcast %cst_5 : f32 to vector<50x16xf32>
    %14 = arith.maximumf %12, %13 : vector<50x16xf32>
    %c0_6 = arith.constant 0 : index
    %c0_7 = arith.constant 0 : index
    %15 = vector.load %arg4[%c0_6, %c0_7] : memref<50x16xf32, #tpu.memory_space<vmem>>, vector<50x16xf32>
    tpu.vector_store %arg4[%c0_6, %c0_7], %14 {strides = array<i32>} : memref<50x16xf32, #tpu.memory_space<vmem>>, vector<50x16xf32>,
    return
  }
  func.func @transform_0(%arg0: i32) -> (i32, i32) {
    %c0_i32 = arith.constant 0 : i32
    %c0_i32_0 = arith.constant 0 : i32
    %c0_i32_1 = arith.constant 0 : i32
    return %c0_i32, %c0_i32_0 : i32, i32
  }
  func.func @transform_1(%arg0: i32) -> (i32, i32) {
    %c0_i32 = arith.constant 0 : i32
    %c0_i32_0 = arith.constant 0 : i32
    %c0_i32_1 = arith.constant 0 : i32
    return %c0_i32, %c0_i32_0 : i32, i32
  }
  func.func @transform_2(%arg0: i32) -> (i32, i32) {
    %c0_i32 = arith.constant 0 : i32
    %c0_i32_0 = arith.constant 0 : i32
    %c0_i32_1 = arith.constant 0 : i32
    return %c0_i32, %c0_i32_0 : i32, i32
  }
  func.func @transform_3(%arg0: i32) -> (i32, i32) {
    %c0_i32 = arith.constant 0 : i32
    %c0_i32_0 = arith.constant 0 : i32
    %c0_i32_1 = arith.constant 0 : i32
    return %c0_i32, %c0_i32_0 : i32, i32
  }
}

module attributes {stable_mosaic.version = 11 : i64} {
  func.func @_fc2_fc3_kernel(%arg0: i32, %arg1: memref<2x120xf32, #tpu.memory_space<vmem>>, %arg2: memref<120x84xf32, #tpu.memory_space<vmem>>, %arg3: memref<1x84xf32, #tpu.memory_space<vmem>>, %arg4: memref<84x10xf32, #tpu.memory_space<vmem>>, %arg5: memref<1x10xf32, #tpu.memory_space<vmem>>, %arg6: memref<2x84xf32, #tpu.memory_space<vmem>>, %arg7: memref<2x10xf32, #tpu.memory_space<vmem>>) attributes {dimension_semantics = [#tpu.dimension_semantics<arbitrary>], iteration_bounds = array<i64: 1>, scalar_prefetch = 0 : i64, scratch_operands = 0 : i64, tpu.core_type = #tpu.core_type<tc>, window_params = [{pipeline_mode = #tpu.pipeline_mode<synchronous>, transform_indices = @transform_0, window_bounds = array<i64: 2, 120>}, {pipeline_mode = #tpu.pipeline_mode<synchronous>, transform_indices = @transform_1, window_bounds = array<i64: 120, 84>}, {pipeline_mode = #tpu.pipeline_mode<synchronous>, transform_indices = @transform_2, window_bounds = array<i64: 1, 84>}, {pipeline_mode = #tpu.pipeline_mode<synchronous>, transform_indices = @transform_3, window_bounds = array<i64: 84, 10>}, {pipeline_mode = #tpu.pipeline_mode<synchronous>, transform_indices = @transform_4, window_bounds = array<i64: 1, 10>}, {pipeline_mode = #tpu.pipeline_mode<synchronous>, transform_indices = @transform_5, window_bounds = array<i64: 2, 84>}, {pipeline_mode = #tpu.pipeline_mode<synchronous>, transform_indices = @transform_6, window_bounds = array<i64: 2, 10>}]} {
    %c0 = arith.constant 0 : index
    %c0_0 = arith.constant 0 : index
    %0 = vector.load %arg1[%c0, %c0_0] : memref<2x120xf32, #tpu.memory_space<vmem>>, vector<2x120xf32>
    %c0_1 = arith.constant 0 : index
    %c0_2 = arith.constant 0 : index
    %1 = vector.load %arg2[%c0_1, %c0_2] : memref<120x84xf32, #tpu.memory_space<vmem>>, vector<120x84xf32>
    %cst = arith.constant dense<0.000000e+00> : vector<2x84xf32>
    %2 = tpu.matmul %0, %1, %cst {dimension_numbers = #tpu.dot_dimension_numbers<[1], [0], [0], [1], [0, 0, 1, 1], [], []>} : vector<2x120xf32>, vector<120x84xf32>, vector<2x84xf32> -> vector<2x84xf32>
    %c0_3 = arith.constant 0 : index
    %c0_4 = arith.constant 0 : index
    %3 = vector.load %arg3[%c0_3, %c0_4] : memref<1x84xf32, #tpu.memory_space<vmem>>, vector<1x84xf32>
    %4 = vector.broadcast %3 : vector<1x84xf32> to vector<2x84xf32>
    %5 = arith.addf %2, %4 : vector<2x84xf32>
    %cst_5 = arith.constant 0.000000e+00 : f32
    %6 = vector.broadcast %cst_5 : f32 to vector<2x84xf32>
    %7 = arith.maximumf %5, %6 : vector<2x84xf32>
    %c0_6 = arith.constant 0 : index
    %c0_7 = arith.constant 0 : index
    %8 = vector.load %arg6[%c0_6, %c0_7] : memref<2x84xf32, #tpu.memory_space<vmem>>, vector<2x84xf32>
    tpu.vector_store %arg6[%c0_6, %c0_7], %7 {strides = array<i32>} : memref<2x84xf32, #tpu.memory_space<vmem>>, vector<2x84xf32>,
    %c0_8 = arith.constant 0 : index
    %c0_9 = arith.constant 0 : index
    %9 = vector.load %arg4[%c0_8, %c0_9] : memref<84x10xf32, #tpu.memory_space<vmem>>, vector<84x10xf32>
    %cst_10 = arith.constant dense<0.000000e+00> : vector<2x10xf32>
    %10 = tpu.matmul %7, %9, %cst_10 {dimension_numbers = #tpu.dot_dimension_numbers<[1], [0], [0], [1], [0, 0, 1, 1], [], []>} : vector<2x84xf32>, vector<84x10xf32>, vector<2x10xf32> -> vector<2x10xf32>
    %c0_11 = arith.constant 0 : index
    %c0_12 = arith.constant 0 : index
    %11 = vector.load %arg5[%c0_11, %c0_12] : memref<1x10xf32, #tpu.memory_space<vmem>>, vector<1x10xf32>
    %12 = vector.broadcast %11 : vector<1x10xf32> to vector<2x10xf32>
    %13 = arith.addf %10, %12 : vector<2x10xf32>
    %c0_13 = arith.constant 0 : index
    %c0_14 = arith.constant 0 : index
    %14 = vector.load %arg7[%c0_13, %c0_14] : memref<2x10xf32, #tpu.memory_space<vmem>>, vector<2x10xf32>
    tpu.vector_store %arg7[%c0_13, %c0_14], %13 {strides = array<i32>} : memref<2x10xf32, #tpu.memory_space<vmem>>, vector<2x10xf32>,
    return
  }
  func.func @transform_0(%arg0: i32) -> (i32, i32) {
    %c0_i32 = arith.constant 0 : i32
    %c0_i32_0 = arith.constant 0 : i32
    %c0_i32_1 = arith.constant 0 : i32
    return %c0_i32, %c0_i32_0 : i32, i32
  }
  func.func @transform_1(%arg0: i32) -> (i32, i32) {
    %c0_i32 = arith.constant 0 : i32
    %c0_i32_0 = arith.constant 0 : i32
    %c0_i32_1 = arith.constant 0 : i32
    return %c0_i32, %c0_i32_0 : i32, i32
  }
  func.func @transform_2(%arg0: i32) -> (i32, i32) {
    %c0_i32 = arith.constant 0 : i32
    %c0_i32_0 = arith.constant 0 : i32
    %c0_i32_1 = arith.constant 0 : i32
    return %c0_i32, %c0_i32_0 : i32, i32
  }
  func.func @transform_3(%arg0: i32) -> (i32, i32) {
    %c0_i32 = arith.constant 0 : i32
    %c0_i32_0 = arith.constant 0 : i32
    %c0_i32_1 = arith.constant 0 : i32
    return %c0_i32, %c0_i32_0 : i32, i32
  }
  func.func @transform_4(%arg0: i32) -> (i32, i32) {
    %c0_i32 = arith.constant 0 : i32
    %c0_i32_0 = arith.constant 0 : i32
    %c0_i32_1 = arith.constant 0 : i32
    return %c0_i32, %c0_i32_0 : i32, i32
  }
  func.func @transform_5(%arg0: i32) -> (i32, i32) {
    %c0_i32 = arith.constant 0 : i32
    %c0_i32_0 = arith.constant 0 : i32
    %c0_i32_1 = arith.constant 0 : i32
    return %c0_i32, %c0_i32_0 : i32, i32
  }
  func.func @transform_6(%arg0: i32) -> (i32, i32) {
    %c0_i32 = arith.constant 0 : i32
    %c0_i32_0 = arith.constant 0 : i32
    %c0_i32_1 = arith.constant 0 : i32
    return %c0_i32, %c0_i32_0 : i32, i32
  }
}

module attributes {stable_mosaic.version = 11 : i64} {
  func.func @_linear_relu_kernel(%arg0: i32, %arg1: memref<2x25xf32, #tpu.memory_space<vmem>>, %arg2: memref<25x34688xf32, #tpu.memory_space<vmem>>, %arg3: memref<1x34688xf32, #tpu.memory_space<vmem>>, %arg4: memref<2x34688xf32, #tpu.memory_space<vmem>>) attributes {dimension_semantics = [#tpu.dimension_semantics<parallel>], iteration_bounds = array<i64: 4>, scalar_prefetch = 0 : i64, scratch_operands = 0 : i64, tpu.core_type = #tpu.core_type<tc>, window_params = [{pipeline_mode = #tpu.pipeline_mode<synchronous>, transform_indices = @transform_0, window_bounds = array<i64: 2, 25>}, {transform_indices = @transform_1, window_bounds = array<i64: 25, 34688>}, {transform_indices = @transform_2, window_bounds = array<i64: 1, 34688>}, {transform_indices = @transform_3, window_bounds = array<i64: 2, 34688>}]} {
    %c0 = arith.constant 0 : index
    %c0_0 = arith.constant 0 : index
    %0 = vector.load %arg1[%c0, %c0_0] : memref<2x25xf32, #tpu.memory_space<vmem>>, vector<2x25xf32>
    %c0_1 = arith.constant 0 : index
    %c0_2 = arith.constant 0 : index
    %1 = vector.load %arg2[%c0_1, %c0_2] : memref<25x34688xf32, #tpu.memory_space<vmem>>, vector<25x34688xf32>
    %cst = arith.constant dense<0.000000e+00> : vector<2x34688xf32>
    %2 = tpu.matmul %0, %1, %cst {dimension_numbers = #tpu.dot_dimension_numbers<[1], [0], [0], [1], [0, 0, 1, 1], [], []>} : vector<2x25xf32>, vector<25x34688xf32>, vector<2x34688xf32> -> vector<2x34688xf32>
    %c0_3 = arith.constant 0 : index
    %c0_4 = arith.constant 0 : index
    %3 = vector.load %arg3[%c0_3, %c0_4] : memref<1x34688xf32, #tpu.memory_space<vmem>>, vector<1x34688xf32>
    %4 = vector.broadcast %3 : vector<1x34688xf32> to vector<2x34688xf32>
    %5 = arith.addf %2, %4 : vector<2x34688xf32>
    %cst_5 = arith.constant 0.000000e+00 : f32
    %6 = vector.broadcast %cst_5 : f32 to vector<2x34688xf32>
    %7 = arith.maximumf %5, %6 : vector<2x34688xf32>
    %c0_6 = arith.constant 0 : index
    %c0_7 = arith.constant 0 : index
    %8 = vector.load %arg4[%c0_6, %c0_7] : memref<2x34688xf32, #tpu.memory_space<vmem>>, vector<2x34688xf32>
    tpu.vector_store %arg4[%c0_6, %c0_7], %7 {strides = array<i32>} : memref<2x34688xf32, #tpu.memory_space<vmem>>, vector<2x34688xf32>,
    return
  }
  func.func @transform_0(%arg0: i32) -> (i32, i32) {
    %c0_i32 = arith.constant 0 : i32
    %c0_i32_0 = arith.constant 0 : i32
    %c0_i32_1 = arith.constant 0 : i32
    return %c0_i32, %c0_i32_0 : i32, i32
  }
  func.func @transform_1(%arg0: i32) -> (i32, i32) {
    %c0_i32 = arith.constant 0 : i32
    %c0_i32_0 = arith.constant 0 : i32
    return %c0_i32, %arg0 : i32, i32
  }
  func.func @transform_2(%arg0: i32) -> (i32, i32) {
    %c0_i32 = arith.constant 0 : i32
    %c0_i32_0 = arith.constant 0 : i32
    return %c0_i32, %arg0 : i32, i32
  }
  func.func @transform_3(%arg0: i32) -> (i32, i32) {
    %c0_i32 = arith.constant 0 : i32
    %c0_i32_0 = arith.constant 0 : i32
    return %c0_i32, %arg0 : i32, i32
  }
}

</mosaic_0001>

<bundles_post_ra>
// kernel: run_model.4
= control target key start
LH: loop header
LB: loop body
LE: loop exit
PB: predicated region body
PF: predicated region fallthrough
CT: control target
= control target key end

     0   :  { %vm220_vm0 = vcmask 613376   ;;  %vm809_vm1 = vcmask 1042432   ;;  %vm2915_vm2 = vmmov 1   ;;  %vm2110_vm4 = vcmask 48128   ;;  %s4294_s1 = inlined_call_operand.vmem [shape: f32[75,6], index: 1, kind: input, shape index: {}]   ;;  %s4295_s0 = inlined_call_operand.vmem [shape: f32[1568,75], index: 0, kind: input, shape index: {}]   ;;  %s4296_s2 = inlined_call_operand.vmem [shape: f32[1,6], index: 2, kind: input, shape index: {}]   ;;  %s4297_s3 = inlined_call_operand.vmem [shape: f32[392,6], index: 3, kind: output, shape index: {}]  }
   0x1   :  { %v210_v0 = vld [vmem:[%s4294_s1] sm:$0xff]  ;;  %v211_v1 = vld [vmem:[%s4294_s1 + $0x8] sm:$0xff]  ;;  %v212_v2 = vld [vmem:[%s4294_s1 + $0x10] sm:$0xff] }
   0x2   :  { %v2882_v3 = vpack.c.bf16 %v211_v1, %v210_v0  ;;  %v213_v4 = vld [vmem:[%s4294_s1 + $0x18] sm:$0xff]  ;;  %v214_v6 = vld [vmem:[%s4294_s1 + $0x20] sm:$0xff]  ;;  %v215_v7 = vld [vmem:[%s4294_s1 + $0x28] sm:$0xff] }
   0x3   :  { %v2886_v5 = vpack.c.bf16 %v213_v4, %v212_v2  ;;  %v14_v8 = vld [vmem:[%s4295_s0] sm:$0xff]  ;;  %v112_v9 = vld [vmem:[%s4295_s0 + $0x310] sm:$0xff]  ;;  %v2890_v10 = vpack.c.bf16 %v215_v7, %v214_v6  ;;  %v217_v12 = vld [vmem:[%s4294_s1 + $0x38] sm:$0xff] }
   0x4   :  { %2883 = vmatprep.subr.bf16.mxu0 %v2882_v3  ;;  %2904 = vmatprep.subr.bf16.mxu1 %v2882_v3  ;;  %v216_v11 = vld [vmem:[%s4294_s1 + $0x30] sm:$0xff]  ;;  %v218_v14 = vld [vmem:[%s4294_s1 + $0x40] sm:$0xff]  ;;  %v219_v15 = vld [vmem:[%s4294_s1 + $0x48] sm:$0x7] }
   0x5   :  { %2885 = vmatpush3.bf16.msra.mxu0 %v2882_v3  ;;  %2909 = vmatpush3.bf16.msra.mxu1 %v2882_v3  ;;  %v2894_v13 = vpack.c.bf16 %v217_v12, %v216_v11  ;;  %v2898_v16 = vpack.c.bf16 %v219_v15, %v218_v14  ;;  %vm2899_vm3 = vmpackc.low %vm809_vm1, %vm2915_vm2  ;;  %v15_v17 = vld [vmem:[%s4295_s0 + $0x8] sm:$0xff]  ;;  %v113_v18 = vld [vmem:[%s4295_s0 + $0x318] sm:$0xff] }
   0x6   :  { %2887 = vmatprep.subr.bf16.mxu0 %v2886_v5  ;;  %2905 = vmatprep.subr.bf16.mxu1 %v2886_v5  ;;  %v16_v19 = vld [vmem:[%s4295_s0 + $0x10] sm:$0xff]  ;;  %v114_v20 = vld [vmem:[%s4295_s0 + $0x320] sm:$0xff]  ;;  %v17_v21 = vld [vmem:[%s4295_s0 + $0x18] sm:$0xff] }
   0x7   :  { %2588 = vmatprep.mubr.msk.f32.mxu0 %vm220_vm0, %v14_v8  ;;  %2735 = vmatprep.mubr.msk.f32.mxu1 %vm220_vm0, %v112_v9  ;;  %v115_v22 = vld [vmem:[%s4295_s0 + $0x328] sm:$0xff]  ;;  %v18_v23 = vld [vmem:[%s4295_s0 + $0x20] sm:$0xff]  ;;  %v116_v24 = vld [vmem:[%s4295_s0 + $0x330] sm:$0xff] }
   0x8   :  { %v19_v25 = vld [vmem:[%s4295_s0 + $0x28] sm:$0xff]  ;;  %v117_v26 = vld [vmem:[%s4295_s0 + $0x338] sm:$0xff]  ;;  %v20_v27 = vld [vmem:[%s4295_s0 + $0x30] sm:$0xff] }
   0x9   :  { %2889 = vmatpush3.bf16.msra.mxu0 %v2886_v5  ;;  %2910 = vmatpush3.bf16.msra.mxu1 %v2886_v5  ;;  %v118_v28 = vld [vmem:[%s4295_s0 + $0x340] sm:$0xff]  ;;  %v21_v29 = vld [vmem:[%s4295_s0 + $0x38] sm:$0xff]  ;;  %v119_v30 = vld [vmem:[%s4295_s0 + $0x348] sm:$0xff] }
   0xa   :  { %2891 = vmatprep.subr.bf16.mxu0 %v2890_v10  ;;  %2906 = vmatprep.subr.bf16.mxu1 %v2890_v10  ;;  %v22_v31 = vld [vmem:[%s4295_s0 + $0x40] sm:$0xff]  ;;  %v120_v32 = vld [vmem:[%s4295_s0 + $0x350] sm:$0xff]  ;;  %v23_v33 = vld [vmem:[%s4295_s0 + $0x48] sm:$0xff] }
   0xb   :  { %v121_v34 = vld [vmem:[%s4295_s0 + $0x358] sm:$0xff]  ;;  %v24_v35 = vld [vmem:[%s4295_s0 + $0x50] sm:$0xff]  ;;  %v122_v36 = vld [vmem:[%s4295_s0 + $0x360] sm:$0xff] }
   0xc   :  { %v25_v37 = vld [vmem:[%s4295_s0 + $0x58] sm:$0xff]  ;;  %v123_v38 = vld [vmem:[%s4295_s0 + $0x368] sm:$0xff]  ;;  %v26_v39 = vld [vmem:[%s4295_s0 + $0x60] sm:$0xff] }
   0xd   :  { %2893 = vmatpush3.bf16.msra.mxu0 %v2890_v10  ;;  %2911 = vmatpush3.bf16.msra.mxu1 %v2890_v10  ;;  %v124_v40 = vld [vmem:[%s4295_s0 + $0x370] sm:$0xff]  ;;  %v27_v41 = vld [vmem:[%s4295_s0 + $0x68] sm:$0xff]  ;;  %v125_v42 = vld [vmem:[%s4295_s0 + $0x378] sm:$0xff] }
   0xe   :  { %2895 = vmatprep.subr.bf16.mxu0 %v2894_v13  ;;  %2907 = vmatprep.subr.bf16.mxu1 %v2894_v13  ;;  %v28_v43 = vld [vmem:[%s4295_s0 + $0x70] sm:$0xff]  ;;  %v126_v44 = vld [vmem:[%s4295_s0 + $0x380] sm:$0xff]  ;;  %v29_v45 = vld [vmem:[%s4295_s0 + $0x78] sm:$0xff] }
   0xf   :  { %v127_v46 = vld [vmem:[%s4295_s0 + $0x388] sm:$0xff]  ;;  %v30_v47 = vld [vmem:[%s4295_s0 + $0x80] sm:$0xff]  ;;  %v128_v48 = vld [vmem:[%s4295_s0 + $0x390] sm:$0xff] }
  0x10   :  { %v31_v49 = vld [vmem:[%s4295_s0 + $0x88] sm:$0xff]  ;;  %v129_v50 = vld [vmem:[%s4295_s0 + $0x398] sm:$0xff]  ;;  %v32_v51 = vld [vmem:[%s4295_s0 + $0x90] sm:$0xff] }
  0x11   :  { %2897 = vmatpush3.bf16.msra.mxu0 %v2894_v13  ;;  %2912 = vmatpush3.bf16.msra.mxu1 %v2894_v13  ;;  %v130_v52 = vld [vmem:[%s4295_s0 + $0x3a0] sm:$0xff]  ;;  %v33_v53 = vld [vmem:[%s4295_s0 + $0x98] sm:$0xff]  ;;  %v131_v54 = vld [vmem:[%s4295_s0 + $0x3a8] sm:$0xff] }
  0x12   :  { %2900 = vmatprep.subr.msk.bf16.mxu0 %vm2899_vm3, %v2898_v16  ;;  %2908 = vmatprep.subr.msk.bf16.mxu1 %vm2899_vm3, %v2898_v16  ;;  %v34_v55 = vld [vmem:[%s4295_s0 + $0xa0] sm:$0xff]  ;;  %v132_v56 = vld [vmem:[%s4295_s0 + $0x3b0] sm:$0xff]  ;;  %v35_v57 = vld [vmem:[%s4295_s0 + $0xa8] sm:$0xff] }
  0x13   :  { %v133_v58 = vld [vmem:[%s4295_s0 + $0x3b8] sm:$0xff]  ;;  %v36_v59 = vld [vmem:[%s4295_s0 + $0xb0] sm:$0xff]  ;;  %v134_v60 = vld [vmem:[%s4295_s0 + $0x3c0] sm:$0xff] }
  0x14   :  { %v37_v61 = vld [vmem:[%s4295_s0 + $0xb8] sm:$0xff]  ;;  %v135_v62 = vld [vmem:[%s4295_s0 + $0x3c8] sm:$0xff]  ;;  %v38_v63 = vld [vmem:[%s4295_s0 + $0xc0] sm:$0xff] }
  0x15   :  { %2903 = vmatpush3.bf16.msk.msra.mxu0 %vm2899_vm3, %v2898_v16  ;;  %2913 = vmatpush3.bf16.msk.msra.mxu1 %vm2899_vm3, %v2898_v16  ;;  %v136_v0 = vld [vmem:[%s4295_s0 + $0x3d0] sm:$0xff]  ;;  %v39_v1 = vld [vmem:[%s4295_s0 + $0xc8] sm:$0xff]  ;;  %v137_v2 = vld [vmem:[%s4295_s0 + $0x3d8] sm:$0xff] }
  0x16   :  { %v40_v3 = vld [vmem:[%s4295_s0 + $0xd0] sm:$0xff]  ;;  %v138_v4 = vld [vmem:[%s4295_s0 + $0x3e0] sm:$0xff]  ;;  %v41_v5 = vld [vmem:[%s4295_s0 + $0xd8] sm:$0xff] }
  0x17   :  { %v139_v6 = vld [vmem:[%s4295_s0 + $0x3e8] sm:$0xff]  ;;  %v42_v7 = vld [vmem:[%s4295_s0 + $0xe0] sm:$0xff]  ;;  %v140_v8 = vld [vmem:[%s4295_s0 + $0x3f0] sm:$0xff] }
  0x18   :  { %2589 = vmatmul.mubr.msk.f32.vlgmr.msra.gmra.mrb[0].mxu0 %vm220_vm0, %v15_v17  ;;  %2736 = vmatmul.mubr.msk.f32.vlgmr.msra.gmra.mrb[0].mxu1 %vm220_vm0, %v113_v18  ;;  %v43_v9 = vld [vmem:[%s4295_s0 + $0xe8] sm:$0xff]  ;;  %v141_v10 = vld [vmem:[%s4295_s0 + $0x3f8] sm:$0xff]  ;;  %v44_v11 = vld [vmem:[%s4295_s0 + $0xf0] sm:$0xff] }
  0x19   :  { %2591 = vmatprep.mubr.msk.f32.mxu0 %vm220_vm0, %v16_v19  ;;  %2738 = vmatprep.mubr.msk.f32.mxu1 %vm220_vm0, %v114_v20  ;;  %v142_v12 = vld [vmem:[%s4295_s0 + $0x400] sm:$0xff]  ;;  %v45_v13 = vld [vmem:[%s4295_s0 + $0xf8] sm:$0xff]  ;;  %v143_v14 = vld [vmem:[%s4295_s0 + $0x408] sm:$0xff] }
  0x1a   :  { %v46_v15 = vld [vmem:[%s4295_s0 + $0x100] sm:$0xff]  ;;  %v144_v16 = vld [vmem:[%s4295_s0 + $0x410] sm:$0xff]  ;;  %v47_v17 = vld [vmem:[%s4295_s0 + $0x108] sm:$0xff] }
  0x1b   :  { %v145_v18 = vld [vmem:[%s4295_s0 + $0x418] sm:$0xff]  ;;  %v48_v19 = vld [vmem:[%s4295_s0 + $0x110] sm:$0xff]  ;;  %v146_v20 = vld [vmem:[%s4295_s0 + $0x420] sm:$0xff] }
  0x1c   :  { %2592 = vmatmul.mubr.msk.f32.gmra.mrb[2].mxu0 %vm220_vm0, %v17_v21  ;;  %2739 = vmatmul.mubr.msk.f32.gmra.mrb[2].mxu1 %vm220_vm0, %v115_v22  ;;  %v49_v21 = vld [vmem:[%s4295_s0 + $0x118] sm:$0xff]  ;;  %v147_v22 = vld [vmem:[%s4295_s0 + $0x428] sm:$0xff] }
  0x1d   :  { %2594 = vmatprep.mubr.msk.f32.mxu0 %vm220_vm0, %v18_v23  ;;  %2741 = vmatprep.mubr.msk.f32.mxu1 %vm220_vm0, %v116_v24  ;;  %v50_v23 = vld [vmem:[%s4295_s0 + $0x120] sm:$0xff]  ;;  %v148_v24 = vld [vmem:[%s4295_s0 + $0x430] sm:$0xff] }
  0x20   :  { %2595 = vmatmul.mubr.msk.f32.gmra.mrb[4].mxu0 %vm220_vm0, %v19_v25  ;;  %2742 = vmatmul.mubr.msk.f32.gmra.mrb[4].mxu1 %vm220_vm0, %v117_v26  ;;  %v51_v25 = vld [vmem:[%s4295_s0 + $0x128] sm:$0xff]  ;;  %v149_v26 = vld [vmem:[%s4295_s0 + $0x438] sm:$0xff] }
  0x21   :  { %2597 = vmatprep.mubr.msk.f32.mxu0 %vm220_vm0, %v20_v27  ;;  %2744 = vmatprep.mubr.msk.f32.mxu1 %vm220_vm0, %v118_v28  ;;  %v52_v27 = vld [vmem:[%s4295_s0 + $0x130] sm:$0xff]  ;;  %v150_v28 = vld [vmem:[%s4295_s0 + $0x440] sm:$0xff] }
  0x24   :  { %2598 = vmatmul.mubr.msk.f32.gmra.mrb[6].mxu0 %vm220_vm0, %v21_v29  ;;  %2745 = vmatmul.mubr.msk.f32.gmra.mrb[6].mxu1 %vm220_vm0, %v119_v30  ;;  %v53_v29 = vld [vmem:[%s4295_s0 + $0x138] sm:$0xff]  ;;  %v151_v30 = vld [vmem:[%s4295_s0 + $0x448] sm:$0xff] }
  0x25   :  { %2600 = vmatprep.mubr.msk.f32.mxu0 %vm220_vm0, %v22_v31  ;;  %2747 = vmatprep.mubr.msk.f32.mxu1 %vm220_vm0, %v120_v32  ;;  %v54_v31 = vld [vmem:[%s4295_s0 + $0x140] sm:$0xff]  ;;  %v152_v32 = vld [vmem:[%s4295_s0 + $0x450] sm:$0xff] }
  0x28   :  { %2601 = vmatmul.mubr.msk.f32.gmra.mrb[8].mxu0 %vm220_vm0, %v23_v33  ;;  %2748 = vmatmul.mubr.msk.f32.gmra.mrb[8].mxu1 %vm220_vm0, %v121_v34  ;;  %v55_v33 = vld [vmem:[%s4295_s0 + $0x148] sm:$0xff]  ;;  %v153_v34 = vld [vmem:[%s4295_s0 + $0x458] sm:$0xff] }
  0x29   :  { %2603 = vmatprep.mubr.msk.f32.mxu0 %vm220_vm0, %v24_v35  ;;  %2750 = vmatprep.mubr.msk.f32.mxu1 %vm220_vm0, %v122_v36  ;;  %v56_v35 = vld [vmem:[%s4295_s0 + $0x150] sm:$0xff]  ;;  %v154_v36 = vld [vmem:[%s4295_s0 + $0x460] sm:$0xff] }
  0x2c   :  { %2604 = vmatmul.mubr.msk.f32.gmra.mrb[10].mxu0 %vm220_vm0, %v25_v37  ;;  %2751 = vmatmul.mubr.msk.f32.gmra.mrb[10].mxu1 %vm220_vm0, %v123_v38  ;;  %v57_v37 = vld [vmem:[%s4295_s0 + $0x158] sm:$0xff]  ;;  %v155_v38 = vld [vmem:[%s4295_s0 + $0x468] sm:$0xff] }
  0x2d   :  { %2606 = vmatprep.mubr.msk.f32.mxu0 %vm220_vm0, %v26_v39  ;;  %2753 = vmatprep.mubr.msk.f32.mxu1 %vm220_vm0, %v124_v40  ;;  %v58_v39 = vld [vmem:[%s4295_s0 + $0x160] sm:$0xff]  ;;  %v156_v40 = vld [vmem:[%s4295_s0 + $0x470] sm:$0xff] }
  0x30   :  { %2607 = vmatmul.mubr.msk.f32.gmra.mrb[12].mxu0 %vm220_vm0, %v27_v41  ;;  %2754 = vmatmul.mubr.msk.f32.gmra.mrb[12].mxu1 %vm220_vm0, %v125_v42  ;;  %v59_v41 = vld [vmem:[%s4295_s0 + $0x168] sm:$0xff]  ;;  %v157_v42 = vld [vmem:[%s4295_s0 + $0x478] sm:$0xff] }
  0x31   :  { %2609 = vmatprep.mubr.msk.f32.mxu0 %vm220_vm0, %v28_v43  ;;  %2756 = vmatprep.mubr.msk.f32.mxu1 %vm220_vm0, %v126_v44  ;;  %v60_v43 = vld [vmem:[%s4295_s0 + $0x170] sm:$0xff]  ;;  %v158_v44 = vld [vmem:[%s4295_s0 + $0x480] sm:$0xff] }
  0x34   :  { %2610 = vmatmul.mubr.msk.f32.gmra.mrb[14].mxu0 %vm220_vm0, %v29_v45  ;;  %2757 = vmatmul.mubr.msk.f32.gmra.mrb[14].mxu1 %vm220_vm0, %v127_v46  ;;  %v61_v45 = vld [vmem:[%s4295_s0 + $0x178] sm:$0xff]  ;;  %v159_v46 = vld [vmem:[%s4295_s0 + $0x488] sm:$0xff] }
  0x35   :  { %2612 = vmatprep.mubr.msk.f32.mxu0 %vm220_vm0, %v30_v47  ;;  %2759 = vmatprep.mubr.msk.f32.mxu1 %vm220_vm0, %v128_v48  ;;  %v62_v47 = vld [vmem:[%s4295_s0 + $0x180] sm:$0xff]  ;;  %v160_v48 = vld [vmem:[%s4295_s0 + $0x490] sm:$0xff] }
  0x38   :  { %2613 = vmatmul.mubr.msk.f32.gmra.mrb[16].mxu0 %vm220_vm0, %v31_v49  ;;  %2760 = vmatmul.mubr.msk.f32.gmra.mrb[16].mxu1 %vm220_vm0, %v129_v50  ;;  %v63_v49 = vld [vmem:[%s4295_s0 + $0x188] sm:$0xff]  ;;  %v161_v50 = vld [vmem:[%s4295_s0 + $0x498] sm:$0xff] }
  0x39   :  { %2615 = vmatprep.mubr.msk.f32.mxu0 %vm220_vm0, %v32_v51  ;;  %2762 = vmatprep.mubr.msk.f32.mxu1 %vm220_vm0, %v130_v52  ;;  %v64_v51 = vld [vmem:[%s4295_s0 + $0x190] sm:$0xff]  ;;  %v162_v52 = vld [vmem:[%s4295_s0 + $0x4a0] sm:$0xff] }
  0x3c   :  { %2616 = vmatmul.mubr.msk.f32.gmra.mrb[18].mxu0 %vm220_vm0, %v33_v53  ;;  %2763 = vmatmul.mubr.msk.f32.gmra.mrb[18].mxu1 %vm220_vm0, %v131_v54  ;;  %v65_v53 = vld [vmem:[%s4295_s0 + $0x198] sm:$0xff]  ;;  %v163_v54 = vld [vmem:[%s4295_s0 + $0x4a8] sm:$0xff] }
  0x3d   :  { %2618 = vmatprep.mubr.msk.f32.mxu0 %vm220_vm0, %v34_v55  ;;  %2765 = vmatprep.mubr.msk.f32.mxu1 %vm220_vm0, %v132_v56  ;;  %v66_v55 = vld [vmem:[%s4295_s0 + $0x1a0] sm:$0xff]  ;;  %v164_v56 = vld [vmem:[%s4295_s0 + $0x4b0] sm:$0xff] }
  0x40   :  { %2619 = vmatmul.mubr.msk.f32.gmra.mrb[20].mxu0 %vm220_vm0, %v35_v57  ;;  %2766 = vmatmul.mubr.msk.f32.gmra.mrb[20].mxu1 %vm220_vm0, %v133_v58  ;;  %v67_v57 = vld [vmem:[%s4295_s0 + $0x1a8] sm:$0xff]  ;;  %v165_v58 = vld [vmem:[%s4295_s0 + $0x4b8] sm:$0xff] }
  0x41   :  { %2621 = vmatprep.mubr.msk.f32.mxu0 %vm220_vm0, %v36_v59  ;;  %2768 = vmatprep.mubr.msk.f32.mxu1 %vm220_vm0, %v134_v60  ;;  %v68_v59 = vld [vmem:[%s4295_s0 + $0x1b0] sm:$0xff]  ;;  %v166_v60 = vld [vmem:[%s4295_s0 + $0x4c0] sm:$0xff] }
  0x44   :  { %2622 = vmatmul.mubr.msk.f32.gmra.mrb[22].mxu0 %vm220_vm0, %v37_v61  ;;  %2769 = vmatmul.mubr.msk.f32.gmra.mrb[22].mxu1 %vm220_vm0, %v135_v62  ;;  %v69_v61 = vld [vmem:[%s4295_s0 + $0x1b8] sm:$0xff]  ;;  %v167_v62 = vld [vmem:[%s4295_s0 + $0x4c8] sm:$0xff] }
  0x45   :  { %2624 = vmatprep.mubr.msk.f32.mxu0 %vm220_vm0, %v38_v63  ;;  %2771 = vmatprep.mubr.msk.f32.mxu1 %vm220_vm0, %v136_v0  ;;  %v70_v63 = vld [vmem:[%s4295_s0 + $0x1c0] sm:$0xff]  ;;  %v168_v0 = vld [vmem:[%s4295_s0 + $0x4d0] sm:$0xff] }
  0x48   :  { %2625 = vmatmul.mubr.msk.f32.gmra.mrb[24].mxu0 %vm220_vm0, %v39_v1  ;;  %2772 = vmatmul.mubr.msk.f32.gmra.mrb[24].mxu1 %vm220_vm0, %v137_v2  ;;  %v71_v1 = vld [vmem:[%s4295_s0 + $0x1c8] sm:$0xff]  ;;  %v169_v2 = vld [vmem:[%s4295_s0 + $0x4d8] sm:$0xff] }
  0x49   :  { %2627 = vmatprep.mubr.msk.f32.mxu0 %vm220_vm0, %v40_v3  ;;  %2774 = vmatprep.mubr.msk.f32.mxu1 %vm220_vm0, %v138_v4  ;;  %v72_v3 = vld [vmem:[%s4295_s0 + $0x1d0] sm:$0xff]  ;;  %v170_v4 = vld [vmem:[%s4295_s0 + $0x4e0] sm:$0xff] }
  0x4c   :  { %2628 = vmatmul.mubr.msk.f32.gmra.mrb[26].mxu0 %vm220_vm0, %v41_v5  ;;  %2775 = vmatmul.mubr.msk.f32.gmra.mrb[26].mxu1 %vm220_vm0, %v139_v6  ;;  %v73_v5 = vld [vmem:[%s4295_s0 + $0x1d8] sm:$0xff]  ;;  %v171_v6 = vld [vmem:[%s4295_s0 + $0x4e8] sm:$0xff] }
  0x4d   :  { %2630 = vmatprep.mubr.msk.f32.mxu0 %vm220_vm0, %v42_v7  ;;  %2777 = vmatprep.mubr.msk.f32.mxu1 %vm220_vm0, %v140_v8  ;;  %v74_v7 = vld [vmem:[%s4295_s0 + $0x1e0] sm:$0xff]  ;;  %v172_v8 = vld [vmem:[%s4295_s0 + $0x4f0] sm:$0xff] }
  0x50   :  { %2631 = vmatmul.mubr.msk.f32.gmra.mrb[28].mxu0 %vm220_vm0, %v43_v9  ;;  %2778 = vmatmul.mubr.msk.f32.gmra.mrb[28].mxu1 %vm220_vm0, %v141_v10  ;;  %v75_v9 = vld [vmem:[%s4295_s0 + $0x1e8] sm:$0xff]  ;;  %v173_v10 = vld [vmem:[%s4295_s0 + $0x4f8] sm:$0xff] }
  0x51   :  { %2633 = vmatprep.mubr.msk.f32.mxu0 %vm220_vm0, %v44_v11  ;;  %2780 = vmatprep.mubr.msk.f32.mxu1 %vm220_vm0, %v142_v12  ;;  %v76_v11 = vld [vmem:[%s4295_s0 + $0x1f0] sm:$0xff]  ;;  %v174_v12 = vld [vmem:[%s4295_s0 + $0x500] sm:$0xff] }
  0x54   :  { %2634 = vmatmul.mubr.msk.f32.gmra.mrb[30].mxu0 %vm220_vm0, %v45_v13  ;;  %2781 = vmatmul.mubr.msk.f32.gmra.mrb[30].mxu1 %vm220_vm0, %v143_v14  ;;  %v77_v13 = vld [vmem:[%s4295_s0 + $0x1f8] sm:$0xff]  ;;  %v175_v14 = vld [vmem:[%s4295_s0 + $0x508] sm:$0xff] }
  0x55   :  { %2636 = vmatprep.mubr.msk.f32.mxu0 %vm220_vm0, %v46_v15  ;;  %2783 = vmatprep.mubr.msk.f32.mxu1 %vm220_vm0, %v144_v16  ;;  %v78_v15 = vld [vmem:[%s4295_s0 + $0x200] sm:$0xff]  ;;  %v176_v16 = vld [vmem:[%s4295_s0 + $0x510] sm:$0xff] }
  0x58   :  { %2637 = vmatmul.mubr.msk.f32.gmra.mrb[32].mxu0 %vm220_vm0, %v47_v17  ;;  %2784 = vmatmul.mubr.msk.f32.gmra.mrb[32].mxu1 %vm220_vm0, %v145_v18  ;;  %v79_v17 = vld [vmem:[%s4295_s0 + $0x208] sm:$0xff]  ;;  %v177_v18 = vld [vmem:[%s4295_s0 + $0x518] sm:$0xff] }
  0x59   :  { %2639 = vmatprep.mubr.msk.f32.mxu0 %vm220_vm0, %v48_v19  ;;  %2786 = vmatprep.mubr.msk.f32.mxu1 %vm220_vm0, %v146_v20  ;;  %v80_v19 = vld [vmem:[%s4295_s0 + $0x210] sm:$0xff]  ;;  %v178_v20 = vld [vmem:[%s4295_s0 + $0x520] sm:$0xff] }
  0x5c   :  { %2640 = vmatmul.mubr.msk.f32.gmra.mrb[34].mxu0 %vm220_vm0, %v49_v21  ;;  %2787 = vmatmul.mubr.msk.f32.gmra.mrb[34].mxu1 %vm220_vm0, %v147_v22  ;;  %v81_v21 = vld [vmem:[%s4295_s0 + $0x218] sm:$0xff]  ;;  %v179_v22 = vld [vmem:[%s4295_s0 + $0x528] sm:$0xff] }
  0x5d   :  { %2642 = vmatprep.mubr.msk.f32.mxu0 %vm220_vm0, %v50_v23  ;;  %2789 = vmatprep.mubr.msk.f32.mxu1 %vm220_vm0, %v148_v24  ;;  %v82_v23 = vld [vmem:[%s4295_s0 + $0x220] sm:$0xff]  ;;  %v180_v24 = vld [vmem:[%s4295_s0 + $0x530] sm:$0xff] }
  0x60   :  { %2643 = vmatmul.mubr.msk.f32.gmra.mrb[36].mxu0 %vm220_vm0, %v51_v25  ;;  %2790 = vmatmul.mubr.msk.f32.gmra.mrb[36].mxu1 %vm220_vm0, %v149_v26  ;;  %v83_v25 = vld [vmem:[%s4295_s0 + $0x228] sm:$0xff]  ;;  %v181_v26 = vld [vmem:[%s4295_s0 + $0x538] sm:$0xff] }
  0x61   :  { %2645 = vmatprep.mubr.msk.f32.mxu0 %vm220_vm0, %v52_v27  ;;  %2792 = vmatprep.mubr.msk.f32.mxu1 %vm220_vm0, %v150_v28  ;;  %v84_v27 = vld [vmem:[%s4295_s0 + $0x230] sm:$0xff]  ;;  %v182_v28 = vld [vmem:[%s4295_s0 + $0x540] sm:$0xff] }
  0x64   :  { %2646 = vmatmul.mubr.msk.f32.gmra.mrb[38].mxu0 %vm220_vm0, %v53_v29  ;;  %2793 = vmatmul.mubr.msk.f32.gmra.mrb[38].mxu1 %vm220_vm0, %v151_v30  ;;  %v85_v29 = vld [vmem:[%s4295_s0 + $0x238] sm:$0xff]  ;;  %v183_v30 = vld [vmem:[%s4295_s0 + $0x548] sm:$0xff] }
  0x65   :  { %2648 = vmatprep.mubr.msk.f32.mxu0 %vm220_vm0, %v54_v31  ;;  %2795 = vmatprep.mubr.msk.f32.mxu1 %vm220_vm0, %v152_v32  ;;  %v86_v31 = vld [vmem:[%s4295_s0 + $0x240] sm:$0xff]  ;;  %v184_v32 = vld [vmem:[%s4295_s0 + $0x550] sm:$0xff] }
  0x68   :  { %2649 = vmatmul.mubr.msk.f32.gmra.mrb[40].mxu0 %vm220_vm0, %v55_v33  ;;  %2796 = vmatmul.mubr.msk.f32.gmra.mrb[40].mxu1 %vm220_vm0, %v153_v34  ;;  %v87_v33 = vld [vmem:[%s4295_s0 + $0x248] sm:$0xff]  ;;  %v185_v34 = vld [vmem:[%s4295_s0 + $0x558] sm:$0xff] }
  0x69   :  { %2651 = vmatprep.mubr.msk.f32.mxu0 %vm220_vm0, %v56_v35  ;;  %2798 = vmatprep.mubr.msk.f32.mxu1 %vm220_vm0, %v154_v36  ;;  %v88_v35 = vld [vmem:[%s4295_s0 + $0x250] sm:$0xff]  ;;  %v186_v36 = vld [vmem:[%s4295_s0 + $0x560] sm:$0xff] }
  0x6c   :  { %2652 = vmatmul.mubr.msk.f32.gmra.mrb[42].mxu0 %vm220_vm0, %v57_v37  ;;  %2799 = vmatmul.mubr.msk.f32.gmra.mrb[42].mxu1 %vm220_vm0, %v155_v38  ;;  %v89_v37 = vld [vmem:[%s4295_s0 + $0x258] sm:$0xff]  ;;  %v187_v38 = vld [vmem:[%s4295_s0 + $0x568] sm:$0xff] }
  0x6d   :  { %2654 = vmatprep.mubr.msk.f32.mxu0 %vm220_vm0, %v58_v39  ;;  %2801 = vmatprep.mubr.msk.f32.mxu1 %vm220_vm0, %v156_v40  ;;  %v90_v39 = vld [vmem:[%s4295_s0 + $0x260] sm:$0xff]  ;;  %v188_v40 = vld [vmem:[%s4295_s0 + $0x570] sm:$0xff] }
  0x70   :  { %2655 = vmatmul.mubr.msk.f32.gmra.mrb[44].mxu0 %vm220_vm0, %v59_v41  ;;  %2802 = vmatmul.mubr.msk.f32.gmra.mrb[44].mxu1 %vm220_vm0, %v157_v42  ;;  %v91_v41 = vld [vmem:[%s4295_s0 + $0x268] sm:$0xff]  ;;  %v189_v42 = vld [vmem:[%s4295_s0 + $0x578] sm:$0xff] }
  0x71   :  { %2657 = vmatprep.mubr.msk.f32.mxu0 %vm220_vm0, %v60_v43  ;;  %2804 = vmatprep.mubr.msk.f32.mxu1 %vm220_vm0, %v158_v44  ;;  %v92_v43 = vld [vmem:[%s4295_s0 + $0x270] sm:$0xff]  ;;  %v190_v44 = vld [vmem:[%s4295_s0 + $0x580] sm:$0xff] }
  0x74   :  { %2658 = vmatmul.mubr.msk.f32.gmra.mrb[46].mxu0 %vm220_vm0, %v61_v45  ;;  %2805 = vmatmul.mubr.msk.f32.gmra.mrb[46].mxu1 %vm220_vm0, %v159_v46  ;;  %v93_v45 = vld [vmem:[%s4295_s0 + $0x278] sm:$0xff]  ;;  %v191_v46 = vld [vmem:[%s4295_s0 + $0x588] sm:$0xff] }
  0x75   :  { %2660 = vmatprep.mubr.msk.f32.mxu0 %vm220_vm0, %v62_v47  ;;  %2807 = vmatprep.mubr.msk.f32.mxu1 %vm220_vm0, %v160_v48  ;;  %v94_v47 = vld [vmem:[%s4295_s0 + $0x280] sm:$0xff]  ;;  %v192_v48 = vld [vmem:[%s4295_s0 + $0x590] sm:$0xff] }
  0x78   :  { %2661 = vmatmul.mubr.msk.f32.gmra.mrb[48].mxu0 %vm220_vm0, %v63_v49  ;;  %2808 = vmatmul.mubr.msk.f32.gmra.mrb[48].mxu1 %vm220_vm0, %v161_v50  ;;  %v95_v49 = vld [vmem:[%s4295_s0 + $0x288] sm:$0xff]  ;;  %v193_v50 = vld [vmem:[%s4295_s0 + $0x598] sm:$0xff] }
  0x79   :  { %2663 = vmatprep.mubr.msk.f32.mxu0 %vm220_vm0, %v64_v51  ;;  %2810 = vmatprep.mubr.msk.f32.mxu1 %vm220_vm0, %v162_v52  ;;  %v96_v51 = vld [vmem:[%s4295_s0 + $0x290] sm:$0xff]  ;;  %v194_v52 = vld [vmem:[%s4295_s0 + $0x5a0] sm:$0xff] }
  0x7c   :  { %2664 = vmatmul.mubr.msk.f32.gmra.mrb[50].mxu0 %vm220_vm0, %v65_v53  ;;  %2811 = vmatmul.mubr.msk.f32.gmra.mrb[50].mxu1 %vm220_vm0, %v163_v54  ;;  %v97_v53 = vld [vmem:[%s4295_s0 + $0x298] sm:$0xff]  ;;  %v195_v54 = vld [vmem:[%s4295_s0 + $0x5a8] sm:$0xff] }
  0x7d   :  { %2666 = vmatprep.mubr.msk.f32.mxu0 %vm220_vm0, %v66_v55  ;;  %2813 = vmatprep.mubr.msk.f32.mxu1 %vm220_vm0, %v164_v56  ;;  %v98_v55 = vld [vmem:[%s4295_s0 + $0x2a0] sm:$0xff]  ;;  %v196_v56 = vld [vmem:[%s4295_s0 + $0x5b0] sm:$0xff] }
  0x80   :  { %2667 = vmatmul.mubr.msk.f32.gmra.mrb[52].mxu0 %vm220_vm0, %v67_v57  ;;  %2814 = vmatmul.mubr.msk.f32.gmra.mrb[52].mxu1 %vm220_vm0, %v165_v58  ;;  %v99_v57 = vld [vmem:[%s4295_s0 + $0x2a8] sm:$0xff]  ;;  %v197_v58 = vld [vmem:[%s4295_s0 + $0x5b8] sm:$0xff] }
  0x81   :  { %2669 = vmatprep.mubr.msk.f32.mxu0 %vm220_vm0, %v68_v59  ;;  %2816 = vmatprep.mubr.msk.f32.mxu1 %vm220_vm0, %v166_v60  ;;  %v100_v59 = vld [vmem:[%s4295_s0 + $0x2b0] sm:$0xff]  ;;  %v198_v60 = vld [vmem:[%s4295_s0 + $0x5c0] sm:$0xff] }
  0x84   :  { %2670 = vmatmul.mubr.msk.f32.gmra.mrb[54].mxu0 %vm220_vm0, %v69_v61  ;;  %2817 = vmatmul.mubr.msk.f32.gmra.mrb[54].mxu1 %vm220_vm0, %v167_v62  ;;  %v101_v61 = vld [vmem:[%s4295_s0 + $0x2b8] sm:$0xff]  ;;  %v199_v62 = vld [vmem:[%s4295_s0 + $0x5c8] sm:$0xff] }
  0x85   :  { %2672 = vmatprep.mubr.msk.f32.mxu0 %vm220_vm0, %v70_v63  ;;  %2819 = vmatprep.mubr.msk.f32.mxu1 %vm220_vm0, %v168_v0  ;;  %v102_v63 = vld [vmem:[%s4295_s0 + $0x2c0] sm:$0xff]  ;;  %v200_v0 = vld [vmem:[%s4295_s0 + $0x5d0] sm:$0xff] }
  0x88   :  { %2673 = vmatmul.mubr.msk.f32.gmra.mrb[56].mxu0 %vm220_vm0, %v71_v1  ;;  %2820 = vmatmul.mubr.msk.f32.gmra.mrb[56].mxu1 %vm220_vm0, %v169_v2  ;;  %v103_v1 = vld [vmem:[%s4295_s0 + $0x2c8] sm:$0xff]  ;;  %v201_v2 = vld [vmem:[%s4295_s0 + $0x5d8] sm:$0xff] }
  0x89   :  { %2675 = vmatprep.mubr.msk.f32.mxu0 %vm220_vm0, %v72_v3  ;;  %2822 = vmatprep.mubr.msk.f32.mxu1 %vm220_vm0, %v170_v4  ;;  %v104_v3 = vld [vmem:[%s4295_s0 + $0x2d0] sm:$0xff]  ;;  %v202_v4 = vld [vmem:[%s4295_s0 + $0x5e0] sm:$0xff] }
  0x8c   :  { %2676 = vmatmul.mubr.msk.f32.gmra.mrb[58].mxu0 %vm220_vm0, %v73_v5  ;;  %2823 = vmatmul.mubr.msk.f32.gmra.mrb[58].mxu1 %vm220_vm0, %v171_v6  ;;  %v105_v5 = vld [vmem:[%s4295_s0 + $0x2d8] sm:$0xff]  ;;  %v203_v6 = vld [vmem:[%s4295_s0 + $0x5e8] sm:$0xff] }
  0x8d   :  { %2678 = vmatprep.mubr.msk.f32.mxu0 %vm220_vm0, %v74_v7  ;;  %2825 = vmatprep.mubr.msk.f32.mxu1 %vm220_vm0, %v172_v8  ;;  %v106_v7 = vld [vmem:[%s4295_s0 + $0x2e0] sm:$0xff]  ;;  %v204_v8 = vld [vmem:[%s4295_s0 + $0x5f0] sm:$0xff] }
  0x90   :  { %2679 = vmatmul.mubr.msk.f32.gmra.mrb[60].mxu0 %vm220_vm0, %v75_v9  ;;  %2826 = vmatmul.mubr.msk.f32.gmra.mrb[60].mxu1 %vm220_vm0, %v173_v10  ;;  %v107_v9 = vld [vmem:[%s4295_s0 + $0x2e8] sm:$0xff]  ;;  %v205_v10 = vld [vmem:[%s4295_s0 + $0x5f8] sm:$0xff] }
  0x91   :  { %2681 = vmatprep.mubr.msk.f32.mxu0 %vm220_vm0, %v76_v11  ;;  %2828 = vmatprep.mubr.msk.f32.mxu1 %vm220_vm0, %v174_v12  ;;  %v108_v11 = vld [vmem:[%s4295_s0 + $0x2f0] sm:$0xff]  ;;  %v206_v12 = vld [vmem:[%s4295_s0 + $0x600] sm:$0xff] }
  0x94   :  { %2682 = vmatmul.mubr.msk.f32.gmra.mrb[62].mxu0 %vm220_vm0, %v77_v13  ;;  %2829 = vmatmul.mubr.msk.f32.gmra.mrb[62].mxu1 %vm220_vm0, %v175_v14  ;;  %v109_v13 = vld [vmem:[%s4295_s0 + $0x2f8] sm:$0xff]  ;;  %v207_v14 = vld [vmem:[%s4295_s0 + $0x608] sm:$0xff] }
  0x95   :  { %2684 = vmatprep.mubr.msk.f32.mxu0 %vm220_vm0, %v78_v15  ;;  %2831 = vmatprep.mubr.msk.f32.mxu1 %vm220_vm0, %v176_v16  ;;  %v110_v15 = vld [vmem:[%s4295_s0 + $0x300] sm:$0xff]  ;;  %v208_v16 = vld [vmem:[%s4295_s0 + $0x610] sm:$0xff] }
  0x98   :  { %2685 = vmatmul.mubr.msk.f32.gmra.mrb[64].mxu0 %vm220_vm0, %v79_v17  ;;  %2832 = vmatmul.mubr.msk.f32.gmra.mrb[64].mxu1 %vm220_vm0, %v177_v18  ;;  %v111_v17 = vld [vmem:[%s4295_s0 + $0x308] sm:$0xff]  ;;  %v209_v18 = vld [vmem:[%s4295_s0 + $0x618] sm:$0xff] }
  0x99   :  { %2687 = vmatprep.mubr.msk.f32.mxu0 %vm220_vm0, %v80_v19  ;;  %2834 = vmatprep.mubr.msk.f32.mxu1 %vm220_vm0, %v178_v20 }
  0x9c   :  { %2688 = vmatmul.mubr.msk.f32.gmra.mrb[66].mxu0 %vm220_vm0, %v81_v21  ;;  %2835 = vmatmul.mubr.msk.f32.gmra.mrb[66].mxu1 %vm220_vm0, %v179_v22 }
  0x9d   :  { %2690 = vmatprep.mubr.msk.f32.mxu0 %vm220_vm0, %v82_v23  ;;  %2837 = vmatprep.mubr.msk.f32.mxu1 %vm220_vm0, %v180_v24 }
  0xa0   :  { %2691 = vmatmul.mubr.msk.f32.gmra.mrb[68].mxu0 %vm220_vm0, %v83_v25  ;;  %2838 = vmatmul.mubr.msk.f32.gmra.mrb[68].mxu1 %vm220_vm0, %v181_v26 }
  0xa1   :  { %2693 = vmatprep.mubr.msk.f32.mxu0 %vm220_vm0, %v84_v27  ;;  %2840 = vmatprep.mubr.msk.f32.mxu1 %vm220_vm0, %v182_v28 }
  0xa4   :  { %2694 = vmatmul.mubr.msk.f32.gmra.mrb[70].mxu0 %vm220_vm0, %v85_v29  ;;  %2841 = vmatmul.mubr.msk.f32.gmra.mrb[70].mxu1 %vm220_vm0, %v183_v30 }
  0xa5   :  { %2696 = vmatprep.mubr.msk.f32.mxu0 %vm220_vm0, %v86_v31  ;;  %2843 = vmatprep.mubr.msk.f32.mxu1 %vm220_vm0, %v184_v32 }
  0xa8   :  { %2697 = vmatmul.mubr.msk.f32.gmra.mrb[72].mxu0 %vm220_vm0, %v87_v33  ;;  %2844 = vmatmul.mubr.msk.f32.gmra.mrb[72].mxu1 %vm220_vm0, %v185_v34 }
  0xa9   :  { %2699 = vmatprep.mubr.msk.f32.mxu0 %vm220_vm0, %v88_v35  ;;  %2846 = vmatprep.mubr.msk.f32.mxu1 %vm220_vm0, %v186_v36 }
  0xac   :  { %2700 = vmatmul.mubr.msk.f32.gmra.mrb[74].mxu0 %vm220_vm0, %v89_v37  ;;  %2847 = vmatmul.mubr.msk.f32.gmra.mrb[74].mxu1 %vm220_vm0, %v187_v38 }
  0xad   :  { %2702 = vmatprep.mubr.msk.f32.mxu0 %vm220_vm0, %v90_v39  ;;  %2849 = vmatprep.mubr.msk.f32.mxu1 %vm220_vm0, %v188_v40 }
  0xb0   :  { %2703 = vmatmul.mubr.msk.f32.gmra.mrb[76].mxu0 %vm220_vm0, %v91_v41  ;;  %2850 = vmatmul.mubr.msk.f32.gmra.mrb[76].mxu1 %vm220_vm0, %v189_v42 }
  0xb1   :  { %2705 = vmatprep.mubr.msk.f32.mxu0 %vm220_vm0, %v92_v43  ;;  %2852 = vmatprep.mubr.msk.f32.mxu1 %vm220_vm0, %v190_v44 }
  0xb4   :  { %2706 = vmatmul.mubr.msk.f32.gmra.mrb[78].mxu0 %vm220_vm0, %v93_v45  ;;  %2853 = vmatmul.mubr.msk.f32.gmra.mrb[78].mxu1 %vm220_vm0, %v191_v46 }
  0xb5   :  { %2708 = vmatprep.mubr.msk.f32.mxu0 %vm220_vm0, %v94_v47  ;;  %2855 = vmatprep.mubr.msk.f32.mxu1 %vm220_vm0, %v192_v48 }
  0xb8   :  { %2709 = vmatmul.mubr.msk.f32.gmra.mrb[80].mxu0 %vm220_vm0, %v95_v49  ;;  %2856 = vmatmul.mubr.msk.f32.gmra.mrb[80].mxu1 %vm220_vm0, %v193_v50 }
  0xb9   :  { %2711 = vmatprep.mubr.msk.f32.mxu0 %vm220_vm0, %v96_v51  ;;  %2858 = vmatprep.mubr.msk.f32.mxu1 %vm220_vm0, %v194_v52 }
  0xbc   :  { %2712 = vmatmul.mubr.msk.f32.gmra.mrb[82].mxu0 %vm220_vm0, %v97_v53  ;;  %2859 = vmatmul.mubr.msk.f32.gmra.mrb[82].mxu1 %vm220_vm0, %v195_v54 }
  0xbd   :  { %2714 = vmatprep.mubr.msk.f32.mxu0 %vm220_vm0, %v98_v55  ;;  %2861 = vmatprep.mubr.msk.f32.mxu1 %vm220_vm0, %v196_v56 }
  0xc0   :  { %2715 = vmatmul.mubr.msk.f32.gmra.mrb[84].mxu0 %vm220_vm0, %v99_v57  ;;  %2862 = vmatmul.mubr.msk.f32.gmra.mrb[84].mxu1 %vm220_vm0, %v197_v58 }
  0xc1   :  { %2717 = vmatprep.mubr.msk.f32.mxu0 %vm220_vm0, %v100_v59  ;;  %2864 = vmatprep.mubr.msk.f32.mxu1 %vm220_vm0, %v198_v60 }
  0xc4   :  { %2718 = vmatmul.mubr.msk.f32.gmra.mrb[86].mxu0 %vm220_vm0, %v101_v61  ;;  %2865 = vmatmul.mubr.msk.f32.gmra.mrb[86].mxu1 %vm220_vm0, %v199_v62 }
  0xc5   :  { %2720 = vmatprep.mubr.msk.f32.mxu0 %vm220_vm0, %v102_v63  ;;  %2867 = vmatprep.mubr.msk.f32.mxu1 %vm220_vm0, %v200_v0 }
  0xc8   :  { %2721 = vmatmul.mubr.msk.f32.gmra.mrb[88].mxu0 %vm220_vm0, %v103_v1  ;;  %2868 = vmatmul.mubr.msk.f32.gmra.mrb[88].mxu1 %vm220_vm0, %v201_v2 }
  0xc9   :  { %2723 = vmatprep.mubr.msk.f32.mxu0 %vm220_vm0, %v104_v3  ;;  %2870 = vmatprep.mubr.msk.f32.mxu1 %vm220_vm0, %v202_v4 }
  0xcc   :  { %2724 = vmatmul.mubr.msk.f32.gmra.mrb[90].mxu0 %vm220_vm0, %v105_v5  ;;  %2871 = vmatmul.mubr.msk.f32.gmra.mrb[90].mxu1 %vm220_vm0, %v203_v6 }
  0xcd   :  { %2726 = vmatprep.mubr.msk.f32.mxu0 %vm220_vm0, %v106_v7  ;;  %2873 = vmatprep.mubr.msk.f32.mxu1 %vm220_vm0, %v204_v8 }
  0xd0   :  { %2727 = vmatmul.mubr.msk.f32.gmra.mrb[92].mxu0 %vm220_vm0, %v107_v9  ;;  %2874 = vmatmul.mubr.msk.f32.gmra.mrb[92].mxu1 %vm220_vm0, %v205_v10 }
  0xd1   :  { %2729 = vmatprep.mubr.msk.f32.mxu0 %vm220_vm0, %v108_v11  ;;  %2876 = vmatprep.mubr.msk.f32.mxu1 %vm220_vm0, %v206_v12 }
  0xd4   :  { %2730 = vmatmul.mubr.msk.f32.gmra.mrb[94].mxu0 %vm220_vm0, %v109_v13  ;;  %2877 = vmatmul.mubr.msk.f32.gmra.mrb[94].mxu1 %vm220_vm0, %v207_v14 }
  0xd5   :  { %2732 = vmatprep.mubr.msk.f32.mxu0 %vm220_vm0, %v110_v15  ;;  %2879 = vmatprep.mubr.msk.f32.mxu1 %vm220_vm0, %v208_v16 }
  0xd8   :  { %2733 = vmatmul.mubr.msk.f32.gmra.mrb[96].mxu0 %vm220_vm0, %v111_v17  ;;  %2880 = vmatmul.mubr.msk.f32.gmra.mrb[96].mxu1 %vm220_vm0, %v209_v18 }
  0xeb   :  { %v3750_v19 = vpop.f32.mrb[0].mxu0  ;;  %v3752_v20 = vpop.f32.mrb[0].mxu1 }
  0xec   :  { %v3754_v21 = vpop.f32.mrb[1].mxu0  ;;  %v3756_v22 = vpop.f32.mrb[1].mxu1 }
  0xef   :  { %v3758_v23 = vpop.f32.mrb[2].mxu0  ;;  %v3760_v24 = vpop.f32.mrb[2].mxu1 }
  0xf0   :  { %v3762_v25 = vpop.f32.mrb[3].mxu0  ;;  %v3764_v26 = vpop.f32.mrb[3].mxu1 }
  0xf3   :  { %v3766_v27 = vpop.f32.mrb[4].mxu0  ;;  %v3768_v28 = vpop.f32.mrb[4].mxu1 }
  0xf4   :  { %v3770_v29 = vpop.f32.mrb[5].mxu0  ;;  %v3772_v30 = vpop.f32.mrb[5].mxu1 }
  0xf7   :  { %v3774_v31 = vpop.f32.mrb[6].mxu0  ;;  %v3776_v32 = vpop.f32.mrb[6].mxu1 }
  0xf8   :  { %v3778_v33 = vpop.f32.mrb[7].mxu0  ;;  %v3780_v34 = vpop.f32.mrb[7].mxu1 }
  0xfb   :  { %v3782_v35 = vpop.f32.mrb[8].mxu0  ;;  %v3784_v36 = vpop.f32.mrb[8].mxu1 }
  0xfc   :  { %v3786_v37 = vpop.f32.mrb[9].mxu0  ;;  %v3788_v38 = vpop.f32.mrb[9].mxu1 }
  0xff   :  { %v3790_v39 = vpop.f32.mrb[10].mxu0  ;;  %v3792_v40 = vpop.f32.mrb[10].mxu1 }
 0x100   :  { %v3794_v41 = vpop.f32.mrb[11].mxu0  ;;  %v3796_v42 = vpop.f32.mrb[11].mxu1 }
 0x103   :  { %v3798_v43 = vpop.f32.mrb[12].mxu0  ;;  %v3800_v44 = vpop.f32.mrb[12].mxu1 }
 0x104   :  { %v3802_v45 = vpop.f32.mrb[13].mxu0  ;;  %v3804_v46 = vpop.f32.mrb[13].mxu1 }
 0x107   :  { %v3806_v47 = vpop.f32.mrb[14].mxu0  ;;  %v3808_v48 = vpop.f32.mrb[14].mxu1 }
 0x108   :  { %v3810_v49 = vpop.f32.mrb[15].mxu0  ;;  %v3812_v50 = vpop.f32.mrb[15].mxu1 }
 0x10b   :  { %v3814_v51 = vpop.f32.mrb[16].mxu0  ;;  %v3816_v52 = vpop.f32.mrb[16].mxu1 }
 0x10c   :  { %v3818_v53 = vpop.f32.mrb[17].mxu0  ;;  %v3820_v54 = vpop.f32.mrb[17].mxu1 }
 0x10f   :  { %v3822_v55 = vpop.f32.mrb[18].mxu0  ;;  %v3824_v56 = vpop.f32.mrb[18].mxu1 }
 0x110   :  { %v3826_v57 = vpop.f32.mrb[19].mxu0  ;;  %v3828_v58 = vpop.f32.mrb[19].mxu1 }
 0x113   :  { %v3830_v59 = vpop.f32.mrb[20].mxu0  ;;  %v3832_v60 = vpop.f32.mrb[20].mxu1 }
 0x114   :  { %v3834_v61 = vpop.f32.mrb[21].mxu0  ;;  %v3836_v62 = vpop.f32.mrb[21].mxu1 }
 0x117   :  { %v3838_v63 = vpop.f32.mrb[22].mxu0  ;;  %v3840_v0 = vpop.f32.mrb[22].mxu1 }
 0x118   :  { %4298 = vst [vmem:[#allocation2_spill] sm:$0xff] %v3840_v0  ;;  %v3842_v1 = vpop.f32.mrb[23].mxu0  ;;  %v3844_v2 = vpop.f32.mrb[23].mxu1 }
 0x11b   :  { %v3846_v3 = vpop.f32.mrb[24].mxu0  ;;  %v3848_v4 = vpop.f32.mrb[24].mxu1 }
 0x11c   :  { %4299 = vst [vmem:[#allocation3_spill] sm:$0xff] %v3846_v3  ;;  %4300 = vst [vmem:[#allocation4_spill] sm:$0xff] %v3848_v4  ;;  %v3850_v5 = vpop.f32.mrb[25].mxu0  ;;  %v3852_v6 = vpop.f32.mrb[25].mxu1 }
 0x11f   :  { %v3854_v7 = vpop.f32.mrb[26].mxu0  ;;  %v3856_v8 = vpop.f32.mrb[26].mxu1 }
 0x120   :  { %4301 = vst [vmem:[#allocation5_spill] sm:$0xff] %v3854_v7  ;;  %4302 = vst [vmem:[#allocation6_spill] sm:$0xff] %v3856_v8  ;;  %v3858_v9 = vpop.f32.mrb[27].mxu0  ;;  %v3860_v10 = vpop.f32.mrb[27].mxu1 }
 0x121   :  { %4303 = vst [vmem:[#allocation7_spill] sm:$0xff] %v3858_v9  ;;  %4304 = vst [vmem:[#allocation8_spill] sm:$0xff] %v3860_v10 }
 0x123   :  { %v3862_v11 = vpop.f32.mrb[28].mxu0  ;;  %v3864_v12 = vpop.f32.mrb[28].mxu1 }
 0x124   :  { %4305 = vst [vmem:[#allocation9_spill] sm:$0xff] %v3862_v11  ;;  %4306 = vst [vmem:[#allocation10_spill] sm:$0xff] %v3864_v12  ;;  %v3866_v13 = vpop.f32.mrb[29].mxu0  ;;  %v3868_v14 = vpop.f32.mrb[29].mxu1 }
 0x125   :  { %4307 = vst [vmem:[#allocation11_spill] sm:$0xff] %v3866_v13  ;;  %4308 = vst [vmem:[#allocation12_spill] sm:$0xff] %v3868_v14 }
 0x127   :  { %v3870_v15 = vpop.f32.mrb[30].mxu0  ;;  %v3872_v16 = vpop.f32.mrb[30].mxu1 }
 0x128   :  { %4309 = vst [vmem:[#allocation13_spill] sm:$0xff] %v3870_v15  ;;  %4310 = vst [vmem:[#allocation14_spill] sm:$0xff] %v3872_v16  ;;  %v3874_v17 = vpop.f32.mrb[31].mxu0  ;;  %v3876_v18 = vpop.f32.mrb[31].mxu1 }
 0x129   :  { %4311 = vst [vmem:[#allocation15_spill] sm:$0xff] %v3874_v17  ;;  %4312 = vst [vmem:[#allocation16_spill] sm:$0xff] %v3876_v18 }
 0x12b   :  { %v3878_v8 = vpop.f32.mrb[32].mxu0  ;;  %v3880_v7 = vpop.f32.mrb[32].mxu1 }
 0x12c   :  { %4313 = vst [vmem:[#allocation17_spill] sm:$0xff] %v3878_v8  ;;  %4314 = vst [vmem:[#allocation18_spill] sm:$0xff] %v3880_v7  ;;  %v3882_v4 = vpop.f32.mrb[33].mxu0  ;;  %v3884_v11 = vpop.f32.mrb[33].mxu1 }
 0x12d   :  { %4315 = vst [vmem:[#allocation19_spill] sm:$0xff] %v3882_v4  ;;  %4316 = vst [vmem:[#allocation20_spill] sm:$0xff] %v3884_v11 }
 0x12f   :  { %v3886_v12 = vpop.f32.mrb[34].mxu0  ;;  %v3888_v13 = vpop.f32.mrb[34].mxu1 }
 0x130   :  { %4317 = vst [vmem:[#allocation21_spill] sm:$0xff] %v3886_v12  ;;  %4318 = vst [vmem:[#allocation22_spill] sm:$0xff] %v3888_v13  ;;  %v3890_v14 = vpop.f32.mrb[35].mxu0  ;;  %v3892_v15 = vpop.f32.mrb[35].mxu1 }
 0x131   :  { %4319 = vst [vmem:[#allocation23_spill] sm:$0xff] %v3890_v14  ;;  %4320 = vst [vmem:[#allocation24_spill] sm:$0xff] %v3892_v15 }
 0x133   :  { %v3894_v16 = vpop.f32.mrb[36].mxu0  ;;  %v3896_v17 = vpop.f32.mrb[36].mxu1 }
 0x134   :  { %4321 = vst [vmem:[#allocation25_spill] sm:$0xff] %v3894_v16  ;;  %4322 = vst [vmem:[#allocation26_spill] sm:$0xff] %v3896_v17  ;;  %v3898_v18 = vpop.f32.mrb[37].mxu0  ;;  %v3900_v8 = vpop.f32.mrb[37].mxu1 }
 0x135   :  { %4323 = vst [vmem:[#allocation27_spill] sm:$0xff] %v3898_v18  ;;  %4324 = vst [vmem:[#allocation28_spill] sm:$0xff] %v3900_v8 }
 0x137   :  { %v3902_v7 = vpop.f32.mrb[38].mxu0  ;;  %v3904_v4 = vpop.f32.mrb[38].mxu1 }
 0x138   :  { %4325 = vst [vmem:[#allocation29_spill] sm:$0xff] %v3902_v7  ;;  %4326 = vst [vmem:[#allocation30_spill] sm:$0xff] %v3904_v4  ;;  %v3906_v11 = vpop.f32.mrb[39].mxu0  ;;  %v3908_v12 = vpop.f32.mrb[39].mxu1 }
 0x139   :  { %4327 = vst [vmem:[#allocation31_spill] sm:$0xff] %v3906_v11  ;;  %4328 = vst [vmem:[#allocation32_spill] sm:$0xff] %v3908_v12 }
 0x13b   :  { %v3910_v13 = vpop.f32.mrb[40].mxu0  ;;  %v3912_v14 = vpop.f32.mrb[40].mxu1 }
 0x13c   :  { %4329 = vst [vmem:[#allocation33_spill] sm:$0xff] %v3910_v13  ;;  %4330 = vst [vmem:[#allocation34_spill] sm:$0xff] %v3912_v14  ;;  %v3914_v15 = vpop.f32.mrb[41].mxu0  ;;  %v3916_v16 = vpop.f32.mrb[41].mxu1 }
 0x13d   :  { %4331 = vst [vmem:[#allocation35_spill] sm:$0xff] %v3914_v15  ;;  %4332 = vst [vmem:[#allocation36_spill] sm:$0xff] %v3916_v16 }
 0x13f   :  { %v3918_v17 = vpop.f32.mrb[42].mxu0  ;;  %v3920_v18 = vpop.f32.mrb[42].mxu1 }
 0x140   :  { %4333 = vst [vmem:[#allocation37_spill] sm:$0xff] %v3918_v17  ;;  %4334 = vst [vmem:[#allocation38_spill] sm:$0xff] %v3920_v18  ;;  %v3922_v8 = vpop.f32.mrb[43].mxu0  ;;  %v3924_v7 = vpop.f32.mrb[43].mxu1 }
 0x141   :  { %4335 = vst [vmem:[#allocation39_spill] sm:$0xff] %v3922_v8  ;;  %4336 = vst [vmem:[#allocation40_spill] sm:$0xff] %v3924_v7 }
 0x143   :  { %v3926_v4 = vpop.f32.mrb[44].mxu0  ;;  %v3928_v11 = vpop.f32.mrb[44].mxu1 }
 0x144   :  { %4337 = vst [vmem:[#allocation41_spill] sm:$0xff] %v3926_v4  ;;  %4338 = vst [vmem:[#allocation42_spill] sm:$0xff] %v3928_v11  ;;  %v3930_v12 = vpop.f32.mrb[45].mxu0  ;;  %v3932_v13 = vpop.f32.mrb[45].mxu1 }
 0x145   :  { %4339 = vst [vmem:[#allocation43_spill] sm:$0xff] %v3930_v12  ;;  %4340 = vst [vmem:[#allocation44_spill] sm:$0xff] %v3932_v13 }
 0x147   :  { %v3934_v14 = vpop.f32.mrb[46].mxu0  ;;  %v3936_v15 = vpop.f32.mrb[46].mxu1 }
 0x148   :  { %4341 = vst [vmem:[#allocation45_spill] sm:$0xff] %v3934_v14  ;;  %4342 = vst [vmem:[#allocation46_spill] sm:$0xff] %v3936_v15  ;;  %v3938_v16 = vpop.f32.mrb[47].mxu0  ;;  %v3940_v17 = vpop.f32.mrb[47].mxu1  ;;  %v3951_v14 = vld [vmem:[%s4296_s2] ss:$0 sm:$0xff] }
 0x149   :  { %4343 = vst [vmem:[#allocation47_spill] sm:$0xff] %v3938_v16  ;;  %4344 = vst [vmem:[#allocation48_spill] sm:$0xff] %v3940_v17 }
 0x14b   :  { %v2662_v18 = vpop.f32.mrb[48].mxu0  ;;  %v2809_v8 = vpop.f32.mrb[48].mxu1 }
 0x14c   :  { %v1858_v7 = vmax.f32 %v3754_v21, %v2662_v18  ;;  %v1907_v4 = vmax.f32 %v3756_v22, %v2809_v8  ;;  %v3944_v3 = vpop.f32.mrb[49].mxu0  ;;  %v3946_v11 = vpop.f32.mrb[49].mxu1 }
 0x14d   :  { %4345 = vst [vmem:[#allocation49_spill] sm:$0xff] %v3944_v3  ;;  %4346 = vst [vmem:[#allocation50_spill] sm:$0xff] %v3946_v11 }
 0x14e   :  { %v1956_v15 = vmax.f32 %v1858_v7, %v1907_v4 }
 0x14f   :  { %v2665_v13 = vpop.f32.mrb[50].mxu0  ;;  %v2812_v16 = vpop.f32.mrb[50].mxu1 }
 0x150   :  { %v2012_v17 = vadd.f32 %v3951_v14, %v1956_v15  ;;  %v1860_v12 = vmax.f32 %v3762_v25, %v2665_v13  ;;  %v1909_v21 = vmax.f32 %v3764_v26, %v2812_v16  ;;  %v1129_v18 = vpop.f32.mrb[51].mxu0  ;;  %v1619_v22 = vpop.f32.mrb[51].mxu1 }
 0x151   :  { %v1859_v8 = vmax.f32 %v3750_v19, %v1129_v18  ;;  %v1908_v11 = vmax.f32 %v3752_v20, %v1619_v22 }
 0x152   :  { %v2061_v3 = vmax.f32 %v2012_v17, 0.0  ;;  %v1958_v10 = vmax.f32 %v1860_v12, %v1909_v21 }
 0x153   :  { %v1957_v9 = vmax.f32 %v1859_v8, %v1908_v11  ;;  %v2668_v0 = vpop.f32.mrb[52].mxu0  ;;  %v2815_v4 = vpop.f32.mrb[52].mxu1 }
 0x154   :  { %2111 = vst.msk [vmem:[%s4297_s3] sm:$0xff] %vm2110_vm4, %v2061_v3  ;;  %v2014_v25 = vadd.f32 %v3951_v14, %v1958_v10  ;;  %v1862_v26 = vmax.f32 %v3770_v29, %v2668_v0  ;;  %v1911_v7 = vmax.f32 %v3772_v30, %v2815_v4  ;;  %v1139_v13 = vpop.f32.mrb[53].mxu0  ;;  %v1629_v19 = vpop.f32.mrb[53].mxu1 }
 0x155   :  { %v2013_v20 = vadd.f32 %v3951_v14, %v1957_v9  ;;  %v1861_v12 = vmax.f32 %v3758_v23, %v1139_v13  ;;  %v1910_v11 = vmax.f32 %v3760_v24, %v1629_v19 }
 0x156   :  { %v2063_v15 = vmax.f32 %v2014_v25, 0.0  ;;  %v1960_v16 = vmax.f32 %v1862_v26, %v1911_v7 }
 0x157   :  { %v2062_v17 = vmax.f32 %v2013_v20, 0.0  ;;  %v1959_v21 = vmax.f32 %v1861_v12, %v1910_v11  ;;  %v2671_v18 = vpop.f32.mrb[54].mxu0  ;;  %v2818_v3 = vpop.f32.mrb[54].mxu1 }
 0x158   :  { %2113 = vst.msk [vmem:[%s4297_s3 + $0x10] sm:$0xff] %vm2110_vm4, %v2063_v15  ;;  %v2016_v29 = vadd.f32 %v3951_v14, %v1960_v16  ;;  %v1864_v30 = vmax.f32 %v3778_v33, %v2671_v18  ;;  %v1913_v0 = vmax.f32 %v3780_v34, %v2818_v3  ;;  %v1149_v23 = vpop.f32.mrb[55].mxu0  ;;  %v1639_v9 = vpop.f32.mrb[55].mxu1 }
 0x159   :  { %2112 = vst.msk [vmem:[%s4297_s3 + $0x8] sm:$0xff] %vm2110_vm4, %v2062_v17  ;;  %v2015_v24 = vadd.f32 %v3951_v14, %v1959_v21  ;;  %v1863_v10 = vmax.f32 %v3766_v27, %v1149_v23  ;;  %v1912_v22 = vmax.f32 %v3768_v28, %v1639_v9 }
 0x15a   :  { %v2065_v8 = vmax.f32 %v2016_v29, 0.0  ;;  %v1962_v4 = vmax.f32 %v1864_v30, %v1913_v0 }
 0x15b   :  { %v2064_v25 = vmax.f32 %v2015_v24, 0.0  ;;  %v1961_v26 = vmax.f32 %v1863_v10, %v1912_v22  ;;  %v2674_v33 = vpop.f32.mrb[56].mxu0  ;;  %v2821_v7 = vpop.f32.mrb[56].mxu1 }
 0x15c   :  { %2115 = vst.msk [vmem:[%s4297_s3 + $0x20] sm:$0xff] %vm2110_vm4, %v2065_v8  ;;  %v2018_v34 = vadd.f32 %v3951_v14, %v1962_v4  ;;  %v1866_v13 = vmax.f32 %v3786_v37, %v2674_v33  ;;  %v1915_v19 = vmax.f32 %v3788_v38, %v2821_v7  ;;  %v1159_v27 = vpop.f32.mrb[57].mxu0  ;;  %v1649_v20 = vpop.f32.mrb[57].mxu1 }
 0x15d   :  { %2114 = vst.msk [vmem:[%s4297_s3 + $0x18] sm:$0xff] %vm2110_vm4, %v2064_v25  ;;  %v2017_v28 = vadd.f32 %v3951_v14, %v1961_v26  ;;  %v1865_v12 = vmax.f32 %v3774_v31, %v1159_v27  ;;  %v1914_v11 = vmax.f32 %v3776_v32, %v1649_v20 }
 0x15e   :  { %v2067_v15 = vmax.f32 %v2018_v34, 0.0  ;;  %v1964_v16 = vmax.f32 %v1866_v13, %v1915_v19 }
 0x15f   :  { %v2066_v17 = vmax.f32 %v2017_v28, 0.0  ;;  %v1963_v21 = vmax.f32 %v1865_v12, %v1914_v11  ;;  %v2677_v37 = vpop.f32.mrb[58].mxu0  ;;  %v2824_v18 = vpop.f32.mrb[58].mxu1 }
 0x160   :  { %2117 = vst.msk [vmem:[%s4297_s3 + $0x30] sm:$0xff] %vm2110_vm4, %v2067_v15  ;;  %v2020_v38 = vadd.f32 %v3951_v14, %v1964_v16  ;;  %v1868_v3 = vmax.f32 %v3794_v41, %v2677_v37  ;;  %v1917_v29 = vmax.f32 %v3796_v42, %v2824_v18  ;;  %v1169_v31 = vpop.f32.mrb[59].mxu0  ;;  %v1659_v30 = vpop.f32.mrb[59].mxu1 }
 0x161   :  { %2116 = vst.msk [vmem:[%s4297_s3 + $0x28] sm:$0xff] %vm2110_vm4, %v2066_v17  ;;  %v2019_v32 = vadd.f32 %v3951_v14, %v1963_v21  ;;  %v1867_v0 = vmax.f32 %v3782_v35, %v1169_v31  ;;  %v1916_v23 = vmax.f32 %v3784_v36, %v1659_v30 }
 0x162   :  { %v2069_v9 = vmax.f32 %v2020_v38, 0.0  ;;  %v1966_v24 = vmax.f32 %v1868_v3, %v1917_v29 }
 0x163   :  { %v2068_v10 = vmax.f32 %v2019_v32, 0.0  ;;  %v1965_v22 = vmax.f32 %v1867_v0, %v1916_v23  ;;  %v2680_v41 = vpop.f32.mrb[60].mxu0  ;;  %v2827_v8 = vpop.f32.mrb[60].mxu1 }
 0x164   :  { %2119 = vst.msk [vmem:[%s4297_s3 + $0x40] sm:$0xff] %vm2110_vm4, %v2069_v9  ;;  %v2022_v42 = vadd.f32 %v3951_v14, %v1966_v24  ;;  %v1870_v4 = vmax.f32 %v3802_v45, %v2680_v41  ;;  %v1919_v25 = vmax.f32 %v3804_v46, %v2827_v8  ;;  %v1179_v35 = vpop.f32.mrb[61].mxu0  ;;  %v1669_v26 = vpop.f32.mrb[61].mxu1 }
 0x165   :  { %2118 = vst.msk [vmem:[%s4297_s3 + $0x38] sm:$0xff] %vm2110_vm4, %v2068_v10  ;;  %v2021_v36 = vadd.f32 %v3951_v14, %v1965_v22  ;;  %v1869_v33 = vmax.f32 %v3790_v39, %v1179_v35  ;;  %v1918_v7 = vmax.f32 %v3792_v40, %v1669_v26 }
 0x166   :  { %v2071_v34 = vmax.f32 %v2022_v42, 0.0  ;;  %v1968_v13 = vmax.f32 %v1870_v4, %v1919_v25 }
 0x167   :  { %v2070_v19 = vmax.f32 %v2021_v36, 0.0  ;;  %v1967_v27 = vmax.f32 %v1869_v33, %v1918_v7  ;;  %v2683_v45 = vpop.f32.mrb[62].mxu0  ;;  %v2830_v20 = vpop.f32.mrb[62].mxu1 }
 0x168   :  { %2121 = vst.msk [vmem:[%s4297_s3 + $0x50] sm:$0xff] %vm2110_vm4, %v2071_v34  ;;  %v2024_v46 = vadd.f32 %v3951_v14, %v1968_v13  ;;  %v1872_v28 = vmax.f32 %v3810_v49, %v2683_v45  ;;  %v1921_v12 = vmax.f32 %v3812_v50, %v2830_v20  ;;  %v1189_v39 = vpop.f32.mrb[63].mxu0  ;;  %v1679_v11 = vpop.f32.mrb[63].mxu1 }
 0x169   :  { %2120 = vst.msk [vmem:[%s4297_s3 + $0x48] sm:$0xff] %vm2110_vm4, %v2070_v19  ;;  %v2023_v40 = vadd.f32 %v3951_v14, %v1967_v27  ;;  %v1871_v15 = vmax.f32 %v3798_v43, %v1189_v39  ;;  %v1920_v16 = vmax.f32 %v3800_v44, %v1679_v11 }
 0x16a   :  { %v2073_v17 = vmax.f32 %v2024_v46, 0.0  ;;  %v1970_v21 = vmax.f32 %v1872_v28, %v1921_v12 }
 0x16b   :  { %v2072_v37 = vmax.f32 %v2023_v40, 0.0  ;;  %v1969_v18 = vmax.f32 %v1871_v15, %v1920_v16  ;;  %v2686_v49 = vpop.f32.mrb[64].mxu0  ;;  %v2833_v38 = vpop.f32.mrb[64].mxu1 }
 0x16c   :  { %2123 = vst.msk [vmem:[%s4297_s3 + $0x60] sm:$0xff] %vm2110_vm4, %v2073_v17  ;;  %v2026_v50 = vadd.f32 %v3951_v14, %v1970_v21  ;;  %v1874_v3 = vmax.f32 %v3818_v53, %v2686_v49  ;;  %v1923_v29 = vmax.f32 %v3820_v54, %v2833_v38  ;;  %v1199_v43 = vpop.f32.mrb[65].mxu0  ;;  %v1689_v31 = vpop.f32.mrb[65].mxu1 }
 0x16d   :  { %2122 = vst.msk [vmem:[%s4297_s3 + $0x58] sm:$0xff] %vm2110_vm4, %v2072_v37  ;;  %v2025_v44 = vadd.f32 %v3951_v14, %v1969_v18  ;;  %v1873_v30 = vmax.f32 %v3806_v47, %v1199_v43  ;;  %v1922_v32 = vmax.f32 %v3808_v48, %v1689_v31  ;;  %v4347_v43 = vld [vmem:[#allocation2_spill] sm:$0xff] }
 0x16e   :  { %v2075_v0 = vmax.f32 %v2026_v50, 0.0  ;;  %v1972_v23 = vmax.f32 %v1874_v3, %v1923_v29 }
 0x16f   :  { %v2074_v9 = vmax.f32 %v2025_v44, 0.0  ;;  %v1971_v24 = vmax.f32 %v1873_v30, %v1922_v32  ;;  %v2689_v53 = vpop.f32.mrb[66].mxu0  ;;  %v2836_v10 = vpop.f32.mrb[66].mxu1 }
 0x170   :  { %2125 = vst.msk [vmem:[%s4297_s3 + $0x70] sm:$0xff] %vm2110_vm4, %v2075_v0  ;;  %v2028_v54 = vadd.f32 %v3951_v14, %v1972_v23  ;;  %v1876_v22 = vmax.f32 %v3826_v57, %v2689_v53  ;;  %v1925_v41 = vmax.f32 %v3828_v58, %v2836_v10  ;;  %v1209_v47 = vpop.f32.mrb[67].mxu0  ;;  %v1699_v8 = vpop.f32.mrb[67].mxu1  ;;  %v4349_v53 = vld [vmem:[#allocation8_spill] sm:$0xff] }
 0x171   :  { %2124 = vst.msk [vmem:[%s4297_s3 + $0x68] sm:$0xff] %vm2110_vm4, %v2074_v9  ;;  %v2027_v48 = vadd.f32 %v3951_v14, %v1971_v24  ;;  %v1875_v42 = vmax.f32 %v3814_v51, %v1209_v47  ;;  %v1924_v4 = vmax.f32 %v3816_v52, %v1699_v8  ;;  %v4348_v9 = vld [vmem:[#allocation7_spill] sm:$0xff]  ;;  %v4351_v8 = vld [vmem:[#allocation4_spill] sm:$0xff] }
 0x172   :  { %v2077_v25 = vmax.f32 %v2028_v54, 0.0  ;;  %v1974_v35 = vmax.f32 %v1876_v22, %v1925_v41  ;;  %v4350_v41 = vld [vmem:[#allocation3_spill] sm:$0xff] }
 0x173   :  { %v2076_v26 = vmax.f32 %v2027_v48, 0.0  ;;  %v1973_v36 = vmax.f32 %v1875_v42, %v1924_v4  ;;  %v2692_v57 = vpop.f32.mrb[68].mxu0  ;;  %v2839_v33 = vpop.f32.mrb[68].mxu1 }
 0x174   :  { %2127 = vst.msk [vmem:[%s4297_s3 + $0x80] sm:$0xff] %vm2110_vm4, %v2077_v25  ;;  %v2030_v58 = vadd.f32 %v3951_v14, %v1974_v35  ;;  %v1878_v7 = vmax.f32 %v3834_v61, %v2692_v57  ;;  %v1927_v34 = vmax.f32 %v3836_v62, %v2839_v33  ;;  %v1219_v51 = vpop.f32.mrb[69].mxu0  ;;  %v1709_v13 = vpop.f32.mrb[69].mxu1  ;;  %v4352_v33 = vld [vmem:[#allocation11_spill] sm:$0xff] }
 0x175   :  { %2126 = vst.msk [vmem:[%s4297_s3 + $0x78] sm:$0xff] %vm2110_vm4, %v2076_v26  ;;  %v2029_v52 = vadd.f32 %v3951_v14, %v1973_v36  ;;  %v1877_v19 = vmax.f32 %v3822_v55, %v1219_v51  ;;  %v1926_v27 = vmax.f32 %v3824_v56, %v1709_v13 }
 0x176   :  { %v2079_v45 = vmax.f32 %v2030_v58, 0.0  ;;  %v1976_v20 = vmax.f32 %v1878_v7, %v1927_v34  ;;  %v4353_v7 = vld [vmem:[#allocation12_spill] sm:$0xff] }
 0x177   :  { %v2078_v46 = vmax.f32 %v2029_v52, 0.0  ;;  %v1975_v28 = vmax.f32 %v1877_v19, %v1926_v27  ;;  %v2695_v61 = vpop.f32.mrb[70].mxu0  ;;  %v2842_v12 = vpop.f32.mrb[70].mxu1  ;;  %v4354_v19 = vld [vmem:[#allocation5_spill] sm:$0xff] }
 0x178   :  { %2129 = vst.msk [vmem:[%s4297_s3 + $0x90] sm:$0xff] %vm2110_vm4, %v2079_v45  ;;  %v2032_v62 = vadd.f32 %v3951_v14, %v1976_v20  ;;  %v1880_v39 = vmax.f32 %v3842_v1, %v2695_v61  ;;  %v1929_v11 = vmax.f32 %v3844_v2, %v2842_v12  ;;  %v1229_v55 = vpop.f32.mrb[71].mxu0  ;;  %v1719_v40 = vpop.f32.mrb[71].mxu1  ;;  %v4355_v45 = vld [vmem:[#allocation6_spill] sm:$0xff] }
 0x179   :  { %2128 = vst.msk [vmem:[%s4297_s3 + $0x88] sm:$0xff] %vm2110_vm4, %v2078_v46  ;;  %v2031_v56 = vadd.f32 %v3951_v14, %v1975_v28  ;;  %v1879_v15 = vmax.f32 %v3830_v59, %v1229_v55  ;;  %v1928_v16 = vmax.f32 %v3832_v60, %v1719_v40  ;;  %v4356_v55 = vld [vmem:[#allocation15_spill] sm:$0xff] }
 0x17a   :  { %v2081_v17 = vmax.f32 %v2032_v62, 0.0  ;;  %v1978_v21 = vmax.f32 %v1880_v39, %v1929_v11 }
 0x17b   :  { %v2080_v37 = vmax.f32 %v2031_v56, 0.0  ;;  %v1977_v18 = vmax.f32 %v1879_v15, %v1928_v16  ;;  %v2698_v1 = vpop.f32.mrb[72].mxu0  ;;  %v2845_v49 = vpop.f32.mrb[72].mxu1  ;;  %v4357_v56 = vld [vmem:[#allocation16_spill] sm:$0xff] }
 0x17c   :  { %2131 = vst.msk [vmem:[%s4297_s3 + $0xa0] sm:$0xff] %vm2110_vm4, %v2081_v17  ;;  %v2034_v2 = vadd.f32 %v3951_v14, %v1978_v21  ;;  %v1882_v38 = vmax.f32 %v3850_v5, %v2698_v1  ;;  %v1931_v50 = vmax.f32 %v3852_v6, %v2845_v49  ;;  %v1239_v59 = vpop.f32.mrb[73].mxu0  ;;  %v1729_v3 = vpop.f32.mrb[73].mxu1  ;;  %v4359_v1 = vld [vmem:[#allocation10_spill] sm:$0xff] }
 0x17d   :  { %2130 = vst.msk [vmem:[%s4297_s3 + $0x98] sm:$0xff] %vm2110_vm4, %v2080_v37  ;;  %v2033_v60 = vadd.f32 %v3951_v14, %v1977_v18  ;;  %v1881_v29 = vmax.f32 %v3838_v63, %v1239_v59  ;;  %v1930_v31 = vmax.f32 %v4347_v43, %v1729_v3  ;;  %v4358_v37 = vld [vmem:[#allocation9_spill] sm:$0xff]  ;;  %v4360_v43 = vld [vmem:[#allocation19_spill] sm:$0xff] }
 0x17e   :  { %v2083_v44 = vmax.f32 %v2034_v2, 0.0  ;;  %v1980_v30 = vmax.f32 %v1882_v38, %v1931_v50 }
 0x17f   :  { %v2082_v32 = vmax.f32 %v2033_v60, 0.0  ;;  %v1979_v0 = vmax.f32 %v1881_v29, %v1930_v31  ;;  %v2701_v5 = vpop.f32.mrb[74].mxu0  ;;  %v2848_v23 = vpop.f32.mrb[74].mxu1 }
 0x180   :  { %2133 = vst.msk [vmem:[%s4297_s3 + $0xb0] sm:$0xff] %vm2110_vm4, %v2083_v44  ;;  %v2036_v6 = vadd.f32 %v3951_v14, %v1980_v30  ;;  %v1884_v24 = vmax.f32 %v4348_v9, %v2701_v5  ;;  %v1933_v10 = vmax.f32 %v4349_v53, %v2848_v23  ;;  %v1249_v63 = vpop.f32.mrb[75].mxu0  ;;  %v1739_v54 = vpop.f32.mrb[75].mxu1  ;;  %v4361_v44 = vld [vmem:[#allocation20_spill] sm:$0xff]  ;;  %v4362_v23 = vld [vmem:[#allocation13_spill] sm:$0xff]  ;;  %v4363_v9 = vld [vmem:[#allocation14_spill] sm:$0xff] }
 0x181   :  { %2132 = vst.msk [vmem:[%s4297_s3 + $0xa8] sm:$0xff] %vm2110_vm4, %v2082_v32  ;;  %v2035_v22 = vadd.f32 %v3951_v14, %v1979_v0  ;;  %v1883_v47 = vmax.f32 %v4350_v41, %v1249_v63  ;;  %v1932_v48 = vmax.f32 %v4351_v8, %v1739_v54  ;;  %v4364_v8 = vld [vmem:[#allocation23_spill] sm:$0xff] }
 0x182   :  { %v2085_v42 = vmax.f32 %v2036_v6, 0.0  ;;  %v1982_v4 = vmax.f32 %v1884_v24, %v1933_v10 }
 0x183   :  { %v2084_v25 = vmax.f32 %v2035_v22, 0.0  ;;  %v1981_v35 = vmax.f32 %v1883_v47, %v1932_v48  ;;  %v2704_v26 = vpop.f32.mrb[76].mxu0  ;;  %v2851_v36 = vpop.f32.mrb[76].mxu1 }
 0x184   :  { %2135 = vst.msk [vmem:[%s4297_s3 + $0xc0] sm:$0xff] %vm2110_vm4, %v2085_v42  ;;  %v2038_v57 = vadd.f32 %v3951_v14, %v1982_v4  ;;  %v1886_v58 = vmax.f32 %v4352_v33, %v2704_v26  ;;  %v1935_v34 = vmax.f32 %v4353_v7, %v2851_v36  ;;  %v1259_v51 = vpop.f32.mrb[77].mxu0  ;;  %v1749_v13 = vpop.f32.mrb[77].mxu1  ;;  %v4365_v42 = vld [vmem:[#allocation24_spill] sm:$0xff]  ;;  %v4366_v36 = vld [vmem:[#allocation17_spill] sm:$0xff]  ;;  %v4367_v33 = vld [vmem:[#allocation18_spill] sm:$0xff] }
 0x185   :  { %2134 = vst.msk [vmem:[%s4297_s3 + $0xb8] sm:$0xff] %vm2110_vm4, %v2084_v25  ;;  %v2037_v52 = vadd.f32 %v3951_v14, %v1981_v35  ;;  %v1885_v27 = vmax.f32 %v4354_v19, %v1259_v51  ;;  %v1934_v20 = vmax.f32 %v4355_v45, %v1749_v13  ;;  %v4368_v45 = vld [vmem:[#allocation27_spill] sm:$0xff] }
 0x186   :  { %v2087_v46 = vmax.f32 %v2038_v57, 0.0  ;;  %v1984_v28 = vmax.f32 %v1886_v58, %v1935_v34 }
 0x187   :  { %v2086_v61 = vmax.f32 %v2037_v52, 0.0  ;;  %v1983_v12 = vmax.f32 %v1885_v27, %v1934_v20  ;;  %v2707_v62 = vpop.f32.mrb[78].mxu0  ;;  %v2854_v39 = vpop.f32.mrb[78].mxu1 }
 0x188   :  { %2137 = vst.msk [vmem:[%s4297_s3 + $0xd0] sm:$0xff] %vm2110_vm4, %v2087_v46  ;;  %v2040_v11 = vadd.f32 %v3951_v14, %v1984_v28  ;;  %v1888_v40 = vmax.f32 %v4356_v55, %v2707_v62  ;;  %v1937_v15 = vmax.f32 %v4357_v56, %v2854_v39  ;;  %v1269_v16 = vpop.f32.mrb[79].mxu0  ;;  %v1759_v17 = vpop.f32.mrb[79].mxu1  ;;  %v4369_v46 = vld [vmem:[#allocation28_spill] sm:$0xff]  ;;  %v4370_v39 = vld [vmem:[#allocation21_spill] sm:$0xff]  ;;  %v4371_v55 = vld [vmem:[#allocation22_spill] sm:$0xff] }
 0x189   :  { %2136 = vst.msk [vmem:[%s4297_s3 + $0xc8] sm:$0xff] %vm2110_vm4, %v2086_v61  ;;  %v2039_v21 = vadd.f32 %v3951_v14, %v1983_v12  ;;  %v1887_v18 = vmax.f32 %v4358_v37, %v1269_v16  ;;  %v1936_v49 = vmax.f32 %v4359_v1, %v1759_v17  ;;  %v4372_v1 = vld [vmem:[#allocation31_spill] sm:$0xff] }
 0x18a   :  { %v2089_v2 = vmax.f32 %v2040_v11, 0.0  ;;  %v1986_v38 = vmax.f32 %v1888_v40, %v1937_v15 }
 0x18b   :  { %v2088_v50 = vmax.f32 %v2039_v21, 0.0  ;;  %v1985_v59 = vmax.f32 %v1887_v18, %v1936_v49  ;;  %v2710_v3 = vpop.f32.mrb[80].mxu0  ;;  %v2857_v60 = vpop.f32.mrb[80].mxu1 }
 0x18c   :  { %2139 = vst.msk [vmem:[%s4297_s3 + $0xe0] sm:$0xff] %vm2110_vm4, %v2089_v2  ;;  %v2042_v29 = vadd.f32 %v3951_v14, %v1986_v38  ;;  %v1890_v31 = vmax.f32 %v4360_v43, %v2710_v3  ;;  %v1939_v30 = vmax.f32 %v4361_v44, %v2857_v60  ;;  %v1279_v32 = vpop.f32.mrb[81].mxu0  ;;  %v1769_v0 = vpop.f32.mrb[81].mxu1  ;;  %v4373_v2 = vld [vmem:[#allocation32_spill] sm:$0xff]  ;;  %v4374_v60 = vld [vmem:[#allocation25_spill] sm:$0xff]  ;;  %v4375_v43 = vld [vmem:[#allocation26_spill] sm:$0xff] }
 0x18d   :  { %2138 = vst.msk [vmem:[%s4297_s3 + $0xd8] sm:$0xff] %vm2110_vm4, %v2088_v50  ;;  %v2041_v5 = vadd.f32 %v3951_v14, %v1985_v59  ;;  %v1889_v6 = vmax.f32 %v4362_v23, %v1279_v32  ;;  %v1938_v24 = vmax.f32 %v4363_v9, %v1769_v0  ;;  %v4376_v9 = vld [vmem:[#allocation35_spill] sm:$0xff] }
 0x18e   :  { %v2091_v53 = vmax.f32 %v2042_v29, 0.0  ;;  %v1988_v10 = vmax.f32 %v1890_v31, %v1939_v30 }
 0x18f   :  { %v2090_v63 = vmax.f32 %v2041_v5, 0.0  ;;  %v1987_v54 = vmax.f32 %v1889_v6, %v1938_v24  ;;  %v2713_v22 = vpop.f32.mrb[82].mxu0  ;;  %v2860_v41 = vpop.f32.mrb[82].mxu1 }
 0x190   :  { %2141 = vst.msk [vmem:[%s4297_s3 + $0xf0] sm:$0xff] %vm2110_vm4, %v2091_v53  ;;  %v2044_v47 = vadd.f32 %v3951_v14, %v1988_v10  ;;  %v1892_v48 = vmax.f32 %v4364_v8, %v2713_v22  ;;  %v1941_v4 = vmax.f32 %v4365_v42, %v2860_v41  ;;  %v1289_v25 = vpop.f32.mrb[83].mxu0  ;;  %v1779_v35 = vpop.f32.mrb[83].mxu1  ;;  %v4377_v53 = vld [vmem:[#allocation36_spill] sm:$0xff]  ;;  %v4378_v41 = vld [vmem:[#allocation29_spill] sm:$0xff]  ;;  %v4379_v8 = vld [vmem:[#allocation30_spill] sm:$0xff] }
 0x191   :  { %2140 = vst.msk [vmem:[%s4297_s3 + $0xe8] sm:$0xff] %vm2110_vm4, %v2090_v63  ;;  %v2043_v26 = vadd.f32 %v3951_v14, %v1987_v54  ;;  %v1891_v57 = vmax.f32 %v4366_v36, %v1289_v25  ;;  %v1940_v58 = vmax.f32 %v4367_v33, %v1779_v35  ;;  %v4380_v33 = vld [vmem:[#allocation39_spill] sm:$0xff] }
 0x192   :  { %v2093_v7 = vmax.f32 %v2044_v47, 0.0  ;;  %v1990_v34 = vmax.f32 %v1892_v48, %v1941_v4 }
 0x193   :  { %v2092_v51 = vmax.f32 %v2043_v26, 0.0  ;;  %v1989_v13 = vmax.f32 %v1891_v57, %v1940_v58  ;;  %v2716_v52 = vpop.f32.mrb[84].mxu0  ;;  %v2863_v19 = vpop.f32.mrb[84].mxu1 }
 0x194   :  { %2143 = vst.msk [vmem:[%s4297_s3 + $0x100] sm:$0xff] %vm2110_vm4, %v2093_v7  ;;  %v2046_v27 = vadd.f32 %v3951_v14, %v1990_v34  ;;  %v1894_v20 = vmax.f32 %v4368_v45, %v2716_v52  ;;  %v1943_v28 = vmax.f32 %v4369_v46, %v2863_v19  ;;  %v1299_v61 = vpop.f32.mrb[85].mxu0  ;;  %v1789_v12 = vpop.f32.mrb[85].mxu1  ;;  %v4381_v7 = vld [vmem:[#allocation40_spill] sm:$0xff]  ;;  %v4382_v19 = vld [vmem:[#allocation33_spill] sm:$0xff]  ;;  %v4383_v45 = vld [vmem:[#allocation34_spill] sm:$0xff] }
 0x195   :  { %2142 = vst.msk [vmem:[%s4297_s3 + $0xf8] sm:$0xff] %vm2110_vm4, %v2092_v51  ;;  %v2045_v62 = vadd.f32 %v3951_v14, %v1989_v13  ;;  %v1893_v11 = vmax.f32 %v4370_v39, %v1299_v61  ;;  %v1942_v40 = vmax.f32 %v4371_v55, %v1789_v12  ;;  %v4384_v55 = vld [vmem:[#allocation43_spill] sm:$0xff] }
 0x196   :  { %v2095_v56 = vmax.f32 %v2046_v27, 0.0  ;;  %v1992_v15 = vmax.f32 %v1894_v20, %v1943_v28 }
 0x197   :  { %v2094_v16 = vmax.f32 %v2045_v62, 0.0  ;;  %v1991_v17 = vmax.f32 %v1893_v11, %v1942_v40  ;;  %v2719_v21 = vpop.f32.mrb[86].mxu0  ;;  %v2866_v37 = vpop.f32.mrb[86].mxu1 }
 0x198   :  { %2145 = vst.msk [vmem:[%s4297_s3 + $0x110] sm:$0xff] %vm2110_vm4, %v2095_v56  ;;  %v2048_v18 = vadd.f32 %v3951_v14, %v1992_v15  ;;  %v1896_v49 = vmax.f32 %v4372_v1, %v2719_v21  ;;  %v1945_v38 = vmax.f32 %v4373_v2, %v2866_v37  ;;  %v1309_v50 = vpop.f32.mrb[87].mxu0  ;;  %v1799_v59 = vpop.f32.mrb[87].mxu1  ;;  %v4385_v56 = vld [vmem:[#allocation44_spill] sm:$0xff]  ;;  %v4386_v37 = vld [vmem:[#allocation37_spill] sm:$0xff]  ;;  %v4387_v1 = vld [vmem:[#allocation38_spill] sm:$0xff] }
 0x199   :  { %2144 = vst.msk [vmem:[%s4297_s3 + $0x108] sm:$0xff] %vm2110_vm4, %v2094_v16  ;;  %v2047_v3 = vadd.f32 %v3951_v14, %v1991_v17  ;;  %v1895_v29 = vmax.f32 %v4374_v60, %v1309_v50  ;;  %v1944_v31 = vmax.f32 %v4375_v43, %v1799_v59  ;;  %v4388_v43 = vld [vmem:[#allocation47_spill] sm:$0xff] }
 0x19a   :  { %v2097_v44 = vmax.f32 %v2048_v18, 0.0  ;;  %v1994_v30 = vmax.f32 %v1896_v49, %v1945_v38 }
 0x19b   :  { %v2096_v32 = vmax.f32 %v2047_v3, 0.0  ;;  %v1993_v0 = vmax.f32 %v1895_v29, %v1944_v31  ;;  %v2722_v5 = vpop.f32.mrb[88].mxu0  ;;  %v2869_v23 = vpop.f32.mrb[88].mxu1 }
 0x19c   :  { %2147 = vst.msk [vmem:[%s4297_s3 + $0x120] sm:$0xff] %vm2110_vm4, %v2097_v44  ;;  %v2050_v6 = vadd.f32 %v3951_v14, %v1994_v30  ;;  %v1898_v24 = vmax.f32 %v4376_v9, %v2722_v5  ;;  %v1947_v10 = vmax.f32 %v4377_v53, %v2869_v23  ;;  %v1319_v63 = vpop.f32.mrb[89].mxu0  ;;  %v1809_v54 = vpop.f32.mrb[89].mxu1  ;;  %v4389_v44 = vld [vmem:[#allocation48_spill] sm:$0xff]  ;;  %v4390_v23 = vld [vmem:[#allocation41_spill] sm:$0xff]  ;;  %v4391_v9 = vld [vmem:[#allocation42_spill] sm:$0xff] }
 0x19d   :  { %2146 = vst.msk [vmem:[%s4297_s3 + $0x118] sm:$0xff] %vm2110_vm4, %v2096_v32  ;;  %v2049_v22 = vadd.f32 %v3951_v14, %v1993_v0  ;;  %v1897_v47 = vmax.f32 %v4378_v41, %v1319_v63  ;;  %v1946_v48 = vmax.f32 %v4379_v8, %v1809_v54  ;;  %v4392_v8 = vld [vmem:[#allocation49_spill] sm:$0xff] }
 0x19e   :  { %v2099_v42 = vmax.f32 %v2050_v6, 0.0  ;;  %v1996_v4 = vmax.f32 %v1898_v24, %v1947_v10 }
 0x19f   :  { %v2098_v25 = vmax.f32 %v2049_v22, 0.0  ;;  %v1995_v35 = vmax.f32 %v1897_v47, %v1946_v48  ;;  %v2725_v26 = vpop.f32.mrb[90].mxu0  ;;  %v2872_v36 = vpop.f32.mrb[90].mxu1 }
 0x1a0   :  { %2149 = vst.msk [vmem:[%s4297_s3 + $0x130] sm:$0xff] %vm2110_vm4, %v2099_v42  ;;  %v2052_v57 = vadd.f32 %v3951_v14, %v1996_v4  ;;  %v1900_v58 = vmax.f32 %v4380_v33, %v2725_v26  ;;  %v1949_v34 = vmax.f32 %v4381_v7, %v2872_v36  ;;  %v1329_v51 = vpop.f32.mrb[91].mxu0  ;;  %v1819_v13 = vpop.f32.mrb[91].mxu1  ;;  %v4393_v42 = vld [vmem:[#allocation50_spill] sm:$0xff]  ;;  %v4394_v36 = vld [vmem:[#allocation45_spill] sm:$0xff] }
 0x1a1   :  { %2148 = vst.msk [vmem:[%s4297_s3 + $0x128] sm:$0xff] %vm2110_vm4, %v2098_v25  ;;  %v2051_v52 = vadd.f32 %v3951_v14, %v1995_v35  ;;  %v1899_v27 = vmax.f32 %v4382_v19, %v1329_v51  ;;  %v1948_v20 = vmax.f32 %v4383_v45, %v1819_v13  ;;  %v4395_v33 = vld [vmem:[#allocation46_spill] sm:$0xff] }
 0x1a2   :  { %v2101_v46 = vmax.f32 %v2052_v57, 0.0  ;;  %v1998_v28 = vmax.f32 %v1900_v58, %v1949_v34 }
 0x1a3   :  { %v2100_v61 = vmax.f32 %v2051_v52, 0.0  ;;  %v1997_v12 = vmax.f32 %v1899_v27, %v1948_v20  ;;  %v2728_v62 = vpop.f32.mrb[92].mxu0  ;;  %v2875_v39 = vpop.f32.mrb[92].mxu1 }
 0x1a4   :  { %2151 = vst.msk [vmem:[%s4297_s3 + $0x140] sm:$0xff] %vm2110_vm4, %v2101_v46  ;;  %v2054_v11 = vadd.f32 %v3951_v14, %v1998_v28  ;;  %v1902_v40 = vmax.f32 %v4384_v55, %v2728_v62  ;;  %v1951_v15 = vmax.f32 %v4385_v56, %v2875_v39  ;;  %v1339_v16 = vpop.f32.mrb[93].mxu0  ;;  %v1829_v17 = vpop.f32.mrb[93].mxu1 }
 0x1a5   :  { %2150 = vst.msk [vmem:[%s4297_s3 + $0x138] sm:$0xff] %vm2110_vm4, %v2100_v61  ;;  %v2053_v21 = vadd.f32 %v3951_v14, %v1997_v12  ;;  %v1901_v18 = vmax.f32 %v4386_v37, %v1339_v16  ;;  %v1950_v49 = vmax.f32 %v4387_v1, %v1829_v17 }
 0x1a6   :  { %v2103_v2 = vmax.f32 %v2054_v11, 0.0  ;;  %v2000_v38 = vmax.f32 %v1902_v40, %v1951_v15 }
 0x1a7   :  { %v2102_v50 = vmax.f32 %v2053_v21, 0.0  ;;  %v1999_v59 = vmax.f32 %v1901_v18, %v1950_v49  ;;  %v2731_v3 = vpop.f32.mrb[94].mxu0  ;;  %v2878_v60 = vpop.f32.mrb[94].mxu1 }
 0x1a8   :  { %2153 = vst.msk [vmem:[%s4297_s3 + $0x150] sm:$0xff] %vm2110_vm4, %v2103_v2  ;;  %v2056_v29 = vadd.f32 %v3951_v14, %v2000_v38  ;;  %v1904_v31 = vmax.f32 %v4388_v43, %v2731_v3  ;;  %v1953_v30 = vmax.f32 %v4389_v44, %v2878_v60  ;;  %v1349_v32 = vpop.f32.mrb[95].mxu0  ;;  %v1839_v0 = vpop.f32.mrb[95].mxu1 }
 0x1a9   :  { %2152 = vst.msk [vmem:[%s4297_s3 + $0x148] sm:$0xff] %vm2110_vm4, %v2102_v50  ;;  %v2055_v5 = vadd.f32 %v3951_v14, %v1999_v59  ;;  %v1903_v6 = vmax.f32 %v4390_v23, %v1349_v32  ;;  %v1952_v24 = vmax.f32 %v4391_v9, %v1839_v0 }
 0x1aa   :  { %v2105_v53 = vmax.f32 %v2056_v29, 0.0  ;;  %v2002_v10 = vmax.f32 %v1904_v31, %v1953_v30 }
 0x1ab   :  { %v2104_v63 = vmax.f32 %v2055_v5, 0.0  ;;  %v2001_v54 = vmax.f32 %v1903_v6, %v1952_v24  ;;  %v2734_v22 = vpop.f32.mrb[96].mxu0  ;;  %v2881_v41 = vpop.f32.mrb[96].mxu1 }
 0x1ac   :  { %2155 = vst.msk [vmem:[%s4297_s3 + $0x160] sm:$0xff] %vm2110_vm4, %v2105_v53  ;;  %v2058_v47 = vadd.f32 %v3951_v14, %v2002_v10  ;;  %v1906_v48 = vmax.f32 %v4392_v8, %v2734_v22  ;;  %v1955_v4 = vmax.f32 %v4393_v42, %v2881_v41  ;;  %v1359_v25 = vpop.f32.mrb[97].mxu0  ;;  %v1849_v35 = vpop.f32.mrb[97].mxu1 }
 0x1ad   :  { %2154 = vst.msk [vmem:[%s4297_s3 + $0x158] sm:$0xff] %vm2110_vm4, %v2104_v63  ;;  %v2057_v26 = vadd.f32 %v3951_v14, %v2001_v54  ;;  %v1905_v57 = vmax.f32 %v4394_v36, %v1359_v25  ;;  %v1954_v58 = vmax.f32 %v4395_v33, %v1849_v35 }
 0x1ae   :  { %v2107_v7 = vmax.f32 %v2058_v47, 0.0  ;;  %v2004_v34 = vmax.f32 %v1906_v48, %v1955_v4 }
 0x1af   :  { %v2106_v51 = vmax.f32 %v2057_v26, 0.0  ;;  %v2003_v13 = vmax.f32 %v1905_v57, %v1954_v58 }
 0x1b0   :  { %2157 = vst.msk [vmem:[%s4297_s3 + $0x170] sm:$0xff] %vm2110_vm4, %v2107_v7  ;;  %v2060_v52 = vadd.f32 %v3951_v14, %v2004_v34 }
 0x1b1   :  { %2156 = vst.msk [vmem:[%s4297_s3 + $0x168] sm:$0xff] %vm2110_vm4, %v2106_v51  ;;  %v2059_v19 = vadd.f32 %v3951_v14, %v2003_v13 }
 0x1b2   :  { %v2109_v27 = vmax.f32 %v2060_v52, 0.0 }
 0x1b3   :  { %v2108_v45 = vmax.f32 %v2059_v19, 0.0 }
 0x1b4   :  { %2159 = vst.msk [vmem:[%s4297_s3 + $0x180] sm:$0xff] %vm2110_vm4, %v2109_v27 }
 0x1b5   :  { %2158 = vst.msk [vmem:[%s4297_s3 + $0x178] sm:$0xff] %vm2110_vm4, %v2108_v45 }

// kernel: run_model.5
= control target key start
LH: loop header
LB: loop body
LE: loop exit
PB: predicated region body
PF: predicated region fallthrough
CT: control target
= control target key end

     0   :  { %v566_v0 = vmov 0.0|0.0   ;;  %vm83_vm0 = vcmask 179200   ;;  %v567_v30 = vmov 0.0   ;;  %vm159_vm1 = vcmask 1045504   ;;  %s941_s1 = inlined_call_operand.vmem [shape: f32[150,16], index: 1, kind: input, shape index: {}]   ;;  %s942_s0 = inlined_call_operand.vmem [shape: f32[200,150], index: 0, kind: input, shape index: {}]   ;;  %s943_s2 = inlined_call_operand.vmem [shape: f32[1,16], index: 2, kind: input, shape index: {}]   ;;  %s944_s3 = inlined_call_operand.vmem [shape: f32[50,16], index: 3, kind: output, shape index: {}]  }
   0x1   :  { %517 = vmatprep.subr.bf16.mxu0 %v566_v0  ;;  %544 = vmatprep.subr.bf16.mxu1 %v566_v0  ;;  %v64_v1 = vld [vmem:[%s941_s1] sm:$0xff]  ;;  %v65_v2 = vld [vmem:[%s941_s1 + $0x8] sm:$0xff]  ;;  %v66_v3 = vld [vmem:[%s941_s1 + $0x10] sm:$0xff]  ;;  %vm428_vm2 = vcmask 1043456   ;;  %vm477_vm3 = vcmask 130048   ;;  %vm484_vm4 = vcmask 123904  }
   0x2   :  { %v518_v4 = vpack.c.bf16 %v65_v2, %v64_v1  ;;  %v67_v5 = vld [vmem:[%s941_s1 + $0x18] sm:$0xff]  ;;  %v68_v7 = vld [vmem:[%s941_s1 + $0x20] sm:$0xff]  ;;  %v69_v8 = vld [vmem:[%s941_s1 + $0x28] sm:$0xff] }
   0x3   :  { %v521_v6 = vpack.c.bf16 %v67_v5, %v66_v3  ;;  %v15_v9 = vld [vmem:[%s942_s0 + $0x8] sm:$0xff]  ;;  %v41_v10 = vld [vmem:[%s942_s0 + $0xd8] sm:$0xff]  ;;  %v524_v11 = vpack.c.bf16 %v69_v8, %v68_v7  ;;  %v70_v12 = vld [vmem:[%s941_s1 + $0x30] sm:$0xff] }
   0x4   :  { %519 = vmatpush1.bf16.msra.mxu0 %v518_v4  ;;  %554 = vmatpush1.bf16.msra.mxu1 %v518_v4  ;;  %v71_v13 = vld [vmem:[%s941_s1 + $0x38] sm:$0xff]  ;;  %v72_v15 = vld [vmem:[%s941_s1 + $0x40] sm:$0xff]  ;;  %v73_v16 = vld [vmem:[%s941_s1 + $0x48] sm:$0xff] }
   0x5   :  { %520 = vmatprep.subr.bf16.mxu0 %v566_v0  ;;  %545 = vmatprep.subr.bf16.mxu1 %v566_v0  ;;  %v527_v14 = vpack.c.bf16 %v71_v13, %v70_v12  ;;  %v530_v17 = vpack.c.bf16 %v73_v16, %v72_v15  ;;  %v74_v18 = vld [vmem:[%s941_s1 + $0x50] sm:$0xff]  ;;  %v75_v19 = vld [vmem:[%s941_s1 + $0x58] sm:$0xff]  ;;  %v76_v21 = vld [vmem:[%s941_s1 + $0x60] sm:$0xff] }
   0x6   :  { %491 = vmatprep.mubr.msk.f32.mxu0 %vm83_vm0, %v15_v9  ;;  %504 = vmatprep.mubr.msk.f32.mxu1 %vm83_vm0, %v41_v10  ;;  %v533_v20 = vpack.c.bf16 %v75_v19, %v74_v18  ;;  %v77_v22 = vld [vmem:[%s941_s1 + $0x68] sm:$0xff]  ;;  %v78_v24 = vld [vmem:[%s941_s1 + $0x70] sm:$0xff]  ;;  %v79_v25 = vld [vmem:[%s941_s1 + $0x78] sm:$0xff] }
   0x7   :  { %v536_v23 = vpack.c.bf16 %v77_v22, %v76_v21  ;;  %v539_v26 = vpack.c.bf16 %v79_v25, %v78_v24  ;;  %v80_v27 = vld [vmem:[%s941_s1 + $0x80] sm:$0xff]  ;;  %v81_v28 = vld [vmem:[%s941_s1 + $0x88] sm:$0xff]  ;;  %v82_v31 = vld [vmem:[%s941_s1 + $0x90] sm:$0x3f] }
   0x8   :  { %522 = vmatpush1.bf16.msra.mxu0 %v521_v6  ;;  %555 = vmatpush1.bf16.msra.mxu1 %v521_v6  ;;  %v542_v29 = vpack.c.bf16 %v81_v28, %v80_v27  ;;  %v14_v32 = vld [vmem:[%s942_s0] sm:$0xff]  ;;  %v40_v33 = vld [vmem:[%s942_s0 + $0xd0] sm:$0xff]  ;;  %v17_v34 = vld [vmem:[%s942_s0 + $0x18] sm:$0xff] }
   0x9   :  { %523 = vmatprep.subr.bf16.mxu0 %v566_v0  ;;  %546 = vmatprep.subr.bf16.mxu1 %v566_v0  ;;  %v43_v35 = vld [vmem:[%s942_s0 + $0xe8] sm:$0xff]  ;;  %v16_v36 = vld [vmem:[%s942_s0 + $0x10] sm:$0xff]  ;;  %v42_v37 = vld [vmem:[%s942_s0 + $0xe0] sm:$0xff] }
   0xa   :  { %v19_v38 = vld [vmem:[%s942_s0 + $0x28] sm:$0xff]  ;;  %v45_v39 = vld [vmem:[%s942_s0 + $0xf8] sm:$0xff]  ;;  %v18_v40 = vld [vmem:[%s942_s0 + $0x20] sm:$0xff] }
   0xb   :  { %v44_v41 = vld [vmem:[%s942_s0 + $0xf0] sm:$0xff]  ;;  %v21_v42 = vld [vmem:[%s942_s0 + $0x38] sm:$0xff]  ;;  %v47_v43 = vld [vmem:[%s942_s0 + $0x108] sm:$0xff] }
   0xc   :  { %525 = vmatpush1.bf16.msra.mxu0 %v524_v11  ;;  %556 = vmatpush1.bf16.msra.mxu1 %v524_v11  ;;  %v20_v44 = vld [vmem:[%s942_s0 + $0x30] sm:$0xff]  ;;  %v46_v45 = vld [vmem:[%s942_s0 + $0x100] sm:$0xff]  ;;  %v23_v46 = vld [vmem:[%s942_s0 + $0x48] sm:$0xff] }
   0xd   :  { %526 = vmatprep.subr.bf16.mxu0 %v566_v0  ;;  %547 = vmatprep.subr.bf16.mxu1 %v566_v0  ;;  %v49_v47 = vld [vmem:[%s942_s0 + $0x118] sm:$0xff]  ;;  %v22_v48 = vld [vmem:[%s942_s0 + $0x40] sm:$0xff]  ;;  %v48_v49 = vld [vmem:[%s942_s0 + $0x110] sm:$0xff] }
   0xe   :  { %v25_v50 = vld [vmem:[%s942_s0 + $0x58] sm:$0xff]  ;;  %v51_v51 = vld [vmem:[%s942_s0 + $0x128] sm:$0xff]  ;;  %v24_v52 = vld [vmem:[%s942_s0 + $0x50] sm:$0xff] }
   0xf   :  { %v50_v53 = vld [vmem:[%s942_s0 + $0x120] sm:$0xff]  ;;  %v27_v54 = vld [vmem:[%s942_s0 + $0x68] sm:$0xff]  ;;  %v53_v55 = vld [vmem:[%s942_s0 + $0x138] sm:$0xff] }
  0x10   :  { %528 = vmatpush1.bf16.msra.mxu0 %v527_v14  ;;  %557 = vmatpush1.bf16.msra.mxu1 %v527_v14  ;;  %v26_v56 = vld [vmem:[%s942_s0 + $0x60] sm:$0xff]  ;;  %v52_v57 = vld [vmem:[%s942_s0 + $0x130] sm:$0xff]  ;;  %v29_v58 = vld [vmem:[%s942_s0 + $0x78] sm:$0xff] }
  0x11   :  { %529 = vmatprep.subr.bf16.mxu0 %v566_v0  ;;  %548 = vmatprep.subr.bf16.mxu1 %v566_v0  ;;  %v55_v59 = vld [vmem:[%s942_s0 + $0x148] sm:$0xff]  ;;  %v28_v60 = vld [vmem:[%s942_s0 + $0x70] sm:$0xff]  ;;  %v54_v61 = vld [vmem:[%s942_s0 + $0x140] sm:$0xff] }
  0x12   :  { %v31_v62 = vld [vmem:[%s942_s0 + $0x88] sm:$0xff]  ;;  %v57_v63 = vld [vmem:[%s942_s0 + $0x158] sm:$0xff]  ;;  %v56_v1 = vld [vmem:[%s942_s0 + $0x150] sm:$0xff] }
  0x13   :  { %v33_v2 = vld [vmem:[%s942_s0 + $0x98] sm:$0xff]  ;;  %v59_v3 = vld [vmem:[%s942_s0 + $0x168] sm:$0xff]  ;;  %v32_v4 = vld [vmem:[%s942_s0 + $0x90] sm:$0xff] }
  0x14   :  { %531 = vmatpush1.bf16.msra.mxu0 %v530_v17  ;;  %558 = vmatpush1.bf16.msra.mxu1 %v530_v17  ;;  %v58_v5 = vld [vmem:[%s942_s0 + $0x160] sm:$0xff]  ;;  %v35_v6 = vld [vmem:[%s942_s0 + $0xa8] sm:$0xff]  ;;  %v61_v7 = vld [vmem:[%s942_s0 + $0x178] sm:$0xff] }
  0x15   :  { %532 = vmatprep.subr.bf16.mxu0 %v566_v0  ;;  %549 = vmatprep.subr.bf16.mxu1 %v566_v0  ;;  %v34_v8 = vld [vmem:[%s942_s0 + $0xa0] sm:$0xff]  ;;  %v60_v9 = vld [vmem:[%s942_s0 + $0x170] sm:$0xff]  ;;  %v37_v10 = vld [vmem:[%s942_s0 + $0xb8] sm:$0xff] }
  0x16   :  { %v63_v11 = vld [vmem:[%s942_s0 + $0x188] sm:$0xff]  ;;  %v36_v12 = vld [vmem:[%s942_s0 + $0xb0] sm:$0xff]  ;;  %v62_v13 = vld [vmem:[%s942_s0 + $0x180] sm:$0xff] }
  0x17   :  { %v39_v14 = vld [vmem:[%s942_s0 + $0xc8] sm:$0xff]  ;;  %v38_v15 = vld [vmem:[%s942_s0 + $0xc0] sm:$0xff] }
  0x18   :  { %534 = vmatpush1.bf16.msra.mxu0 %v533_v20  ;;  %559 = vmatpush1.bf16.msra.mxu1 %v533_v20 }
  0x19   :  { %535 = vmatprep.subr.bf16.mxu0 %v566_v0  ;;  %550 = vmatprep.subr.bf16.mxu1 %v566_v0 }
  0x1c   :  { %537 = vmatpush1.bf16.msra.mxu0 %v536_v23  ;;  %560 = vmatpush1.bf16.msra.mxu1 %v536_v23 }
  0x1d   :  { %538 = vmatprep.subr.bf16.mxu0 %v566_v0  ;;  %551 = vmatprep.subr.bf16.mxu1 %v566_v0 }
  0x20   :  { %540 = vmatpush1.bf16.msra.mxu0 %v539_v26  ;;  %561 = vmatpush1.bf16.msra.mxu1 %v539_v26 }
  0x21   :  { %541 = vmatprep.subr.bf16.mxu0 %v566_v0  ;;  %552 = vmatprep.subr.bf16.mxu1 %v566_v0  ;;  %v30_v0 = vld [vmem:[%s942_s0 + $0x80] sm:$0xff] }
  0x24   :  { %543 = vmatpush1.bf16.msra.mxu0 %v542_v29  ;;  %562 = vmatpush1.bf16.msra.mxu1 %v542_v29 }
  0x25   :  { %199 = vmatprep.subr.mxu0 %v567_v30  ;;  %553 = vmatprep.subr.mxu1 %v567_v30 }
  0x28   :  { %490 = vmatpush1.msk.msra.mxu0 %vm159_vm1, %v82_v31  ;;  %563 = vmatpush1.msk.msra.mxu1 %vm159_vm1, %v82_v31 }
  0x29   :  { %228 = vmatmul.mubr.f32.vlgmr.msra.gmra.mrb[0].mxu0 %v14_v32  ;;  %293 = vmatmul.mubr.f32.vlgmr.msra.gmra.mrb[0].mxu1 %v40_v33 }
  0x2a   :  { %492 = vmatprep.mubr.msk.f32.mxu0 %vm83_vm0, %v17_v34  ;;  %505 = vmatprep.mubr.msk.f32.mxu1 %vm83_vm0, %v43_v35 }
  0x2d   :  { %233 = vmatmul.mubr.f32.gmra.mrb[2].mxu0 %v16_v36  ;;  %298 = vmatmul.mubr.f32.gmra.mrb[2].mxu1 %v42_v37 }
  0x2e   :  { %493 = vmatprep.mubr.msk.f32.mxu0 %vm83_vm0, %v19_v38  ;;  %506 = vmatprep.mubr.msk.f32.mxu1 %vm83_vm0, %v45_v39 }
  0x31   :  { %238 = vmatmul.mubr.f32.gmra.mrb[4].mxu0 %v18_v40  ;;  %303 = vmatmul.mubr.f32.gmra.mrb[4].mxu1 %v44_v41 }
  0x32   :  { %494 = vmatprep.mubr.msk.f32.mxu0 %vm83_vm0, %v21_v42  ;;  %507 = vmatprep.mubr.msk.f32.mxu1 %vm83_vm0, %v47_v43 }
  0x35   :  { %243 = vmatmul.mubr.f32.gmra.mrb[6].mxu0 %v20_v44  ;;  %308 = vmatmul.mubr.f32.gmra.mrb[6].mxu1 %v46_v45 }
  0x36   :  { %495 = vmatprep.mubr.msk.f32.mxu0 %vm83_vm0, %v23_v46  ;;  %508 = vmatprep.mubr.msk.f32.mxu1 %vm83_vm0, %v49_v47 }
  0x39   :  { %248 = vmatmul.mubr.f32.gmra.mrb[8].mxu0 %v22_v48  ;;  %313 = vmatmul.mubr.f32.gmra.mrb[8].mxu1 %v48_v49 }
  0x3a   :  { %496 = vmatprep.mubr.msk.f32.mxu0 %vm83_vm0, %v25_v50  ;;  %509 = vmatprep.mubr.msk.f32.mxu1 %vm83_vm0, %v51_v51 }
  0x3d   :  { %253 = vmatmul.mubr.f32.gmra.mrb[10].mxu0 %v24_v52  ;;  %318 = vmatmul.mubr.f32.gmra.mrb[10].mxu1 %v50_v53 }
  0x3e   :  { %497 = vmatprep.mubr.msk.f32.mxu0 %vm83_vm0, %v27_v54  ;;  %510 = vmatprep.mubr.msk.f32.mxu1 %vm83_vm0, %v53_v55 }
  0x41   :  { %258 = vmatmul.mubr.f32.gmra.mrb[12].mxu0 %v26_v56  ;;  %323 = vmatmul.mubr.f32.gmra.mrb[12].mxu1 %v52_v57 }
  0x42   :  { %498 = vmatprep.mubr.msk.f32.mxu0 %vm83_vm0, %v29_v58  ;;  %511 = vmatprep.mubr.msk.f32.mxu1 %vm83_vm0, %v55_v59 }
  0x45   :  { %263 = vmatmul.mubr.f32.gmra.mrb[14].mxu0 %v28_v60  ;;  %328 = vmatmul.mubr.f32.gmra.mrb[14].mxu1 %v54_v61 }
  0x46   :  { %499 = vmatprep.mubr.msk.f32.mxu0 %vm83_vm0, %v31_v62  ;;  %512 = vmatprep.mubr.msk.f32.mxu1 %vm83_vm0, %v57_v63 }
  0x49   :  { %268 = vmatmul.mubr.f32.gmra.mrb[16].mxu0 %v30_v0  ;;  %333 = vmatmul.mubr.f32.gmra.mrb[16].mxu1 %v56_v1 }
  0x4a   :  { %500 = vmatprep.mubr.msk.f32.mxu0 %vm83_vm0, %v33_v2  ;;  %513 = vmatprep.mubr.msk.f32.mxu1 %vm83_vm0, %v59_v3 }
  0x4d   :  { %273 = vmatmul.mubr.f32.gmra.mrb[18].mxu0 %v32_v4  ;;  %338 = vmatmul.mubr.f32.gmra.mrb[18].mxu1 %v58_v5 }
  0x4e   :  { %501 = vmatprep.mubr.msk.f32.mxu0 %vm83_vm0, %v35_v6  ;;  %514 = vmatprep.mubr.msk.f32.mxu1 %vm83_vm0, %v61_v7 }
  0x51   :  { %278 = vmatmul.mubr.f32.gmra.mrb[20].mxu0 %v34_v8  ;;  %343 = vmatmul.mubr.f32.gmra.mrb[20].mxu1 %v60_v9 }
  0x52   :  { %502 = vmatprep.mubr.msk.f32.mxu0 %vm83_vm0, %v37_v10  ;;  %515 = vmatprep.mubr.msk.f32.mxu1 %vm83_vm0, %v63_v11 }
  0x55   :  { %283 = vmatmul.mubr.f32.gmra.mrb[22].mxu0 %v36_v12  ;;  %348 = vmatmul.mubr.f32.gmra.mrb[22].mxu1 %v62_v13 }
  0x56   :  { %503 = vmatprep.mubr.msk.f32.mxu0 %vm83_vm0, %v39_v14 }
  0x59   :  { %288 = vmatmul.mubr.f32.gmra.mrb[24].mxu0 %v38_v15  ;;  %v882_v15 = vld [vmem:[%s943_s2] ss:$0 sm:$0xff] }
  0xfc   :  { %v840_v16 = vpop.f32.mrb[0].mxu0  ;;  %v294_v17 = vpop.f32.mrb[0].mxu1 }
  0xfd   :  { %v231_v18 = vpop.f32.mrb[1].mxu0  ;;  %v296_v19 = vpop.f32.mrb[1].mxu1 }
 0x100   :  { %v842_v20 = vpop.f32.mrb[2].mxu0  ;;  %v299_v21 = vpop.f32.mrb[2].mxu1 }
 0x101   :  { %v236_v22 = vpop.f32.mrb[3].mxu0  ;;  %v301_v23 = vpop.f32.mrb[3].mxu1 }
 0x104   :  { %v844_v24 = vpop.f32.mrb[4].mxu0  ;;  %v846_v25 = vpop.f32.mrb[4].mxu1 }
 0x105   :  { %v241_v26 = vpop.f32.mrb[5].mxu0  ;;  %v306_v27 = vpop.f32.mrb[5].mxu1 }
 0x108   :  { %v848_v28 = vpop.f32.mrb[6].mxu0  ;;  %v850_v29 = vpop.f32.mrb[6].mxu1 }
 0x109   :  { %v246_v30 = vpop.f32.mrb[7].mxu0  ;;  %v311_v31 = vpop.f32.mrb[7].mxu1 }
 0x10c   :  { %v852_v32 = vpop.f32.mrb[8].mxu0  ;;  %v854_v33 = vpop.f32.mrb[8].mxu1 }
 0x10d   :  { %v251_v34 = vpop.f32.mrb[9].mxu0  ;;  %v316_v35 = vpop.f32.mrb[9].mxu1 }
 0x110   :  { %v856_v36 = vpop.f32.mrb[10].mxu0  ;;  %v858_v37 = vpop.f32.mrb[10].mxu1 }
 0x111   :  { %v256_v38 = vpop.f32.mrb[11].mxu0  ;;  %v321_v39 = vpop.f32.mrb[11].mxu1  ;;  %v394_v42 = vrot.slane %v858_v37, 2 }
 0x114   :  { %v860_v40 = vpop.f32.mrb[12].mxu0  ;;  %v324_v41 = vpop.f32.mrb[12].mxu1 }
 0x115   :  { %v395_v43 = vrot.slane %v324_v41, 2  ;;  %v261_v44 = vpop.f32.mrb[13].mxu0  ;;  %v326_v45 = vpop.f32.mrb[13].mxu1  ;;  %v360_v49 = vrot.slane %v860_v40, 2 }
 0x117   :  { %v864_v46 = vsel %vm159_vm1, %v394_v42, %v395_v43 }
 0x118   :  { %v264_v47 = vpop.f32.mrb[14].mxu0  ;;  %v329_v48 = vpop.f32.mrb[14].mxu1 }
 0x119   :  { %v361_v50 = vrot.slane %v264_v47, 2  ;;  %v397_v51 = vrot.slane %v329_v48, 2  ;;  %v266_v52 = vpop.f32.mrb[15].mxu0  ;;  %v331_v53 = vpop.f32.mrb[15].mxu1 }
 0x11b   :  { %v868_v54 = vsel %vm159_vm1, %v360_v49, %v361_v50  ;;  %v398_v55 = vsel %vm159_vm1, %v395_v43, %v397_v51 }
 0x11c   :  { %v380_v56 = vmax.f32 %v840_v16, %v868_v54  ;;  %v415_v57 = vmax.f32 %v294_v17, %v398_v55  ;;  %v269_v58 = vpop.f32.mrb[16].mxu0  ;;  %v334_v59 = vpop.f32.mrb[16].mxu1 }
 0x11d   :  { %v363_v60 = vrot.slane %v269_v58, 2  ;;  %v399_v61 = vrot.slane %v334_v59, 2  ;;  %v271_v62 = vpop.f32.mrb[17].mxu0  ;;  %v336_v63 = vpop.f32.mrb[17].mxu1 }
 0x11e   :  { %v430_v10 = vrot.slane %v415_v57, 4 }
 0x11f   :  { %v364_v0 = vsel %vm159_vm1, %v361_v50, %v363_v60  ;;  %v400_v1 = vsel %vm159_vm1, %v397_v51, %v399_v61 }
 0x120   :  { %v381_v2 = vmax.f32 %v842_v20, %v364_v0  ;;  %v416_v3 = vmax.f32 %v299_v21, %v400_v1  ;;  %v274_v4 = vpop.f32.mrb[18].mxu0  ;;  %v339_v5 = vpop.f32.mrb[18].mxu1 }
 0x121   :  { %v365_v6 = vrot.slane %v274_v4, 2  ;;  %v401_v7 = vrot.slane %v339_v5, 2  ;;  %v276_v8 = vpop.f32.mrb[19].mxu0  ;;  %v341_v9 = vpop.f32.mrb[19].mxu1 }
 0x122   :  { %v432_v11 = vrot.slane %v416_v3, 4 }
 0x123   :  { %v366_v12 = vsel %vm159_vm1, %v363_v60, %v365_v6  ;;  %v402_v13 = vsel %vm159_vm1, %v399_v61, %v401_v7 }
 0x124   :  { %v433_v14 = vsel %vm428_vm2, %v430_v10, %v432_v11  ;;  %v382_v17 = vmax.f32 %v844_v24, %v366_v12  ;;  %v417_v18 = vmax.f32 %v846_v25, %v402_v13  ;;  %v279_v19 = vpop.f32.mrb[20].mxu0  ;;  %v344_v20 = vpop.f32.mrb[20].mxu1 }
 0x125   :  { %v450_v21 = vmax.f32 %v381_v2, %v433_v14  ;;  %v367_v22 = vrot.slane %v279_v19, 2  ;;  %v403_v23 = vrot.slane %v344_v20, 2  ;;  %v281_v26 = vpop.f32.mrb[21].mxu0  ;;  %v346_v27 = vpop.f32.mrb[21].mxu1 }
 0x126   :  { %v434_v30 = vrot.slane %v417_v18, 4 }
 0x127   :  { %v464_v31 = vadd.f32 %v882_v15, %v450_v21  ;;  %v368_v34 = vsel %vm159_vm1, %v365_v6, %v367_v22  ;;  %v404_v35 = vsel %vm159_vm1, %v401_v7, %v403_v23 }
 0x128   :  { %v435_v38 = vsel %vm428_vm2, %v432_v11, %v434_v30  ;;  %v383_v24 = vmax.f32 %v848_v28, %v368_v34  ;;  %v418_v25 = vmax.f32 %v850_v29, %v404_v35  ;;  %v284_v39 = vpop.f32.mrb[22].mxu0  ;;  %v349_v41 = vpop.f32.mrb[22].mxu1 }
 0x129   :  { %v471_v42 = vmax.f32 %v464_v31, 0.0  ;;  %v451_v43 = vmax.f32 %v382_v17, %v435_v38  ;;  %v369_v44 = vrot.slane %v284_v39, 2  ;;  %v405_v45 = vrot.slane %v349_v41, 2  ;;  %v286_v47 = vpop.f32.mrb[23].mxu0  ;;  %v351_v48 = vpop.f32.mrb[23].mxu1 }
 0x12a   :  { %v436_v49 = vrot.slane %v418_v25, 4 }
 0x12b   :  { %479 = vst.msk [vmem:[%s944_s3 + $0x8] sm:$0xff] %vm477_vm3, %v471_v42  ;;  %v465_v50 = vadd.f32 %v882_v15, %v451_v43  ;;  %v370_v28 = vsel %vm159_vm1, %v367_v22, %v369_v44  ;;  %v406_v29 = vsel %vm159_vm1, %v403_v23, %v405_v45  ;;  %v420_v51 = vmax.f32 %v858_v37, %v405_v45 }
 0x12c   :  { %v437_v52 = vsel %vm428_vm2, %v434_v30, %v436_v49  ;;  %v384_v53 = vmax.f32 %v852_v32, %v370_v28  ;;  %v419_v55 = vmax.f32 %v854_v33, %v406_v29  ;;  %v289_v57 = vpop.f32.mrb[24].mxu0 }
 0x12d   :  { %v472_v58 = vmax.f32 %v465_v50, 0.0  ;;  %v452_v59 = vmax.f32 %v383_v24, %v437_v52  ;;  %v440_v60 = vrot.slane %v420_v51, 4  ;;  %v371_v61 = vrot.slane %v289_v57, 2  ;;  %v291_v62 = vpop.f32.mrb[25].mxu0 }
 0x12e   :  { %v438_v63 = vrot.slane %v419_v55, 4  ;;  %v414_v0 = vmax.f32 %v289_v57, %v864_v46 }
 0x12f   :  { %480 = vst.msk [vmem:[%s944_s3 + $0x10] sm:$0xff] %vm477_vm3, %v472_v58  ;;  %v466_v37 = vadd.f32 %v882_v15, %v452_v59  ;;  %v372_v32 = vsel %vm159_vm1, %v369_v44, %v371_v61  ;;  %v386_v33 = vmax.f32 %v860_v40, %v371_v61 }
 0x130   :  { %v439_v1 = vsel %vm428_vm2, %v436_v49, %v438_v63  ;;  %v441_v2 = vsel %vm428_vm2, %v438_v63, %v440_v60  ;;  %v385_v3 = vmax.f32 %v856_v36, %v372_v32  ;;  %v429_v4 = vrot.slane %v414_v0, 4 }
 0x131   :  { %v473_v5 = vmax.f32 %v466_v37, 0.0  ;;  %v453_v46 = vmax.f32 %v384_v53, %v439_v1  ;;  %v455_v6 = vmax.f32 %v386_v33, %v440_v60 }
 0x132   :  { %v431_v7 = vsel %vm428_vm2, %v429_v4, %v430_v10  ;;  %v454_v8 = vmax.f32 %v385_v3, %v441_v2 }
 0x133   :  { %481 = vst.msk [vmem:[%s944_s3 + $0x18] sm:$0xff] %vm477_vm3, %v473_v5  ;;  %v467_v40 = vadd.f32 %v882_v15, %v453_v46  ;;  %v449_v9 = vmax.f32 %v380_v56, %v431_v7  ;;  %v469_v36 = vadd.f32 %v882_v15, %v455_v6 }
 0x134   :  { %v468_v11 = vadd.f32 %v882_v15, %v454_v8 }
 0x135   :  { %v474_v12 = vmax.f32 %v467_v40, 0.0  ;;  %v463_v10 = vadd.f32 %v882_v15, %v449_v9  ;;  %v476_v13 = vmax.f32 %v469_v36, 0.0 }
 0x136   :  { %v475_v14 = vmax.f32 %v468_v11, 0.0 }
 0x137   :  { %482 = vst.msk [vmem:[%s944_s3 + $0x20] sm:$0xff] %vm477_vm3, %v474_v12  ;;  %v470_v17 = vmax.f32 %v463_v10, 0.0 }
 0x138   :  { %485 = vst.msk [vmem:[%s944_s3 + $0x30] sm:$0x3] %vm484_vm4, %v476_v13 }
 0x139   :  { %483 = vst.msk [vmem:[%s944_s3 + $0x28] sm:$0xff] %vm477_vm3, %v475_v14  ;;  %478 = vst.msk [vmem:[%s944_s3] sm:$0xff] %vm477_vm3, %v470_v17 }

// kernel: run_model.7
= control target key start
LH: loop header
LB: loop body
LE: loop exit
PB: predicated region body
PF: predicated region fallthrough
CT: control target
= control target key end

     0   :  { %12 = vsyncpa [#allocation3], 0  ;;  %v430_v3 = vmov 0.0|0.0   ;;  %vm431_vm0 = vmmov 0   ;;  %v432_v6 = vmov 0.0   ;;  %s585_s0 = inlined_call_operand.vmem [shape: f32[2,120], index: 0, kind: input, shape index: {}]   ;;  %s586_s1 = inlined_call_operand.vmem [shape: f32[120,84], index: 1, kind: input, shape index: {}]   ;;  %s587_s2 = inlined_call_operand.vmem [shape: f32[1,84], index: 2, kind: input, shape index: {}]   ;;  %s588_s3 = inlined_call_operand.vmem [shape: f32[84,10], index: 3, kind: input, shape index: {}]   ;;  %s589_s4 = inlined_call_operand.vmem [shape: f32[1,10], index: 4, kind: input, shape index: {}]   ;;  %s590_s5 = inlined_call_operand.hbm [shape: f32[2,84], index: 5, kind: output, shape index: {0}]   ;;  %s591_s6 = inlined_call_operand.hbm [shape: f32[2,10], index: 6, kind: output, shape index: {1}]  }
   0x1   :  { %v25_v0 = vld [vmem:[%s586_s1] sm:$0xff]  ;;  %v26_v1 = vld [vmem:[%s586_s1 + $0x8] sm:$0xff]  ;;  %v27_v2 = vld [vmem:[%s586_s1 + $0x10] sm:$0xff]  ;;  %341 = vmatprep.subr.bf16.mxu0 %v430_v3  ;;  %313 = vmatprep.mubr.msk.f32.mxu0 %vm431_vm0, %v432_v6 }
   0x2   :  { %v342_v4 = vpack.c.bf16 %v26_v1, %v25_v0  ;;  %v28_v5 = vld [vmem:[%s586_s1 + $0x18] sm:$0xff]  ;;  %362 = vmatprep.subr.bf16.mxu1 %v430_v3  ;;  %338 = vmatprep.mubr.msk.f32.mxu1 %vm431_vm0, %v432_v6  ;;  %v29_v8 = vld [vmem:[%s586_s1 + $0x20] sm:$0xff]  ;;  %v30_v9 = vld [vmem:[%s586_s1 + $0x28] sm:$0xff] }
   0x3   :  { %v345_v7 = vpack.c.bf16 %v28_v5, %v27_v2  ;;  %v124_v10 = vld [vmem:[%s588_s3] sm:$0xff]  ;;  %v125_v11 = vld [vmem:[%s588_s3 + $0x8] sm:$0xff]  ;;  %v126_v13 = vld [vmem:[%s588_s3 + $0x10] sm:$0xff]  ;;  %v348_v15 = vpack.c.bf16 %v30_v9, %v29_v8 }
   0x4   :  { %343 = vmatpush3.bf16.msra.mxu0 %v342_v4  ;;  %v363_v12 = vpack.c.bf16 %v125_v11, %v124_v10  ;;  %v127_v14 = vld [vmem:[%s588_s3 + $0x18] sm:$0xff]  ;;  %v31_v16 = vld [vmem:[%s586_s1 + $0x30] sm:$0xff] }
   0x5   :  { %344 = vmatprep.subr.bf16.mxu0 %v430_v3  ;;  %v32_v17 = vld [vmem:[%s586_s1 + $0x38] sm:$0xff]  ;;  %v366_v18 = vpack.c.bf16 %v127_v14, %v126_v13 }
   0x6   :  { %364 = vmatpush3.bf16.msra.mxu1 %v363_v12 }
   0x8   :  { %346 = vmatpush3.bf16.msra.mxu0 %v345_v7 }
   0x9   :  { %347 = vmatprep.subr.bf16.mxu0 %v430_v3 }
   0xa   :  { %13 = vsyncpa [#allocation5], 0  ;;  %365 = vmatprep.subr.bf16.mxu1 %v430_v3  ;;  %v128_v19 = vld [vmem:[%s588_s3 + $0x20] sm:$0xff]  ;;  %v129_v20 = vld [vmem:[%s588_s3 + $0x28] sm:$0xff]  ;;  %v351_v21 = vpack.c.bf16 %v32_v17, %v31_v16  ;;  %vm47_vm1 = vcmask 982016   ;;  %vm146_vm2 = vcmask 1043456  }
   0xb   :  { %v33_v22 = vld [vmem:[%s586_s1 + $0x40] sm:$0xff]  ;;  %v34_v23 = vld [vmem:[%s586_s1 + $0x48] sm:$0xff]  ;;  %367 = vmatpush3.bf16.msra.mxu1 %v366_v18  ;;  %v369_v24 = vpack.c.bf16 %v129_v20, %v128_v19  ;;  %v130_v25 = vld [vmem:[%s588_s3 + $0x30] sm:$0xff]  ;;  %vm142_vm3 = vcmask 687104   ;;  %vm122_vm4 = vcmask 680960   ;;  %s433_s27 = smov [#allocation2]  }
   0xc   :  { %349 = vmatpush3.bf16.msra.mxu0 %v348_v15  ;;  %368 = vmatprep.subr.bf16.mxu1 %v430_v3  ;;  %v131_v26 = vld [vmem:[%s588_s3 + $0x38] sm:$0xff]  ;;  %v354_v27 = vpack.c.bf16 %v34_v23, %v33_v22  ;;  %v35_v28 = vld [vmem:[%s586_s1 + $0x50] sm:$0xff]  ;;  %v37_v32 = vld [vmem:[%s586_s1 + $0x60] sm:$0xff]  ;;  %s228_s28 = sshll.u32 %s433_s27, 4  ;;  %s229_s28 = int_to_ptr.vmem [resolvable:$true] %s228_s28 }
   0xd   :  { %350 = vmatprep.subr.bf16.mxu0 %v430_v3  ;;  %v36_v29 = vld [vmem:[%s586_s1 + $0x58] sm:$0xff]  ;;  %v372_v30 = vpack.c.bf16 %v131_v26, %v130_v25  ;;  %v38_v33 = vld [vmem:[%s586_s1 + $0x68] sm:$0xff]  ;;  %v39_v35 = vld [vmem:[%s586_s1 + $0x70] sm:$0xff]  ;;  %s382_s29 = scalar_lea.vmem %s229_s28, 32  ;;  %p387_p1 = scmp.lt.s32.totalorder %s229_s28, %s229_s28 }
   0xe   :  { %v357_v31 = vpack.c.bf16 %v36_v29, %v35_v28  ;;  %v360_v34 = vpack.c.bf16 %v38_v33, %v37_v32  ;;  %v24_v36 = vld [vmem:[%s585_s0] sm:$0x3]  ;;  %v133_v38 = vld [vmem:[%s588_s3 + $0x48] sm:$0xff]  ;;  %v134_v40 = vld [vmem:[%s588_s3 + $0x50] sm:$0xf]  ;;  %p383_p0 = scmp.ne.s32.totalorder %s229_s28, %s382_s29  ;;  %p388_p2 = scmp.lt.s32.totalorder %s382_s29, %s382_s29 }
   0xf   :  { %370 = vmatpush3.bf16.msra.mxu1 %v369_v24  ;;  %v132_v37 = vld [vmem:[%s588_s3 + $0x40] sm:$0xff] }
  0x10   :  { %352 = vmatpush3.bf16.msra.mxu0 %v351_v21  ;;  %371 = vmatprep.subr.bf16.mxu1 %v430_v3  ;;  %v375_v39 = vpack.c.bf16 %v133_v38, %v132_v37  ;;  %v250_v41 = vld [vmem:[%s587_s2] ss:$0 sm:$0xff]  ;;  %p389_p3 = por %p388_p2, %p387_p1 }
  0x11   :  { %353 = vmatprep.subr.bf16.mxu0 %v430_v3 }
  0x12   :  { %p390_p4 = pnand %p389_p3, %p383_p0 }
  0x13   :  { %373 = vmatpush3.bf16.msra.mxu1 %v372_v30 }
  0x14   :  { %355 = vmatpush3.bf16.msra.mxu0 %v354_v27  ;;  %374 = vmatprep.subr.bf16.mxu1 %v430_v3 }
  0x15   :  { %356 = vmatprep.subr.bf16.mxu0 %v430_v3 }
  0x17   :  { %376 = vmatpush3.bf16.msra.mxu1 %v375_v39 }
  0x18   :  { %358 = vmatpush3.bf16.msra.mxu0 %v357_v31  ;;  %336 = vmatprep.subr.mxu1 %v432_v6 }
  0x19   :  { %359 = vmatprep.subr.bf16.mxu0 %v430_v3 }
  0x1b   :  { %337 = vmatpush3.msk.msra.mxu1 %vm146_vm2, %v134_v40 }
  0x1c   :  { %361 = vmatpush3.bf16.msra.mxu0 %v360_v34 }
  0x1d   :  { %311 = vmatprep.subr.mxu0 %v432_v6 }
  0x20   :  { %312 = vmatpush3.msra.mxu0 %v39_v35 }
  0x21   :  { %314 = vmatmul.mubr.msk.f32.vlgmr.msra.gmra.mrb[0].mxu0 %vm47_vm1, %v24_v36 }
  0xf4   :  { %v117_v42 = vpop.f32.mrb[0].mxu0 }
  0xf5   :  { %v118_v43 = vadd.f32 %v250_v41, %v117_v42  ;;  %v315_v44 = vpop.f32.mrb[1].mxu0 }
  0xf7   :  { %v121_v45 = vmax.f32 %v118_v43, 0.0 }
  0xf9   :  { %339 = vmatmul.mubr.msk.f32.vlgmr.msra.gmra.mrb[0].mxu1 %vm142_vm3, %v121_v45  ;;  %123 = vst.msk [vmem:[#allocation2] sm:$0x3] %vm122_vm4, %v121_v45 }
  0xfa   :  { %393 = shalt.err (!%p390_p4)
}
  0xfb   :  { %s394_s30 = scalar_lea.hbm %s590_s5, 32 }
  0xfc   :  { %p395_p5 = scmp.ne.s32.totalorder %s590_s5, %s394_s30  ;;  %p398_p6 = scmp.lt.u32.totalorder %s394_s30, %s590_s5 }
  0xfe   :  { %p400_p7 = pnand %p398_p6, %p395_p5 }
 0x100   :  { %403 = shalt.err (!%p400_p7)
}
 0x101   :  { %231 = dma.vmem_to_hbm [thread:$0]  %s229_s28, 32, %s590_s5, [#allocation3]   ;;  %v252_v46 = vld [vmem:[%s589_s4] ss:$0 sm:$0xff]  ;;  %vm220_vm5 = vcmask 74752  }
 0x102   :  { %s434_s15 = smov [#allocation4]  }
 0x103   :  { %s238_s16 = sshll.u32 %s434_s15, 4  ;;  %s239_s16 = int_to_ptr.vmem [resolvable:$true] %s238_s16 }
 0x104   :  { %s404_s17 = scalar_lea.vmem %s239_s16, 32  ;;  %p409_p9 = scmp.lt.s32.totalorder %s239_s16, %s239_s16 }
 0x105   :  { %p405_p8 = scmp.ne.s32.totalorder %s239_s16, %s404_s17  ;;  %p410_p10 = scmp.lt.s32.totalorder %s404_s17, %s404_s17 }
 0x107   :  { %p411_p11 = por %p410_p10, %p409_p9 }
 0x109   :  { %p412_p12 = pnand %p411_p11, %p405_p8 }
 0x1cc   :  { %v216_v47 = vpop.f32.mrb[0].mxu1 }
 0x1cd   :  { %v217_v48 = vadd.f32 %v252_v46, %v216_v47  ;;  %v340_v49 = vpop.f32.mrb[1].mxu1 }
 0x1cf   :  { %221 = vst.msk [vmem:[#allocation4] sm:$0x3] %vm220_vm5, %v217_v48 }
 0x1d0   :  { %415 = shalt.err (!%p412_p12)
}
 0x1d1   :  { %s416_s19 = scalar_lea.hbm %s591_s6, 32 }
 0x1d2   :  { %p417_p13 = scmp.ne.s32.totalorder %s591_s6, %s416_s19  ;;  %p420_p0 = scmp.lt.u32.totalorder %s416_s19, %s591_s6 }
 0x1d4   :  { %p422_p1 = pnand %p420_p0, %p417_p13 }
 0x1d6   :  { %425 = shalt.err (!%p422_p1)
}
 0x1d7   :  { %241 = dma.vmem_to_hbm [thread:$0]  %s239_s16, 32, %s591_s6, [#allocation5]  }
 0x1d8   :  { %426 = dma.done.wait [#allocation3], 32  }
 0x1d9   :  { %427 = vsyncadd [#allocation3], 4294967264 }
 0x1da   :  { %428 = dma.done.wait [#allocation5], 32  }
 0x1db   :  { %429 = vsyncadd [#allocation5], 4294967264 }
 0x1dc   :  { %248 = vsyncpa [#allocation3], 1 }
 0x1dd   :  { %249 = vsyncpa [#allocation5], 1 }

// kernel: run_model.6
= control target key start
LH: loop header
LB: loop body
LE: loop exit
PB: predicated region body
PF: predicated region fallthrough
CT: control target
= control target key end

     0   :  { %s21283_s0 = inlined_call_operand.vmem [shape: f32[2,25], index: 0, kind: input, shape index: {}]   ;;  %s21284_s1 = inlined_call_operand.vmem [shape: f32[25,138384], index: 1, kind: input, shape index: {}]   ;;  %s21285_s2 = inlined_call_operand.vmem [shape: f32[1,138384], index: 2, kind: input, shape index: {}]   ;;  %s21286_s3 = inlined_call_operand.hbm [shape: f32[2,138384], index: 3, kind: output, shape index: {}]  }
   0x1   :  { %21287 = sst [smem:[#allocation6_spill]] %s21284_s1 }
   0x2   :  { %8 = vsyncpa [#allocation4], 0 }
   0x3   :  { %10 = vsyncpa [#allocation4 + $0x1], 0  ;;  %s17866_s12 = smov 0   ;;  %s17868_s13 = smov 0  }
   0x4   :  { %s17870_s14 = smov 0   ;;  %s17872_s15 = smov 0  }
   0x5 LB: > { %s17887_s16 = sadd.s32 4294967295, %s17772_s15   ;;  %s15642_s17 = sadd.s32 4294967294, %s17772_s15   ;;  %s17772_s15 = sphi %s17872_s15, %s21312_s15   ;;  %s17768_s14 = sphi %s17870_s14, %s21311_s14   ;;  %s17764_s13 = sphi %s17868_s13, %s21310_s13   ;;  %s17760_s12 = sphi %s17866_s12, %s21309_s12  }
   0x6   : > { %s17891_s18 = sadd.s32 1, %s17772_s15   ;;  %s44_s19 = sadd.s32 1, %s17768_s14 }
   0x7   : > { %s41_s20 = ssub.s32 %s17772_s15, %s17891_s18  ;;  %p51_p0 = scmp.ne.s32.totalorder %s17768_s14, %s17764_s13 }
   0x8   : > { %p42_p1 = scmp.eq.s32.totalorder %s41_s20, 0  ;;  %p52_p2 = scmp.eq.s32.totalorder %s17772_s15, 0 }
   0x9   : > { %p107_p3 = scmp.eq.s32.totalorder %s17887_s16, 3  ;;  %p112_p4 = scmp.ne.s32.totalorder %s17764_s13, %s17760_s12 }
   0xa   : > { %s17903_s21 = scalar_select %p42_p1, %s17768_s14, %s44_s19  }
   0xb   : > { %p53_p5 = por %p52_p2, %p51_p0  ;;  %p17905_p6 = por %p107_p3, %p51_p0 }
   0xc   : > { %p113_p7 = scmp.eq.s32.totalorder %s15642_s17, 3  ;;  %p15644_p9 = scmp.ge.s32.totalorder %s17772_s15, 4 }
   0xe   : > { %p17909_p8 = por %p113_p7, %p112_p4  ;;  %132 = sbr.rel (%p15644_p9) target bundleno = 195 (0xc3), region = 20 }
  0x15   : > { %135 = sbr.rel (!%p53_p5) target bundleno = 195 (0xc3), region = 24  ;;  %s137_s24 = sand.u32 (%p53_p5), 1, %s17768_s14  }
  0x16   : > { %s140_s25 = smul.u32 (%p53_p5), 271, %s17772_s15  ;;  %s21290_s1 = sld [smem:[#allocation6_spill]] (%p53_p5) }
  0x17   : > { %s17464_s26 = smul.u32 (%p53_p5), 8672, %s137_s24 }
  0x18   : > { %s141_s27 = ssub.s32 (%p53_p5), 1082, %s140_s25  ;;  %s16085_s28 = smul.u32 (%p53_p5), 2168, %s17772_s15 }
  0x19   : > { %p142_p10 = scmp.lt.s32.totalorder (%p53_p5), %s141_s27, 271  ;;  %s17924_s7 = scalar_lea.vmem (%p53_p5), [#allocation2], %s17464_s26  }
  0x1c   : > { %s17920_s4 = scalar_lea.vmem %s21290_s1, %s16085_s28   ;;  %s21314_s27 = smov (!%p142_p10, %s141_s27), 271 }
  0x1d   : > { %s15645_s5 = sshll.u32 %s21314_s27, 9  ;;  %s17922_s6 = sshll.u32 %s21314_s27, 3 }
  0x1e   : > { %p15649_p11 = scmp.eq.s32.totalorder %s15645_s5, 0 }
  0x1f   : > { %p152_p12 = scmp.lt.u32.totalorder (!%p15649_p11), %s17922_s6, 8 }
  0x20   : > { %151 = sbr.rel (%p15649_p11) target bundleno = 195 (0xc3), region = 28 }
  0x27   : > { %155 = sbr.rel (%p152_p12) target bundleno = 186 (0xba), region = 32  ;;  %s17928_s8 = sand.u32 (!%p152_p12), 7, %s17922_s6  }
  0x28   : > { %p177_p13 = scmp.eq.s32.totalorder (!%p152_p12), %s17928_s8, 0  ;;  %p15650_p0 = scmp.ne.s32.totalorder (!%p152_p12), %s17928_s8, 0 }
  0x2e   : > { %180 = sbr.rel (%p15650_p0) target bundleno = 113 (0x71), region = 47  ;;  %s181_s9 = sshrl.u32 (!%p15650_p0), %s17922_s6, 3 }
  0x2f   : > { %s17935_s10 = sshrl.u32 (!%p15650_p0), %s181_s9, 4 }
  0x30   : > { %p15651_p1 = scmp.le.s32.totalorder (!%p15650_p0), %s17935_s10, 0 }
  0x35   : > { %15564 = sbr.rel (%p15651_p1) target bundleno = 93 (0x5d), region = 153  ;;  %s21291_s11 = smov (!%p15651_p1), %s17924_s7 }
  0x36   : > { %s21292_s17 = smov (!%p15651_p1), %s17920_s4  ;;  %s17944_s19 = smov (!%p15651_p1), 0  }
  0x37   : > { %s17946_s20 = smov (!%p15651_p1), 0  }
  0x3c LB: >> { %v194_v0 = vld [vmem:[%s17780_s17] sm:$0xff]  ;;  %v196_v1 = vld [vmem:[%s17780_s17 + $0x8] sm:$0xff]  ;;  %v198_v2 = vld [vmem:[%s17780_s17 + $0x10] sm:$0xff]  ;;  %s322_s24 = sadd.s32 1, %s17784_s19  ;;  %s188_s20 = sadd.s32 1, %s17788_s20   ;;  %s17788_s20 = sphi %s17946_s20, %s188_s20   ;;  %s17784_s19 = sphi %s17944_s19, %s21295_s19   ;;  %s17780_s17 = sphi %s21292_s17, %s21294_s17   ;;  %s17776_s11 = sphi %s21291_s11, %s21293_s11  }
  0x3d   : >> { %195 = vst [vmem:[%s17776_s11] sm:$0xff] %v194_v0  ;;  %197 = vst [vmem:[%s17776_s11 + $0x8] sm:$0xff] %v196_v1  ;;  %v200_v3 = vld [vmem:[%s17780_s17 + $0x18] sm:$0xff]  ;;  %v202_v4 = vld [vmem:[%s17780_s17 + $0x20] sm:$0xff]  ;;  %p323_p2 = scmp.ge.s32.totalorder %s322_s24, %s17935_s10  ;;  %p187_p3 = scmp.ge.s32.totalorder %s188_s20, %s17935_s10 }
  0x3e   : >> { %199 = vst [vmem:[%s17776_s11 + $0x10] sm:$0xff] %v198_v2  ;;  %v204_v5 = vld [vmem:[%s17780_s17 + $0x28] sm:$0xff]  ;;  %201 = vst [vmem:[%s17776_s11 + $0x18] sm:$0xff] %v200_v3  ;;  %v206_v6 = vld [vmem:[%s17780_s17 + $0x30] sm:$0xff] }
  0x3f   : >> { %203 = vst [vmem:[%s17776_s11 + $0x20] sm:$0xff] %v202_v4  ;;  %205 = vst [vmem:[%s17776_s11 + $0x28] sm:$0xff] %v204_v5  ;;  %v208_v7 = vld [vmem:[%s17780_s17 + $0x38] sm:$0xff]  ;;  %v210_v8 = vld [vmem:[%s17780_s17 + $0x40] sm:$0xff]  ;;  %s21316_s24 = smov (%p323_p2, %s322_s24), 0 }
  0x40   : >> { %207 = vst [vmem:[%s17776_s11 + $0x30] sm:$0xff] %v206_v6  ;;  %209 = vst [vmem:[%s17776_s11 + $0x38] sm:$0xff] %v208_v7  ;;  %v212_v9 = vld [vmem:[%s17780_s17 + $0x48] sm:$0xff]  ;;  %v214_v10 = vld [vmem:[%s17780_s17 + $0x50] sm:$0xff]  ;;  %s15652_s25 = sshll.u32 %s21316_s24, 7  ;;  %s21295_s19 = smov %s21316_s24 }
  0x41   : >> { %211 = vst [vmem:[%s17776_s11 + $0x40] sm:$0xff] %v210_v8  ;;  %v216_v11 = vld [vmem:[%s17780_s17 + $0x58] sm:$0xff]  ;;  %213 = vst [vmem:[%s17776_s11 + $0x48] sm:$0xff] %v212_v9  ;;  %v218_v12 = vld [vmem:[%s17780_s17 + $0x60] sm:$0xff]  ;;  %s18002_s26 = scalar_lea.vmem %s17920_s4, %s15652_s25   ;;  %s18005_s27 = scalar_lea.vmem %s17924_s7, %s15652_s25 [#allocation2]  }
  0x42   : >> { %215 = vst [vmem:[%s17776_s11 + $0x50] sm:$0xff] %v214_v10  ;;  %217 = vst [vmem:[%s17776_s11 + $0x58] sm:$0xff] %v216_v11  ;;  %v220_v13 = vld [vmem:[%s17780_s17 + $0x68] sm:$0xff]  ;;  %v222_v14 = vld [vmem:[%s17780_s17 + $0x70] sm:$0xff] }
  0x43   : >> { %219 = vst [vmem:[%s17776_s11 + $0x60] sm:$0xff] %v218_v12  ;;  %221 = vst [vmem:[%s17776_s11 + $0x68] sm:$0xff] %v220_v13  ;;  %v224_v15 = vld [vmem:[%s17780_s17 + $0x78] sm:$0xff]  ;;  %v226_v16 = vld [vmem:[%s17780_s17 + $0x21d0] sm:$0xff] }
  0x44   : >> { %223 = vst [vmem:[%s17776_s11 + $0x70] sm:$0xff] %v222_v14  ;;  %v228_v17 = vld [vmem:[%s17780_s17 + $0x21d8] sm:$0xff]  ;;  %225 = vst [vmem:[%s17776_s11 + $0x78] sm:$0xff] %v224_v15  ;;  %v230_v18 = vld [vmem:[%s17780_s17 + $0x21e0] sm:$0xff] }
  0x45   : >> { %227 = vst [vmem:[%s17776_s11 + $0x878] sm:$0xff] %v226_v16  ;;  %229 = vst [vmem:[%s17776_s11 + $0x880] sm:$0xff] %v228_v17  ;;  %v232_v19 = vld [vmem:[%s17780_s17 + $0x21e8] sm:$0xff]  ;;  %v234_v20 = vld [vmem:[%s17780_s17 + $0x21f0] sm:$0xff] }
  0x46   : >> { %231 = vst [vmem:[%s17776_s11 + $0x888] sm:$0xff] %v230_v18  ;;  %233 = vst [vmem:[%s17776_s11 + $0x890] sm:$0xff] %v232_v19  ;;  %v236_v21 = vld [vmem:[%s17780_s17 + $0x21f8] sm:$0xff]  ;;  %v238_v22 = vld [vmem:[%s17780_s17 + $0x2200] sm:$0xff] }
  0x47   : >> { %235 = vst [vmem:[%s17776_s11 + $0x898] sm:$0xff] %v234_v20  ;;  %v240_v23 = vld [vmem:[%s17780_s17 + $0x2208] sm:$0xff]  ;;  %237 = vst [vmem:[%s17776_s11 + $0x8a0] sm:$0xff] %v236_v21  ;;  %v242_v24 = vld [vmem:[%s17780_s17 + $0x2210] sm:$0xff] }
  0x48   : >> { %239 = vst [vmem:[%s17776_s11 + $0x8a8] sm:$0xff] %v238_v22  ;;  %241 = vst [vmem:[%s17776_s11 + $0x8b0] sm:$0xff] %v240_v23  ;;  %v244_v25 = vld [vmem:[%s17780_s17 + $0x2218] sm:$0xff]  ;;  %v246_v26 = vld [vmem:[%s17780_s17 + $0x2220] sm:$0xff] }
  0x49   : >> { %243 = vst [vmem:[%s17776_s11 + $0x8b8] sm:$0xff] %v242_v24  ;;  %245 = vst [vmem:[%s17776_s11 + $0x8c0] sm:$0xff] %v244_v25  ;;  %v248_v27 = vld [vmem:[%s17780_s17 + $0x2228] sm:$0xff]  ;;  %v250_v28 = vld [vmem:[%s17780_s17 + $0x2230] sm:$0xff] }
  0x4a   : >> { %247 = vst [vmem:[%s17776_s11 + $0x8c8] sm:$0xff] %v246_v26  ;;  %v252_v29 = vld [vmem:[%s17780_s17 + $0x2238] sm:$0xff]  ;;  %249 = vst [vmem:[%s17776_s11 + $0x8d0] sm:$0xff] %v248_v27  ;;  %v254_v30 = vld [vmem:[%s17780_s17 + $0x2240] sm:$0xff] }
  0x4b   : >> { %251 = vst [vmem:[%s17776_s11 + $0x8d8] sm:$0xff] %v250_v28  ;;  %253 = vst [vmem:[%s17776_s11 + $0x8e0] sm:$0xff] %v252_v29  ;;  %v256_v31 = vld [vmem:[%s17780_s17 + $0x2248] sm:$0xff]  ;;  %v258_v32 = vld [vmem:[%s17780_s17 + $0x43a0] sm:$0xff] }
  0x4c   : >> { %255 = vst [vmem:[%s17776_s11 + $0x8e8] sm:$0xff] %v254_v30  ;;  %257 = vst [vmem:[%s17776_s11 + $0x8f0] sm:$0xff] %v256_v31  ;;  %v260_v33 = vld [vmem:[%s17780_s17 + $0x43a8] sm:$0xff]  ;;  %v262_v34 = vld [vmem:[%s17780_s17 + $0x43b0] sm:$0xff] }
  0x4d   : >> { %259 = vst [vmem:[%s17776_s11 + $0x10f0] sm:$0xff] %v258_v32  ;;  %v264_v35 = vld [vmem:[%s17780_s17 + $0x43b8] sm:$0xff]  ;;  %261 = vst [vmem:[%s17776_s11 + $0x10f8] sm:$0xff] %v260_v33  ;;  %v266_v36 = vld [vmem:[%s17780_s17 + $0x43c0] sm:$0xff] }
  0x4e   : >> { %263 = vst [vmem:[%s17776_s11 + $0x1100] sm:$0xff] %v262_v34  ;;  %265 = vst [vmem:[%s17776_s11 + $0x1108] sm:$0xff] %v264_v35  ;;  %v268_v37 = vld [vmem:[%s17780_s17 + $0x43c8] sm:$0xff]  ;;  %v270_v38 = vld [vmem:[%s17780_s17 + $0x43d0] sm:$0xff] }
  0x4f   : >> { %267 = vst [vmem:[%s17776_s11 + $0x1110] sm:$0xff] %v266_v36  ;;  %269 = vst [vmem:[%s17776_s11 + $0x1118] sm:$0xff] %v268_v37  ;;  %v272_v39 = vld [vmem:[%s17780_s17 + $0x43d8] sm:$0xff]  ;;  %v274_v40 = vld [vmem:[%s17780_s17 + $0x43e0] sm:$0xff] }
  0x50   : >> { %271 = vst [vmem:[%s17776_s11 + $0x1120] sm:$0xff] %v270_v38  ;;  %v276_v41 = vld [vmem:[%s17780_s17 + $0x43e8] sm:$0xff]  ;;  %273 = vst [vmem:[%s17776_s11 + $0x1128] sm:$0xff] %v272_v39  ;;  %v278_v42 = vld [vmem:[%s17780_s17 + $0x43f0] sm:$0xff] }
  0x51   : >> { %275 = vst [vmem:[%s17776_s11 + $0x1130] sm:$0xff] %v274_v40  ;;  %277 = vst [vmem:[%s17776_s11 + $0x1138] sm:$0xff] %v276_v41  ;;  %v280_v43 = vld [vmem:[%s17780_s17 + $0x43f8] sm:$0xff]  ;;  %v282_v44 = vld [vmem:[%s17780_s17 + $0x4400] sm:$0xff] }
  0x52   : >> { %279 = vst [vmem:[%s17776_s11 + $0x1140] sm:$0xff] %v278_v42  ;;  %281 = vst [vmem:[%s17776_s11 + $0x1148] sm:$0xff] %v280_v43  ;;  %v284_v45 = vld [vmem:[%s17780_s17 + $0x4408] sm:$0xff]  ;;  %v286_v46 = vld [vmem:[%s17780_s17 + $0x4410] sm:$0xff] }
  0x53   : >> { %283 = vst [vmem:[%s17776_s11 + $0x1150] sm:$0xff] %v282_v44  ;;  %v288_v47 = vld [vmem:[%s17780_s17 + $0x4418] sm:$0xff]  ;;  %285 = vst [vmem:[%s17776_s11 + $0x1158] sm:$0xff] %v284_v45  ;;  %v290_v48 = vld [vmem:[%s17780_s17 + $0x6570] sm:$0xff] }
  0x54   : >> { %287 = vst [vmem:[%s17776_s11 + $0x1160] sm:$0xff] %v286_v46  ;;  %289 = vst [vmem:[%s17776_s11 + $0x1168] sm:$0xff] %v288_v47  ;;  %v292_v49 = vld [vmem:[%s17780_s17 + $0x6578] sm:$0xff]  ;;  %v294_v50 = vld [vmem:[%s17780_s17 + $0x6580] sm:$0xff] }
  0x55   : >> { %291 = vst [vmem:[%s17776_s11 + $0x1968] sm:$0xff] %v290_v48  ;;  %293 = vst [vmem:[%s17776_s11 + $0x1970] sm:$0xff] %v292_v49  ;;  %v296_v51 = vld [vmem:[%s17780_s17 + $0x6588] sm:$0xff]  ;;  %v298_v52 = vld [vmem:[%s17780_s17 + $0x6590] sm:$0xff] }
  0x56   : >> { %295 = vst [vmem:[%s17776_s11 + $0x1978] sm:$0xff] %v294_v50  ;;  %v300_v53 = vld [vmem:[%s17780_s17 + $0x6598] sm:$0xff]  ;;  %297 = vst [vmem:[%s17776_s11 + $0x1980] sm:$0xff] %v296_v51  ;;  %v302_v54 = vld [vmem:[%s17780_s17 + $0x65a0] sm:$0xff]  ;;  %190 = sbr.rel (!%p187_p3) target bundleno = 60 (0x3c), region = 159 }
  0x57   : >> { %299 = vst [vmem:[%s17776_s11 + $0x1988] sm:$0xff] %v298_v52  ;;  %301 = vst [vmem:[%s17776_s11 + $0x1990] sm:$0xff] %v300_v53  ;;  %v304_v55 = vld [vmem:[%s17780_s17 + $0x65a8] sm:$0xff]  ;;  %v306_v56 = vld [vmem:[%s17780_s17 + $0x65b0] sm:$0xff] }
  0x58   : >> { %303 = vst [vmem:[%s17776_s11 + $0x1998] sm:$0xff] %v302_v54  ;;  %305 = vst [vmem:[%s17776_s11 + $0x19a0] sm:$0xff] %v304_v55  ;;  %v308_v57 = vld [vmem:[%s17780_s17 + $0x65b8] sm:$0xff]  ;;  %v310_v58 = vld [vmem:[%s17780_s17 + $0x65c0] sm:$0xff] }
  0x59   : >> { %307 = vst [vmem:[%s17776_s11 + $0x19a8] sm:$0xff] %v306_v56  ;;  %v312_v59 = vld [vmem:[%s17780_s17 + $0x65c8] sm:$0xff]  ;;  %309 = vst [vmem:[%s17776_s11 + $0x19b0] sm:$0xff] %v308_v57  ;;  %v314_v60 = vld [vmem:[%s17780_s17 + $0x65d0] sm:$0xff] }
  0x5a   : >> { %311 = vst [vmem:[%s17776_s11 + $0x19b8] sm:$0xff] %v310_v58  ;;  %313 = vst [vmem:[%s17776_s11 + $0x19c0] sm:$0xff] %v312_v59  ;;  %v316_v61 = vld [vmem:[%s17780_s17 + $0x65d8] sm:$0xff]  ;;  %v318_v62 = vld [vmem:[%s17780_s17 + $0x65e0] sm:$0xff] }
  0x5b   : >> { %315 = vst [vmem:[%s17776_s11 + $0x19c8] sm:$0xff] %v314_v60  ;;  %317 = vst [vmem:[%s17776_s11 + $0x19d0] sm:$0xff] %v316_v61  ;;  %v320_v63 = vld [vmem:[%s17780_s17 + $0x65e8] sm:$0xff]  ;;  %s21294_s17 = smov %s18002_s26 }
  0x5c   : >> { %319 = vst [vmem:[%s17776_s11 + $0x19d8] sm:$0xff] %v318_v62  ;;  %321 = vst [vmem:[%s17776_s11 + $0x19e0] sm:$0xff] %v320_v63  ;;  %s21293_s11 = smov %s18005_s27 }
  0x5d PF: > { %s18111_s28 = sand.u32 15, %s181_s9   ;;  %s16086_s29 = sshll.u32 %s17935_s10, 11 }
  0x5e   : > { %s333_s30 = sshra.s32 %s16086_s29, 4  ;;  %p15657_p4 = scmp.le.s32.totalorder %s18111_s28, 0 }
  0x5f   : > { %s18115_s5 = scalar_lea.vmem %s17920_s4, %s333_s30   ;;  %s18118_s25 = scalar_lea.vmem %s17924_s7, %s333_s30 [#allocation2]  }
  0x60   : > { %15578 = sbr.rel (%p15657_p4) target bundleno = 113 (0x71), region = 164  ;;  %s21296_s11 = smov (!%p15657_p4), %s18118_s25 }
  0x61   : > { %s21297_s17 = smov (!%p15657_p4), %s18115_s5  ;;  %s18127_s19 = smov (!%p15657_p4), 0  }
  0x62   : > { %s17802_s20 = smov (!%p15657_p4), 0  }
  0x67 LB: >> { %v349_v0 = vld [vmem:[%s17796_s17] sm:$0xff]  ;;  %v351_v1 = vld [vmem:[%s17796_s17 + $0x21d0] sm:$0xff]  ;;  %s357_s9 = sadd.s32 1, %s17800_s19  ;;  %s343_s20 = sadd.s32 1, %s17804_s20   ;;  %s17804_s20 = sphi %s17802_s20, %s343_s20   ;;  %s17800_s19 = sphi %s18127_s19, %s21298_s19   ;;  %s17796_s17 = sphi %s21297_s17, %s362_s17   ;;  %s17792_s11 = sphi %s21296_s11, %s363_s11  }
  0x68   : >> { %v353_v2 = vld [vmem:[%s17796_s17 + $0x43a0] sm:$0xff]  ;;  %350 = vst [vmem:[%s17792_s11] sm:$0xff] %v349_v0  ;;  %352 = vst [vmem:[%s17792_s11 + $0x878] sm:$0xff] %v351_v1  ;;  %v355_v3 = vld [vmem:[%s17796_s17 + $0x6570] sm:$0xff]  ;;  %p358_p5 = scmp.ge.s32.totalorder %s357_s9, %s18111_s28  ;;  %p342_p7 = scmp.ge.s32.totalorder %s343_s20, %s18111_s28 }
  0x69   : >> { %354 = vst [vmem:[%s17792_s11 + $0x10f0] sm:$0xff] %v353_v2  ;;  %356 = vst [vmem:[%s17792_s11 + $0x1968] sm:$0xff] %v355_v3 }
  0x6a   : >> { %s21318_s9 = smov (%p358_p5, %s357_s9), 0  ;;  %345 = sbr.rel (!%p342_p7) target bundleno = 103 (0x67), region = 170 }
  0x6b   : >> { %s15658_s10 = sshll.u32 %s21318_s9, 3  ;;  %s21298_s19 = smov %s21318_s9 }
  0x6c   : >> { %s362_s17 = scalar_lea.vmem %s18115_s5, %s15658_s10   ;;  %s363_s11 = scalar_lea.vmem %s18118_s25, %s15658_s10 [#allocation2]  }
  0x71 PF: > { %366 = sbr.rel (%p177_p13) target bundleno = 186 (0xba), region = 65  ;;  %s368_s24 = ssub.s32 (!%p177_p13), %s17922_s6, %s17928_s8 }
  0x72   : > { %s372_s26 = sshrl.u32 (!%p177_p13), %s17922_s6, 3  ;;  %s18148_s27 = scalar_lea.vmem (!%p177_p13), %s17920_s4, %s368_s24 }
  0x73   : > { %s18151_s29 = scalar_lea.vmem (!%p177_p13), %s17924_s7, %s368_s24 [#allocation2]  ;;  %s18155_s30 = sshrl.u32 (!%p177_p13), %s372_s26, 4 }
  0x74   : > { %p15660_p9 = scmp.le.s32.totalorder (!%p177_p13), %s18155_s30, 0 }
  0x78   : > { %15592 = sbr.rel (%p15660_p9) target bundleno = 160 (0xa0), region = 175  ;;  %s21299_s28 = smov (!%p15660_p9), %s17924_s7 }
  0x79   : > { %s21300_s5 = smov (!%p15660_p9), %s17920_s4  ;;  %s18164_s25 = smov (!%p15660_p9), 0  }
  0x7a   : > { %s18166_s11 = smov (!%p15660_p9), 0  }
  0x7f LB: >> { %v385_v4 = vld [vmem:[%s17812_s5] sm:$0xff]  ;;  %v387_v5 = vld [vmem:[%s17812_s5 + $0x8] sm:$0xff]  ;;  %v389_v6 = vld [vmem:[%s17812_s5 + $0x10] sm:$0xff]  ;;  %s513_s17 = sadd.s32 1, %s17816_s25  ;;  %s379_s11 = sadd.s32 1, %s17820_s11   ;;  %s17820_s11 = sphi %s18166_s11, %s379_s11   ;;  %s17816_s25 = sphi %s18164_s25, %s21303_s25   ;;  %s17812_s5 = sphi %s21300_s5, %s21302_s5   ;;  %s17808_s28 = sphi %s21299_s28, %s21301_s28  }
  0x80   : >> { %386 = vst [vmem:[%s17808_s28] sm:$0xff] %v385_v4  ;;  %388 = vst [vmem:[%s17808_s28 + $0x8] sm:$0xff] %v387_v5  ;;  %v391_v7 = vld [vmem:[%s17812_s5 + $0x18] sm:$0xff]  ;;  %v393_v8 = vld [vmem:[%s17812_s5 + $0x20] sm:$0xff]  ;;  %p514_p10 = scmp.ge.s32.totalorder %s513_s17, %s18155_s30  ;;  %p378_p11 = scmp.ge.s32.totalorder %s379_s11, %s18155_s30 }
  0x81   : >> { %390 = vst [vmem:[%s17808_s28 + $0x10] sm:$0xff] %v389_v6  ;;  %v395_v9 = vld [vmem:[%s17812_s5 + $0x28] sm:$0xff]  ;;  %392 = vst [vmem:[%s17808_s28 + $0x18] sm:$0xff] %v391_v7  ;;  %v397_v10 = vld [vmem:[%s17812_s5 + $0x30] sm:$0xff] }
  0x82   : >> { %394 = vst [vmem:[%s17808_s28 + $0x20] sm:$0xff] %v393_v8  ;;  %396 = vst [vmem:[%s17808_s28 + $0x28] sm:$0xff] %v395_v9  ;;  %v399_v11 = vld [vmem:[%s17812_s5 + $0x38] sm:$0xff]  ;;  %v401_v12 = vld [vmem:[%s17812_s5 + $0x40] sm:$0xff]  ;;  %s21320_s17 = smov (%p514_p10, %s513_s17), 0 }
  0x83   : >> { %398 = vst [vmem:[%s17808_s28 + $0x30] sm:$0xff] %v397_v10  ;;  %400 = vst [vmem:[%s17808_s28 + $0x38] sm:$0xff] %v399_v11  ;;  %v403_v13 = vld [vmem:[%s17812_s5 + $0x48] sm:$0xff]  ;;  %v405_v14 = vld [vmem:[%s17812_s5 + $0x50] sm:$0xff]  ;;  %s15661_s19 = sshll.u32 %s21320_s17, 7  ;;  %s21303_s25 = smov %s21320_s17 }
  0x84   : >> { %402 = vst [vmem:[%s17808_s28 + $0x40] sm:$0xff] %v401_v12  ;;  %v407_v15 = vld [vmem:[%s17812_s5 + $0x58] sm:$0xff]  ;;  %404 = vst [vmem:[%s17808_s28 + $0x48] sm:$0xff] %v403_v13  ;;  %v409_v16 = vld [vmem:[%s17812_s5 + $0x60] sm:$0xff]  ;;  %s18222_s20 = scalar_lea.vmem %s17920_s4, %s15661_s19   ;;  %s18225_s9 = scalar_lea.vmem %s17924_s7, %s15661_s19 [#allocation2]  }
  0x85   : >> { %406 = vst [vmem:[%s17808_s28 + $0x50] sm:$0xff] %v405_v14  ;;  %408 = vst [vmem:[%s17808_s28 + $0x58] sm:$0xff] %v407_v15  ;;  %v411_v17 = vld [vmem:[%s17812_s5 + $0x68] sm:$0xff]  ;;  %v413_v18 = vld [vmem:[%s17812_s5 + $0x70] sm:$0xff] }
  0x86   : >> { %410 = vst [vmem:[%s17808_s28 + $0x60] sm:$0xff] %v409_v16  ;;  %412 = vst [vmem:[%s17808_s28 + $0x68] sm:$0xff] %v411_v17  ;;  %v415_v19 = vld [vmem:[%s17812_s5 + $0x78] sm:$0xff]  ;;  %v417_v20 = vld [vmem:[%s17812_s5 + $0x21d0] sm:$0xff] }
  0x87   : >> { %414 = vst [vmem:[%s17808_s28 + $0x70] sm:$0xff] %v413_v18  ;;  %v419_v21 = vld [vmem:[%s17812_s5 + $0x21d8] sm:$0xff]  ;;  %416 = vst [vmem:[%s17808_s28 + $0x78] sm:$0xff] %v415_v19  ;;  %v421_v22 = vld [vmem:[%s17812_s5 + $0x21e0] sm:$0xff] }
  0x88   : >> { %418 = vst [vmem:[%s17808_s28 + $0x878] sm:$0xff] %v417_v20  ;;  %420 = vst [vmem:[%s17808_s28 + $0x880] sm:$0xff] %v419_v21  ;;  %v423_v23 = vld [vmem:[%s17812_s5 + $0x21e8] sm:$0xff]  ;;  %v425_v24 = vld [vmem:[%s17812_s5 + $0x21f0] sm:$0xff] }
  0x89   : >> { %422 = vst [vmem:[%s17808_s28 + $0x888] sm:$0xff] %v421_v22  ;;  %424 = vst [vmem:[%s17808_s28 + $0x890] sm:$0xff] %v423_v23  ;;  %v427_v25 = vld [vmem:[%s17812_s5 + $0x21f8] sm:$0xff]  ;;  %v429_v26 = vld [vmem:[%s17812_s5 + $0x2200] sm:$0xff] }
  0x8a   : >> { %426 = vst [vmem:[%s17808_s28 + $0x898] sm:$0xff] %v425_v24  ;;  %v431_v27 = vld [vmem:[%s17812_s5 + $0x2208] sm:$0xff]  ;;  %428 = vst [vmem:[%s17808_s28 + $0x8a0] sm:$0xff] %v427_v25  ;;  %v433_v28 = vld [vmem:[%s17812_s5 + $0x2210] sm:$0xff] }
  0x8b   : >> { %430 = vst [vmem:[%s17808_s28 + $0x8a8] sm:$0xff] %v429_v26  ;;  %432 = vst [vmem:[%s17808_s28 + $0x8b0] sm:$0xff] %v431_v27  ;;  %v435_v29 = vld [vmem:[%s17812_s5 + $0x2218] sm:$0xff]  ;;  %v437_v30 = vld [vmem:[%s17812_s5 + $0x2220] sm:$0xff] }
  0x8c   : >> { %434 = vst [vmem:[%s17808_s28 + $0x8b8] sm:$0xff] %v433_v28  ;;  %436 = vst [vmem:[%s17808_s28 + $0x8c0] sm:$0xff] %v435_v29  ;;  %v439_v31 = vld [vmem:[%s17812_s5 + $0x2228] sm:$0xff]  ;;  %v441_v32 = vld [vmem:[%s17812_s5 + $0x2230] sm:$0xff] }
  0x8d   : >> { %438 = vst [vmem:[%s17808_s28 + $0x8c8] sm:$0xff] %v437_v30  ;;  %v443_v33 = vld [vmem:[%s17812_s5 + $0x2238] sm:$0xff]  ;;  %440 = vst [vmem:[%s17808_s28 + $0x8d0] sm:$0xff] %v439_v31  ;;  %v445_v34 = vld [vmem:[%s17812_s5 + $0x2240] sm:$0xff] }
  0x8e   : >> { %442 = vst [vmem:[%s17808_s28 + $0x8d8] sm:$0xff] %v441_v32  ;;  %444 = vst [vmem:[%s17808_s28 + $0x8e0] sm:$0xff] %v443_v33  ;;  %v447_v35 = vld [vmem:[%s17812_s5 + $0x2248] sm:$0xff]  ;;  %v449_v36 = vld [vmem:[%s17812_s5 + $0x43a0] sm:$0xff] }
  0x8f   : >> { %446 = vst [vmem:[%s17808_s28 + $0x8e8] sm:$0xff] %v445_v34  ;;  %448 = vst [vmem:[%s17808_s28 + $0x8f0] sm:$0xff] %v447_v35  ;;  %v451_v37 = vld [vmem:[%s17812_s5 + $0x43a8] sm:$0xff]  ;;  %v453_v38 = vld [vmem:[%s17812_s5 + $0x43b0] sm:$0xff] }
  0x90   : >> { %450 = vst [vmem:[%s17808_s28 + $0x10f0] sm:$0xff] %v449_v36  ;;  %v455_v39 = vld [vmem:[%s17812_s5 + $0x43b8] sm:$0xff]  ;;  %452 = vst [vmem:[%s17808_s28 + $0x10f8] sm:$0xff] %v451_v37  ;;  %v457_v40 = vld [vmem:[%s17812_s5 + $0x43c0] sm:$0xff] }
  0x91   : >> { %454 = vst [vmem:[%s17808_s28 + $0x1100] sm:$0xff] %v453_v38  ;;  %456 = vst [vmem:[%s17808_s28 + $0x1108] sm:$0xff] %v455_v39  ;;  %v459_v41 = vld [vmem:[%s17812_s5 + $0x43c8] sm:$0xff]  ;;  %v461_v42 = vld [vmem:[%s17812_s5 + $0x43d0] sm:$0xff] }
  0x92   : >> { %458 = vst [vmem:[%s17808_s28 + $0x1110] sm:$0xff] %v457_v40  ;;  %460 = vst [vmem:[%s17808_s28 + $0x1118] sm:$0xff] %v459_v41  ;;  %v463_v43 = vld [vmem:[%s17812_s5 + $0x43d8] sm:$0xff]  ;;  %v465_v44 = vld [vmem:[%s17812_s5 + $0x43e0] sm:$0xff] }
  0x93   : >> { %462 = vst [vmem:[%s17808_s28 + $0x1120] sm:$0xff] %v461_v42  ;;  %v467_v45 = vld [vmem:[%s17812_s5 + $0x43e8] sm:$0xff]  ;;  %464 = vst [vmem:[%s17808_s28 + $0x1128] sm:$0xff] %v463_v43  ;;  %v469_v46 = vld [vmem:[%s17812_s5 + $0x43f0] sm:$0xff] }
  0x94   : >> { %466 = vst [vmem:[%s17808_s28 + $0x1130] sm:$0xff] %v465_v44  ;;  %468 = vst [vmem:[%s17808_s28 + $0x1138] sm:$0xff] %v467_v45  ;;  %v471_v47 = vld [vmem:[%s17812_s5 + $0x43f8] sm:$0xff]  ;;  %v473_v48 = vld [vmem:[%s17812_s5 + $0x4400] sm:$0xff] }
  0x95   : >> { %470 = vst [vmem:[%s17808_s28 + $0x1140] sm:$0xff] %v469_v46  ;;  %472 = vst [vmem:[%s17808_s28 + $0x1148] sm:$0xff] %v471_v47  ;;  %v475_v49 = vld [vmem:[%s17812_s5 + $0x4408] sm:$0xff]  ;;  %v477_v50 = vld [vmem:[%s17812_s5 + $0x4410] sm:$0xff] }
  0x96   : >> { %474 = vst [vmem:[%s17808_s28 + $0x1150] sm:$0xff] %v473_v48  ;;  %v479_v51 = vld [vmem:[%s17812_s5 + $0x4418] sm:$0xff]  ;;  %476 = vst [vmem:[%s17808_s28 + $0x1158] sm:$0xff] %v475_v49  ;;  %v481_v52 = vld [vmem:[%s17812_s5 + $0x6570] sm:$0xff] }
  0x97   : >> { %478 = vst [vmem:[%s17808_s28 + $0x1160] sm:$0xff] %v477_v50  ;;  %480 = vst [vmem:[%s17808_s28 + $0x1168] sm:$0xff] %v479_v51  ;;  %v483_v53 = vld [vmem:[%s17812_s5 + $0x6578] sm:$0xff]  ;;  %v485_v54 = vld [vmem:[%s17812_s5 + $0x6580] sm:$0xff] }
  0x98   : >> { %482 = vst [vmem:[%s17808_s28 + $0x1968] sm:$0xff] %v481_v52  ;;  %484 = vst [vmem:[%s17808_s28 + $0x1970] sm:$0xff] %v483_v53  ;;  %v487_v55 = vld [vmem:[%s17812_s5 + $0x6588] sm:$0xff]  ;;  %v489_v56 = vld [vmem:[%s17812_s5 + $0x6590] sm:$0xff] }
  0x99   : >> { %486 = vst [vmem:[%s17808_s28 + $0x1978] sm:$0xff] %v485_v54  ;;  %v491_v57 = vld [vmem:[%s17812_s5 + $0x6598] sm:$0xff]  ;;  %488 = vst [vmem:[%s17808_s28 + $0x1980] sm:$0xff] %v487_v55  ;;  %v493_v58 = vld [vmem:[%s17812_s5 + $0x65a0] sm:$0xff]  ;;  %381 = sbr.rel (!%p378_p11) target bundleno = 127 (0x7f), region = 181 }
  0x9a   : >> { %490 = vst [vmem:[%s17808_s28 + $0x1988] sm:$0xff] %v489_v56  ;;  %492 = vst [vmem:[%s17808_s28 + $0x1990] sm:$0xff] %v491_v57  ;;  %v495_v59 = vld [vmem:[%s17812_s5 + $0x65a8] sm:$0xff]  ;;  %v497_v60 = vld [vmem:[%s17812_s5 + $0x65b0] sm:$0xff] }
  0x9b   : >> { %494 = vst [vmem:[%s17808_s28 + $0x1998] sm:$0xff] %v493_v58  ;;  %496 = vst [vmem:[%s17808_s28 + $0x19a0] sm:$0xff] %v495_v59  ;;  %v499_v61 = vld [vmem:[%s17812_s5 + $0x65b8] sm:$0xff]  ;;  %v501_v62 = vld [vmem:[%s17812_s5 + $0x65c0] sm:$0xff] }
  0x9c   : >> { %498 = vst [vmem:[%s17808_s28 + $0x19a8] sm:$0xff] %v497_v60  ;;  %v503_v63 = vld [vmem:[%s17812_s5 + $0x65c8] sm:$0xff]  ;;  %500 = vst [vmem:[%s17808_s28 + $0x19b0] sm:$0xff] %v499_v61  ;;  %v505_v0 = vld [vmem:[%s17812_s5 + $0x65d0] sm:$0xff] }
  0x9d   : >> { %502 = vst [vmem:[%s17808_s28 + $0x19b8] sm:$0xff] %v501_v62  ;;  %504 = vst [vmem:[%s17808_s28 + $0x19c0] sm:$0xff] %v503_v63  ;;  %v507_v1 = vld [vmem:[%s17812_s5 + $0x65d8] sm:$0xff]  ;;  %v509_v2 = vld [vmem:[%s17812_s5 + $0x65e0] sm:$0xff] }
  0x9e   : >> { %506 = vst [vmem:[%s17808_s28 + $0x19c8] sm:$0xff] %v505_v0  ;;  %508 = vst [vmem:[%s17808_s28 + $0x19d0] sm:$0xff] %v507_v1  ;;  %v511_v3 = vld [vmem:[%s17812_s5 + $0x65e8] sm:$0xff]  ;;  %s21302_s5 = smov %s18222_s20 }
  0x9f   : >> { %510 = vst [vmem:[%s17808_s28 + $0x19d8] sm:$0xff] %v509_v2  ;;  %512 = vst [vmem:[%s17808_s28 + $0x19e0] sm:$0xff] %v511_v3  ;;  %s21301_s28 = smov %s18225_s9 }
  0xa0 PF: > { %s18331_s10 = sand.u32 15, %s372_s26   ;;  %s16088_s24 = sshll.u32 %s18155_s30, 11 }
  0xa1   : > { %s524_s19 = sshra.s32 %s16088_s24, 4  ;;  %p15666_p12 = scmp.le.s32.totalorder %s18331_s10, 0 }
  0xa2   : > { %s18335_s1 = scalar_lea.vmem %s17920_s4, %s524_s19   ;;  %s18338_s9 = scalar_lea.vmem %s17924_s7, %s524_s19 [#allocation2]  }
  0xa3   : > { %15606 = sbr.rel (%p15666_p12) target bundleno = 180 (0xb4), region = 186  ;;  %s21304_s28 = smov (!%p15666_p12), %s18338_s9 }
  0xa4   : > { %s21305_s5 = smov (!%p15666_p12), %s18335_s1  ;;  %s18347_s25 = smov (!%p15666_p12), 0  }
  0xa5   : > { %s17834_s11 = smov (!%p15666_p12), 0  }
  0xaa LB: >> { %v540_v4 = vld [vmem:[%s17828_s5] sm:$0xff]  ;;  %v542_v5 = vld [vmem:[%s17828_s5 + $0x21d0] sm:$0xff]  ;;  %s548_s26 = sadd.s32 1, %s17832_s25  ;;  %s534_s11 = sadd.s32 1, %s17836_s11   ;;  %s17836_s11 = sphi %s17834_s11, %s534_s11   ;;  %s17832_s25 = sphi %s18347_s25, %s21306_s25   ;;  %s17828_s5 = sphi %s21305_s5, %s553_s5   ;;  %s17824_s28 = sphi %s21304_s28, %s554_s28  }
  0xab   : >> { %v544_v6 = vld [vmem:[%s17828_s5 + $0x43a0] sm:$0xff]  ;;  %541 = vst [vmem:[%s17824_s28] sm:$0xff] %v540_v4  ;;  %543 = vst [vmem:[%s17824_s28 + $0x878] sm:$0xff] %v542_v5  ;;  %v546_v7 = vld [vmem:[%s17828_s5 + $0x6570] sm:$0xff]  ;;  %p549_p13 = scmp.ge.s32.totalorder %s548_s26, %s18331_s10  ;;  %p533_p0 = scmp.ge.s32.totalorder %s534_s11, %s18331_s10 }
  0xac   : >> { %545 = vst [vmem:[%s17824_s28 + $0x10f0] sm:$0xff] %v544_v6  ;;  %547 = vst [vmem:[%s17824_s28 + $0x1968] sm:$0xff] %v546_v7 }
  0xad   : >> { %s21322_s26 = smov (%p549_p13, %s548_s26), 0  ;;  %536 = sbr.rel (!%p533_p0) target bundleno = 170 (0xaa), region = 192 }
  0xae   : >> { %s15667_s30 = sshll.u32 %s21322_s26, 3  ;;  %s21306_s25 = smov %s21322_s26 }
  0xaf   : >> { %s553_s5 = scalar_lea.vmem %s18335_s1, %s15667_s30   ;;  %s554_s28 = scalar_lea.vmem %s18338_s9, %s15667_s30 [#allocation2]  }
  0xb4 PF: > { %s17838_s17 = smov 0  }
  0xb5   : > { %s555_s20 = sshllo.u32 %s17838_s17, %s17928_s8 }
  0xb6   : > { %v564_v8 = vld [vmem:[%s18148_s27] sm:%s555_s20]  ;;  %v566_v9 = vld [vmem:[%s18148_s27 + $0x21d0] sm:%s555_s20] }
  0xb7   : > { %565 = vst [vmem:[%s18151_s29] sm:%s555_s20] %v564_v8  ;;  %567 = vst [vmem:[%s18151_s29 + $0x878] sm:%s555_s20] %v566_v9 }
  0xb8   : > { %v568_v10 = vld [vmem:[%s18148_s27 + $0x43a0] sm:%s555_s20]  ;;  %v570_v11 = vld [vmem:[%s18148_s27 + $0x6570] sm:%s555_s20] }
  0xb9   : > { %569 = vst [vmem:[%s18151_s29 + $0x10f0] sm:%s555_s20] %v568_v10  ;;  %571 = vst [vmem:[%s18151_s29 + $0x1968] sm:%s555_s20] %v570_v11 }
  0xba PF: > { %p15669_p1 = scmp.ge.u32.totalorder %s17922_s6, 8 }
  0xbb   : > { %s17839_s1 = smov (!%p15669_p1), 0  }
  0xbc   : > { %158 = sbr.rel (%p15669_p1) target bundleno = 195 (0xc3), region = 36  ;;  %s159_s8 = sshllo.u32 (!%p15669_p1), %s17839_s1, %s17922_s6 }
  0xbd   : > { %v168_v12 = vld [vmem:[%s17920_s4] sm:%s159_s8] (!%p15669_p1)  ;;  %v170_v13 = vld [vmem:[%s17920_s4 + $0x21d0] sm:%s159_s8] (!%p15669_p1) }
  0xbe   : > { %169 = vst [vmem:[%s17924_s7] sm:%s159_s8] (!%p15669_p1), %v168_v12  ;;  %171 = vst [vmem:[%s17924_s7 + $0x878] sm:%s159_s8] (!%p15669_p1), %v170_v13 }
  0xbf   : > { %v172_v14 = vld [vmem:[%s17920_s4 + $0x43a0] sm:%s159_s8] (!%p15669_p1)  ;;  %v174_v15 = vld [vmem:[%s17920_s4 + $0x6570] sm:%s159_s8] (!%p15669_p1) }
  0xc0   : > { %173 = vst [vmem:[%s17924_s7 + $0x10f0] sm:%s159_s8] (!%p15669_p1), %v172_v14  ;;  %175 = vst [vmem:[%s17924_s7 + $0x1968] sm:%s159_s8] (!%p15669_p1), %v174_v15 }
  0xc3 PF: > { %p15670_p2 = scmp.ge.s32.totalorder %s17772_s15, 1  ;;  %p590_p3 = scmp.lt.s32.totalorder %s17772_s15, 5 }
  0xc5   : > { %p591_p4 = pnand %p15670_p2, %p590_p3 }
  0xc6   : > { %s18384_s6 = sand.u32 (!%p591_p4), 1, %s17764_s13   ;;  %vm3163_vm0 = vcmask (!%p591_p4), 1040384   ;;  %v17840_v16 = vmov (!%p591_p4), 0.0   ;;  %vm17841_vm1 = vmmov (!%p591_p4), 1   ;;  %v18420_v44 = vld [vmem:[%s21283_s0] sm:$0x3] (!%p591_p4) }
  0xc7   : > { %594 = sbr.rel (%p591_p4) target bundleno = 1001 (0x3e9), region = 94  ;;  %4041 = vmatprep.mubr.f32.mxu0 (!%p591_p4), %v17840_v16  ;;  %4112 = vmatprep.mubr.f32.mxu1 (!%p591_p4), %v17840_v16  ;;  %vm18389_vm2 = vmpackc.low (!%p591_p4), %vm3163_vm0, %vm17841_vm1  ;;  %vm3159_vm3 = vcmask (!%p591_p4), 203776   ;;  %vm17844_vm4 = vmmov (!%p591_p4), 0  }
  0xc8   : > { %s17465_s27 = smul.u32 (!%p591_p4), 8672, %s18384_s6 }
  0xc9   : > { %s19165_s19 = smul.u32 (!%p591_p4), 271, %s17887_s16 }
  0xca   : > { %s18393_s4 = scalar_lea.vmem (!%p591_p4), [#allocation2], %s17465_s27  ;;  %s17466_s11 = smul.u32 (!%p591_p4), 542, %s18384_s6 }
  0xcb   : > { %v653_v18 = vld [vmem:[%s18393_s4 + $0x8] sm:$0xff] (!%p591_p4)  ;;  %v924_v19 = vld [vmem:[%s18393_s4 + $0x880] sm:$0xff] (!%p591_p4)  ;;  %v655_v20 = vld [vmem:[%s18393_s4 + $0x18] sm:$0xff] (!%p591_p4)  ;;  %p638_p5 = scmp.lt.s32.totalorder (!%p591_p4), %s19165_s19, 1081 }
  0xcc   : > { %v16107_v21 = vpack.c.bf16 (!%p591_p4), %v924_v19, %v653_v18  ;;  %v926_v22 = vld [vmem:[%s18393_s4 + $0x890] sm:$0xff] (!%p591_p4)  ;;  %v652_v23 = vld [vmem:[%s18393_s4] sm:$0xff] (!%p591_p4)  ;;  %v923_v24 = vld [vmem:[%s18393_s4 + $0x878] sm:$0xff] (!%p591_p4)  ;;  %s19355_s26 = scalar_lea.vmem (!%p591_p4), [#allocation3], %s17466_s11 }
  0xcd   : > { %v16117_v25 = vpack.c.bf16 (!%p591_p4), %v926_v22, %v655_v20  ;;  %v16109_v26 = vpack.c.bf16 (!%p591_p4), %v923_v24, %v652_v23  ;;  %v654_v27 = vld [vmem:[%s18393_s4 + $0x10] sm:$0xff] (!%p591_p4)  ;;  %v925_v28 = vld [vmem:[%s18393_s4 + $0x888] sm:$0xff] (!%p591_p4)  ;;  %v1195_v29 = vld [vmem:[%s18393_s4 + $0x10f8] sm:$0xff] (!%p591_p4) }
  0xce   : > { %16108 = vmatprep.subr.bf16.mxu0 %v16107_v21  ;;  %v16119_v30 = vpack.c.bf16 %v925_v28, %v654_v27  ;;  %v1466_v31 = vld [vmem:[%s18393_s4 + $0x1970] sm:$0x1]  ;;  %v1197_v32 = vld [vmem:[%s18393_s4 + $0x1108] sm:$0xff]  ;;  %v1468_v33 = vld [vmem:[%s18393_s4 + $0x1980] sm:$0x1]  ;;  %s639_s9 = scalar_select %p638_p5, %s19165_s19, 1081 }
  0xcf   : > { %16118 = vmatprep.subr.bf16.mxu1 %v16117_v25  ;;  %16110 = vmatpush1.bf16.msra.mxu0 %v16109_v26  ;;  %v16111_v34 = vpack.c.bf16 %v1466_v31, %v1195_v29  ;;  %v16121_v35 = vpack.c.bf16 %v1468_v33, %v1197_v32  ;;  %v1194_v36 = vld [vmem:[%s18393_s4 + $0x10f0] sm:$0xff]  ;;  %v1465_v37 = vld [vmem:[%s18393_s4 + $0x1968] sm:$0x1]  ;;  %v1196_v38 = vld [vmem:[%s18393_s4 + $0x1100] sm:$0xff] }
  0xd0   : > { %16120 = vmatpush1.bf16.msra.mxu1 %v16119_v30  ;;  %v16114_v39 = vpack.c.bf16 %v1465_v37, %v1194_v36  ;;  %v1467_v40 = vld [vmem:[%s18393_s4 + $0x1978] sm:$0x1]  ;;  %v657_v41 = vld [vmem:[%s18393_s4 + $0x28] sm:$0xff]  ;;  %v928_v42 = vld [vmem:[%s18393_s4 + $0x8a0] sm:$0xff]  ;;  %s19220_s25 = scalar_lea.vmem %s21285_s2, %s639_s9  ;;  %s15474_s9 = ssub.s32 (%p17905_p6), 1082, %s19165_s19 }
  0xd1   : > { %16113 = vmatprep.subr.msk.bf16.mxu0 %vm18389_vm2, %v16111_v34  ;;  %16123 = vmatprep.subr.msk.bf16.mxu1 %vm18389_vm2, %v16121_v35  ;;  %v16124_v43 = vpack.c.bf16 %v1467_v40, %v1196_v38  ;;  %v16127_v45 = vpack.c.bf16 %v928_v42, %v657_v41  ;;  %v659_v46 = vld [vmem:[%s18393_s4 + $0x38] sm:$0xff]  ;;  %v930_v47 = vld [vmem:[%s18393_s4 + $0x8b0] sm:$0xff]  ;;  %v656_v48 = vld [vmem:[%s18393_s4 + $0x20] sm:$0xff]  ;;  %p15475_p7 = scmp.lt.s32.totalorder (%p17905_p6), %s15474_s9, 271 }
  0xd2   : > { %v16137_v49 = vpack.c.bf16 %v930_v47, %v659_v46  ;;  %v927_v50 = vld [vmem:[%s18393_s4 + $0x898] sm:$0xff]  ;;  %v658_v51 = vld [vmem:[%s18393_s4 + $0x30] sm:$0xff]  ;;  %v929_v52 = vld [vmem:[%s18393_s4 + $0x8a8] sm:$0xff] }
  0xd3   : > { %16116 = vmatpush1.bf16.msk.msra.mxu0 %vm18389_vm2, %v16114_v39  ;;  %v16129_v53 = vpack.c.bf16 %v927_v50, %v656_v48  ;;  %v1199_v54 = vld [vmem:[%s18393_s4 + $0x1118] sm:$0xff]  ;;  %v1470_v55 = vld [vmem:[%s18393_s4 + $0x1990] sm:$0x1]  ;;  %v1201_v56 = vld [vmem:[%s18393_s4 + $0x1128] sm:$0xff]  ;;  %v16139_v57 = vpack.c.bf16 %v929_v52, %v658_v51 }
  0xd4   : > { %16126 = vmatpush1.bf16.msk.msra.mxu1 %vm18389_vm2, %v16124_v43  ;;  %16128 = vmatprep.subr.bf16.mxu0 %v16127_v45  ;;  %v16131_v58 = vpack.c.bf16 %v1470_v55, %v1199_v54  ;;  %v1472_v59 = vld [vmem:[%s18393_s4 + $0x19a0] sm:$0x1]  ;;  %v1198_v60 = vld [vmem:[%s18393_s4 + $0x1110] sm:$0xff]  ;;  %v1469_v61 = vld [vmem:[%s18393_s4 + $0x1988] sm:$0x1] }
  0xd5   : > { %16138 = vmatprep.subr.bf16.mxu1 %v16137_v49  ;;  %v16141_v62 = vpack.c.bf16 %v1472_v59, %v1201_v56  ;;  %v1200_v63 = vld [vmem:[%s18393_s4 + $0x1120] sm:$0xff]  ;;  %v1471_v0 = vld [vmem:[%s18393_s4 + $0x1998] sm:$0x1]  ;;  %v661_v1 = vld [vmem:[%s18393_s4 + $0x48] sm:$0xff]  ;;  %v16134_v5 = vpack.c.bf16 %v1469_v61, %v1198_v60 }
  0xd6   : > { %15673 = vmatmul.mubr.msk.f32.vlgmr.msra.gmra.mrb[0].mxu0 %vm3159_vm3, %v18420_v44  ;;  %v932_v2 = vld [vmem:[%s18393_s4 + $0x8c0] sm:$0xff]  ;;  %v663_v3 = vld [vmem:[%s18393_s4 + $0x58] sm:$0xff]  ;;  %v934_v4 = vld [vmem:[%s18393_s4 + $0x8d0] sm:$0xff]  ;;  %v16144_v6 = vpack.c.bf16 %v1471_v0, %v1200_v63 }
  0xd7   : > { %15676 = vmatmul.mubr.msk.f32.vlgmr.msra.gmra.mrb[0].mxu1 %vm3159_vm3, %v18420_v44  ;;  %16130 = vmatpush1.bf16.msra.mxu0 %v16129_v53  ;;  %v16147_v7 = vpack.c.bf16 %v932_v2, %v661_v1  ;;  %v660_v8 = vld [vmem:[%s18393_s4 + $0x40] sm:$0xff]  ;;  %v931_v9 = vld [vmem:[%s18393_s4 + $0x8b8] sm:$0xff]  ;;  %v662_v10 = vld [vmem:[%s18393_s4 + $0x50] sm:$0xff]  ;;  %v16157_v11 = vpack.c.bf16 %v934_v4, %v663_v3 }
  0xd8   : > { %16140 = vmatpush1.bf16.msra.mxu1 %v16139_v57  ;;  %16133 = vmatprep.subr.msk.bf16.mxu0 %vm18389_vm2, %v16131_v58  ;;  %v933_v12 = vld [vmem:[%s18393_s4 + $0x8c8] sm:$0xff]  ;;  %v1203_v13 = vld [vmem:[%s18393_s4 + $0x1138] sm:$0xff]  ;;  %v1474_v14 = vld [vmem:[%s18393_s4 + $0x19b0] sm:$0x1]  ;;  %v16149_v19 = vpack.c.bf16 %v931_v9, %v660_v8 }
  0xd9   : > { %16143 = vmatprep.subr.msk.bf16.mxu1 %vm18389_vm2, %v16141_v62  ;;  %4183 = vmatprep.mubr.f32.mxu0 %v17840_v16  ;;  %v1205_v15 = vld [vmem:[%s18393_s4 + $0x1148] sm:$0xff]  ;;  %v1476_v18 = vld [vmem:[%s18393_s4 + $0x19c0] sm:$0x1]  ;;  %v16159_v20 = vpack.c.bf16 %v933_v12, %v662_v10  ;;  %v16151_v21 = vpack.c.bf16 %v1474_v14, %v1203_v13  ;;  %v1202_v22 = vld [vmem:[%s18393_s4 + $0x1130] sm:$0xff] }
  0xda   : > { %4254 = vmatprep.mubr.f32.mxu1 %v17840_v16  ;;  %v1473_v23 = vld [vmem:[%s18393_s4 + $0x19a8] sm:$0x1]  ;;  %v1204_v24 = vld [vmem:[%s18393_s4 + $0x1140] sm:$0xff]  ;;  %v16161_v25 = vpack.c.bf16 %v1476_v18, %v1205_v15  ;;  %v1475_v26 = vld [vmem:[%s18393_s4 + $0x19b8] sm:$0x1] }
  0xdb   : > { %16136 = vmatpush1.bf16.msk.msra.mxu0 %vm18389_vm2, %v16134_v5  ;;  %v665_v27 = vld [vmem:[%s18393_s4 + $0x68] sm:$0xff]  ;;  %v936_v28 = vld [vmem:[%s18393_s4 + $0x8e0] sm:$0xff]  ;;  %v667_v29 = vld [vmem:[%s18393_s4 + $0x78] sm:$0xff]  ;;  %v16154_v31 = vpack.c.bf16 %v1473_v23, %v1202_v22  ;;  %v16164_v32 = vpack.c.bf16 %v1475_v26, %v1204_v24 }
  0xdc   : > { %16146 = vmatpush1.bf16.msk.msra.mxu1 %vm18389_vm2, %v16144_v6  ;;  %16148 = vmatprep.subr.bf16.mxu0 %v16147_v7  ;;  %v938_v30 = vld [vmem:[%s18393_s4 + $0x8f0] sm:$0xff]  ;;  %v16167_v33 = vpack.c.bf16 %v936_v28, %v665_v27  ;;  %v664_v34 = vld [vmem:[%s18393_s4 + $0x60] sm:$0xff]  ;;  %v935_v35 = vld [vmem:[%s18393_s4 + $0x8d8] sm:$0xff] }
  0xdd   : > { %16158 = vmatprep.subr.bf16.mxu1 %v16157_v11  ;;  %v666_v36 = vld [vmem:[%s18393_s4 + $0x70] sm:$0xff]  ;;  %v16177_v37 = vpack.c.bf16 %v938_v30, %v667_v29  ;;  %v937_v38 = vld [vmem:[%s18393_s4 + $0x8e8] sm:$0xff]  ;;  %v1207_v39 = vld [vmem:[%s18393_s4 + $0x1158] sm:$0xff]  ;;  %v16169_v43 = vpack.c.bf16 %v935_v35, %v664_v34 }
  0xde   : > { %15679 = vmatmul.mubr.msk.f32.vlgmr.msra.gmra.mrb[2].mxu0 %vm3159_vm3, %v18420_v44  ;;  %v1478_v40 = vld [vmem:[%s18393_s4 + $0x19d0] sm:$0x1]  ;;  %v1209_v41 = vld [vmem:[%s18393_s4 + $0x1168] sm:$0xff]  ;;  %v1480_v42 = vld [vmem:[%s18393_s4 + $0x19e0] sm:$0x1]  ;;  %v16179_v45 = vpack.c.bf16 %v937_v38, %v666_v36 }
  0xdf   : > { %15682 = vmatmul.mubr.msk.f32.vlgmr.msra.gmra.mrb[2].mxu1 %vm3159_vm3, %v18420_v44  ;;  %16150 = vmatpush1.bf16.msra.mxu0 %v16149_v19  ;;  %v16171_v46 = vpack.c.bf16 %v1478_v40, %v1207_v39  ;;  %v1206_v47 = vld [vmem:[%s18393_s4 + $0x1150] sm:$0xff]  ;;  %v1477_v48 = vld [vmem:[%s18393_s4 + $0x19c8] sm:$0x1]  ;;  %v1208_v49 = vld [vmem:[%s18393_s4 + $0x1160] sm:$0xff]  ;;  %v16181_v50 = vpack.c.bf16 %v1480_v42, %v1209_v41 }
  0xe0   : > { %16160 = vmatpush1.bf16.msra.mxu1 %v16159_v20  ;;  %16153 = vmatprep.subr.msk.bf16.mxu0 %vm18389_vm2, %v16151_v21  ;;  %v1479_v51 = vld [vmem:[%s18393_s4 + $0x19d8] sm:$0x1]  ;;  %v669_v52 = vld [vmem:[%s18393_s4 + $0x88] sm:$0xff]  ;;  %v940_v53 = vld [vmem:[%s18393_s4 + $0x900] sm:$0xff]  ;;  %v16174_v56 = vpack.c.bf16 %v1477_v48, %v1206_v47 }
  0xe1   : > { %16163 = vmatprep.subr.msk.bf16.mxu1 %vm18389_vm2, %v16161_v25  ;;  %4325 = vmatprep.mubr.f32.mxu0 %v17840_v16  ;;  %v671_v54 = vld [vmem:[%s18393_s4 + $0x98] sm:$0xff]  ;;  %v942_v55 = vld [vmem:[%s18393_s4 + $0x910] sm:$0xff]  ;;  %v16184_v57 = vpack.c.bf16 %v1479_v51, %v1208_v49  ;;  %v16187_v58 = vpack.c.bf16 %v940_v53, %v669_v52  ;;  %v668_v59 = vld [vmem:[%s18393_s4 + $0x80] sm:$0xff] }
  0xe2   : > { %4396 = vmatprep.mubr.f32.mxu1 %v17840_v16  ;;  %v939_v60 = vld [vmem:[%s18393_s4 + $0x8f8] sm:$0xff]  ;;  %v670_v61 = vld [vmem:[%s18393_s4 + $0x90] sm:$0xff]  ;;  %v16197_v62 = vpack.c.bf16 %v942_v55, %v671_v54  ;;  %v941_v63 = vld [vmem:[%s18393_s4 + $0x908] sm:$0xff] }
  0xe3   : > { %16156 = vmatpush1.bf16.msk.msra.mxu0 %vm18389_vm2, %v16154_v31  ;;  %v1211_v0 = vld [vmem:[%s18393_s4 + $0x1178] sm:$0xff]  ;;  %v1482_v1 = vld [vmem:[%s18393_s4 + $0x19f0] sm:$0x1]  ;;  %v1213_v2 = vld [vmem:[%s18393_s4 + $0x1188] sm:$0xff]  ;;  %v16189_v4 = vpack.c.bf16 %v939_v60, %v668_v59  ;;  %v16199_v5 = vpack.c.bf16 %v941_v63, %v670_v61 }
  0xe4   : > { %16166 = vmatpush1.bf16.msk.msra.mxu1 %vm18389_vm2, %v16164_v32  ;;  %16168 = vmatprep.subr.bf16.mxu0 %v16167_v33  ;;  %v1484_v3 = vld [vmem:[%s18393_s4 + $0x1a00] sm:$0x1]  ;;  %v16191_v6 = vpack.c.bf16 %v1482_v1, %v1211_v0  ;;  %v1210_v7 = vld [vmem:[%s18393_s4 + $0x1170] sm:$0xff]  ;;  %v1481_v8 = vld [vmem:[%s18393_s4 + $0x19e8] sm:$0x1] }
  0xe5   : > { %16178 = vmatprep.subr.bf16.mxu1 %v16177_v37  ;;  %v1212_v9 = vld [vmem:[%s18393_s4 + $0x1180] sm:$0xff]  ;;  %v16201_v10 = vpack.c.bf16 %v1484_v3, %v1213_v2  ;;  %v1483_v11 = vld [vmem:[%s18393_s4 + $0x19f8] sm:$0x1]  ;;  %v673_v12 = vld [vmem:[%s18393_s4 + $0xa8] sm:$0xff]  ;;  %v16194_v18 = vpack.c.bf16 %v1481_v8, %v1210_v7 }
  0xe6   : > { %15685 = vmatmul.mubr.msk.f32.vlgmr.msra.gmra.mrb[4].mxu0 %vm3159_vm3, %v18420_v44  ;;  %v944_v13 = vld [vmem:[%s18393_s4 + $0x920] sm:$0xff]  ;;  %v675_v14 = vld [vmem:[%s18393_s4 + $0xb8] sm:$0xff]  ;;  %v946_v15 = vld [vmem:[%s18393_s4 + $0x930] sm:$0xff]  ;;  %v16204_v19 = vpack.c.bf16 %v1483_v11, %v1212_v9 }
  0xe7   : > { %15688 = vmatmul.mubr.msk.f32.vlgmr.msra.gmra.mrb[4].mxu1 %vm3159_vm3, %v18420_v44  ;;  %16170 = vmatpush1.bf16.msra.mxu0 %v16169_v43  ;;  %v16207_v20 = vpack.c.bf16 %v944_v13, %v673_v12  ;;  %v672_v21 = vld [vmem:[%s18393_s4 + $0xa0] sm:$0xff]  ;;  %v943_v22 = vld [vmem:[%s18393_s4 + $0x918] sm:$0xff]  ;;  %v674_v23 = vld [vmem:[%s18393_s4 + $0xb0] sm:$0xff]  ;;  %v16217_v24 = vpack.c.bf16 %v946_v15, %v675_v14 }
  0xe8   : > { %16180 = vmatpush1.bf16.msra.mxu1 %v16179_v45  ;;  %16173 = vmatprep.subr.msk.bf16.mxu0 %vm18389_vm2, %v16171_v46  ;;  %v945_v25 = vld [vmem:[%s18393_s4 + $0x928] sm:$0xff]  ;;  %v1215_v26 = vld [vmem:[%s18393_s4 + $0x1198] sm:$0xff]  ;;  %v1486_v27 = vld [vmem:[%s18393_s4 + $0x1a10] sm:$0x1]  ;;  %v16209_v30 = vpack.c.bf16 %v943_v22, %v672_v21 }
  0xe9   : > { %16183 = vmatprep.subr.msk.bf16.mxu1 %vm18389_vm2, %v16181_v50  ;;  %4467 = vmatprep.mubr.f32.mxu0 %v17840_v16  ;;  %v1217_v28 = vld [vmem:[%s18393_s4 + $0x11a8] sm:$0xff]  ;;  %v1488_v29 = vld [vmem:[%s18393_s4 + $0x1a20] sm:$0x1]  ;;  %v16219_v31 = vpack.c.bf16 %v945_v25, %v674_v23  ;;  %v16211_v32 = vpack.c.bf16 %v1486_v27, %v1215_v26  ;;  %v1214_v33 = vld [vmem:[%s18393_s4 + $0x1190] sm:$0xff] }
  0xea   : > { %4538 = vmatprep.mubr.f32.mxu1 %v17840_v16  ;;  %v1485_v34 = vld [vmem:[%s18393_s4 + $0x1a08] sm:$0x1]  ;;  %v1216_v35 = vld [vmem:[%s18393_s4 + $0x11a0] sm:$0xff]  ;;  %v16221_v36 = vpack.c.bf16 %v1488_v29, %v1217_v28  ;;  %v1487_v37 = vld [vmem:[%s18393_s4 + $0x1a18] sm:$0x1] }
  0xeb   : > { %16176 = vmatpush1.bf16.msk.msra.mxu0 %vm18389_vm2, %v16174_v56  ;;  %v677_v38 = vld [vmem:[%s18393_s4 + $0xc8] sm:$0xff]  ;;  %v948_v39 = vld [vmem:[%s18393_s4 + $0x940] sm:$0xff]  ;;  %v679_v40 = vld [vmem:[%s18393_s4 + $0xd8] sm:$0xff]  ;;  %v16214_v42 = vpack.c.bf16 %v1485_v34, %v1214_v33  ;;  %v16224_v43 = vpack.c.bf16 %v1487_v37, %v1216_v35 }
  0xec   : > { %16186 = vmatpush1.bf16.msk.msra.mxu1 %vm18389_vm2, %v16184_v57  ;;  %16188 = vmatprep.subr.bf16.mxu0 %v16187_v58  ;;  %v950_v41 = vld [vmem:[%s18393_s4 + $0x950] sm:$0xff]  ;;  %v16227_v45 = vpack.c.bf16 %v948_v39, %v677_v38  ;;  %v676_v46 = vld [vmem:[%s18393_s4 + $0xc0] sm:$0xff]  ;;  %v947_v47 = vld [vmem:[%s18393_s4 + $0x938] sm:$0xff] }
  0xed   : > { %16198 = vmatprep.subr.bf16.mxu1 %v16197_v62  ;;  %v678_v48 = vld [vmem:[%s18393_s4 + $0xd0] sm:$0xff]  ;;  %v16237_v49 = vpack.c.bf16 %v950_v41, %v679_v40  ;;  %v949_v50 = vld [vmem:[%s18393_s4 + $0x948] sm:$0xff]  ;;  %v1219_v51 = vld [vmem:[%s18393_s4 + $0x11b8] sm:$0xff]  ;;  %v16229_v55 = vpack.c.bf16 %v947_v47, %v676_v46 }
  0xee   : > { %15691 = vmatmul.mubr.msk.f32.vlgmr.msra.gmra.mrb[6].mxu0 %vm3159_vm3, %v18420_v44  ;;  %v1490_v52 = vld [vmem:[%s18393_s4 + $0x1a30] sm:$0x1]  ;;  %v1221_v53 = vld [vmem:[%s18393_s4 + $0x11c8] sm:$0xff]  ;;  %v1492_v54 = vld [vmem:[%s18393_s4 + $0x1a40] sm:$0x1]  ;;  %v16239_v56 = vpack.c.bf16 %v949_v50, %v678_v48 }
  0xef   : > { %15694 = vmatmul.mubr.msk.f32.vlgmr.msra.gmra.mrb[6].mxu1 %vm3159_vm3, %v18420_v44  ;;  %16190 = vmatpush1.bf16.msra.mxu0 %v16189_v4  ;;  %v16231_v57 = vpack.c.bf16 %v1490_v52, %v1219_v51  ;;  %v1218_v58 = vld [vmem:[%s18393_s4 + $0x11b0] sm:$0xff]  ;;  %v1489_v59 = vld [vmem:[%s18393_s4 + $0x1a28] sm:$0x1]  ;;  %v1220_v60 = vld [vmem:[%s18393_s4 + $0x11c0] sm:$0xff]  ;;  %v16241_v61 = vpack.c.bf16 %v1492_v54, %v1221_v53 }
  0xf0   : > { %16200 = vmatpush1.bf16.msra.mxu1 %v16199_v5  ;;  %16193 = vmatprep.subr.msk.bf16.mxu0 %vm18389_vm2, %v16191_v6  ;;  %v1491_v62 = vld [vmem:[%s18393_s4 + $0x1a38] sm:$0x1]  ;;  %v681_v63 = vld [vmem:[%s18393_s4 + $0xe8] sm:$0xff]  ;;  %v952_v0 = vld [vmem:[%s18393_s4 + $0x960] sm:$0xff]  ;;  %v16234_v3 = vpack.c.bf16 %v1489_v59, %v1218_v58 }
  0xf1   : > { %16203 = vmatprep.subr.msk.bf16.mxu1 %vm18389_vm2, %v16201_v10  ;;  %4609 = vmatprep.mubr.f32.mxu0 %v17840_v16  ;;  %v683_v1 = vld [vmem:[%s18393_s4 + $0xf8] sm:$0xff]  ;;  %v954_v2 = vld [vmem:[%s18393_s4 + $0x970] sm:$0xff]  ;;  %v16244_v4 = vpack.c.bf16 %v1491_v62, %v1220_v60  ;;  %v16247_v5 = vpack.c.bf16 %v952_v0, %v681_v63  ;;  %v680_v6 = vld [vmem:[%s18393_s4 + $0xe0] sm:$0xff] }
  0xf2   : > { %4680 = vmatprep.mubr.f32.mxu1 %v17840_v16  ;;  %v951_v7 = vld [vmem:[%s18393_s4 + $0x958] sm:$0xff]  ;;  %v682_v8 = vld [vmem:[%s18393_s4 + $0xf0] sm:$0xff]  ;;  %v16257_v9 = vpack.c.bf16 %v954_v2, %v683_v1  ;;  %v953_v10 = vld [vmem:[%s18393_s4 + $0x968] sm:$0xff] }
  0xf3   : > { %16196 = vmatpush1.bf16.msk.msra.mxu0 %vm18389_vm2, %v16194_v18  ;;  %v1223_v11 = vld [vmem:[%s18393_s4 + $0x11d8] sm:$0xff]  ;;  %v1494_v12 = vld [vmem:[%s18393_s4 + $0x1a50] sm:$0x1]  ;;  %v1225_v13 = vld [vmem:[%s18393_s4 + $0x11e8] sm:$0xff]  ;;  %v16249_v15 = vpack.c.bf16 %v951_v7, %v680_v6  ;;  %v16259_v18 = vpack.c.bf16 %v953_v10, %v682_v8 }
  0xf4   : > { %16206 = vmatpush1.bf16.msk.msra.mxu1 %vm18389_vm2, %v16204_v19  ;;  %16208 = vmatprep.subr.bf16.mxu0 %v16207_v20  ;;  %v1496_v14 = vld [vmem:[%s18393_s4 + $0x1a60] sm:$0x1]  ;;  %v16251_v19 = vpack.c.bf16 %v1494_v12, %v1223_v11  ;;  %v1222_v20 = vld [vmem:[%s18393_s4 + $0x11d0] sm:$0xff]  ;;  %v1493_v21 = vld [vmem:[%s18393_s4 + $0x1a48] sm:$0x1] }
  0xf5   : > { %16218 = vmatprep.subr.bf16.mxu1 %v16217_v24  ;;  %v1224_v22 = vld [vmem:[%s18393_s4 + $0x11e0] sm:$0xff]  ;;  %v16261_v23 = vpack.c.bf16 %v1496_v14, %v1225_v13  ;;  %v1495_v24 = vld [vmem:[%s18393_s4 + $0x1a58] sm:$0x1]  ;;  %v685_v25 = vld [vmem:[%s18393_s4 + $0x108] sm:$0xff]  ;;  %v16254_v29 = vpack.c.bf16 %v1493_v21, %v1222_v20 }
  0xf6   : > { %15697 = vmatmul.mubr.msk.f32.vlgmr.msra.gmra.mrb[8].mxu0 %vm3159_vm3, %v18420_v44  ;;  %v956_v26 = vld [vmem:[%s18393_s4 + $0x980] sm:$0xff]  ;;  %v687_v27 = vld [vmem:[%s18393_s4 + $0x118] sm:$0xff]  ;;  %v958_v28 = vld [vmem:[%s18393_s4 + $0x990] sm:$0xff] }
  0xf7   : > { %15700 = vmatmul.mubr.msk.f32.vlgmr.msra.gmra.mrb[8].mxu1 %vm3159_vm3, %v18420_v44  ;;  %16210 = vmatpush1.bf16.msra.mxu0 %v16209_v30  ;;  %v16264_v30 = vpack.c.bf16 %v1495_v24, %v1224_v22  ;;  %v955_v33 = vld [vmem:[%s18393_s4 + $0x978] sm:$0xff]  ;;  %v686_v34 = vld [vmem:[%s18393_s4 + $0x110] sm:$0xff]  ;;  %v16277_v35 = vpack.c.bf16 %v958_v28, %v687_v27  ;;  %v1229_v39 = vld [vmem:[%s18393_s4 + $0x1208] sm:$0xff] }
  0xf8   : > { %16220 = vmatpush1.bf16.msra.mxu1 %v16219_v31  ;;  %16213 = vmatprep.subr.msk.bf16.mxu0 %vm18389_vm2, %v16211_v32  ;;  %v16267_v31 = vpack.c.bf16 %v956_v26, %v685_v25  ;;  %v684_v32 = vld [vmem:[%s18393_s4 + $0x100] sm:$0xff]  ;;  %v1227_v37 = vld [vmem:[%s18393_s4 + $0x11f8] sm:$0xff]  ;;  %v1498_v38 = vld [vmem:[%s18393_s4 + $0x1a70] sm:$0x1] }
  0xf9   : > { %16223 = vmatprep.subr.msk.bf16.mxu1 %vm18389_vm2, %v16221_v36  ;;  %4751 = vmatprep.mubr.f32.mxu0 %v17840_v16  ;;  %v957_v36 = vld [vmem:[%s18393_s4 + $0x988] sm:$0xff]  ;;  %v1500_v40 = vld [vmem:[%s18393_s4 + $0x1a80] sm:$0x1]  ;;  %v16269_v41 = vpack.c.bf16 %v955_v33, %v684_v32  ;;  %v691_v52 = vld [vmem:[%s18393_s4 + $0x138] sm:$0xff] }
  0xfa   : > { %4822 = vmatprep.mubr.f32.mxu1 %v17840_v16  ;;  %v1497_v46 = vld [vmem:[%s18393_s4 + $0x1a68] sm:$0x1]  ;;  %v1228_v47 = vld [vmem:[%s18393_s4 + $0x1200] sm:$0xff]  ;;  %v16281_v48 = vpack.c.bf16 %v1500_v40, %v1229_v39  ;;  %v962_v53 = vld [vmem:[%s18393_s4 + $0x9b0] sm:$0xff] }
  0xfb   : > { %16216 = vmatpush1.bf16.msk.msra.mxu0 %vm18389_vm2, %v16214_v42  ;;  %v16279_v42 = vpack.c.bf16 %v957_v36, %v686_v34  ;;  %v689_v50 = vld [vmem:[%s18393_s4 + $0x128] sm:$0xff]  ;;  %v960_v51 = vld [vmem:[%s18393_s4 + $0x9a0] sm:$0xff]  ;;  %v959_v58 = vld [vmem:[%s18393_s4 + $0x998] sm:$0xff]  ;;  %v16297_v60 = vpack.c.bf16 %v962_v53, %v691_v52 }
  0xfc   : > { %16226 = vmatpush1.bf16.msk.msra.mxu1 %vm18389_vm2, %v16224_v43  ;;  %16228 = vmatprep.subr.bf16.mxu0 %v16227_v45  ;;  %v16271_v43 = vpack.c.bf16 %v1498_v38, %v1227_v37  ;;  %v1226_v45 = vld [vmem:[%s18393_s4 + $0x11f0] sm:$0xff]  ;;  %v1231_v62 = vld [vmem:[%s18393_s4 + $0x1218] sm:$0xff]  ;;  %v1233_v0 = vld [vmem:[%s18393_s4 + $0x1228] sm:$0xff] }
  0xfd   : > { %16238 = vmatprep.subr.bf16.mxu1 %v16237_v49  ;;  %v1499_v49 = vld [vmem:[%s18393_s4 + $0x1a78] sm:$0x1]  ;;  %v16274_v54 = vpack.c.bf16 %v1497_v46, %v1226_v45  ;;  %v690_v59 = vld [vmem:[%s18393_s4 + $0x130] sm:$0xff]  ;;  %v1504_v1 = vld [vmem:[%s18393_s4 + $0x1aa0] sm:$0x1] }
  0xfe   : > { %15703 = vmatmul.mubr.msk.f32.vlgmr.msra.gmra.mrb[10].mxu0 %vm3159_vm3, %v18420_v44  ;;  %v1502_v63 = vld [vmem:[%s18393_s4 + $0x1a90] sm:$0x1]  ;;  %v1501_v6 = vld [vmem:[%s18393_s4 + $0x1a88] sm:$0x1]  ;;  %v1232_v7 = vld [vmem:[%s18393_s4 + $0x1220] sm:$0xff]  ;;  %v16301_v8 = vpack.c.bf16 %v1504_v1, %v1233_v0 }
  0xff   : > { %15706 = vmatmul.mubr.msk.f32.vlgmr.msra.gmra.mrb[10].mxu1 %vm3159_vm3, %v18420_v44  ;;  %16230 = vmatpush1.bf16.msra.mxu0 %v16229_v55  ;;  %v16284_v55 = vpack.c.bf16 %v1499_v49, %v1228_v47  ;;  %v693_v10 = vld [vmem:[%s18393_s4 + $0x148] sm:$0xff]  ;;  %v964_v11 = vld [vmem:[%s18393_s4 + $0x9c0] sm:$0xff]  ;;  %v695_v12 = vld [vmem:[%s18393_s4 + $0x158] sm:$0xff] }
 0x100   : > { %16240 = vmatpush1.bf16.msra.mxu1 %v16239_v56  ;;  %16233 = vmatprep.subr.msk.bf16.mxu0 %vm18389_vm2, %v16231_v57  ;;  %v16287_v56 = vpack.c.bf16 %v960_v51, %v689_v50  ;;  %v688_v57 = vld [vmem:[%s18393_s4 + $0x120] sm:$0xff]  ;;  %v966_v13 = vld [vmem:[%s18393_s4 + $0x9d0] sm:$0xff]  ;;  %v963_v20 = vld [vmem:[%s18393_s4 + $0x9b8] sm:$0xff] }
 0x101   : > { %16243 = vmatprep.subr.msk.bf16.mxu1 %vm18389_vm2, %v16241_v61  ;;  %4893 = vmatprep.mubr.f32.mxu0 %v17840_v16  ;;  %v961_v61 = vld [vmem:[%s18393_s4 + $0x9a8] sm:$0xff]  ;;  %v16289_v2 = vpack.c.bf16 %v959_v58, %v688_v57  ;;  %v694_v21 = vld [vmem:[%s18393_s4 + $0x150] sm:$0xff]  ;;  %v16317_v22 = vpack.c.bf16 %v966_v13, %v695_v12  ;;  %v1235_v24 = vld [vmem:[%s18393_s4 + $0x1238] sm:$0xff] }
 0x102   : > { %4964 = vmatprep.mubr.f32.mxu1 %v17840_v16  ;;  %v1506_v25 = vld [vmem:[%s18393_s4 + $0x1ab0] sm:$0x1]  ;;  %v1237_v26 = vld [vmem:[%s18393_s4 + $0x1248] sm:$0xff]  ;;  %v1508_v27 = vld [vmem:[%s18393_s4 + $0x1ac0] sm:$0x1] }
 0x103   : > { %16236 = vmatpush1.bf16.msk.msra.mxu0 %vm18389_vm2, %v16234_v3  ;;  %v16299_v3 = vpack.c.bf16 %v961_v61, %v690_v59  ;;  %v1505_v32 = vld [vmem:[%s18393_s4 + $0x1aa8] sm:$0x1]  ;;  %v1236_v33 = vld [vmem:[%s18393_s4 + $0x1240] sm:$0xff]  ;;  %v16321_v34 = vpack.c.bf16 %v1508_v27, %v1237_v26  ;;  %v699_v38 = vld [vmem:[%s18393_s4 + $0x178] sm:$0xff] }
 0x104   : > { %16246 = vmatpush1.bf16.msk.msra.mxu1 %vm18389_vm2, %v16244_v4  ;;  %16248 = vmatprep.subr.bf16.mxu0 %v16247_v5  ;;  %v16291_v4 = vpack.c.bf16 %v1502_v63, %v1231_v62  ;;  %v1230_v5 = vld [vmem:[%s18393_s4 + $0x1210] sm:$0xff]  ;;  %v697_v36 = vld [vmem:[%s18393_s4 + $0x168] sm:$0xff]  ;;  %v968_v37 = vld [vmem:[%s18393_s4 + $0x9e0] sm:$0xff] }
 0x105   : > { %16258 = vmatprep.subr.bf16.mxu1 %v16257_v9  ;;  %v1503_v9 = vld [vmem:[%s18393_s4 + $0x1a98] sm:$0x1]  ;;  %v16294_v14 = vpack.c.bf16 %v1501_v6, %v1230_v5  ;;  %v970_v39 = vld [vmem:[%s18393_s4 + $0x9f0] sm:$0xff]  ;;  %v1241_v51 = vld [vmem:[%s18393_s4 + $0x1268] sm:$0xff] }
 0x106   : > { %15709 = vmatmul.mubr.msk.f32.vlgmr.msra.gmra.mrb[12].mxu0 %vm3159_vm3, %v18420_v44  ;;  %v967_v45 = vld [vmem:[%s18393_s4 + $0x9d8] sm:$0xff]  ;;  %v698_v46 = vld [vmem:[%s18393_s4 + $0x170] sm:$0xff]  ;;  %v16337_v47 = vpack.c.bf16 %v970_v39, %v699_v38  ;;  %v1512_v52 = vld [vmem:[%s18393_s4 + $0x1ae0] sm:$0x1] }
 0x107   : > { %15712 = vmatmul.mubr.msk.f32.vlgmr.msra.gmra.mrb[12].mxu1 %vm3159_vm3, %v18420_v44  ;;  %16250 = vmatpush1.bf16.msra.mxu0 %v16249_v15  ;;  %v16304_v15 = vpack.c.bf16 %v1503_v9, %v1232_v7  ;;  %v1239_v49 = vld [vmem:[%s18393_s4 + $0x1258] sm:$0xff]  ;;  %v1510_v50 = vld [vmem:[%s18393_s4 + $0x1ad0] sm:$0x1]  ;;  %v1509_v57 = vld [vmem:[%s18393_s4 + $0x1ac8] sm:$0x1]  ;;  %v16341_v59 = vpack.c.bf16 %v1512_v52, %v1241_v51 }
 0x108   : > { %16260 = vmatpush1.bf16.msra.mxu1 %v16259_v18  ;;  %16253 = vmatprep.subr.msk.bf16.mxu0 %vm18389_vm2, %v16251_v19  ;;  %v16307_v18 = vpack.c.bf16 %v964_v11, %v693_v10  ;;  %v692_v19 = vld [vmem:[%s18393_s4 + $0x140] sm:$0xff]  ;;  %v701_v61 = vld [vmem:[%s18393_s4 + $0x188] sm:$0xff]  ;;  %v703_v63 = vld [vmem:[%s18393_s4 + $0x198] sm:$0xff] }
 0x109   : > { %16263 = vmatprep.subr.msk.bf16.mxu1 %vm18389_vm2, %v16261_v23  ;;  %5035 = vmatprep.mubr.f32.mxu0 %v17840_v16  ;;  %v965_v23 = vld [vmem:[%s18393_s4 + $0x9c8] sm:$0xff]  ;;  %v16309_v28 = vpack.c.bf16 %v963_v20, %v692_v19  ;;  %v1240_v58 = vld [vmem:[%s18393_s4 + $0x1260] sm:$0xff]  ;;  %v974_v0 = vld [vmem:[%s18393_s4 + $0xa10] sm:$0xff] }
 0x10a   : > { %5106 = vmatprep.mubr.f32.mxu1 %v17840_v16  ;;  %v972_v62 = vld [vmem:[%s18393_s4 + $0xa00] sm:$0xff]  ;;  %v971_v5 = vld [vmem:[%s18393_s4 + $0x9f8] sm:$0xff]  ;;  %v702_v6 = vld [vmem:[%s18393_s4 + $0x190] sm:$0xff]  ;;  %v16357_v7 = vpack.c.bf16 %v974_v0, %v703_v63 }
 0x10b   : > { %16256 = vmatpush1.bf16.msk.msra.mxu0 %vm18389_vm2, %v16254_v29  ;;  %v16319_v29 = vpack.c.bf16 %v965_v23, %v694_v21  ;;  %v1243_v9 = vld [vmem:[%s18393_s4 + $0x1278] sm:$0xff]  ;;  %v1514_v10 = vld [vmem:[%s18393_s4 + $0x1af0] sm:$0x1]  ;;  %v1245_v11 = vld [vmem:[%s18393_s4 + $0x1288] sm:$0xff] }
 0x10c   : > { %16266 = vmatpush1.bf16.msk.msra.mxu1 %vm18389_vm2, %v16264_v30  ;;  %16268 = vmatprep.subr.bf16.mxu0 %v16267_v31  ;;  %v16311_v30 = vpack.c.bf16 %v1506_v25, %v1235_v24  ;;  %v1234_v31 = vld [vmem:[%s18393_s4 + $0x1230] sm:$0xff]  ;;  %v1516_v12 = vld [vmem:[%s18393_s4 + $0x1b00] sm:$0x1]  ;;  %v1513_v19 = vld [vmem:[%s18393_s4 + $0x1ae8] sm:$0x1] }
 0x10d   : > { %16278 = vmatprep.subr.bf16.mxu1 %v16277_v35  ;;  %v1507_v35 = vld [vmem:[%s18393_s4 + $0x1ab8] sm:$0x1]  ;;  %v16314_v40 = vpack.c.bf16 %v1505_v32, %v1234_v31  ;;  %v1244_v20 = vld [vmem:[%s18393_s4 + $0x1280] sm:$0xff]  ;;  %v16361_v21 = vpack.c.bf16 %v1516_v12, %v1245_v11  ;;  %v705_v23 = vld [vmem:[%s18393_s4 + $0x1a8] sm:$0xff] }
 0x10e   : > { %15715 = vmatmul.mubr.msk.f32.vlgmr.msra.gmra.mrb[14].mxu0 %vm3159_vm3, %v18420_v44  ;;  %v976_v24 = vld [vmem:[%s18393_s4 + $0xa20] sm:$0xff]  ;;  %v707_v25 = vld [vmem:[%s18393_s4 + $0x1b8] sm:$0xff]  ;;  %v978_v26 = vld [vmem:[%s18393_s4 + $0xa30] sm:$0xff] }
 0x10f   : > { %15718 = vmatmul.mubr.msk.f32.vlgmr.msra.gmra.mrb[14].mxu1 %vm3159_vm3, %v18420_v44  ;;  %16270 = vmatpush1.bf16.msra.mxu0 %v16269_v41  ;;  %v16324_v41 = vpack.c.bf16 %v1507_v35, %v1236_v33  ;;  %v975_v31 = vld [vmem:[%s18393_s4 + $0xa18] sm:$0xff]  ;;  %v706_v32 = vld [vmem:[%s18393_s4 + $0x1b0] sm:$0xff]  ;;  %v16377_v33 = vpack.c.bf16 %v978_v26, %v707_v25  ;;  %v1520_v38 = vld [vmem:[%s18393_s4 + $0x1b20] sm:$0x1] }
 0x110   : > { %16280 = vmatpush1.bf16.msra.mxu1 %v16279_v42  ;;  %16273 = vmatprep.subr.msk.bf16.mxu0 %vm18389_vm2, %v16271_v43  ;;  %v16327_v42 = vpack.c.bf16 %v968_v37, %v697_v36  ;;  %v696_v43 = vld [vmem:[%s18393_s4 + $0x160] sm:$0xff]  ;;  %v1247_v35 = vld [vmem:[%s18393_s4 + $0x1298] sm:$0xff]  ;;  %v1518_v36 = vld [vmem:[%s18393_s4 + $0x1b10] sm:$0x1] }
 0x111   : > { %16283 = vmatprep.subr.msk.bf16.mxu1 %vm18389_vm2, %v16281_v48  ;;  %5177 = vmatprep.mubr.f32.mxu0 %v17840_v16  ;;  %v969_v48 = vld [vmem:[%s18393_s4 + $0x9e8] sm:$0xff]  ;;  %v16329_v53 = vpack.c.bf16 %v967_v45, %v696_v43  ;;  %v1248_v45 = vld [vmem:[%s18393_s4 + $0x12a0] sm:$0xff]  ;;  %v982_v51 = vld [vmem:[%s18393_s4 + $0xa50] sm:$0xff] }
 0x112   : > { %5248 = vmatprep.mubr.f32.mxu1 %v17840_v16  ;;  %v1249_v37 = vld [vmem:[%s18393_s4 + $0x12a8] sm:$0xff]  ;;  %v1524_v63 = vld [vmem:[%s18393_s4 + $0x1b40] sm:$0x1]  ;;  %v986_v11 = vld [vmem:[%s18393_s4 + $0xa70] sm:$0xff] }
 0x113   : > { %16276 = vmatpush1.bf16.msk.msra.mxu0 %vm18389_vm2, %v16274_v54  ;;  %v16339_v54 = vpack.c.bf16 %v969_v48, %v698_v46  ;;  %v1517_v43 = vld [vmem:[%s18393_s4 + $0x1b08] sm:$0x1]  ;;  %v16381_v46 = vpack.c.bf16 %v1520_v38, %v1249_v37  ;;  %v990_v37 = vld [vmem:[%s18393_s4 + $0xa90] sm:$0xff] }
 0x114   : > { %16286 = vmatpush1.bf16.msk.msra.mxu1 %vm18389_vm2, %v16284_v55  ;;  %16288 = vmatprep.subr.bf16.mxu0 %v16287_v56  ;;  %v16331_v55 = vpack.c.bf16 %v1510_v50, %v1239_v49  ;;  %v1238_v56 = vld [vmem:[%s18393_s4 + $0x1250] sm:$0xff]  ;;  %v709_v48 = vld [vmem:[%s18393_s4 + $0x1c8] sm:$0xff]  ;;  %v980_v49 = vld [vmem:[%s18393_s4 + $0xa40] sm:$0xff] }
 0x115   : > { %16298 = vmatprep.subr.bf16.mxu1 %v16297_v60  ;;  %v1511_v60 = vld [vmem:[%s18393_s4 + $0x1ad8] sm:$0x1]  ;;  %v16334_v1 = vpack.c.bf16 %v1509_v57, %v1238_v56  ;;  %v710_v57 = vld [vmem:[%s18393_s4 + $0x1d0] sm:$0xff] }
 0x116   : > { %15721 = vmatmul.mubr.msk.f32.vlgmr.msra.gmra.mrb[16].mxu0 %vm3159_vm3, %v18420_v44  ;;  %v711_v50 = vld [vmem:[%s18393_s4 + $0x1d8] sm:$0xff] }
 0x117   : > { %15724 = vmatmul.mubr.msk.f32.vlgmr.msra.gmra.mrb[16].mxu1 %vm3159_vm3, %v18420_v44  ;;  %16290 = vmatpush1.bf16.msra.mxu0 %v16289_v2  ;;  %v16344_v2 = vpack.c.bf16 %v1511_v60, %v1240_v58  ;;  %v979_v56 = vld [vmem:[%s18393_s4 + $0xa38] sm:$0xff]  ;;  %v16397_v58 = vpack.c.bf16 %v982_v51, %v711_v50  ;;  %v1532_v50 = vld [vmem:[%s18393_s4 + $0x1b80] sm:$0x1] }
 0x118   : > { %16300 = vmatpush1.bf16.msra.mxu1 %v16299_v3  ;;  %16293 = vmatprep.subr.msk.bf16.mxu0 %vm18389_vm2, %v16291_v4  ;;  %v16347_v3 = vpack.c.bf16 %v972_v62, %v701_v61  ;;  %v700_v4 = vld [vmem:[%s18393_s4 + $0x180] sm:$0xff]  ;;  %v1251_v60 = vld [vmem:[%s18393_s4 + $0x12b8] sm:$0xff]  ;;  %v1522_v61 = vld [vmem:[%s18393_s4 + $0x1b30] sm:$0x1] }
 0x119   : > { %16303 = vmatprep.subr.msk.bf16.mxu1 %vm18389_vm2, %v16301_v8  ;;  %5319 = vmatprep.mubr.f32.mxu0 %v17840_v16  ;;  %v973_v8 = vld [vmem:[%s18393_s4 + $0xa08] sm:$0xff]  ;;  %v16349_v13 = vpack.c.bf16 %v971_v5, %v700_v4  ;;  %v1252_v5 = vld [vmem:[%s18393_s4 + $0x12c0] sm:$0xff] }
 0x11a   : > { %5390 = vmatprep.mubr.f32.mxu1 %v17840_v16  ;;  %v1253_v62 = vld [vmem:[%s18393_s4 + $0x12c8] sm:$0xff] }
 0x11b   : > { %16296 = vmatpush1.bf16.msk.msra.mxu0 %vm18389_vm2, %v16294_v14  ;;  %v16359_v14 = vpack.c.bf16 %v973_v8, %v702_v6  ;;  %v1521_v4 = vld [vmem:[%s18393_s4 + $0x1b28] sm:$0x1]  ;;  %v16401_v6 = vpack.c.bf16 %v1524_v63, %v1253_v62  ;;  %v994_v62 = vld [vmem:[%s18393_s4 + $0xab0] sm:$0xff] }
 0x11c   : > { %16306 = vmatpush1.bf16.msk.msra.mxu1 %vm18389_vm2, %v16304_v15  ;;  %16308 = vmatprep.subr.bf16.mxu0 %v16307_v18  ;;  %v16351_v15 = vpack.c.bf16 %v1514_v10, %v1243_v9  ;;  %v1242_v18 = vld [vmem:[%s18393_s4 + $0x1270] sm:$0xff]  ;;  %v713_v8 = vld [vmem:[%s18393_s4 + $0x1e8] sm:$0xff]  ;;  %v984_v9 = vld [vmem:[%s18393_s4 + $0xa60] sm:$0xff] }
 0x11d   : > { %16318 = vmatprep.subr.bf16.mxu1 %v16317_v22  ;;  %v1515_v22 = vld [vmem:[%s18393_s4 + $0x1af8] sm:$0x1]  ;;  %v16354_v27 = vpack.c.bf16 %v1513_v19, %v1242_v18  ;;  %v714_v19 = vld [vmem:[%s18393_s4 + $0x1f0] sm:$0xff] }
 0x11e   : > { %15727 = vmatmul.mubr.msk.f32.vlgmr.msra.gmra.mrb[18].mxu0 %vm3159_vm3, %v18420_v44  ;;  %v715_v10 = vld [vmem:[%s18393_s4 + $0x1f8] sm:$0xff] }
 0x11f   : > { %15730 = vmatmul.mubr.msk.f32.vlgmr.msra.gmra.mrb[18].mxu1 %vm3159_vm3, %v18420_v44  ;;  %16310 = vmatpush1.bf16.msra.mxu0 %v16309_v28  ;;  %v16364_v28 = vpack.c.bf16 %v1515_v22, %v1244_v20  ;;  %v983_v18 = vld [vmem:[%s18393_s4 + $0xa58] sm:$0xff]  ;;  %v985_v20 = vld [vmem:[%s18393_s4 + $0xa68] sm:$0xff]  ;;  %v1526_v22 = vld [vmem:[%s18393_s4 + $0x1b50] sm:$0x1] }
 0x120   : > { %16320 = vmatpush1.bf16.msra.mxu1 %v16319_v29  ;;  %16313 = vmatprep.subr.msk.bf16.mxu0 %vm18389_vm2, %v16311_v30  ;;  %v16367_v29 = vpack.c.bf16 %v976_v24, %v705_v23  ;;  %v704_v30 = vld [vmem:[%s18393_s4 + $0x1a0] sm:$0xff]  ;;  %v1257_v23 = vld [vmem:[%s18393_s4 + $0x12e8] sm:$0xff]  ;;  %v16419_v26 = vpack.c.bf16 %v985_v20, %v714_v19 }
 0x121   : > { %16323 = vmatprep.subr.msk.bf16.mxu1 %vm18389_vm2, %v16321_v34  ;;  %5461 = vmatprep.mubr.f32.mxu0 %v17840_v16  ;;  %v977_v34 = vld [vmem:[%s18393_s4 + $0xa28] sm:$0xff]  ;;  %v16369_v39 = vpack.c.bf16 %v975_v31, %v704_v30  ;;  %v1528_v24 = vld [vmem:[%s18393_s4 + $0x1b60] sm:$0x1] }
 0x122   : > { %5532 = vmatprep.mubr.f32.mxu1 %v17840_v16  ;;  %v1256_v30 = vld [vmem:[%s18393_s4 + $0x12e0] sm:$0xff]  ;;  %v16421_v31 = vpack.c.bf16 %v1528_v24, %v1257_v23  ;;  %v725_v20 = vld [vmem:[%s18393_s4 + $0x248] sm:$0xff]  ;;  %v998_v23 = vld [vmem:[%s18393_s4 + $0xad0] sm:$0xff] }
 0x123   : > { %16316 = vmatpush1.bf16.msk.msra.mxu0 %vm18389_vm2, %v16314_v40  ;;  %v16379_v40 = vpack.c.bf16 %v977_v34, %v706_v32  ;;  %v1527_v32 = vld [vmem:[%s18393_s4 + $0x1b58] sm:$0x1]  ;;  %v988_v34 = vld [vmem:[%s18393_s4 + $0xa80] sm:$0xff] }
 0x124   : > { %16326 = vmatpush1.bf16.msk.msra.mxu1 %vm18389_vm2, %v16324_v41  ;;  %16328 = vmatprep.subr.bf16.mxu0 %v16327_v42  ;;  %v16371_v41 = vpack.c.bf16 %v1518_v36, %v1247_v35  ;;  %v1246_v42 = vld [vmem:[%s18393_s4 + $0x1290] sm:$0xff]  ;;  %v18865_v35 = vld [vmem:[%s21283_s0] sm:$0x3]  ;;  %v719_v36 = vld [vmem:[%s18393_s4 + $0x218] sm:$0xff] }
 0x125   : > { %16338 = vmatprep.subr.bf16.mxu1 %v16337_v47  ;;  %v1519_v47 = vld [vmem:[%s18393_s4 + $0x1b18] sm:$0x1]  ;;  %v16374_v52 = vpack.c.bf16 %v1517_v43, %v1246_v42  ;;  %v718_v43 = vld [vmem:[%s18393_s4 + $0x210] sm:$0xff] }
 0x126   : > { %15733 = vmatmul.mubr.msk.f32.vlgmr.msra.gmra.mrb[20].mxu0 %vm3159_vm3, %v18420_v44  ;;  %v987_v42 = vld [vmem:[%s18393_s4 + $0xa78] sm:$0xff] }
 0x127   : > { %15736 = vmatmul.mubr.msk.f32.vlgmr.msra.gmra.mrb[20].mxu1 %vm3159_vm3, %v18420_v44  ;;  %16330 = vmatpush1.bf16.msra.mxu0 %v16329_v53  ;;  %v16384_v53 = vpack.c.bf16 %v1519_v47, %v1248_v45  ;;  %v16437_v45 = vpack.c.bf16 %v990_v37, %v719_v36  ;;  %v1259_v47 = vld [vmem:[%s18393_s4 + $0x12f8] sm:$0xff]  ;;  %v1540_v36 = vld [vmem:[%s18393_s4 + $0x1bc0] sm:$0x1] }
 0x128   : > { %16340 = vmatpush1.bf16.msra.mxu1 %v16339_v54  ;;  %16333 = vmatprep.subr.msk.bf16.mxu0 %vm18389_vm2, %v16331_v55  ;;  %v16387_v54 = vpack.c.bf16 %v980_v49, %v709_v48  ;;  %v708_v55 = vld [vmem:[%s18393_s4 + $0x1c0] sm:$0xff]  ;;  %v1530_v48 = vld [vmem:[%s18393_s4 + $0x1b70] sm:$0x1]  ;;  %v1261_v49 = vld [vmem:[%s18393_s4 + $0x1308] sm:$0xff] }
 0x129   : > { %16343 = vmatprep.subr.msk.bf16.mxu1 %vm18389_vm2, %v16341_v59  ;;  %5603 = vmatprep.mubr.f32.mxu0 %v17840_v16  ;;  %v981_v59 = vld [vmem:[%s18393_s4 + $0xa48] sm:$0xff]  ;;  %v16389_v0 = vpack.c.bf16 %v979_v56, %v708_v55  ;;  %v1260_v56 = vld [vmem:[%s18393_s4 + $0x1300] sm:$0xff] }
 0x12a   : > { %5674 = vmatprep.mubr.f32.mxu1 %v17840_v16  ;;  %v1529_v55 = vld [vmem:[%s18393_s4 + $0x1b68] sm:$0x1] }
 0x12b   : > { %16336 = vmatpush1.bf16.msk.msra.mxu0 %vm18389_vm2, %v16334_v1  ;;  %v16399_v1 = vpack.c.bf16 %v981_v59, %v710_v57  ;;  %v16441_v57 = vpack.c.bf16 %v1532_v50, %v1261_v49  ;;  %v721_v59 = vld [vmem:[%s18393_s4 + $0x228] sm:$0xff]  ;;  %v1002_v49 = vld [vmem:[%s18393_s4 + $0xaf0] sm:$0xff] }
 0x12c   : > { %16346 = vmatpush1.bf16.msk.msra.mxu1 %vm18389_vm2, %v16344_v2  ;;  %16348 = vmatprep.subr.bf16.mxu0 %v16347_v3  ;;  %v16391_v2 = vpack.c.bf16 %v1522_v61, %v1251_v60  ;;  %v1250_v3 = vld [vmem:[%s18393_s4 + $0x12b0] sm:$0xff]  ;;  %v992_v60 = vld [vmem:[%s18393_s4 + $0xaa0] sm:$0xff]  ;;  %v723_v61 = vld [vmem:[%s18393_s4 + $0x238] sm:$0xff] }
 0x12d   : > { %16358 = vmatprep.subr.bf16.mxu1 %v16357_v7  ;;  %v1523_v7 = vld [vmem:[%s18393_s4 + $0x1b38] sm:$0x1]  ;;  %v16394_v12 = vpack.c.bf16 %v1521_v4, %v1250_v3  ;;  %v722_v4 = vld [vmem:[%s18393_s4 + $0x230] sm:$0xff] }
 0x12e   : > { %15739 = vmatmul.mubr.msk.f32.vlgmr.msra.gmra.mrb[22].mxu0 %vm3159_vm3, %v18420_v44  ;;  %v991_v3 = vld [vmem:[%s18393_s4 + $0xa98] sm:$0xff] }
 0x12f   : > { %15742 = vmatmul.mubr.msk.f32.vlgmr.msra.gmra.mrb[22].mxu1 %vm3159_vm3, %v18420_v44  ;;  %16350 = vmatpush1.bf16.msra.mxu0 %v16349_v13  ;;  %v16404_v13 = vpack.c.bf16 %v1523_v7, %v1252_v5  ;;  %v16457_v5 = vpack.c.bf16 %v994_v62, %v723_v61  ;;  %v1263_v7 = vld [vmem:[%s18393_s4 + $0x1318] sm:$0xff]  ;;  %v1544_v61 = vld [vmem:[%s18393_s4 + $0x1be0] sm:$0x1] }
 0x130   : > { %16360 = vmatpush1.bf16.msra.mxu1 %v16359_v14  ;;  %16353 = vmatprep.subr.msk.bf16.mxu0 %vm18389_vm2, %v16351_v15  ;;  %v16407_v14 = vpack.c.bf16 %v984_v9, %v713_v8  ;;  %v712_v15 = vld [vmem:[%s18393_s4 + $0x1e0] sm:$0xff]  ;;  %v1534_v8 = vld [vmem:[%s18393_s4 + $0x1b90] sm:$0x1]  ;;  %v1265_v9 = vld [vmem:[%s18393_s4 + $0x1328] sm:$0xff] }
 0x131   : > { %16363 = vmatprep.subr.msk.bf16.mxu1 %vm18389_vm2, %v16361_v21  ;;  %5745 = vmatprep.mubr.f32.mxu0 %v17840_v16  ;;  %v1255_v21 = vld [vmem:[%s18393_s4 + $0x12d8] sm:$0xff]  ;;  %v16409_v25 = vpack.c.bf16 %v983_v18, %v712_v15  ;;  %v1533_v15 = vld [vmem:[%s18393_s4 + $0x1b88] sm:$0x1]  ;;  %v1264_v18 = vld [vmem:[%s18393_s4 + $0x1320] sm:$0xff] }
 0x132   : > { %5816 = vmatprep.mubr.f32.mxu1 %v17840_v16 }
 0x133   : > { %16356 = vmatpush1.bf16.msk.msra.mxu0 %vm18389_vm2, %v16354_v27  ;;  %v16411_v27 = vpack.c.bf16 %v1526_v22, %v1255_v21  ;;  %v996_v21 = vld [vmem:[%s18393_s4 + $0xac0] sm:$0xff]  ;;  %v727_v22 = vld [vmem:[%s18393_s4 + $0x258] sm:$0xff] }
 0x134   : > { %16366 = vmatpush1.bf16.msk.msra.mxu1 %vm18389_vm2, %v16364_v28  ;;  %16368 = vmatprep.subr.bf16.mxu0 %v16367_v29  ;;  %v1254_v28 = vld [vmem:[%s18393_s4 + $0x12d0] sm:$0xff]  ;;  %v1525_v29 = vld [vmem:[%s18393_s4 + $0x1b48] sm:$0x1] }
 0x135   : > { %16378 = vmatprep.subr.bf16.mxu1 %v16377_v33  ;;  %v717_v33 = vld [vmem:[%s18393_s4 + $0x208] sm:$0xff]  ;;  %v16414_v38 = vpack.c.bf16 %v1525_v29, %v1254_v28  ;;  %v995_v28 = vld [vmem:[%s18393_s4 + $0xab8] sm:$0xff]  ;;  %v726_v29 = vld [vmem:[%s18393_s4 + $0x250] sm:$0xff] }
 0x136   : > { %15745 = vmatmul.mubr.msk.f32.vlgmr.msra.gmra.mrb[24].mxu0 %vm3159_vm3, %v18420_v44 }
 0x137   : > { %15748 = vmatmul.mubr.msk.f32.vlgmr.msra.gmra.mrb[24].mxu1 %vm3159_vm3, %v18420_v44  ;;  %16370 = vmatpush1.bf16.msra.mxu0 %v16369_v39  ;;  %v16424_v39 = vpack.c.bf16 %v1527_v32, %v1256_v30  ;;  %v16477_v30 = vpack.c.bf16 %v998_v23, %v727_v22  ;;  %v1267_v32 = vld [vmem:[%s18393_s4 + $0x1338] sm:$0xff]  ;;  %v1548_v22 = vld [vmem:[%s18393_s4 + $0x1c00] sm:$0x1] }
 0x138   : > { %16380 = vmatpush1.bf16.msra.mxu1 %v16379_v40  ;;  %16373 = vmatprep.subr.msk.bf16.mxu0 %vm18389_vm2, %v16371_v41  ;;  %v16427_v40 = vpack.c.bf16 %v988_v34, %v717_v33  ;;  %v716_v41 = vld [vmem:[%s18393_s4 + $0x200] sm:$0xff]  ;;  %v1538_v33 = vld [vmem:[%s18393_s4 + $0x1bb0] sm:$0x1]  ;;  %v1269_v34 = vld [vmem:[%s18393_s4 + $0x1348] sm:$0xff] }
 0x139   : > { %16383 = vmatprep.subr.msk.bf16.mxu1 %vm18389_vm2, %v16381_v46  ;;  %5887 = vmatprep.mubr.f32.mxu0 %v17840_v16  ;;  %v989_v46 = vld [vmem:[%s18393_s4 + $0xa88] sm:$0xff]  ;;  %v16429_v51 = vpack.c.bf16 %v987_v42, %v716_v41  ;;  %v1268_v42 = vld [vmem:[%s18393_s4 + $0x1340] sm:$0xff] }
 0x13a   : > { %5958 = vmatprep.mubr.f32.mxu1 %v17840_v16  ;;  %v1537_v41 = vld [vmem:[%s18393_s4 + $0x1ba8] sm:$0x1] }
 0x13b   : > { %16376 = vmatpush1.bf16.msk.msra.mxu0 %vm18389_vm2, %v16374_v52  ;;  %v16439_v52 = vpack.c.bf16 %v989_v46, %v718_v43  ;;  %v16481_v43 = vpack.c.bf16 %v1540_v36, %v1269_v34  ;;  %v729_v46 = vld [vmem:[%s18393_s4 + $0x268] sm:$0xff]  ;;  %v1010_v34 = vld [vmem:[%s18393_s4 + $0xb30] sm:$0xff] }
 0x13c   : > { %16386 = vmatpush1.bf16.msk.msra.mxu1 %vm18389_vm2, %v16384_v53  ;;  %16388 = vmatprep.subr.bf16.mxu0 %v16387_v54  ;;  %v16431_v53 = vpack.c.bf16 %v1530_v48, %v1259_v47  ;;  %v1258_v54 = vld [vmem:[%s18393_s4 + $0x12f0] sm:$0xff]  ;;  %v1000_v47 = vld [vmem:[%s18393_s4 + $0xae0] sm:$0xff]  ;;  %v731_v48 = vld [vmem:[%s18393_s4 + $0x278] sm:$0xff] }
 0x13d   : > { %16398 = vmatprep.subr.bf16.mxu1 %v16397_v58  ;;  %v1531_v58 = vld [vmem:[%s18393_s4 + $0x1b78] sm:$0x1]  ;;  %v16434_v63 = vpack.c.bf16 %v1529_v55, %v1258_v54  ;;  %v730_v55 = vld [vmem:[%s18393_s4 + $0x270] sm:$0xff] }
 0x13e   : > { %15751 = vmatmul.mubr.msk.f32.vlgmr.msra.gmra.mrb[26].mxu0 %vm3159_vm3, %v18420_v44  ;;  %v999_v54 = vld [vmem:[%s18393_s4 + $0xad8] sm:$0xff] }
 0x13f   : > { %15754 = vmatmul.mubr.msk.f32.vlgmr.msra.gmra.mrb[26].mxu1 %vm3159_vm3, %v18420_v44  ;;  %16390 = vmatpush1.bf16.msra.mxu0 %v16389_v0  ;;  %v16417_v44 = vpack.c.bf16 %v986_v11, %v715_v10  ;;  %v16444_v0 = vpack.c.bf16 %v1531_v58, %v1260_v56  ;;  %v1536_v10 = vld [vmem:[%s18393_s4 + $0x1ba0] sm:$0x1]  ;;  %v16497_v56 = vpack.c.bf16 %v1002_v49, %v731_v48  ;;  %v1271_v58 = vld [vmem:[%s18393_s4 + $0x1358] sm:$0xff] }
 0x140   : > { %16400 = vmatpush1.bf16.msra.mxu1 %v16399_v1  ;;  %16393 = vmatprep.subr.msk.bf16.mxu0 %vm18389_vm2, %v16391_v2  ;;  %v16447_v1 = vpack.c.bf16 %v992_v60, %v721_v59  ;;  %v720_v2 = vld [vmem:[%s18393_s4 + $0x220] sm:$0xff]  ;;  %v16461_v19 = vpack.c.bf16 %v1536_v10, %v1265_v9  ;;  %v1542_v59 = vld [vmem:[%s18393_s4 + $0x1bd0] sm:$0x1]  ;;  %v1273_v60 = vld [vmem:[%s18393_s4 + $0x1368] sm:$0xff] }
 0x141   : > { %16403 = vmatprep.subr.msk.bf16.mxu1 %vm18389_vm2, %v16401_v6  ;;  %6029 = vmatprep.mubr.f32.mxu0 %v17840_v16  ;;  %v993_v6 = vld [vmem:[%s18393_s4 + $0xaa8] sm:$0xff]  ;;  %v16449_v11 = vpack.c.bf16 %v991_v3, %v720_v2  ;;  %v1272_v3 = vld [vmem:[%s18393_s4 + $0x1360] sm:$0xff]  ;;  %v1006_v9 = vld [vmem:[%s18393_s4 + $0xb10] sm:$0xff] }
 0x142   : > { %6100 = vmatprep.mubr.f32.mxu1 %v17840_v16  ;;  %v1541_v2 = vld [vmem:[%s18393_s4 + $0x1bc8] sm:$0x1]  ;;  %v1552_v48 = vld [vmem:[%s18393_s4 + $0x1c20] sm:$0x1] }
 0x143   : > { %16396 = vmatpush1.bf16.msk.msra.mxu0 %vm18389_vm2, %v16394_v12  ;;  %v16459_v12 = vpack.c.bf16 %v993_v6, %v722_v4  ;;  %v16501_v4 = vpack.c.bf16 %v1544_v61, %v1273_v60  ;;  %v733_v6 = vld [vmem:[%s18393_s4 + $0x288] sm:$0xff]  ;;  %v1014_v60 = vld [vmem:[%s18393_s4 + $0xb50] sm:$0xff] }
 0x144   : > { %16406 = vmatpush1.bf16.msk.msra.mxu1 %vm18389_vm2, %v16404_v13  ;;  %16408 = vmatprep.subr.bf16.mxu0 %v16407_v14  ;;  %v16451_v13 = vpack.c.bf16 %v1534_v8, %v1263_v7  ;;  %v1262_v14 = vld [vmem:[%s18393_s4 + $0x1310] sm:$0xff]  ;;  %v1004_v7 = vld [vmem:[%s18393_s4 + $0xb00] sm:$0xff]  ;;  %v735_v8 = vld [vmem:[%s18393_s4 + $0x298] sm:$0xff] }
 0x145   : > { %16418 = vmatprep.subr.bf16.mxu1 %v16417_v44  ;;  %v1535_v44 = vld [vmem:[%s18393_s4 + $0x1b98] sm:$0x1]  ;;  %v16454_v24 = vpack.c.bf16 %v1533_v15, %v1262_v14  ;;  %v734_v15 = vld [vmem:[%s18393_s4 + $0x290] sm:$0xff] }
 0x146   : > { %15757 = vmatmul.mubr.msk.f32.vlgmr.msra.gmra.mrb[28].mxu0 %vm3159_vm3, %v18865_v35  ;;  %v1003_v14 = vld [vmem:[%s18393_s4 + $0xaf8] sm:$0xff] }
 0x147   : > { %15760 = vmatmul.mubr.msk.f32.vlgmr.msra.gmra.mrb[28].mxu1 %vm3159_vm3, %v18865_v35  ;;  %16410 = vmatpush1.bf16.msra.mxu0 %v16409_v25  ;;  %v16464_v25 = vpack.c.bf16 %v1535_v44, %v1264_v18  ;;  %v16517_v18 = vpack.c.bf16 %v1006_v9, %v735_v8  ;;  %v1275_v44 = vld [vmem:[%s18393_s4 + $0x1378] sm:$0xff]  ;;  %v1556_v8 = vld [vmem:[%s18393_s4 + $0x1c40] sm:$0x1] }
 0x148   : > { %16420 = vmatpush1.bf16.msra.mxu1 %v16419_v26  ;;  %16413 = vmatprep.subr.msk.bf16.mxu0 %vm18389_vm2, %v16411_v27  ;;  %v16467_v26 = vpack.c.bf16 %v996_v21, %v725_v20  ;;  %v724_v27 = vld [vmem:[%s18393_s4 + $0x240] sm:$0xff]  ;;  %v1546_v20 = vld [vmem:[%s18393_s4 + $0x1bf0] sm:$0x1]  ;;  %v1277_v21 = vld [vmem:[%s18393_s4 + $0x1388] sm:$0xff] }
 0x149   : > { %16423 = vmatprep.subr.msk.bf16.mxu1 %vm18389_vm2, %v16421_v31  ;;  %6171 = vmatprep.mubr.f32.mxu0 %v17840_v16  ;;  %v997_v31 = vld [vmem:[%s18393_s4 + $0xac8] sm:$0xff]  ;;  %v16469_v37 = vpack.c.bf16 %v995_v28, %v724_v27  ;;  %v1276_v28 = vld [vmem:[%s18393_s4 + $0x1380] sm:$0xff] }
 0x14a   : > { %6242 = vmatprep.mubr.f32.mxu1 %v17840_v16  ;;  %v1545_v27 = vld [vmem:[%s18393_s4 + $0x1be8] sm:$0x1] }
 0x14b   : > { %16416 = vmatpush1.bf16.msk.msra.mxu0 %vm18389_vm2, %v16414_v38  ;;  %v16479_v38 = vpack.c.bf16 %v997_v31, %v726_v29  ;;  %v16521_v29 = vpack.c.bf16 %v1548_v22, %v1277_v21  ;;  %v737_v31 = vld [vmem:[%s18393_s4 + $0x2a8] sm:$0xff]  ;;  %v1018_v21 = vld [vmem:[%s18393_s4 + $0xb70] sm:$0xff] }
 0x14c   : > { %16426 = vmatpush1.bf16.msk.msra.mxu1 %vm18389_vm2, %v16424_v39  ;;  %16428 = vmatprep.subr.bf16.mxu0 %v16427_v40  ;;  %v16471_v39 = vpack.c.bf16 %v1538_v33, %v1267_v32  ;;  %v1266_v40 = vld [vmem:[%s18393_s4 + $0x1330] sm:$0xff]  ;;  %v1008_v32 = vld [vmem:[%s18393_s4 + $0xb20] sm:$0xff]  ;;  %v739_v33 = vld [vmem:[%s18393_s4 + $0x2b8] sm:$0xff] }
 0x14d   : > { %16438 = vmatprep.subr.bf16.mxu1 %v16437_v45  ;;  %v1539_v45 = vld [vmem:[%s18393_s4 + $0x1bb8] sm:$0x1]  ;;  %v16474_v50 = vpack.c.bf16 %v1537_v41, %v1266_v40  ;;  %v738_v41 = vld [vmem:[%s18393_s4 + $0x2b0] sm:$0xff] }
 0x14e   : > { %15763 = vmatmul.mubr.msk.f32.vlgmr.msra.gmra.mrb[30].mxu0 %vm3159_vm3, %v18865_v35  ;;  %v1007_v40 = vld [vmem:[%s18393_s4 + $0xb18] sm:$0xff] }
 0x14f   : > { %15766 = vmatmul.mubr.msk.f32.vlgmr.msra.gmra.mrb[30].mxu1 %vm3159_vm3, %v18865_v35  ;;  %16430 = vmatpush1.bf16.msra.mxu0 %v16429_v51  ;;  %v16484_v51 = vpack.c.bf16 %v1539_v45, %v1268_v42  ;;  %v16537_v42 = vpack.c.bf16 %v1010_v34, %v739_v33  ;;  %v1279_v45 = vld [vmem:[%s18393_s4 + $0x1398] sm:$0xff]  ;;  %v1560_v33 = vld [vmem:[%s18393_s4 + $0x1c60] sm:$0x1] }
 0x150   : > { %16440 = vmatpush1.bf16.msra.mxu1 %v16439_v52  ;;  %16433 = vmatprep.subr.msk.bf16.mxu0 %vm18389_vm2, %v16431_v53  ;;  %v16487_v52 = vpack.c.bf16 %v1000_v47, %v729_v46  ;;  %v728_v53 = vld [vmem:[%s18393_s4 + $0x260] sm:$0xff]  ;;  %v1550_v46 = vld [vmem:[%s18393_s4 + $0x1c10] sm:$0x1]  ;;  %v1281_v47 = vld [vmem:[%s18393_s4 + $0x13a8] sm:$0xff] }
 0x151   : > { %16443 = vmatprep.subr.msk.bf16.mxu1 %vm18389_vm2, %v16441_v57  ;;  %6313 = vmatprep.mubr.f32.mxu0 %v17840_v16  ;;  %v1001_v57 = vld [vmem:[%s18393_s4 + $0xae8] sm:$0xff]  ;;  %v16489_v62 = vpack.c.bf16 %v999_v54, %v728_v53  ;;  %v1280_v54 = vld [vmem:[%s18393_s4 + $0x13a0] sm:$0xff] }
 0x152   : > { %6384 = vmatprep.mubr.f32.mxu1 %v17840_v16  ;;  %v1549_v53 = vld [vmem:[%s18393_s4 + $0x1c08] sm:$0x1] }
 0x153   : > { %16436 = vmatpush1.bf16.msk.msra.mxu0 %vm18389_vm2, %v16434_v63  ;;  %v16499_v63 = vpack.c.bf16 %v1001_v57, %v730_v55  ;;  %v16541_v55 = vpack.c.bf16 %v1552_v48, %v1281_v47  ;;  %v741_v57 = vld [vmem:[%s18393_s4 + $0x2c8] sm:$0xff]  ;;  %v1022_v47 = vld [vmem:[%s18393_s4 + $0xb90] sm:$0xff] }
 0x154   : > { %16446 = vmatpush1.bf16.msk.msra.mxu1 %vm18389_vm2, %v16444_v0  ;;  %16448 = vmatprep.subr.bf16.mxu0 %v16447_v1  ;;  %v16491_v0 = vpack.c.bf16 %v1542_v59, %v1271_v58  ;;  %v1270_v1 = vld [vmem:[%s18393_s4 + $0x1350] sm:$0xff]  ;;  %v1012_v58 = vld [vmem:[%s18393_s4 + $0xb40] sm:$0xff]  ;;  %v743_v59 = vld [vmem:[%s18393_s4 + $0x2d8] sm:$0xff] }
 0x155   : > { %16458 = vmatprep.subr.bf16.mxu1 %v16457_v5  ;;  %v1543_v5 = vld [vmem:[%s18393_s4 + $0x1bd8] sm:$0x1]  ;;  %v16494_v10 = vpack.c.bf16 %v1541_v2, %v1270_v1  ;;  %v742_v2 = vld [vmem:[%s18393_s4 + $0x2d0] sm:$0xff] }
 0x156   : > { %15769 = vmatmul.mubr.msk.f32.vlgmr.msra.gmra.mrb[32].mxu0 %vm3159_vm3, %v18865_v35  ;;  %v1011_v1 = vld [vmem:[%s18393_s4 + $0xb38] sm:$0xff] }
 0x157   : > { %15772 = vmatmul.mubr.msk.f32.vlgmr.msra.gmra.mrb[32].mxu1 %vm3159_vm3, %v18865_v35  ;;  %16450 = vmatpush1.bf16.msra.mxu0 %v16449_v11  ;;  %v16504_v11 = vpack.c.bf16 %v1543_v5, %v1272_v3  ;;  %v16557_v3 = vpack.c.bf16 %v1014_v60, %v743_v59  ;;  %v1283_v5 = vld [vmem:[%s18393_s4 + $0x13b8] sm:$0xff]  ;;  %v1564_v59 = vld [vmem:[%s18393_s4 + $0x1c80] sm:$0x1] }
 0x158   : > { %16460 = vmatpush1.bf16.msra.mxu1 %v16459_v12  ;;  %16453 = vmatprep.subr.msk.bf16.mxu0 %vm18389_vm2, %v16451_v13  ;;  %v16507_v12 = vpack.c.bf16 %v1004_v7, %v733_v6  ;;  %v732_v13 = vld [vmem:[%s18393_s4 + $0x280] sm:$0xff]  ;;  %v1554_v6 = vld [vmem:[%s18393_s4 + $0x1c30] sm:$0x1]  ;;  %v1285_v7 = vld [vmem:[%s18393_s4 + $0x13c8] sm:$0xff] }
 0x159   : > { %16463 = vmatprep.subr.msk.bf16.mxu1 %vm18389_vm2, %v16461_v19  ;;  %6455 = vmatprep.mubr.f32.mxu0 %v17840_v16  ;;  %v1005_v19 = vld [vmem:[%s18393_s4 + $0xb08] sm:$0xff]  ;;  %v16509_v23 = vpack.c.bf16 %v1003_v14, %v732_v13  ;;  %v1284_v14 = vld [vmem:[%s18393_s4 + $0x13c0] sm:$0xff] }
 0x15a   : > { %6526 = vmatprep.mubr.f32.mxu1 %v17840_v16  ;;  %v1553_v13 = vld [vmem:[%s18393_s4 + $0x1c28] sm:$0x1] }
 0x15b   : > { %16456 = vmatpush1.bf16.msk.msra.mxu0 %vm18389_vm2, %v16454_v24  ;;  %v16519_v24 = vpack.c.bf16 %v1005_v19, %v734_v15  ;;  %v16561_v15 = vpack.c.bf16 %v1556_v8, %v1285_v7  ;;  %v745_v19 = vld [vmem:[%s18393_s4 + $0x2e8] sm:$0xff]  ;;  %v1026_v7 = vld [vmem:[%s18393_s4 + $0xbb0] sm:$0xff] }
 0x15c   : > { %16466 = vmatpush1.bf16.msk.msra.mxu1 %vm18389_vm2, %v16464_v25  ;;  %16468 = vmatprep.subr.bf16.mxu0 %v16467_v26  ;;  %v16511_v25 = vpack.c.bf16 %v1546_v20, %v1275_v44  ;;  %v1274_v26 = vld [vmem:[%s18393_s4 + $0x1370] sm:$0xff]  ;;  %v1016_v44 = vld [vmem:[%s18393_s4 + $0xb60] sm:$0xff]  ;;  %v747_v20 = vld [vmem:[%s18393_s4 + $0x2f8] sm:$0xff] }
 0x15d   : > { %16478 = vmatprep.subr.bf16.mxu1 %v16477_v30  ;;  %v1547_v30 = vld [vmem:[%s18393_s4 + $0x1bf8] sm:$0x1]  ;;  %v16514_v36 = vpack.c.bf16 %v1545_v27, %v1274_v26  ;;  %v746_v27 = vld [vmem:[%s18393_s4 + $0x2f0] sm:$0xff] }
 0x15e   : > { %15775 = vmatmul.mubr.msk.f32.vlgmr.msra.gmra.mrb[34].mxu0 %vm3159_vm3, %v18865_v35  ;;  %v1015_v26 = vld [vmem:[%s18393_s4 + $0xb58] sm:$0xff] }
 0x15f   : > { %15778 = vmatmul.mubr.msk.f32.vlgmr.msra.gmra.mrb[34].mxu1 %vm3159_vm3, %v18865_v35  ;;  %16470 = vmatpush1.bf16.msra.mxu0 %v16469_v37  ;;  %v16524_v37 = vpack.c.bf16 %v1547_v30, %v1276_v28  ;;  %v16577_v28 = vpack.c.bf16 %v1018_v21, %v747_v20  ;;  %v1287_v30 = vld [vmem:[%s18393_s4 + $0x13d8] sm:$0xff]  ;;  %v1568_v20 = vld [vmem:[%s18393_s4 + $0x1ca0] sm:$0x1] }
 0x160   : > { %16480 = vmatpush1.bf16.msra.mxu1 %v16479_v38  ;;  %16473 = vmatprep.subr.msk.bf16.mxu0 %vm18389_vm2, %v16471_v39  ;;  %v16527_v38 = vpack.c.bf16 %v1008_v32, %v737_v31  ;;  %v736_v39 = vld [vmem:[%s18393_s4 + $0x2a0] sm:$0xff]  ;;  %v1558_v31 = vld [vmem:[%s18393_s4 + $0x1c50] sm:$0x1]  ;;  %v1289_v32 = vld [vmem:[%s18393_s4 + $0x13e8] sm:$0xff] }
 0x161   : > { %16483 = vmatprep.subr.msk.bf16.mxu1 %vm18389_vm2, %v16481_v43  ;;  %6597 = vmatprep.mubr.f32.mxu0 %v17840_v16  ;;  %v1009_v43 = vld [vmem:[%s18393_s4 + $0xb28] sm:$0xff]  ;;  %v16529_v49 = vpack.c.bf16 %v1007_v40, %v736_v39  ;;  %v1288_v40 = vld [vmem:[%s18393_s4 + $0x13e0] sm:$0xff] }
 0x162   : > { %6668 = vmatprep.mubr.f32.mxu1 %v17840_v16  ;;  %v1557_v39 = vld [vmem:[%s18393_s4 + $0x1c48] sm:$0x1] }
 0x163   : > { %16476 = vmatpush1.bf16.msk.msra.mxu0 %vm18389_vm2, %v16474_v50  ;;  %v16539_v50 = vpack.c.bf16 %v1009_v43, %v738_v41  ;;  %v16581_v41 = vpack.c.bf16 %v1560_v33, %v1289_v32  ;;  %v749_v43 = vld [vmem:[%s18393_s4 + $0x308] sm:$0xff]  ;;  %v1030_v32 = vld [vmem:[%s18393_s4 + $0xbd0] sm:$0xff] }
 0x164   : > { %16486 = vmatpush1.bf16.msk.msra.mxu1 %vm18389_vm2, %v16484_v51  ;;  %16488 = vmatprep.subr.bf16.mxu0 %v16487_v52  ;;  %v16531_v51 = vpack.c.bf16 %v1550_v46, %v1279_v45  ;;  %v1278_v52 = vld [vmem:[%s18393_s4 + $0x1390] sm:$0xff]  ;;  %v1020_v45 = vld [vmem:[%s18393_s4 + $0xb80] sm:$0xff]  ;;  %v751_v46 = vld [vmem:[%s18393_s4 + $0x318] sm:$0xff] }
 0x165   : > { %16498 = vmatprep.subr.bf16.mxu1 %v16497_v56  ;;  %v1551_v56 = vld [vmem:[%s18393_s4 + $0x1c18] sm:$0x1]  ;;  %v16534_v61 = vpack.c.bf16 %v1549_v53, %v1278_v52  ;;  %v750_v53 = vld [vmem:[%s18393_s4 + $0x310] sm:$0xff] }
 0x166   : > { %15781 = vmatmul.mubr.msk.f32.vlgmr.msra.gmra.mrb[36].mxu0 %vm3159_vm3, %v18865_v35  ;;  %v1019_v52 = vld [vmem:[%s18393_s4 + $0xb78] sm:$0xff] }
 0x167   : > { %15784 = vmatmul.mubr.msk.f32.vlgmr.msra.gmra.mrb[36].mxu1 %vm3159_vm3, %v18865_v35  ;;  %16490 = vmatpush1.bf16.msra.mxu0 %v16489_v62  ;;  %v16544_v62 = vpack.c.bf16 %v1551_v56, %v1280_v54  ;;  %v16597_v54 = vpack.c.bf16 %v1022_v47, %v751_v46  ;;  %v1291_v56 = vld [vmem:[%s18393_s4 + $0x13f8] sm:$0xff]  ;;  %v1572_v46 = vld [vmem:[%s18393_s4 + $0x1cc0] sm:$0x1]  ;;  %v1804_v47 = vlaneseq }
 0x168   : > { %16500 = vmatpush1.bf16.msra.mxu1 %v16499_v63  ;;  %16493 = vmatprep.subr.msk.bf16.mxu0 %vm18389_vm2, %v16491_v0  ;;  %v16547_v63 = vpack.c.bf16 %v1012_v58, %v741_v57  ;;  %v740_v0 = vld [vmem:[%s18393_s4 + $0x2c0] sm:$0xff]  ;;  %v1562_v57 = vld [vmem:[%s18393_s4 + $0x1c70] sm:$0x1]  ;;  %v1293_v58 = vld [vmem:[%s18393_s4 + $0x1408] sm:$0xff] }
 0x169   : > { %16503 = vmatprep.subr.msk.bf16.mxu1 %vm18389_vm2, %v16501_v4  ;;  %6739 = vmatprep.mubr.f32.mxu0 %v17840_v16  ;;  %v1013_v4 = vld [vmem:[%s18393_s4 + $0xb48] sm:$0xff]  ;;  %v16549_v9 = vpack.c.bf16 %v1011_v1, %v740_v0  ;;  %v1292_v1 = vld [vmem:[%s18393_s4 + $0x1400] sm:$0xff] }
 0x16a   : > { %6810 = vmatprep.mubr.f32.mxu1 %v17840_v16  ;;  %v1561_v0 = vld [vmem:[%s18393_s4 + $0x1c68] sm:$0x1] }
 0x16b   : > { %16496 = vmatpush1.bf16.msk.msra.mxu0 %vm18389_vm2, %v16494_v10  ;;  %v16559_v10 = vpack.c.bf16 %v1013_v4, %v742_v2  ;;  %v16601_v2 = vpack.c.bf16 %v1564_v59, %v1293_v58  ;;  %v753_v4 = vld [vmem:[%s18393_s4 + $0x328] sm:$0xff]  ;;  %v763_v58 = vld [vmem:[%s18393_s4 + $0x378] sm:$0xff]  ;;  %v1034_v59 = vld [vmem:[%s18393_s4 + $0xbf0] sm:$0xff] }
 0x16c   : > { %16506 = vmatpush1.bf16.msk.msra.mxu1 %vm18389_vm2, %v16504_v11  ;;  %16508 = vmatprep.subr.bf16.mxu0 %v16507_v12  ;;  %v16551_v11 = vpack.c.bf16 %v1554_v6, %v1283_v5  ;;  %v1282_v12 = vld [vmem:[%s18393_s4 + $0x13b0] sm:$0xff]  ;;  %v1024_v5 = vld [vmem:[%s18393_s4 + $0xba0] sm:$0xff]  ;;  %v755_v6 = vld [vmem:[%s18393_s4 + $0x338] sm:$0xff] }
 0x16d   : > { %16518 = vmatprep.subr.bf16.mxu1 %v16517_v18  ;;  %v1555_v18 = vld [vmem:[%s18393_s4 + $0x1c38] sm:$0x1]  ;;  %v16554_v22 = vpack.c.bf16 %v1553_v13, %v1282_v12  ;;  %v754_v13 = vld [vmem:[%s18393_s4 + $0x330] sm:$0xff] }
 0x16e   : > { %15787 = vmatmul.mubr.msk.f32.vlgmr.msra.gmra.mrb[38].mxu0 %vm3159_vm3, %v18865_v35  ;;  %v1023_v12 = vld [vmem:[%s18393_s4 + $0xb98] sm:$0xff] }
 0x16f   : > { %15790 = vmatmul.mubr.msk.f32.vlgmr.msra.gmra.mrb[38].mxu1 %vm3159_vm3, %v18865_v35  ;;  %16510 = vmatpush1.bf16.msra.mxu0 %v16509_v23  ;;  %v16564_v23 = vpack.c.bf16 %v1555_v18, %v1284_v14  ;;  %v16617_v14 = vpack.c.bf16 %v1026_v7, %v755_v6  ;;  %v1295_v18 = vld [vmem:[%s18393_s4 + $0x1418] sm:$0xff]  ;;  %v1574_v6 = vld [vmem:[%s18393_s4 + $0x1cd0] sm:$0x1] }
 0x170   : > { %16520 = vmatpush1.bf16.msra.mxu1 %v16519_v24  ;;  %16513 = vmatprep.subr.msk.bf16.mxu0 %vm18389_vm2, %v16511_v25  ;;  %v16567_v24 = vpack.c.bf16 %v1016_v44, %v745_v19  ;;  %v744_v25 = vld [vmem:[%s18393_s4 + $0x2e0] sm:$0xff]  ;;  %v1566_v19 = vld [vmem:[%s18393_s4 + $0x1c90] sm:$0x1]  ;;  %v1297_v44 = vld [vmem:[%s18393_s4 + $0x1428] sm:$0xff] }
 0x171   : > { %16523 = vmatprep.subr.msk.bf16.mxu1 %vm18389_vm2, %v16521_v29  ;;  %6881 = vmatprep.mubr.f32.mxu0 %v17840_v16  ;;  %v1017_v29 = vld [vmem:[%s18393_s4 + $0xb68] sm:$0xff]  ;;  %v16569_v34 = vpack.c.bf16 %v1015_v26, %v744_v25  ;;  %v1296_v26 = vld [vmem:[%s18393_s4 + $0x1420] sm:$0xff] }
 0x172   : > { %6952 = vmatprep.mubr.f32.mxu1 %v17840_v16  ;;  %v1565_v25 = vld [vmem:[%s18393_s4 + $0x1c88] sm:$0x1] }
 0x173   : > { %16516 = vmatpush1.bf16.msk.msra.mxu0 %vm18389_vm2, %v16514_v36  ;;  %v16579_v36 = vpack.c.bf16 %v1017_v29, %v746_v27  ;;  %v16621_v27 = vpack.c.bf16 %v1568_v20, %v1297_v44  ;;  %v757_v29 = vld [vmem:[%s18393_s4 + $0x348] sm:$0xff]  ;;  %v1304_v20 = vld [vmem:[%s18393_s4 + $0x1460] sm:$0xff] }
 0x174   : > { %16526 = vmatpush1.bf16.msk.msra.mxu1 %vm18389_vm2, %v16524_v37  ;;  %16528 = vmatprep.subr.bf16.mxu0 %v16527_v38  ;;  %v16571_v37 = vpack.c.bf16 %v1558_v31, %v1287_v30  ;;  %v1286_v38 = vld [vmem:[%s18393_s4 + $0x13d0] sm:$0xff]  ;;  %v1028_v30 = vld [vmem:[%s18393_s4 + $0xbc0] sm:$0xff]  ;;  %v759_v31 = vld [vmem:[%s18393_s4 + $0x358] sm:$0xff] }
 0x175   : > { %16538 = vmatprep.subr.bf16.mxu1 %v16537_v42  ;;  %v1559_v42 = vld [vmem:[%s18393_s4 + $0x1c58] sm:$0x1]  ;;  %v16574_v48 = vpack.c.bf16 %v1557_v39, %v1286_v38  ;;  %v758_v39 = vld [vmem:[%s18393_s4 + $0x350] sm:$0xff]  ;;  %v1573_v44 = vld [vmem:[%s18393_s4 + $0x1cc8] sm:$0x1] }
 0x176   : > { %15793 = vmatmul.mubr.msk.f32.vlgmr.msra.gmra.mrb[40].mxu0 %vm3159_vm3, %v18865_v35  ;;  %v1027_v38 = vld [vmem:[%s18393_s4 + $0xbb8] sm:$0xff] }
 0x177   : > { %15796 = vmatmul.mubr.msk.f32.vlgmr.msra.gmra.mrb[40].mxu1 %vm3159_vm3, %v18865_v35  ;;  %16530 = vmatpush1.bf16.msra.mxu0 %v16529_v49  ;;  %v16584_v49 = vpack.c.bf16 %v1559_v42, %v1288_v40  ;;  %v16637_v40 = vpack.c.bf16 %v1030_v32, %v759_v31  ;;  %v1299_v42 = vld [vmem:[%s18393_s4 + $0x1438] sm:$0xff] }
 0x178   : > { %16540 = vmatpush1.bf16.msra.mxu1 %v16539_v50  ;;  %16533 = vmatprep.subr.msk.bf16.mxu0 %vm18389_vm2, %v16531_v51  ;;  %v16587_v50 = vpack.c.bf16 %v1020_v45, %v749_v43  ;;  %v748_v51 = vld [vmem:[%s18393_s4 + $0x300] sm:$0xff]  ;;  %v1570_v43 = vld [vmem:[%s18393_s4 + $0x1cb0] sm:$0x1]  ;;  %v1301_v45 = vld [vmem:[%s18393_s4 + $0x1448] sm:$0xff] }
 0x179   : > { %16543 = vmatprep.subr.msk.bf16.mxu1 %vm18389_vm2, %v16541_v55  ;;  %7023 = vmatprep.mubr.f32.mxu0 %v17840_v16  ;;  %v1021_v55 = vld [vmem:[%s18393_s4 + $0xb88] sm:$0xff]  ;;  %v16589_v60 = vpack.c.bf16 %v1019_v52, %v748_v51  ;;  %v1298_v51 = vld [vmem:[%s18393_s4 + $0x1430] sm:$0xff] }
 0x17a   : > { %7094 = vmatprep.mubr.f32.mxu1 %v17840_v16  ;;  %v1569_v52 = vld [vmem:[%s18393_s4 + $0x1ca8] sm:$0x1] }
 0x17b   : > { %16536 = vmatpush1.bf16.msk.msra.mxu0 %vm18389_vm2, %v16534_v61  ;;  %v16599_v61 = vpack.c.bf16 %v1021_v55, %v750_v53  ;;  %v1300_v53 = vld [vmem:[%s18393_s4 + $0x1440] sm:$0xff]  ;;  %v1571_v55 = vld [vmem:[%s18393_s4 + $0x1cb8] sm:$0x1] }
 0x17c   : > { %16546 = vmatpush1.bf16.msk.msra.mxu1 %vm18389_vm2, %v16544_v62  ;;  %16548 = vmatprep.subr.bf16.mxu0 %v16547_v63  ;;  %v16591_v62 = vpack.c.bf16 %v1562_v57, %v1291_v56  ;;  %v1290_v63 = vld [vmem:[%s18393_s4 + $0x13f0] sm:$0xff]  ;;  %v761_v56 = vld [vmem:[%s18393_s4 + $0x368] sm:$0xff]  ;;  %v1032_v57 = vld [vmem:[%s18393_s4 + $0xbe0] sm:$0xff] }
 0x17d   : > { %16558 = vmatprep.subr.bf16.mxu1 %v16557_v3  ;;  %v1563_v3 = vld [vmem:[%s18393_s4 + $0x1c78] sm:$0x1]  ;;  %v16594_v8 = vpack.c.bf16 %v1561_v0, %v1290_v63  ;;  %v16647_v63 = vpack.c.bf16 %v1032_v57, %v761_v56  ;;  %v760_v0 = vld [vmem:[%s18393_s4 + $0x360] sm:$0xff] }
 0x17e   : > { %15799 = vmatmul.mubr.msk.f32.vlgmr.msra.gmra.mrb[42].mxu0 %vm3159_vm3, %v18865_v35 }
 0x17f   : > { %15802 = vmatmul.mubr.msk.f32.vlgmr.msra.gmra.mrb[42].mxu1 %vm3159_vm3, %v18865_v35  ;;  %16550 = vmatpush1.bf16.msra.mxu0 %v16549_v9  ;;  %v16604_v9 = vpack.c.bf16 %v1563_v3, %v1292_v1  ;;  %v1031_v1 = vld [vmem:[%s18393_s4 + $0xbd8] sm:$0xff]  ;;  %v16657_v3 = vpack.c.bf16 %v1034_v59, %v763_v58 }
 0x180   : > { %16560 = vmatpush1.bf16.msra.mxu1 %v16559_v10  ;;  %16553 = vmatprep.subr.msk.bf16.mxu0 %vm18389_vm2, %v16551_v11  ;;  %v16607_v10 = vpack.c.bf16 %v1024_v5, %v753_v4  ;;  %v752_v11 = vld [vmem:[%s18393_s4 + $0x320] sm:$0xff]  ;;  %v1033_v4 = vld [vmem:[%s18393_s4 + $0xbe8] sm:$0xff]  ;;  %v1303_v5 = vld [vmem:[%s18393_s4 + $0x1458] sm:$0xff] }
 0x181   : > { %16563 = vmatprep.subr.msk.bf16.mxu1 %vm18389_vm2, %v16561_v15  ;;  %7165 = vmatprep.mubr.f32.mxu0 %v17840_v16  ;;  %v1025_v15 = vld [vmem:[%s18393_s4 + $0xba8] sm:$0xff]  ;;  %v16609_v21 = vpack.c.bf16 %v1023_v12, %v752_v11  ;;  %v19237_v11 = vld [vmem:[%s19220_s25] sm:$0xff] }
 0x182   : > { %7236 = vmatprep.mubr.f32.mxu1 %v17840_v16 }
 0x183   : > { %16556 = vmatpush1.bf16.msk.msra.mxu0 %vm18389_vm2, %v16554_v22  ;;  %v16619_v22 = vpack.c.bf16 %v1025_v15, %v754_v13 }
 0x184   : > { %16566 = vmatpush1.bf16.msk.msra.mxu1 %vm18389_vm2, %v16564_v23  ;;  %16568 = vmatprep.subr.bf16.mxu0 %v16567_v24  ;;  %v16611_v23 = vpack.c.bf16 %v1566_v19, %v1295_v18  ;;  %v1294_v24 = vld [vmem:[%s18393_s4 + $0x1410] sm:$0xff]  ;;  %v16651_v18 = vpack.c.bf16 %v1574_v6, %v1303_v5 }
 0x185   : > { %16578 = vmatprep.subr.bf16.mxu1 %v16577_v28  ;;  %v1567_v28 = vld [vmem:[%s18393_s4 + $0x1c98] sm:$0x1]  ;;  %v16614_v33 = vpack.c.bf16 %v1565_v25, %v1294_v24  ;;  %v1302_v19 = vld [vmem:[%s18393_s4 + $0x1450] sm:$0xff]  ;;  %v765_v25 = vld [vmem:[%s18393_s4 + $0x388] sm:$0xff] }
 0x186   : > { %15805 = vmatmul.mubr.msk.f32.vlgmr.msra.gmra.mrb[44].mxu0 %vm3159_vm3, %v18865_v35  ;;  %v1575_v24 = vld [vmem:[%s18393_s4 + $0x1cd8] sm:$0x1]  ;;  %v16654_v32 = vpack.c.bf16 %v1573_v44, %v1302_v19 }
 0x187   : > { %15808 = vmatmul.mubr.msk.f32.vlgmr.msra.gmra.mrb[44].mxu1 %vm3159_vm3, %v18865_v35  ;;  %16570 = vmatpush1.bf16.msra.mxu0 %v16569_v34  ;;  %v16624_v34 = vpack.c.bf16 %v1567_v28, %v1296_v26  ;;  %v1036_v26 = vld [vmem:[%s18393_s4 + $0xc00] sm:$0xff]  ;;  %v767_v28 = vld [vmem:[%s18393_s4 + $0x398] sm:$0xff] }
 0x188   : > { %16580 = vmatpush1.bf16.msra.mxu1 %v16579_v36  ;;  %16573 = vmatprep.subr.msk.bf16.mxu0 %vm18389_vm2, %v16571_v37  ;;  %v16627_v36 = vpack.c.bf16 %v1028_v30, %v757_v29  ;;  %v756_v37 = vld [vmem:[%s18393_s4 + $0x340] sm:$0xff]  ;;  %v1038_v29 = vld [vmem:[%s18393_s4 + $0xc10] sm:$0xff] }
 0x189   : > { %16583 = vmatprep.subr.msk.bf16.mxu1 %vm18389_vm2, %v16581_v41  ;;  %7307 = vmatprep.mubr.f32.mxu0 %v17840_v16  ;;  %v1029_v41 = vld [vmem:[%s18393_s4 + $0xbc8] sm:$0xff] }
 0x18a   : > { %7378 = vmatprep.mubr.f32.mxu1 %v17840_v16 }
 0x18b   : > { %16576 = vmatpush1.bf16.msk.msra.mxu0 %vm18389_vm2, %v16574_v48  ;;  %v16629_v48 = vpack.c.bf16 %v1027_v38, %v756_v37  ;;  %v764_v37 = vld [vmem:[%s18393_s4 + $0x380] sm:$0xff]  ;;  %v1035_v38 = vld [vmem:[%s18393_s4 + $0xbf8] sm:$0xff] }
 0x18c   : > { %16586 = vmatpush1.bf16.msk.msra.mxu1 %vm18389_vm2, %v16584_v49  ;;  %16588 = vmatprep.subr.bf16.mxu0 %v16587_v50  ;;  %v16639_v49 = vpack.c.bf16 %v1029_v41, %v758_v39  ;;  %v16631_v50 = vpack.c.bf16 %v1570_v43, %v1299_v42  ;;  %v766_v39 = vld [vmem:[%s18393_s4 + $0x390] sm:$0xff]  ;;  %v16677_v43 = vpack.c.bf16 %v1038_v29, %v767_v28  ;;  %v1039_v29 = vld [vmem:[%s18393_s4 + $0xc18] sm:$0xff] }
 0x18d   : > { %16598 = vmatprep.subr.bf16.mxu1 %v16597_v54  ;;  %v16641_v54 = vpack.c.bf16 %v1572_v46, %v1301_v45  ;;  %v1037_v45 = vld [vmem:[%s18393_s4 + $0xc08] sm:$0xff]  ;;  %v16669_v58 = vpack.c.bf16 %v1035_v38, %v764_v37 }
 0x18e   : > { %15811 = vmatmul.mubr.msk.f32.vlgmr.msra.gmra.mrb[46].mxu0 %vm3159_vm3, %v18865_v35 }
 0x18f   : > { %15814 = vmatmul.mubr.msk.f32.vlgmr.msra.gmra.mrb[46].mxu1 %vm3159_vm3, %v18865_v35  ;;  %16590 = vmatpush1.bf16.msra.mxu0 %v16589_v60  ;;  %v19208_v60 = vshrl.u32 %v1804_v47, 7  ;;  %v1307_v47 = vld [vmem:[%s18393_s4 + $0x1478] sm:$0xff] }
 0x190   : > { %16600 = vmatpush1.bf16.msra.mxu1 %v16599_v61  ;;  %16593 = vmatprep.subr.msk.bf16.mxu0 %vm18389_vm2, %v16591_v62  ;;  %v16634_v61 = vpack.c.bf16 %v1569_v52, %v1298_v51  ;;  %v16644_v62 = vpack.c.bf16 %v1571_v55, %v1300_v53  ;;  %v1309_v53 = vld [vmem:[%s18393_s4 + $0x1488] sm:$0xff] }
 0x191   : > { %16603 = vmatprep.subr.msk.bf16.mxu1 %vm18389_vm2, %v16601_v2  ;;  %7449 = vmatprep.mubr.f32.mxu0 %v17840_v16  ;;  %v762_v2 = vld [vmem:[%s18393_s4 + $0x370] sm:$0xff]  ;;  %v19230_v7 = vsub.s32 0, %v19208_v60  ;;  %v19240_v12 = vsub.s32 2, %v19208_v60  ;;  %v19243_v13 = vsub.s32 1, %v19208_v60  ;;  %v19248_v15 = vsub.s32 3, %v19208_v60 }
 0x192   : > { %7520 = vmatprep.mubr.f32.mxu1 %v17840_v16  ;;  %v19283_v46 = vsub.s32 6, %v19208_v60  ;;  %v19289_v52 = vsub.s32 5, %v19208_v60  ;;  %v19296_v59 = vsub.s32 7, %v19208_v60 }
 0x193   : > { %16596 = vmatpush1.bf16.msk.msra.mxu0 %vm18389_vm2, %v16594_v8  ;;  %v1305_v8 = vld [vmem:[%s18393_s4 + $0x1468] sm:$0xff]  ;;  %v1815_v30 = vrot.slane %v19237_v11, %v19240_v12  ;;  %v1811_v31 = vrot.slane %v19237_v11, %v19243_v13 }
 0x194   : > { %16606 = vmatpush1.bf16.msk.msra.mxu1 %vm18389_vm2, %v16604_v9  ;;  %16608 = vmatprep.subr.bf16.mxu0 %v16607_v10  ;;  %v1576_v9 = vld [vmem:[%s18393_s4 + $0x1ce0] sm:$0x1]  ;;  %v16649_v10 = vpack.c.bf16 %v1031_v1, %v760_v0  ;;  %v1306_v1 = vld [vmem:[%s18393_s4 + $0x1470] sm:$0xff]  ;;  %v1831_v44 = vrot.slane %v19237_v11, %v19283_v46 }
 0x195   : > { %16618 = vmatprep.subr.bf16.mxu1 %v16617_v14  ;;  %v16659_v14 = vpack.c.bf16 %v1033_v4, %v762_v2  ;;  %v1577_v2 = vld [vmem:[%s18393_s4 + $0x1ce8] sm:$0x1] }
 0x196   : > { %15817 = vmatmul.mubr.msk.f32.vlgmr.msra.gmra.mrb[48].mxu0 %vm3159_vm3, %v18865_v35 }
 0x197   : > { %15820 = vmatmul.mubr.msk.f32.vlgmr.msra.gmra.mrb[48].mxu1 %vm3159_vm3, %v18865_v35  ;;  %16610 = vmatpush1.bf16.msra.mxu0 %v16609_v21  ;;  %v17842_v21 = vmov 1983009808  }
 0x198   : > { %16620 = vmatpush1.bf16.msra.mxu1 %v16619_v22  ;;  %16613 = vmatprep.subr.msk.bf16.mxu0 %vm18389_vm2, %v16611_v23  ;;  %v14177_v22 = vunpack.c.l.s4 %v17842_v21  ;;  %v16661_v23 = vpack.c.bf16 %v1576_v9, %v1305_v8  ;;  %v1579_v9 = vld [vmem:[%s18393_s4 + $0x1cf8] sm:$0x1]  ;;  %v1042_v21 = vld [vmem:[%s18393_s4 + $0xc30] sm:$0xff] }
 0x199   : > { %16623 = vmatprep.subr.msk.bf16.mxu1 %vm18389_vm2, %v16621_v27  ;;  %7591 = vmatprep.mubr.f32.mxu0 %v17840_v16  ;;  %v1807_v27 = vrot.slane %v19237_v11, %v19230_v7 }
 0x19a   : > { %7662 = vmatprep.mubr.f32.mxu1 %v17840_v16  ;;  %v14178_v42 = vunpack.c.0.s8 %v14177_v22 }
 0x19b   : > { %16616 = vmatpush1.bf16.msk.msra.mxu0 %vm18389_vm2, %v16614_v33  ;;  %v1819_v33 = vrot.slane %v19237_v11, %v19248_v15 }
 0x19c   : > { %16626 = vmatpush1.bf16.msk.msra.mxu1 %vm18389_vm2, %v16624_v34  ;;  %16628 = vmatprep.subr.bf16.mxu0 %v16627_v36  ;;  %v16664_v34 = vpack.c.bf16 %v1575_v24, %v1304_v20  ;;  %v16667_v36 = vpack.c.bf16 %v1036_v26, %v765_v25  ;;  %v19304_v6 = vsub.s32 %v14178_v42, %v19208_v60  ;;  %v771_v20 = vld [vmem:[%s18393_s4 + $0x3b8] sm:$0xff]  ;;  %v768_v25 = vld [vmem:[%s18393_s4 + $0x3a0] sm:$0xff] }
 0x19d   : > { %16638 = vmatprep.subr.bf16.mxu1 %v16637_v40  ;;  %v19276_v40 = vsub.s32 4, %v19208_v60  ;;  %v1827_v60 = vrot.slane %v19237_v11, %v19289_v52  ;;  %v16674_v24 = vpack.c.bf16 %v1577_v2, %v1306_v1  ;;  %v1584_v42 = vld [vmem:[%s18393_s4 + $0x1d20] sm:$0x1]  ;;  %v773_v1 = vld [vmem:[%s18393_s4 + $0x3c8] sm:$0xff] }
 0x19e   : > { %15823 = vmatmul.mubr.msk.f32.vlgmr.msra.gmra.mrb[50].mxu0 %vm3159_vm3, %v18865_v35  ;;  %v1044_v2 = vld [vmem:[%s18393_s4 + $0xc40] sm:$0xff] }
 0x19f   : > { %15826 = vmatmul.mubr.msk.f32.vlgmr.msra.gmra.mrb[50].mxu1 %vm3159_vm3, %v18865_v35  ;;  %16630 = vmatpush1.bf16.msra.mxu0 %v16629_v48  ;;  %v1578_v48 = vld [vmem:[%s18393_s4 + $0x1cf0] sm:$0x1]  ;;  %v1823_v19 = vrot.slane %v19237_v11, %v19276_v40 }
 0x1a0   : > { %16640 = vmatpush1.bf16.msra.mxu1 %v16639_v49  ;;  %16633 = vmatprep.subr.msk.bf16.mxu0 %vm18389_vm2, %v16631_v50  ;;  %v16671_v0 = vpack.c.bf16 %v1578_v48, %v1307_v47  ;;  %v16689_v48 = vpack.c.bf16 %v1039_v29, %v768_v25  ;;  %v1045_v25 = vld [vmem:[%s18393_s4 + $0xc48] sm:$0xff]  ;;  %v1315_v29 = vld [vmem:[%s18393_s4 + $0x14b8] sm:$0xff] }
 0x1a1   : > { %16643 = vmatprep.subr.msk.bf16.mxu1 %vm18389_vm2, %v16641_v54  ;;  %7733 = vmatprep.mubr.f32.mxu0 %v17840_v16  ;;  %v1580_v54 = vld [vmem:[%s18393_s4 + $0x1d00] sm:$0x1] }
 0x1a2   : > { %7804 = vmatprep.mubr.f32.mxu1 %v17840_v16  ;;  %v16681_v8 = vpack.c.bf16 %v1580_v54, %v1309_v53 }
 0x1a3   : > { %16636 = vmatpush1.bf16.msk.msra.mxu0 %vm18389_vm2, %v16634_v61 }
 0x1a4   : > { %16646 = vmatpush1.bf16.msk.msra.mxu1 %vm18389_vm2, %v16644_v62  ;;  %16648 = vmatprep.subr.bf16.mxu0 %v16647_v63  ;;  %v16679_v63 = vpack.c.bf16 %v1037_v45, %v766_v39 }
 0x1a5   : > { %16658 = vmatprep.subr.bf16.mxu1 %v16657_v3  ;;  %v1308_v3 = vld [vmem:[%s18393_s4 + $0x1480] sm:$0xff] }
 0x1a6   : > { %15829 = vmatmul.mubr.msk.f32.vlgmr.msra.gmra.mrb[52].mxu0 %vm3159_vm3, %v18865_v35 }
 0x1a7   : > { %15832 = vmatmul.mubr.msk.f32.vlgmr.msra.gmra.mrb[52].mxu1 %vm3159_vm3, %v18865_v35  ;;  %16650 = vmatpush1.bf16.msra.mxu0 %v16649_v10  ;;  %v769_v10 = vld [vmem:[%s18393_s4 + $0x3a8] sm:$0xff] }
 0x1a8   : > { %16660 = vmatpush1.bf16.msra.mxu1 %v16659_v14  ;;  %16653 = vmatprep.subr.msk.bf16.mxu0 %vm18389_vm2, %v16651_v18  ;;  %v1040_v14 = vld [vmem:[%s18393_s4 + $0xc20] sm:$0xff] }
 0x1a9   : > { %v4043_v41 = vpop.f32.mrb[0].mxu0  ;;  %16663 = vmatprep.subr.msk.bf16.mxu1 %vm18389_vm2, %v16661_v23  ;;  %7875 = vmatprep.mubr.f32.mxu0 %v17840_v16  ;;  %v1835_v23 = vrot.slane %v19237_v11, %v19296_v59  ;;  %v16687_v28 = vpack.c.bf16 %v1040_v14, %v769_v10  ;;  %v16697_v11 = vpack.c.bf16 %v1042_v21, %v771_v20  ;;  %v775_v10 = vld [vmem:[%s18393_s4 + $0x3d8] sm:$0xff]  ;;  %v1046_v14 = vld [vmem:[%s18393_s4 + $0xc50] sm:$0xff] }
 0x1aa   : > { %v4044_v49 = vadd.f32 %v4043_v41, %v1807_v27  ;;  %v4114_v50 = vpop.f32.mrb[0].mxu1  ;;  %v4045_v51 = vpop.f32.mrb[1].mxu0  ;;  %7946 = vmatprep.mubr.f32.mxu1 %v17840_v16  ;;  %v16684_v27 = vpack.c.bf16 %v1579_v9, %v1308_v3  ;;  %v1313_v41 = vld [vmem:[%s18393_s4 + $0x14a8] sm:$0xff] }
 0x1ab   : > { %v4115_v55 = vadd.f32 %v4114_v50, %v1815_v30  ;;  %v4046_v56 = vadd.f32 %v4045_v51, %v1811_v31  ;;  %v4116_v57 = vpop.f32.mrb[1].mxu1  ;;  %16656 = vmatpush1.bf16.msk.msra.mxu0 %vm18389_vm2, %v16654_v32  ;;  %v770_v30 = vld [vmem:[%s18393_s4 + $0x3b0] sm:$0xff]  ;;  %v19343_v50 = vld [vmem:[%s19220_s25 + $0x8] sm:$0xff] }
 0x1ac   : > { %v13632_v61 = vmax.f32 %v4044_v49, 0.0  ;;  %v4117_v62 = vadd.f32 %v4116_v57, %v1819_v33  ;;  %16666 = vmatpush1.bf16.msk.msra.mxu1 %vm18389_vm2, %v16664_v34  ;;  %16668 = vmatprep.subr.bf16.mxu0 %v16667_v36  ;;  %v1311_v33 = vld [vmem:[%s18393_s4 + $0x1498] sm:$0xff]  ;;  %v1582_v34 = vld [vmem:[%s18393_s4 + $0x1d10] sm:$0x1]  ;;  %v1581_v57 = vld [vmem:[%s18393_s4 + $0x1d08] sm:$0x1]  ;;  %v1843_v9 = vrot.slane %v19343_v50, %v19243_v13 }
 0x1ad   : > { %v13634_v4 = vmax.f32 %v4115_v55, 0.0  ;;  %v13633_v5 = vmax.f32 %v4046_v56, 0.0  ;;  %16678 = vmatprep.subr.bf16.mxu1 %v16677_v43  ;;  %v16691_v55 = vpack.c.bf16 %v1582_v34, %v1311_v33  ;;  %v1310_v56 = vld [vmem:[%s18393_s4 + $0x1490] sm:$0xff]  ;;  %v1317_v33 = vld [vmem:[%s18393_s4 + $0x14c8] sm:$0xff]  ;;  %v1588_v34 = vld [vmem:[%s18393_s4 + $0x1d40] sm:$0x1] }
 0x1ae   : > { %v13635_v18 = vmax.f32 %v4117_v62, 0.0  ;;  %15835 = vmatmul.mubr.msk.f32.vlgmr.msra.gmra.mrb[54].mxu0 %vm3159_vm3, %v18865_v35 }
 0x1af   : > { %v14174_v22 = vcombine.low %v13632_v61, %v13633_v5  ;;  %15838 = vmatmul.mubr.msk.f32.vlgmr.msra.gmra.mrb[54].mxu1 %vm3159_vm3, %v18865_v35  ;;  %16670 = vmatpush1.bf16.msra.mxu0 %v16669_v58  ;;  %v1041_v35 = vld [vmem:[%s18393_s4 + $0xc28] sm:$0xff]  ;;  %v1312_v58 = vld [vmem:[%s18393_s4 + $0x14a0] sm:$0xff]  ;;  %v1839_v5 = vrot.slane %v19343_v50, %v19230_v7 }
 0x1b0   : > { %v14175_v26 = vcombine.low %v13634_v4, %v13635_v18  ;;  %16680 = vmatpush1.bf16.msra.mxu1 %v16679_v63  ;;  %16673 = vmatprep.subr.msk.bf16.mxu0 %vm18389_vm2, %v16671_v0  ;;  %v16699_v49 = vpack.c.bf16 %v1041_v35, %v770_v30  ;;  %v16701_v63 = vpack.c.bf16 %v1584_v42, %v1313_v41  ;;  %v1583_v0 = vld [vmem:[%s18393_s4 + $0x1d18] sm:$0x1]  ;;  %v19361_v4 = vld [vmem:[%s21283_s0] sm:$0x3]  ;;  %v1586_v30 = vld [vmem:[%s18393_s4 + $0x1d30] sm:$0x1] }
 0x1b1   : > { %v14182_v31 = vrot.slane %v14174_v22, %v19304_v6  ;;  %v4185_v32 = vpop.f32.mrb[2].mxu0  ;;  %16683 = vmatprep.subr.msk.bf16.mxu1 %vm18389_vm2, %v16681_v8  ;;  %8017 = vmatprep.mubr.f32.mxu0 %v17840_v16  ;;  %v1847_v8 = vrot.slane %v19343_v50, %v19240_v12  ;;  %v16704_v21 = vpack.c.bf16 %v1583_v0, %v1312_v58  ;;  %v1048_v58 = vld [vmem:[%s18393_s4 + $0xc60] sm:$0xff] }
 0x1b2   : > { %v14189_v36 = vrot.slane %v14175_v26, %v19304_v6  ;;  %v4186_v37 = vadd.f32 %v4185_v32, %v1823_v19  ;;  %v4256_v38 = vpop.f32.mrb[2].mxu1  ;;  %v4187_v39 = vpop.f32.mrb[3].mxu0  ;;  %8088 = vmatprep.mubr.f32.mxu1 %v17840_v16  ;;  %v1851_v19 = vrot.slane %v19343_v50, %v19248_v15  ;;  %v16707_v22 = vpack.c.bf16 %v1044_v2, %v773_v1  ;;  %v779_v1 = vld [vmem:[%s18393_s4 + $0x3f8] sm:$0xff]  ;;  %v1050_v2 = vld [vmem:[%s18393_s4 + $0xc70] sm:$0xff] }
 0x1b3   : > { %v4257_v43 = vadd.f32 %v4256_v38, %v1831_v44  ;;  %v4188_v45 = vadd.f32 %v4187_v39, %v1827_v60  ;;  %v4258_v47 = vpop.f32.mrb[3].mxu1  ;;  %16676 = vmatpush1.bf16.msk.msra.mxu0 %vm18389_vm2, %v16674_v24  ;;  %v16694_v44 = vpack.c.bf16 %v1581_v57, %v1310_v56  ;;  %v772_v60 = vld [vmem:[%s18393_s4 + $0x3c0] sm:$0xff]  ;;  %v774_v24 = vld [vmem:[%s18393_s4 + $0x3d0] sm:$0xff]  ;;  %v1587_v56 = vld [vmem:[%s18393_s4 + $0x1d38] sm:$0x1]  ;;  %v1859_v0 = vrot.slane %v19343_v50, %v19289_v52 }
 0x1b4   : > { %v14190_v51 = vcombine.low %v14182_v31, %v14189_v36  ;;  %v13636_v53 = vmax.f32 %v4186_v37, 0.0  ;;  %v4259_v54 = vadd.f32 %v4258_v47, %v1835_v23  ;;  %16686 = vmatpush1.bf16.msk.msra.mxu1 %vm18389_vm2, %v16684_v27  ;;  %16688 = vmatprep.subr.bf16.mxu0 %v16687_v28  ;;  %v1043_v23 = vld [vmem:[%s18393_s4 + $0xc38] sm:$0xff]  ;;  %v16717_v28 = vpack.c.bf16 %v1046_v14, %v775_v10  ;;  %v777_v57 = vld [vmem:[%s18393_s4 + $0x3e8] sm:$0xff] }
 0x1b5   : > { %v13638_v61 = vmax.f32 %v4257_v43, 0.0  ;;  %v13637_v62 = vmax.f32 %v4188_v45, 0.0  ;;  %16698 = vmatprep.subr.bf16.mxu1 %v16697_v11  ;;  %v16709_v39 = vpack.c.bf16 %v1043_v23, %v772_v60  ;;  %v16719_v41 = vpack.c.bf16 %v1045_v25, %v774_v24  ;;  %v1049_v60 = vld [vmem:[%s18393_s4 + $0xc68] sm:$0xff]  ;;  %v1590_v23 = vld [vmem:[%s18393_s4 + $0x1d50] sm:$0x1] }
 0x1b6   : > { %15397 = vst [vmem:[%s19355_s26] sm:$0xff] %v14190_v51  ;;  %v13639_v3 = vmax.f32 %v4259_v54, 0.0  ;;  %15841 = vmatmul.mubr.msk.f32.vlgmr.msra.gmra.mrb[56].mxu0 %vm3159_vm3, %v19361_v4  ;;  %v16711_v47 = vpack.c.bf16 %v1586_v30, %v1315_v29  ;;  %v1316_v51 = vld [vmem:[%s18393_s4 + $0x14c0] sm:$0xff] }
 0x1b7   : > { %v14191_v18 = vcombine.low %v13636_v53, %v13637_v62  ;;  %15844 = vmatmul.mubr.msk.f32.vlgmr.msra.gmra.mrb[56].mxu1 %vm3159_vm3, %v19361_v4  ;;  %16690 = vmatpush1.bf16.msra.mxu0 %v16689_v48  ;;  %v1314_v48 = vld [vmem:[%s18393_s4 + $0x14b0] sm:$0xff]  ;;  %v1855_v62 = vrot.slane %v19343_v50, %v19276_v40  ;;  %v16724_v14 = vpack.c.bf16 %v1587_v56, %v1316_v51  ;;  %v1592_v29 = vld [vmem:[%s18393_s4 + $0x1d60] sm:$0x1] }
 0x1b8   : > { %v14192_v20 = vcombine.low %v13638_v61, %v13639_v3  ;;  %16700 = vmatpush1.bf16.msra.mxu1 %v16699_v49  ;;  %16693 = vmatprep.subr.msk.bf16.mxu0 %vm18389_vm2, %v16691_v55  ;;  %v1585_v49 = vld [vmem:[%s18393_s4 + $0x1d28] sm:$0x1]  ;;  %v16721_v55 = vpack.c.bf16 %v1588_v34, %v1317_v33  ;;  %v19437_v33 = vld [vmem:[%s19220_s25 + $0x10] sm:$0xff]  ;;  %v1052_v51 = vld [vmem:[%s18393_s4 + $0xc80] sm:$0xff] }
 0x1b9   : > { %v14199_v26 = vrot.slane %v14191_v18, %v19304_v6  ;;  %v4327_v27 = vpop.f32.mrb[4].mxu0  ;;  %16703 = vmatprep.subr.msk.bf16.mxu1 %vm18389_vm2, %v16701_v63  ;;  %8159 = vmatprep.mubr.f32.mxu0 %v17840_v16  ;;  %v1863_v63 = vrot.slane %v19343_v50, %v19283_v46  ;;  %v16727_v18 = vpack.c.bf16 %v1048_v58, %v777_v57  ;;  %v783_v57 = vld [vmem:[%s18393_s4 + $0x418] sm:$0xff]  ;;  %v1054_v58 = vld [vmem:[%s18393_s4 + $0xc90] sm:$0xff] }
 0x1ba   : > { %v14206_v35 = vrot.slane %v14192_v20, %v19304_v6  ;;  %v4328_v31 = vadd.f32 %v4327_v27, %v1839_v5  ;;  %v4398_v32 = vpop.f32.mrb[4].mxu1  ;;  %v4329_v11 = vpop.f32.mrb[5].mxu0  ;;  %8230 = vmatprep.mubr.f32.mxu1 %v17840_v16  ;;  %v1867_v5 = vrot.slane %v19343_v50, %v19296_v59  ;;  %v16737_v50 = vpack.c.bf16 %v1050_v2, %v779_v1 }
 0x1bb   : > { %v4399_v36 = vadd.f32 %v4398_v32, %v1847_v8  ;;  %v4330_v37 = vadd.f32 %v4329_v11, %v1843_v9  ;;  %v4400_v38 = vpop.f32.mrb[5].mxu1  ;;  %16696 = vmatpush1.bf16.msk.msra.mxu0 %vm18389_vm2, %v16694_v44  ;;  %v16714_v8 = vpack.c.bf16 %v1585_v49, %v1314_v48  ;;  %v776_v9 = vld [vmem:[%s18393_s4 + $0x3e0] sm:$0xff]  ;;  %v778_v44 = vld [vmem:[%s18393_s4 + $0x3f0] sm:$0xff]  ;;  %v1591_v48 = vld [vmem:[%s18393_s4 + $0x1d58] sm:$0x1]  ;;  %v1875_v56 = vrot.slane %v19437_v33, %v19243_v13 }
 0x1bc   : > { %v14207_v42 = vcombine.low %v14199_v26, %v14206_v35  ;;  %v13640_v43 = vmax.f32 %v4328_v31, 0.0  ;;  %v4401_v45 = vadd.f32 %v4400_v38, %v1851_v19  ;;  %16706 = vmatpush1.bf16.msk.msra.mxu1 %vm18389_vm2, %v16704_v21  ;;  %16708 = vmatprep.subr.bf16.mxu0 %v16707_v22  ;;  %v1047_v19 = vld [vmem:[%s18393_s4 + $0xc58] sm:$0xff]  ;;  %v16739_v11 = vpack.c.bf16 %v1049_v60, %v778_v44  ;;  %v781_v49 = vld [vmem:[%s18393_s4 + $0x408] sm:$0xff]  ;;  %v1594_v44 = vld [vmem:[%s18393_s4 + $0x1d70] sm:$0x1] }
 0x1bd   : > { %v13642_v53 = vmax.f32 %v4399_v36, 0.0  ;;  %v13641_v54 = vmax.f32 %v4330_v37, 0.0  ;;  %16718 = vmatprep.subr.bf16.mxu1 %v16717_v28  ;;  %v1319_v22 = vld [vmem:[%s18393_s4 + $0x14d8] sm:$0xff]  ;;  %v1321_v28 = vld [vmem:[%s18393_s4 + $0x14e8] sm:$0xff]  ;;  %v16729_v32 = vpack.c.bf16 %v1047_v19, %v776_v9 }
 0x1be   : > { %15398 = vst [vmem:[%s19355_s26 + $0x8] sm:$0xff] %v14207_v42  ;;  %v13643_v61 = vmax.f32 %v4401_v45, 0.0  ;;  %15847 = vmatmul.mubr.msk.f32.vlgmr.msra.gmra.mrb[58].mxu0 %vm3159_vm3, %v19361_v4  ;;  %v16731_v38 = vpack.c.bf16 %v1590_v23, %v1319_v22  ;;  %v1320_v42 = vld [vmem:[%s18393_s4 + $0x14e0] sm:$0xff]  ;;  %v1053_v9 = vld [vmem:[%s18393_s4 + $0xc88] sm:$0xff]  ;;  %v1323_v19 = vld [vmem:[%s18393_s4 + $0x14f8] sm:$0xff] }
 0x1bf   : > { %v14208_v3 = vcombine.low %v13640_v43, %v13641_v54  ;;  %15850 = vmatmul.mubr.msk.f32.vlgmr.msra.gmra.mrb[58].mxu1 %vm3159_vm3, %v19361_v4  ;;  %16710 = vmatpush1.bf16.msra.mxu0 %v16709_v39  ;;  %v1318_v39 = vld [vmem:[%s18393_s4 + $0x14d0] sm:$0xff]  ;;  %v1871_v54 = vrot.slane %v19437_v33, %v19230_v7  ;;  %v16744_v2 = vpack.c.bf16 %v1591_v48, %v1320_v42  ;;  %v1325_v22 = vld [vmem:[%s18393_s4 + $0x1508] sm:$0xff]  ;;  %v1596_v23 = vld [vmem:[%s18393_s4 + $0x1d80] sm:$0x1] }
 0x1c0   : > { %v14209_v10 = vcombine.low %v13642_v53, %v13643_v61  ;;  %16720 = vmatpush1.bf16.msra.mxu1 %v16719_v41  ;;  %16713 = vmatprep.subr.msk.bf16.mxu0 %vm18389_vm2, %v16711_v47  ;;  %v1589_v41 = vld [vmem:[%s18393_s4 + $0x1d48] sm:$0x1]  ;;  %v16741_v47 = vpack.c.bf16 %v1592_v29, %v1321_v28  ;;  %v1056_v42 = vld [vmem:[%s18393_s4 + $0xca0] sm:$0xff]  ;;  %v1891_v48 = vrot.slane %v19437_v33, %v19289_v52 }
 0x1c1   : > { %v14216_v20 = vrot.slane %v14208_v3, %v19304_v6  ;;  %v4469_v21 = vpop.f32.mrb[6].mxu0  ;;  %16723 = vmatprep.subr.msk.bf16.mxu1 %vm18389_vm2, %v16721_v55  ;;  %8301 = vmatprep.mubr.f32.mxu0 %v17840_v16  ;;  %v1879_v55 = vrot.slane %v19437_v33, %v19240_v12  ;;  %v16747_v3 = vpack.c.bf16 %v1052_v51, %v781_v49  ;;  %v787_v49 = vld [vmem:[%s18393_s4 + $0x438] sm:$0xff]  ;;  %v1058_v51 = vld [vmem:[%s18393_s4 + $0xcb0] sm:$0xff] }
 0x1c2   : > { %v14223_v24 = vrot.slane %v14209_v10, %v19304_v6  ;;  %v4470_v25 = vadd.f32 %v4469_v21, %v1855_v62  ;;  %v4540_v26 = vpop.f32.mrb[6].mxu1  ;;  %v4471_v27 = vpop.f32.mrb[7].mxu0  ;;  %8372 = vmatprep.mubr.f32.mxu1 %v17840_v16  ;;  %v1883_v62 = vrot.slane %v19437_v33, %v19248_v15 }
 0x1c3   : > { %v4541_v30 = vadd.f32 %v4540_v26, %v1863_v63  ;;  %v4472_v35 = vadd.f32 %v4471_v27, %v1859_v0  ;;  %v4542_v31 = vpop.f32.mrb[7].mxu1  ;;  %16716 = vmatpush1.bf16.msk.msra.mxu0 %vm18389_vm2, %v16714_v8  ;;  %v16734_v63 = vpack.c.bf16 %v1589_v41, %v1318_v39  ;;  %v780_v0 = vld [vmem:[%s18393_s4 + $0x400] sm:$0xff]  ;;  %v782_v8 = vld [vmem:[%s18393_s4 + $0x410] sm:$0xff]  ;;  %v1595_v39 = vld [vmem:[%s18393_s4 + $0x1d78] sm:$0x1] }
 0x1c4   : > { %v14224_v34 = vcombine.low %v14216_v20, %v14223_v24  ;;  %v13644_v36 = vmax.f32 %v4470_v25, 0.0  ;;  %v4543_v37 = vadd.f32 %v4542_v31, %v1867_v5  ;;  %16726 = vmatpush1.bf16.msk.msra.mxu1 %vm18389_vm2, %v16724_v14  ;;  %16728 = vmatprep.subr.bf16.mxu0 %v16727_v18  ;;  %v1051_v5 = vld [vmem:[%s18393_s4 + $0xc78] sm:$0xff]  ;;  %v16757_v18 = vpack.c.bf16 %v1054_v58, %v783_v57  ;;  %v785_v41 = vld [vmem:[%s18393_s4 + $0x428] sm:$0xff] }
 0x1c5   : > { %v13646_v43 = vmax.f32 %v4541_v30, 0.0  ;;  %v13645_v45 = vmax.f32 %v4472_v35, 0.0  ;;  %16738 = vmatprep.subr.bf16.mxu1 %v16737_v50  ;;  %v16749_v27 = vpack.c.bf16 %v1051_v5, %v780_v0  ;;  %v16759_v28 = vpack.c.bf16 %v1053_v9, %v782_v8  ;;  %v1057_v0 = vld [vmem:[%s18393_s4 + $0xca8] sm:$0xff]  ;;  %v1598_v5 = vld [vmem:[%s18393_s4 + $0x1d90] sm:$0x1] }
 0x1c6   : > { %15399 = vst [vmem:[%s19355_s26 + $0x10] sm:$0xff] %v14224_v34  ;;  %v13647_v53 = vmax.f32 %v4543_v37, 0.0  ;;  %15853 = vmatmul.mubr.msk.f32.vlgmr.msra.gmra.mrb[60].mxu0 %vm3159_vm3, %v19361_v4  ;;  %v16751_v31 = vpack.c.bf16 %v1594_v44, %v1323_v19  ;;  %v1324_v34 = vld [vmem:[%s18393_s4 + $0x1500] sm:$0xff] }
 0x1c7   : > { %v14225_v61 = vcombine.low %v13644_v36, %v13645_v45  ;;  %15856 = vmatmul.mubr.msk.f32.vlgmr.msra.gmra.mrb[60].mxu1 %vm3159_vm3, %v19361_v4  ;;  %16730 = vmatpush1.bf16.msra.mxu0 %v16729_v32  ;;  %v1322_v32 = vld [vmem:[%s18393_s4 + $0x14f0] sm:$0xff]  ;;  %v1887_v45 = vrot.slane %v19437_v33, %v19276_v40  ;;  %v16764_v58 = vpack.c.bf16 %v1595_v39, %v1324_v34  ;;  %v1600_v19 = vld [vmem:[%s18393_s4 + $0x1da0] sm:$0x1] }
 0x1c8   : > { %v14226_v1 = vcombine.low %v13646_v43, %v13647_v53  ;;  %16740 = vmatpush1.bf16.msra.mxu1 %v16739_v11  ;;  %16733 = vmatprep.subr.msk.bf16.mxu0 %vm18389_vm2, %v16731_v38  ;;  %v1593_v11 = vld [vmem:[%s18393_s4 + $0x1d68] sm:$0x1]  ;;  %v16761_v38 = vpack.c.bf16 %v1596_v23, %v1325_v22  ;;  %v19522_v22 = vld [vmem:[%s19220_s25 + $0x18] sm:$0xff]  ;;  %v1060_v34 = vld [vmem:[%s18393_s4 + $0xcc0] sm:$0xff] }
 0x1c9   : > { %v14233_v10 = vrot.slane %v14225_v61, %v19304_v6  ;;  %v4611_v14 = vpop.f32.mrb[8].mxu0  ;;  %16743 = vmatprep.subr.msk.bf16.mxu1 %vm18389_vm2, %v16741_v47  ;;  %8443 = vmatprep.mubr.f32.mxu0 %v17840_v16  ;;  %v1895_v47 = vrot.slane %v19437_v33, %v19283_v46  ;;  %v16767_v61 = vpack.c.bf16 %v1056_v42, %v785_v41  ;;  %v791_v41 = vld [vmem:[%s18393_s4 + $0x458] sm:$0xff]  ;;  %v1062_v42 = vld [vmem:[%s18393_s4 + $0xcd0] sm:$0xff] }
 0x1ca   : > { %v14240_v60 = vrot.slane %v14226_v1, %v19304_v6  ;;  %v4612_v20 = vadd.f32 %v4611_v14, %v1871_v54  ;;  %v4682_v21 = vpop.f32.mrb[8].mxu1  ;;  %v4613_v50 = vpop.f32.mrb[9].mxu0  ;;  %8514 = vmatprep.mubr.f32.mxu1 %v17840_v16  ;;  %v1899_v54 = vrot.slane %v19437_v33, %v19296_v59  ;;  %v16777_v33 = vpack.c.bf16 %v1058_v51, %v787_v49 }
 0x1cb   : > { %v4683_v24 = vadd.f32 %v4682_v21, %v1879_v55  ;;  %v4614_v25 = vadd.f32 %v4613_v50, %v1875_v56  ;;  %v4684_v26 = vpop.f32.mrb[9].mxu1  ;;  %16736 = vmatpush1.bf16.msk.msra.mxu0 %vm18389_vm2, %v16734_v63  ;;  %v16754_v55 = vpack.c.bf16 %v1593_v11, %v1322_v32  ;;  %v784_v56 = vld [vmem:[%s18393_s4 + $0x420] sm:$0xff]  ;;  %v786_v63 = vld [vmem:[%s18393_s4 + $0x430] sm:$0xff]  ;;  %v1599_v32 = vld [vmem:[%s18393_s4 + $0x1d98] sm:$0x1]  ;;  %v1907_v39 = vrot.slane %v19522_v22, %v19243_v13 }
 0x1cc   : > { %v14241_v29 = vcombine.low %v14233_v10, %v14240_v60  ;;  %v13648_v30 = vmax.f32 %v4612_v20, 0.0  ;;  %v4685_v35 = vadd.f32 %v4684_v26, %v1883_v62  ;;  %16746 = vmatpush1.bf16.msk.msra.mxu1 %vm18389_vm2, %v16744_v2  ;;  %16748 = vmatprep.subr.bf16.mxu0 %v16747_v3  ;;  %v1055_v62 = vld [vmem:[%s18393_s4 + $0xc98] sm:$0xff]  ;;  %v16779_v50 = vpack.c.bf16 %v1057_v0, %v786_v63  ;;  %v789_v11 = vld [vmem:[%s18393_s4 + $0x448] sm:$0xff]  ;;  %v1602_v63 = vld [vmem:[%s18393_s4 + $0x1db0] sm:$0x1] }
 0x1cd   : > { %v13650_v36 = vmax.f32 %v4683_v24, 0.0  ;;  %v13649_v37 = vmax.f32 %v4614_v25, 0.0  ;;  %16758 = vmatprep.subr.bf16.mxu1 %v16757_v18  ;;  %v1327_v3 = vld [vmem:[%s18393_s4 + $0x1518] sm:$0xff]  ;;  %v1329_v18 = vld [vmem:[%s18393_s4 + $0x1528] sm:$0xff]  ;;  %v16769_v21 = vpack.c.bf16 %v1055_v62, %v784_v56 }
 0x1ce   : > { %15400 = vst [vmem:[%s19355_s26 + $0x18] sm:$0xff] %v14241_v29  ;;  %v13651_v43 = vmax.f32 %v4685_v35, 0.0  ;;  %15859 = vmatmul.mubr.msk.f32.vlgmr.msra.gmra.mrb[62].mxu0 %vm3159_vm3, %v19361_v4  ;;  %v16771_v26 = vpack.c.bf16 %v1598_v5, %v1327_v3  ;;  %v1328_v29 = vld [vmem:[%s18393_s4 + $0x1520] sm:$0xff]  ;;  %v1061_v56 = vld [vmem:[%s18393_s4 + $0xcc8] sm:$0xff]  ;;  %v1331_v62 = vld [vmem:[%s18393_s4 + $0x1538] sm:$0xff] }
 0x1cf   : > { %v14242_v53 = vcombine.low %v13648_v30, %v13649_v37  ;;  %15862 = vmatmul.mubr.msk.f32.vlgmr.msra.gmra.mrb[62].mxu1 %vm3159_vm3, %v19361_v4  ;;  %16750 = vmatpush1.bf16.msra.mxu0 %v16749_v27  ;;  %v1326_v27 = vld [vmem:[%s18393_s4 + $0x1510] sm:$0xff]  ;;  %v1903_v37 = vrot.slane %v19522_v22, %v19230_v7  ;;  %v16784_v51 = vpack.c.bf16 %v1599_v32, %v1328_v29  ;;  %v1333_v3 = vld [vmem:[%s18393_s4 + $0x1548] sm:$0xff]  ;;  %v1604_v5 = vld [vmem:[%s18393_s4 + $0x1dc0] sm:$0x1] }
 0x1d0   : > { %v14243_v57 = vcombine.low %v13650_v36, %v13651_v43  ;;  %16760 = vmatpush1.bf16.msra.mxu1 %v16759_v28  ;;  %16753 = vmatprep.subr.msk.bf16.mxu0 %vm18389_vm2, %v16751_v31  ;;  %v1597_v28 = vld [vmem:[%s18393_s4 + $0x1d88] sm:$0x1]  ;;  %v16781_v31 = vpack.c.bf16 %v1600_v19, %v1329_v18  ;;  %v1064_v29 = vld [vmem:[%s18393_s4 + $0xce0] sm:$0xff]  ;;  %v1923_v32 = vrot.slane %v19522_v22, %v19289_v52 }
 0x1d1   : > { %v14250_v1 = vrot.slane %v14242_v53, %v19304_v6  ;;  %v4753_v2 = vpop.f32.mrb[10].mxu0  ;;  %16763 = vmatprep.subr.msk.bf16.mxu1 %vm18389_vm2, %v16761_v38  ;;  %8585 = vmatprep.mubr.f32.mxu0 %v17840_v16  ;;  %v1911_v38 = vrot.slane %v19522_v22, %v19240_v12  ;;  %v16787_v53 = vpack.c.bf16 %v1060_v34, %v789_v11  ;;  %v795_v11 = vld [vmem:[%s18393_s4 + $0x478] sm:$0xff]  ;;  %v1066_v34 = vld [vmem:[%s18393_s4 + $0xcf0] sm:$0xff] }
 0x1d2   : > { %v14257_v8 = vrot.slane %v14243_v57, %v19304_v6  ;;  %v4754_v9 = vadd.f32 %v4753_v2, %v1887_v45  ;;  %v4824_v10 = vpop.f32.mrb[10].mxu1  ;;  %v4755_v14 = vpop.f32.mrb[11].mxu0  ;;  %8656 = vmatprep.mubr.f32.mxu1 %v17840_v16  ;;  %v1915_v45 = vrot.slane %v19522_v22, %v19248_v15 }
 0x1d3   : > { %v4825_v44 = vadd.f32 %v4824_v10, %v1895_v47  ;;  %v4756_v60 = vadd.f32 %v4755_v14, %v1891_v48  ;;  %v4826_v20 = vpop.f32.mrb[11].mxu1  ;;  %16756 = vmatpush1.bf16.msk.msra.mxu0 %vm18389_vm2, %v16754_v55  ;;  %v16774_v47 = vpack.c.bf16 %v1597_v28, %v1326_v27  ;;  %v788_v48 = vld [vmem:[%s18393_s4 + $0x440] sm:$0xff]  ;;  %v790_v55 = vld [vmem:[%s18393_s4 + $0x450] sm:$0xff]  ;;  %v1603_v27 = vld [vmem:[%s18393_s4 + $0x1db8] sm:$0x1] }
 0x1d4   : > { %v14258_v23 = vcombine.low %v14250_v1, %v14257_v8  ;;  %v13652_v24 = vmax.f32 %v4754_v9, 0.0  ;;  %v4827_v25 = vadd.f32 %v4826_v20, %v1899_v54  ;;  %16766 = vmatpush1.bf16.msk.msra.mxu1 %vm18389_vm2, %v16764_v58  ;;  %16768 = vmatprep.subr.bf16.mxu0 %v16767_v61  ;;  %v1059_v54 = vld [vmem:[%s18393_s4 + $0xcb8] sm:$0xff]  ;;  %v16797_v61 = vpack.c.bf16 %v1062_v42, %v791_v41  ;;  %v793_v28 = vld [vmem:[%s18393_s4 + $0x468] sm:$0xff] }
 0x1d5   : > { %v13654_v30 = vmax.f32 %v4825_v44, 0.0  ;;  %v13653_v35 = vmax.f32 %v4756_v60, 0.0  ;;  %16778 = vmatprep.subr.bf16.mxu1 %v16777_v33  ;;  %v16789_v14 = vpack.c.bf16 %v1059_v54, %v788_v48  ;;  %v16799_v18 = vpack.c.bf16 %v1061_v56, %v790_v55  ;;  %v1065_v48 = vld [vmem:[%s18393_s4 + $0xce8] sm:$0xff]  ;;  %v1606_v54 = vld [vmem:[%s18393_s4 + $0x1dd0] sm:$0x1] }
 0x1d6   : > { %15401 = vst [vmem:[%s19355_s26 + $0x20] sm:$0xff] %v14258_v23  ;;  %v13655_v36 = vmax.f32 %v4827_v25, 0.0  ;;  %15865 = vmatmul.mubr.msk.f32.vlgmr.msra.gmra.mrb[64].mxu0 %vm3159_vm3, %v19361_v4  ;;  %v16791_v20 = vpack.c.bf16 %v1602_v63, %v1331_v62  ;;  %v1332_v23 = vld [vmem:[%s18393_s4 + $0x1540] sm:$0xff] }
 0x1d7   : > { %v14259_v43 = vcombine.low %v13652_v24, %v13653_v35  ;;  %15868 = vmatmul.mubr.msk.f32.vlgmr.msra.gmra.mrb[64].mxu1 %vm3159_vm3, %v19361_v4  ;;  %16770 = vmatpush1.bf16.msra.mxu0 %v16769_v21  ;;  %v1330_v21 = vld [vmem:[%s18393_s4 + $0x1530] sm:$0xff]  ;;  %v1919_v35 = vrot.slane %v19522_v22, %v19276_v40  ;;  %v16804_v42 = vpack.c.bf16 %v1603_v27, %v1332_v23  ;;  %v1608_v62 = vld [vmem:[%s18393_s4 + $0x1de0] sm:$0x1] }
 0x1d8   : > { %v14260_v49 = vcombine.low %v13654_v30, %v13655_v36  ;;  %16780 = vmatpush1.bf16.msra.mxu1 %v16779_v50  ;;  %16773 = vmatprep.subr.msk.bf16.mxu0 %vm18389_vm2, %v16771_v26  ;;  %v1601_v50 = vld [vmem:[%s18393_s4 + $0x1da8] sm:$0x1]  ;;  %v16801_v26 = vpack.c.bf16 %v1604_v5, %v1333_v3  ;;  %v19607_v3 = vld [vmem:[%s19220_s25 + $0x20] sm:$0xff] }
 0x1d9   : > { %v14267_v57 = vrot.slane %v14259_v43, %v19304_v6  ;;  %v4895_v58 = vpop.f32.mrb[12].mxu0  ;;  %16783 = vmatprep.subr.msk.bf16.mxu1 %vm18389_vm2, %v16781_v31  ;;  %8727 = vmatprep.mubr.f32.mxu0 %v17840_v16  ;;  %v1927_v31 = vrot.slane %v19522_v22, %v19283_v46  ;;  %v16807_v43 = vpack.c.bf16 %v1064_v29, %v793_v28  ;;  %v1068_v23 = vld [vmem:[%s18393_s4 + $0xd00] sm:$0xff]  ;;  %v799_v28 = vld [vmem:[%s18393_s4 + $0x498] sm:$0xff]  ;;  %v1070_v29 = vld [vmem:[%s18393_s4 + $0xd10] sm:$0xff] }
 0x1da   : > { %v14274_v0 = vrot.slane %v14260_v49, %v19304_v6  ;;  %v4896_v1 = vadd.f32 %v4895_v58, %v1903_v37  ;;  %v4966_v2 = vpop.f32.mrb[12].mxu1  ;;  %v4897_v33 = vpop.f32.mrb[13].mxu0  ;;  %8798 = vmatprep.mubr.f32.mxu1 %v17840_v16  ;;  %v1931_v37 = vrot.slane %v19522_v22, %v19296_v59  ;;  %v16817_v22 = vpack.c.bf16 %v1066_v34, %v795_v11 }
 0x1db   : > { %v4967_v8 = vadd.f32 %v4966_v2, %v1911_v38  ;;  %v4898_v9 = vadd.f32 %v4897_v33, %v1907_v39  ;;  %v4968_v10 = vpop.f32.mrb[13].mxu1  ;;  %16776 = vmatpush1.bf16.msk.msra.mxu0 %vm18389_vm2, %v16774_v47  ;;  %v16794_v38 = vpack.c.bf16 %v1601_v50, %v1330_v21  ;;  %v792_v39 = vld [vmem:[%s18393_s4 + $0x460] sm:$0xff]  ;;  %v794_v47 = vld [vmem:[%s18393_s4 + $0x470] sm:$0xff]  ;;  %v1607_v21 = vld [vmem:[%s18393_s4 + $0x1dd8] sm:$0x1]  ;;  %v1939_v27 = vrot.slane %v19607_v3, %v19243_v13 }
 0x1dc   : > { %v14275_v19 = vcombine.low %v14267_v57, %v14274_v0  ;;  %v13656_v44 = vmax.f32 %v4896_v1, 0.0  ;;  %v4969_v60 = vadd.f32 %v4968_v10, %v1915_v45  ;;  %16786 = vmatpush1.bf16.msk.msra.mxu1 %vm18389_vm2, %v16784_v51  ;;  %16788 = vmatprep.subr.bf16.mxu0 %v16787_v53  ;;  %v1063_v45 = vld [vmem:[%s18393_s4 + $0xcd8] sm:$0xff]  ;;  %v16819_v33 = vpack.c.bf16 %v1065_v48, %v794_v47  ;;  %v797_v50 = vld [vmem:[%s18393_s4 + $0x488] sm:$0xff]  ;;  %v1610_v47 = vld [vmem:[%s18393_s4 + $0x1df0] sm:$0x1] }
 0x1dd   : > { %v13658_v24 = vmax.f32 %v4967_v8, 0.0  ;;  %v13657_v25 = vmax.f32 %v4898_v9, 0.0  ;;  %16798 = vmatprep.subr.bf16.mxu1 %v16797_v61  ;;  %v1335_v53 = vld [vmem:[%s18393_s4 + $0x1558] sm:$0xff]  ;;  %v1337_v61 = vld [vmem:[%s18393_s4 + $0x1568] sm:$0xff]  ;;  %v16809_v2 = vpack.c.bf16 %v1063_v45, %v792_v39 }
 0x1de   : > { %15402 = vst [vmem:[%s19355_s26 + $0x28] sm:$0xff] %v14275_v19  ;;  %v13659_v30 = vmax.f32 %v4969_v60, 0.0  ;;  %15871 = vmatmul.mubr.msk.f32.vlgmr.msra.gmra.mrb[66].mxu0 %vm3159_vm3, %v19361_v4  ;;  %v16811_v10 = vpack.c.bf16 %v1606_v54, %v1335_v53  ;;  %v1336_v19 = vld [vmem:[%s18393_s4 + $0x1560] sm:$0xff]  ;;  %v1069_v39 = vld [vmem:[%s18393_s4 + $0xd08] sm:$0xff]  ;;  %v1339_v45 = vld [vmem:[%s18393_s4 + $0x1578] sm:$0xff] }
 0x1df   : > { %v14276_v36 = vcombine.low %v13656_v44, %v13657_v25  ;;  %15874 = vmatmul.mubr.msk.f32.vlgmr.msra.gmra.mrb[66].mxu1 %vm3159_vm3, %v19361_v4  ;;  %16790 = vmatpush1.bf16.msra.mxu0 %v16789_v14  ;;  %v1334_v14 = vld [vmem:[%s18393_s4 + $0x1550] sm:$0xff]  ;;  %v1935_v25 = vrot.slane %v19607_v3, %v19230_v7  ;;  %v16824_v34 = vpack.c.bf16 %v1607_v21, %v1336_v19  ;;  %v1341_v53 = vld [vmem:[%s18393_s4 + $0x1588] sm:$0xff]  ;;  %v1612_v54 = vld [vmem:[%s18393_s4 + $0x1e00] sm:$0x1] }
 0x1e0   : > { %v14277_v41 = vcombine.low %v13658_v24, %v13659_v30  ;;  %16800 = vmatpush1.bf16.msra.mxu1 %v16799_v18  ;;  %16793 = vmatprep.subr.msk.bf16.mxu0 %vm18389_vm2, %v16791_v20  ;;  %v1605_v18 = vld [vmem:[%s18393_s4 + $0x1dc8] sm:$0x1]  ;;  %v16821_v20 = vpack.c.bf16 %v1608_v62, %v1337_v61  ;;  %v1072_v19 = vld [vmem:[%s18393_s4 + $0xd20] sm:$0xff]  ;;  %v1955_v21 = vrot.slane %v19607_v3, %v19289_v52 }
 0x1e1   : > { %v14284_v49 = vrot.slane %v14276_v36, %v19304_v6  ;;  %v5037_v51 = vpop.f32.mrb[14].mxu0  ;;  %16803 = vmatprep.subr.msk.bf16.mxu1 %vm18389_vm2, %v16801_v26  ;;  %8869 = vmatprep.mubr.f32.mxu0 %v17840_v16  ;;  %v1943_v26 = vrot.slane %v19607_v3, %v19240_v12  ;;  %v16827_v36 = vpack.c.bf16 %v1068_v23, %v797_v50  ;;  %v803_v50 = vld [vmem:[%s18393_s4 + $0x4b8] sm:$0xff]  ;;  %v1074_v23 = vld [vmem:[%s18393_s4 + $0xd30] sm:$0xff] }
 0x1e2   : > { %v14291_v55 = vrot.slane %v14277_v41, %v19304_v6  ;;  %v5038_v56 = vadd.f32 %v5037_v51, %v1919_v35  ;;  %v5108_v57 = vpop.f32.mrb[14].mxu1  ;;  %v5039_v58 = vpop.f32.mrb[15].mxu0  ;;  %8940 = vmatprep.mubr.f32.mxu1 %v17840_v16  ;;  %v1947_v35 = vrot.slane %v19607_v3, %v19248_v15 }
 0x1e3   : > { %v5109_v63 = vadd.f32 %v5108_v57, %v1927_v31  ;;  %v5040_v0 = vadd.f32 %v5039_v58, %v1923_v32  ;;  %v5110_v1 = vpop.f32.mrb[15].mxu1  ;;  %16796 = vmatpush1.bf16.msk.msra.mxu0 %vm18389_vm2, %v16794_v38  ;;  %v16814_v31 = vpack.c.bf16 %v1605_v18, %v1334_v14  ;;  %v796_v32 = vld [vmem:[%s18393_s4 + $0x480] sm:$0xff]  ;;  %v798_v38 = vld [vmem:[%s18393_s4 + $0x490] sm:$0xff]  ;;  %v1611_v14 = vld [vmem:[%s18393_s4 + $0x1df8] sm:$0x1] }
 0x1e4   : > { %v14292_v5 = vcombine.low %v14284_v49, %v14291_v55  ;;  %v13660_v8 = vmax.f32 %v5038_v56, 0.0  ;;  %v5111_v9 = vadd.f32 %v5110_v1, %v1931_v37  ;;  %16806 = vmatpush1.bf16.msk.msra.mxu1 %vm18389_vm2, %v16804_v42  ;;  %16808 = vmatprep.subr.bf16.mxu0 %v16807_v43  ;;  %v1067_v37 = vld [vmem:[%s18393_s4 + $0xcf8] sm:$0xff]  ;;  %v16837_v43 = vpack.c.bf16 %v1070_v29, %v799_v28  ;;  %v801_v18 = vld [vmem:[%s18393_s4 + $0x4a8] sm:$0xff] }
 0x1e5   : > { %v13662_v44 = vmax.f32 %v5109_v63, 0.0  ;;  %v13661_v60 = vmax.f32 %v5040_v0, 0.0  ;;  %16818 = vmatprep.subr.bf16.mxu1 %v16817_v22  ;;  %v16829_v58 = vpack.c.bf16 %v1067_v37, %v796_v32  ;;  %v16839_v61 = vpack.c.bf16 %v1069_v39, %v798_v38  ;;  %v1073_v32 = vld [vmem:[%s18393_s4 + $0xd28] sm:$0xff]  ;;  %v1614_v37 = vld [vmem:[%s18393_s4 + $0x1e10] sm:$0x1] }
 0x1e6   : > { %15403 = vst [vmem:[%s19355_s26 + $0x30] sm:$0xff] %v14292_v5  ;;  %v13663_v24 = vmax.f32 %v5111_v9, 0.0  ;;  %15877 = vmatmul.mubr.msk.f32.vlgmr.msra.gmra.mrb[68].mxu0 %vm3159_vm3, %v19361_v4  ;;  %v16831_v1 = vpack.c.bf16 %v1610_v47, %v1339_v45  ;;  %v1340_v5 = vld [vmem:[%s18393_s4 + $0x1580] sm:$0xff] }
 0x1e7   : > { %v14293_v30 = vcombine.low %v13660_v8, %v13661_v60  ;;  %15880 = vmatmul.mubr.msk.f32.vlgmr.msra.gmra.mrb[68].mxu1 %vm3159_vm3, %v19361_v4  ;;  %16810 = vmatpush1.bf16.msra.mxu0 %v16809_v2  ;;  %v1338_v2 = vld [vmem:[%s18393_s4 + $0x1570] sm:$0xff]  ;;  %v1951_v60 = vrot.slane %v19607_v3, %v19276_v40  ;;  %v16844_v29 = vpack.c.bf16 %v1611_v14, %v1340_v5  ;;  %v1616_v45 = vld [vmem:[%s18393_s4 + $0x1e20] sm:$0x1] }
 0x1e8   : > { %v14294_v11 = vcombine.low %v13662_v44, %v13663_v24  ;;  %16820 = vmatpush1.bf16.msra.mxu1 %v16819_v33  ;;  %16813 = vmatprep.subr.msk.bf16.mxu0 %vm18389_vm2, %v16811_v10  ;;  %v1609_v33 = vld [vmem:[%s18393_s4 + $0x1de8] sm:$0x1]  ;;  %v16841_v10 = vpack.c.bf16 %v1612_v54, %v1341_v53  ;;  %v1076_v5 = vld [vmem:[%s18393_s4 + $0xd40] sm:$0xff] }
 0x1e9   : > { %v14301_v41 = vrot.slane %v14293_v30, %v19304_v6  ;;  %v5179_v42 = vpop.f32.mrb[16].mxu0  ;;  %16823 = vmatprep.subr.msk.bf16.mxu1 %vm18389_vm2, %v16821_v20  ;;  %9011 = vmatprep.mubr.f32.mxu0 %v17840_v16  ;;  %v1959_v20 = vrot.slane %v19607_v3, %v19283_v46  ;;  %v16847_v30 = vpack.c.bf16 %v1072_v19, %v801_v18  ;;  %v19692_v53 = vld [vmem:[%s19220_s25 + $0x28] sm:$0xff]  ;;  %v807_v18 = vld [vmem:[%s18393_s4 + $0x4d8] sm:$0xff]  ;;  %v1078_v19 = vld [vmem:[%s18393_s4 + $0xd50] sm:$0xff] }
 0x1ea   : > { %v14308_v48 = vrot.slane %v14294_v11, %v19304_v6  ;;  %v5180_v49 = vadd.f32 %v5179_v42, %v1935_v25  ;;  %v5250_v51 = vpop.f32.mrb[16].mxu1  ;;  %v5181_v22 = vpop.f32.mrb[17].mxu0  ;;  %9082 = vmatprep.mubr.f32.mxu1 %v17840_v16  ;;  %v1963_v25 = vrot.slane %v19607_v3, %v19296_v59  ;;  %v16857_v3 = vpack.c.bf16 %v1074_v23, %v803_v50 }
 0x1eb   : > { %v5251_v55 = vadd.f32 %v5250_v51, %v1943_v26  ;;  %v5182_v56 = vadd.f32 %v5181_v22, %v1939_v27  ;;  %v5252_v57 = vpop.f32.mrb[17].mxu1  ;;  %16816 = vmatpush1.bf16.msk.msra.mxu0 %vm18389_vm2, %v16814_v31  ;;  %v16834_v26 = vpack.c.bf16 %v1609_v33, %v1338_v2  ;;  %v800_v27 = vld [vmem:[%s18393_s4 + $0x4a0] sm:$0xff]  ;;  %v802_v31 = vld [vmem:[%s18393_s4 + $0x4b0] sm:$0xff]  ;;  %v1615_v2 = vld [vmem:[%s18393_s4 + $0x1e18] sm:$0x1]  ;;  %v1971_v14 = vrot.slane %v19692_v53, %v19243_v13 }
 0x1ec   : > { %v14309_v62 = vcombine.low %v14301_v41, %v14308_v48  ;;  %v13664_v63 = vmax.f32 %v5180_v49, 0.0  ;;  %v5253_v0 = vadd.f32 %v5252_v57, %v1947_v35  ;;  %16826 = vmatpush1.bf16.msk.msra.mxu1 %vm18389_vm2, %v16824_v34  ;;  %16828 = vmatprep.subr.bf16.mxu0 %v16827_v36  ;;  %v1071_v35 = vld [vmem:[%s18393_s4 + $0xd18] sm:$0xff]  ;;  %v16859_v22 = vpack.c.bf16 %v1073_v32, %v802_v31  ;;  %v805_v33 = vld [vmem:[%s18393_s4 + $0x4c8] sm:$0xff] }
 0x1ed   : > { %v13666_v8 = vmax.f32 %v5251_v55, 0.0  ;;  %v13665_v9 = vmax.f32 %v5182_v56, 0.0  ;;  %16838 = vmatprep.subr.bf16.mxu1 %v16837_v43  ;;  %v1343_v36 = vld [vmem:[%s18393_s4 + $0x1598] sm:$0xff]  ;;  %v1345_v43 = vld [vmem:[%s18393_s4 + $0x15a8] sm:$0xff]  ;;  %v16849_v51 = vpack.c.bf16 %v1071_v35, %v800_v27  ;;  %v1618_v35 = vld [vmem:[%s18393_s4 + $0x1e30] sm:$0x1] }
 0x1ee   : > { %15404 = vst [vmem:[%s19355_s26 + $0x38] sm:$0xff] %v14309_v62  ;;  %v13667_v44 = vmax.f32 %v5253_v0, 0.0  ;;  %15883 = vmatmul.mubr.msk.f32.vlgmr.msra.gmra.mrb[70].mxu0 %vm3159_vm3, %v19361_v4  ;;  %v16851_v57 = vpack.c.bf16 %v1614_v37, %v1343_v36  ;;  %v1344_v62 = vld [vmem:[%s18393_s4 + $0x15a0] sm:$0xff] }
 0x1ef   : > { %v14310_v24 = vcombine.low %v13664_v63, %v13665_v9  ;;  %15886 = vmatmul.mubr.msk.f32.vlgmr.msra.gmra.mrb[70].mxu1 %vm3159_vm3, %v19361_v4  ;;  %16830 = vmatpush1.bf16.msra.mxu0 %v16829_v58  ;;  %v1342_v58 = vld [vmem:[%s18393_s4 + $0x1590] sm:$0xff]  ;;  %v1967_v9 = vrot.slane %v19692_v53, %v19230_v7  ;;  %v16864_v23 = vpack.c.bf16 %v1615_v2, %v1344_v62  ;;  %v1620_v36 = vld [vmem:[%s18393_s4 + $0x1e40] sm:$0x1] }
 0x1f0   : > { %v14311_v28 = vcombine.low %v13666_v8, %v13667_v44  ;;  %16840 = vmatpush1.bf16.msra.mxu1 %v16839_v61  ;;  %16833 = vmatprep.subr.msk.bf16.mxu0 %vm18389_vm2, %v16831_v1  ;;  %v1613_v61 = vld [vmem:[%s18393_s4 + $0x1e08] sm:$0x1]  ;;  %v16861_v1 = vpack.c.bf16 %v1616_v45, %v1345_v43  ;;  %v1987_v2 = vrot.slane %v19692_v53, %v19289_v52 }
 0x1f1   : > { %v14318_v11 = vrot.slane %v14310_v24, %v19304_v6  ;;  %v5321_v34 = vpop.f32.mrb[18].mxu0  ;;  %16843 = vmatprep.subr.msk.bf16.mxu1 %vm18389_vm2, %v16841_v10  ;;  %9153 = vmatprep.mubr.f32.mxu0 %v17840_v16  ;;  %v1975_v10 = vrot.slane %v19692_v53, %v19240_v12  ;;  %v16867_v24 = vpack.c.bf16 %v1076_v5, %v805_v33  ;;  %v811_v33 = vld [vmem:[%s18393_s4 + $0x4f8] sm:$0xff]  ;;  %v1082_v5 = vld [vmem:[%s18393_s4 + $0xd70] sm:$0xff] }
 0x1f2   : > { %v14325_v38 = vrot.slane %v14311_v28, %v19304_v6  ;;  %v5322_v39 = vadd.f32 %v5321_v34, %v1951_v60  ;;  %v5392_v41 = vpop.f32.mrb[18].mxu1  ;;  %v5323_v42 = vpop.f32.mrb[19].mxu0  ;;  %9224 = vmatprep.mubr.f32.mxu1 %v17840_v16  ;;  %v1979_v60 = vrot.slane %v19692_v53, %v19248_v15 }
 0x1f3   : > { %v5393_v47 = vadd.f32 %v5392_v41, %v1959_v20  ;;  %v5324_v48 = vadd.f32 %v5323_v42, %v1955_v21  ;;  %v5394_v49 = vpop.f32.mrb[19].mxu1  ;;  %16836 = vmatpush1.bf16.msk.msra.mxu0 %vm18389_vm2, %v16834_v26  ;;  %v16854_v20 = vpack.c.bf16 %v1613_v61, %v1342_v58  ;;  %v804_v21 = vld [vmem:[%s18393_s4 + $0x4c0] sm:$0xff]  ;;  %v806_v26 = vld [vmem:[%s18393_s4 + $0x4d0] sm:$0xff]  ;;  %v809_v58 = vld [vmem:[%s18393_s4 + $0x4e8] sm:$0xff] }
 0x1f4   : > { %v14326_v54 = vcombine.low %v14318_v11, %v14325_v38  ;;  %v13668_v55 = vmax.f32 %v5322_v39, 0.0  ;;  %v5395_v56 = vadd.f32 %v5394_v49, %v1963_v25  ;;  %16846 = vmatpush1.bf16.msk.msra.mxu1 %vm18389_vm2, %v16844_v29  ;;  %16848 = vmatprep.subr.bf16.mxu0 %v16847_v30  ;;  %v1075_v25 = vld [vmem:[%s18393_s4 + $0xd38] sm:$0xff]  ;;  %v16877_v29 = vpack.c.bf16 %v1078_v19, %v807_v18  ;;  %v1346_v49 = vld [vmem:[%s18393_s4 + $0x15b0] sm:$0xff]  ;;  %v1080_v61 = vld [vmem:[%s18393_s4 + $0xd60] sm:$0xff] }
 0x1f5   : > { %v13670_v63 = vmax.f32 %v5393_v47, 0.0  ;;  %v13669_v0 = vmax.f32 %v5324_v48, 0.0  ;;  %16858 = vmatprep.subr.bf16.mxu1 %v16857_v3  ;;  %v1347_v30 = vld [vmem:[%s18393_s4 + $0x15b8] sm:$0xff]  ;;  %v1349_v3 = vld [vmem:[%s18393_s4 + $0x15c8] sm:$0xff]  ;;  %v16869_v41 = vpack.c.bf16 %v1075_v25, %v804_v21  ;;  %v1622_v25 = vld [vmem:[%s18393_s4 + $0x1e50] sm:$0x1] }
 0x1f6   : > { %15405 = vst [vmem:[%s19355_s26 + $0x40] sm:$0xff] %v14326_v54  ;;  %v13671_v8 = vmax.f32 %v5395_v56, 0.0  ;;  %15889 = vmatmul.mubr.msk.f32.vlgmr.msra.gmra.mrb[72].mxu0 %vm3159_vm3, %v19361_v4  ;;  %v16871_v48 = vpack.c.bf16 %v1618_v35, %v1347_v30  ;;  %v16881_v56 = vpack.c.bf16 %v1620_v36, %v1349_v3  ;;  %v1081_v21 = vld [vmem:[%s18393_s4 + $0xd68] sm:$0xff]  ;;  %v1624_v30 = vld [vmem:[%s18393_s4 + $0x1e60] sm:$0x1]  ;;  %v19782_v3 = vld [vmem:[%s19220_s25 + $0x30] sm:$0xff] }
 0x1f7   : > { %v14327_v44 = vcombine.low %v13668_v55, %v13669_v0  ;;  %15892 = vmatmul.mubr.msk.f32.vlgmr.msra.gmra.mrb[72].mxu1 %vm3159_vm3, %v19361_v4  ;;  %16850 = vmatpush1.bf16.msra.mxu0 %v16849_v51  ;;  %v1077_v4 = vld [vmem:[%s18393_s4 + $0xd48] sm:$0xff]  ;;  %v1983_v0 = vrot.slane %v19692_v53, %v19276_v40 }
 0x1f8   : > { %v14328_v50 = vcombine.low %v13670_v63, %v13671_v8  ;;  %16860 = vmatpush1.bf16.msra.mxu1 %v16859_v22  ;;  %16853 = vmatprep.subr.msk.bf16.mxu0 %vm18389_vm2, %v16851_v57  ;;  %v16879_v42 = vpack.c.bf16 %v1077_v4, %v806_v26  ;;  %v1617_v51 = vld [vmem:[%s18393_s4 + $0x1e28] sm:$0x1]  ;;  %v1348_v22 = vld [vmem:[%s18393_s4 + $0x15c0] sm:$0xff]  ;;  %v1619_v57 = vld [vmem:[%s18393_s4 + $0x1e38] sm:$0x1] }
 0x1f9   : > { %v14335_v27 = vrot.slane %v14327_v44, %v19304_v6  ;;  %v5463_v28 = vpop.f32.mrb[20].mxu0  ;;  %16863 = vmatprep.subr.msk.bf16.mxu1 %vm18389_vm2, %v16861_v1  ;;  %9295 = vmatprep.mubr.f32.mxu0 %v17840_v16  ;;  %v19747_v63 = vld [vmem:[%s21283_s0] sm:$0x3]  ;;  %v1991_v1 = vrot.slane %v19692_v53, %v19283_v46  ;;  %v16884_v19 = vpack.c.bf16 %v1619_v57, %v1348_v22 }
 0x1fa   : > { %v14342_v31 = vrot.slane %v14328_v50, %v19304_v6  ;;  %v5464_v32 = vadd.f32 %v5463_v28, %v1967_v9  ;;  %v5534_v11 = vpop.f32.mrb[20].mxu1  ;;  %v5465_v34 = vpop.f32.mrb[21].mxu0  ;;  %9366 = vmatprep.mubr.f32.mxu1 %v17840_v16  ;;  %v1995_v9 = vrot.slane %v19692_v53, %v19296_v59  ;;  %v16887_v44 = vpack.c.bf16 %v1080_v61, %v809_v58  ;;  %v1084_v22 = vld [vmem:[%s18393_s4 + $0xd80] sm:$0xff]  ;;  %v815_v58 = vld [vmem:[%s18393_s4 + $0x518] sm:$0xff]  ;;  %v1086_v61 = vld [vmem:[%s18393_s4 + $0xd90] sm:$0xff] }
 0x1fb   : > { %v5535_v37 = vadd.f32 %v5534_v11, %v1975_v10  ;;  %v5466_v38 = vadd.f32 %v5465_v34, %v1971_v14  ;;  %v5536_v39 = vpop.f32.mrb[21].mxu1  ;;  %16856 = vmatpush1.bf16.msk.msra.mxu0 %vm18389_vm2, %v16854_v20  ;;  %v16874_v10 = vpack.c.bf16 %v1617_v51, %v1346_v49  ;;  %v808_v14 = vld [vmem:[%s18393_s4 + $0x4e0] sm:$0xff]  ;;  %v810_v20 = vld [vmem:[%s18393_s4 + $0x4f0] sm:$0xff]  ;;  %v16897_v53 = vpack.c.bf16 %v1082_v5, %v811_v33  ;;  %v1623_v49 = vld [vmem:[%s18393_s4 + $0x1e58] sm:$0x1] }
 0x1fc   : > { %v14343_v43 = vcombine.low %v14335_v27, %v14342_v31  ;;  %v13672_v45 = vmax.f32 %v5464_v32, 0.0  ;;  %v5537_v47 = vadd.f32 %v5536_v39, %v1979_v60  ;;  %16866 = vmatpush1.bf16.msk.msra.mxu1 %vm18389_vm2, %v16864_v23  ;;  %16868 = vmatprep.subr.bf16.mxu0 %v16867_v24  ;;  %v1079_v60 = vld [vmem:[%s18393_s4 + $0xd58] sm:$0xff]  ;;  %v16899_v34 = vpack.c.bf16 %v1081_v21, %v810_v20  ;;  %v813_v51 = vld [vmem:[%s18393_s4 + $0x508] sm:$0xff]  ;;  %v1626_v20 = vld [vmem:[%s18393_s4 + $0x1e70] sm:$0x1] }
 0x1fd   : > { %v13674_v54 = vmax.f32 %v5535_v37, 0.0  ;;  %v13673_v55 = vmax.f32 %v5466_v38, 0.0  ;;  %16878 = vmatprep.subr.bf16.mxu1 %v16877_v29  ;;  %v1351_v24 = vld [vmem:[%s18393_s4 + $0x15d8] sm:$0xff]  ;;  %v1353_v29 = vld [vmem:[%s18393_s4 + $0x15e8] sm:$0xff]  ;;  %v16889_v11 = vpack.c.bf16 %v1079_v60, %v808_v14  ;;  %v2003_v57 = vrot.slane %v19782_v3, %v19243_v13 }
 0x1fe   : > { %15406 = vst [vmem:[%s19355_s26 + $0x48] sm:$0xff] %v14343_v43  ;;  %v13675_v62 = vmax.f32 %v5537_v47, 0.0  ;;  %15895 = vmatmul.mubr.msk.f32.vlgmr.msra.gmra.mrb[74].mxu0 %vm3159_vm3, %v19747_v63  ;;  %v16891_v39 = vpack.c.bf16 %v1622_v25, %v1351_v24  ;;  %v1352_v43 = vld [vmem:[%s18393_s4 + $0x15e0] sm:$0xff]  ;;  %v1085_v14 = vld [vmem:[%s18393_s4 + $0xd88] sm:$0xff]  ;;  %v1355_v60 = vld [vmem:[%s18393_s4 + $0x15f8] sm:$0xff] }
 0x1ff   : > { %v14344_v8 = vcombine.low %v13672_v45, %v13673_v55  ;;  %15898 = vmatmul.mubr.msk.f32.vlgmr.msra.gmra.mrb[74].mxu1 %vm3159_vm3, %v19747_v63  ;;  %16870 = vmatpush1.bf16.msra.mxu0 %v16869_v41  ;;  %v1350_v41 = vld [vmem:[%s18393_s4 + $0x15d0] sm:$0xff]  ;;  %v1999_v55 = vrot.slane %v19782_v3, %v19230_v7  ;;  %v16904_v5 = vpack.c.bf16 %v1623_v49, %v1352_v43  ;;  %v1357_v24 = vld [vmem:[%s18393_s4 + $0x1608] sm:$0xff]  ;;  %v1628_v25 = vld [vmem:[%s18393_s4 + $0x1e80] sm:$0x1] }
 0x200   : > { %v14345_v18 = vcombine.low %v13674_v54, %v13675_v62  ;;  %16880 = vmatpush1.bf16.msra.mxu1 %v16879_v42  ;;  %16873 = vmatprep.subr.msk.bf16.mxu0 %vm18389_vm2, %v16871_v48  ;;  %v1621_v42 = vld [vmem:[%s18393_s4 + $0x1e48] sm:$0x1]  ;;  %v16901_v48 = vpack.c.bf16 %v1624_v30, %v1353_v29  ;;  %v1088_v43 = vld [vmem:[%s18393_s4 + $0xda0] sm:$0xff]  ;;  %v2019_v49 = vrot.slane %v19782_v3, %v19289_v52 }
 0x201   : > { %v14352_v50 = vrot.slane %v14344_v8, %v19304_v6  ;;  %v5605_v23 = vpop.f32.mrb[22].mxu0  ;;  %16883 = vmatprep.subr.msk.bf16.mxu1 %vm18389_vm2, %v16881_v56  ;;  %9437 = vmatprep.mubr.f32.mxu0 %v17840_v16  ;;  %v2007_v56 = vrot.slane %v19782_v3, %v19240_v12  ;;  %v16907_v8 = vpack.c.bf16 %v1084_v22, %v813_v51  ;;  %v819_v51 = vld [vmem:[%s18393_s4 + $0x538] sm:$0xff]  ;;  %v1090_v22 = vld [vmem:[%s18393_s4 + $0xdb0] sm:$0xff] }
 0x202   : > { %v14359_v26 = vrot.slane %v14345_v18, %v19304_v6  ;;  %v5606_v4 = vadd.f32 %v5605_v23, %v1983_v0  ;;  %v5676_v27 = vpop.f32.mrb[22].mxu1  ;;  %v5607_v28 = vpop.f32.mrb[23].mxu0  ;;  %9508 = vmatprep.mubr.f32.mxu1 %v17840_v16  ;;  %v2011_v0 = vrot.slane %v19782_v3, %v19248_v15 }
 0x203   : > { %v5677_v35 = vadd.f32 %v5676_v27, %v1991_v1  ;;  %v5608_v31 = vadd.f32 %v5607_v28, %v1987_v2  ;;  %v5678_v32 = vpop.f32.mrb[23].mxu1  ;;  %16876 = vmatpush1.bf16.msk.msra.mxu0 %vm18389_vm2, %v16874_v10  ;;  %v16894_v1 = vpack.c.bf16 %v1621_v42, %v1350_v41  ;;  %v812_v2 = vld [vmem:[%s18393_s4 + $0x500] sm:$0xff]  ;;  %v814_v10 = vld [vmem:[%s18393_s4 + $0x510] sm:$0xff]  ;;  %v1627_v41 = vld [vmem:[%s18393_s4 + $0x1e78] sm:$0x1] }
 0x204   : > { %v14360_v36 = vcombine.low %v14352_v50, %v14359_v26  ;;  %v13676_v37 = vmax.f32 %v5606_v4, 0.0  ;;  %v5679_v38 = vadd.f32 %v5678_v32, %v1995_v9  ;;  %16886 = vmatpush1.bf16.msk.msra.mxu1 %vm18389_vm2, %v16884_v19  ;;  %16888 = vmatprep.subr.bf16.mxu0 %v16887_v44  ;;  %v1083_v9 = vld [vmem:[%s18393_s4 + $0xd78] sm:$0xff]  ;;  %v16917_v44 = vpack.c.bf16 %v1086_v61, %v815_v58  ;;  %v817_v42 = vld [vmem:[%s18393_s4 + $0x528] sm:$0xff] }
 0x205   : > { %v13678_v45 = vmax.f32 %v5677_v35, 0.0  ;;  %v13677_v47 = vmax.f32 %v5608_v31, 0.0  ;;  %16898 = vmatprep.subr.bf16.mxu1 %v16897_v53  ;;  %v16909_v28 = vpack.c.bf16 %v1083_v9, %v812_v2  ;;  %v16919_v29 = vpack.c.bf16 %v1085_v14, %v814_v10  ;;  %v1089_v2 = vld [vmem:[%s18393_s4 + $0xda8] sm:$0xff]  ;;  %v1630_v9 = vld [vmem:[%s18393_s4 + $0x1e90] sm:$0x1] }
 0x206   : > { %15407 = vst [vmem:[%s19355_s26 + $0x50] sm:$0xff] %v14360_v36  ;;  %v13679_v54 = vmax.f32 %v5679_v38, 0.0  ;;  %15901 = vmatmul.mubr.msk.f32.vlgmr.msra.gmra.mrb[76].mxu0 %vm3159_vm3, %v19747_v63  ;;  %v16911_v32 = vpack.c.bf16 %v1626_v20, %v1355_v60  ;;  %v1356_v36 = vld [vmem:[%s18393_s4 + $0x1600] sm:$0xff] }
 0x207   : > { %v14361_v62 = vcombine.low %v13676_v37, %v13677_v47  ;;  %15904 = vmatmul.mubr.msk.f32.vlgmr.msra.gmra.mrb[76].mxu1 %vm3159_vm3, %v19747_v63  ;;  %16890 = vmatpush1.bf16.msra.mxu0 %v16889_v11  ;;  %v1354_v11 = vld [vmem:[%s18393_s4 + $0x15f0] sm:$0xff]  ;;  %v2015_v47 = vrot.slane %v19782_v3, %v19276_v40  ;;  %v16924_v61 = vpack.c.bf16 %v1627_v41, %v1356_v36  ;;  %v1632_v60 = vld [vmem:[%s18393_s4 + $0x1ea0] sm:$0x1] }
 0x208   : > { %v14362_v33 = vcombine.low %v13678_v45, %v13679_v54  ;;  %16900 = vmatpush1.bf16.msra.mxu1 %v16899_v34  ;;  %16893 = vmatprep.subr.msk.bf16.mxu0 %vm18389_vm2, %v16891_v39  ;;  %v1625_v34 = vld [vmem:[%s18393_s4 + $0x1e68] sm:$0x1]  ;;  %v16921_v39 = vpack.c.bf16 %v1628_v25, %v1357_v24  ;;  %v19867_v24 = vld [vmem:[%s19220_s25 + $0x38] sm:$0xff]  ;;  %v1092_v36 = vld [vmem:[%s18393_s4 + $0xdc0] sm:$0xff] }
 0x209   : > { %v14369_v18 = vrot.slane %v14361_v62, %v19304_v6  ;;  %v5747_v19 = vpop.f32.mrb[24].mxu0  ;;  %16903 = vmatprep.subr.msk.bf16.mxu1 %vm18389_vm2, %v16901_v48  ;;  %9579 = vmatprep.mubr.f32.mxu0 %v17840_v16  ;;  %v2023_v48 = vrot.slane %v19782_v3, %v19283_v46  ;;  %v16927_v62 = vpack.c.bf16 %v1088_v43, %v817_v42  ;;  %v823_v42 = vld [vmem:[%s18393_s4 + $0x558] sm:$0xff]  ;;  %v1094_v43 = vld [vmem:[%s18393_s4 + $0xdd0] sm:$0xff] }
 0x20a   : > { %v14376_v21 = vrot.slane %v14362_v33, %v19304_v6  ;;  %v5748_v50 = vadd.f32 %v5747_v19, %v1999_v55  ;;  %v5818_v23 = vpop.f32.mrb[24].mxu1  ;;  %v5749_v53 = vpop.f32.mrb[25].mxu0  ;;  %9650 = vmatprep.mubr.f32.mxu1 %v17840_v16  ;;  %v2027_v55 = vrot.slane %v19782_v3, %v19296_v59  ;;  %v16937_v3 = vpack.c.bf16 %v1090_v22, %v819_v51 }
 0x20b   : > { %v5819_v26 = vadd.f32 %v5818_v23, %v2007_v56  ;;  %v5750_v4 = vadd.f32 %v5749_v53, %v2003_v57  ;;  %v5820_v27 = vpop.f32.mrb[25].mxu1  ;;  %16896 = vmatpush1.bf16.msk.msra.mxu0 %vm18389_vm2, %v16894_v1  ;;  %v16914_v56 = vpack.c.bf16 %v1625_v34, %v1354_v11  ;;  %v816_v57 = vld [vmem:[%s18393_s4 + $0x520] sm:$0xff]  ;;  %v818_v1 = vld [vmem:[%s18393_s4 + $0x530] sm:$0xff]  ;;  %v1631_v11 = vld [vmem:[%s18393_s4 + $0x1e98] sm:$0x1]  ;;  %v2035_v41 = vrot.slane %v19867_v24, %v19243_v13 }
 0x20c   : > { %v14377_v30 = vcombine.low %v14369_v18, %v14376_v21  ;;  %v13680_v35 = vmax.f32 %v5748_v50, 0.0  ;;  %v5821_v31 = vadd.f32 %v5820_v27, %v2011_v0  ;;  %16906 = vmatpush1.bf16.msk.msra.mxu1 %vm18389_vm2, %v16904_v5  ;;  %16908 = vmatprep.subr.bf16.mxu0 %v16907_v8  ;;  %v1087_v0 = vld [vmem:[%s18393_s4 + $0xd98] sm:$0xff]  ;;  %v16939_v53 = vpack.c.bf16 %v1089_v2, %v818_v1  ;;  %v821_v34 = vld [vmem:[%s18393_s4 + $0x548] sm:$0xff]  ;;  %v1634_v1 = vld [vmem:[%s18393_s4 + $0x1eb0] sm:$0x1] }
 0x20d   : > { %v13682_v37 = vmax.f32 %v5819_v26, 0.0  ;;  %v13681_v38 = vmax.f32 %v5750_v4, 0.0  ;;  %16918 = vmatprep.subr.bf16.mxu1 %v16917_v44  ;;  %v1359_v8 = vld [vmem:[%s18393_s4 + $0x1618] sm:$0xff]  ;;  %v1361_v44 = vld [vmem:[%s18393_s4 + $0x1628] sm:$0xff]  ;;  %v16929_v23 = vpack.c.bf16 %v1087_v0, %v816_v57 }
 0x20e   : > { %15408 = vst [vmem:[%s19355_s26 + $0x58] sm:$0xff] %v14377_v30  ;;  %v13683_v45 = vmax.f32 %v5821_v31, 0.0  ;;  %15907 = vmatmul.mubr.msk.f32.vlgmr.msra.gmra.mrb[78].mxu0 %vm3159_vm3, %v19747_v63  ;;  %v16931_v27 = vpack.c.bf16 %v1630_v9, %v1359_v8  ;;  %v1360_v30 = vld [vmem:[%s18393_s4 + $0x1620] sm:$0xff]  ;;  %v1093_v57 = vld [vmem:[%s18393_s4 + $0xdc8] sm:$0xff]  ;;  %v1363_v0 = vld [vmem:[%s18393_s4 + $0x1638] sm:$0xff] }
 0x20f   : > { %v14378_v54 = vcombine.low %v13680_v35, %v13681_v38  ;;  %15910 = vmatmul.mubr.msk.f32.vlgmr.msra.gmra.mrb[78].mxu1 %vm3159_vm3, %v19747_v63  ;;  %16910 = vmatpush1.bf16.msra.mxu0 %v16909_v28  ;;  %v1358_v28 = vld [vmem:[%s18393_s4 + $0x1610] sm:$0xff]  ;;  %v2031_v38 = vrot.slane %v19867_v24, %v19230_v7  ;;  %v16944_v22 = vpack.c.bf16 %v1631_v11, %v1360_v30  ;;  %v1365_v8 = vld [vmem:[%s18393_s4 + $0x1648] sm:$0xff]  ;;  %v1636_v9 = vld [vmem:[%s18393_s4 + $0x1ec0] sm:$0x1] }
 0x210   : > { %v14379_v58 = vcombine.low %v13682_v37, %v13683_v45  ;;  %16920 = vmatpush1.bf16.msra.mxu1 %v16919_v29  ;;  %16913 = vmatprep.subr.msk.bf16.mxu0 %vm18389_vm2, %v16911_v32  ;;  %v1629_v29 = vld [vmem:[%s18393_s4 + $0x1e88] sm:$0x1]  ;;  %v16941_v32 = vpack.c.bf16 %v1632_v60, %v1361_v44  ;;  %v1096_v30 = vld [vmem:[%s18393_s4 + $0xde0] sm:$0xff]  ;;  %v2051_v11 = vrot.slane %v19867_v24, %v19289_v52 }
 0x211   : > { %v14386_v33 = vrot.slane %v14378_v54, %v19304_v6  ;;  %v5889_v5 = vpop.f32.mrb[26].mxu0  ;;  %16923 = vmatprep.subr.msk.bf16.mxu1 %vm18389_vm2, %v16921_v39  ;;  %9721 = vmatprep.mubr.f32.mxu0 %v17840_v16  ;;  %v2039_v39 = vrot.slane %v19867_v24, %v19240_v12  ;;  %v16947_v54 = vpack.c.bf16 %v1092_v36, %v821_v34  ;;  %v827_v34 = vld [vmem:[%s18393_s4 + $0x578] sm:$0xff]  ;;  %v1098_v36 = vld [vmem:[%s18393_s4 + $0xdf0] sm:$0xff] }
 0x212   : > { %v14393_v10 = vrot.slane %v14379_v58, %v19304_v6  ;;  %v5890_v14 = vadd.f32 %v5889_v5, %v2015_v47  ;;  %v5960_v18 = vpop.f32.mrb[26].mxu1  ;;  %v5891_v19 = vpop.f32.mrb[27].mxu0  ;;  %9792 = vmatprep.mubr.f32.mxu1 %v17840_v16  ;;  %v2043_v47 = vrot.slane %v19867_v24, %v19248_v15 }
 0x213   : > { %v5961_v20 = vadd.f32 %v5960_v18, %v2023_v48  ;;  %v5892_v21 = vadd.f32 %v5891_v19, %v2019_v49  ;;  %v5962_v50 = vpop.f32.mrb[27].mxu1  ;;  %16916 = vmatpush1.bf16.msk.msra.mxu0 %vm18389_vm2, %v16914_v56  ;;  %v16934_v48 = vpack.c.bf16 %v1629_v29, %v1358_v28  ;;  %v820_v49 = vld [vmem:[%s18393_s4 + $0x540] sm:$0xff]  ;;  %v822_v56 = vld [vmem:[%s18393_s4 + $0x550] sm:$0xff]  ;;  %v1635_v28 = vld [vmem:[%s18393_s4 + $0x1eb8] sm:$0x1] }
 0x214   : > { %v14394_v25 = vcombine.low %v14386_v33, %v14393_v10  ;;  %v13684_v26 = vmax.f32 %v5890_v14, 0.0  ;;  %v5963_v4 = vadd.f32 %v5962_v50, %v2027_v55  ;;  %16926 = vmatpush1.bf16.msk.msra.mxu1 %vm18389_vm2, %v16924_v61  ;;  %16928 = vmatprep.subr.bf16.mxu0 %v16927_v62  ;;  %v1091_v55 = vld [vmem:[%s18393_s4 + $0xdb8] sm:$0xff]  ;;  %v16957_v62 = vpack.c.bf16 %v1094_v43, %v823_v42  ;;  %v825_v29 = vld [vmem:[%s18393_s4 + $0x568] sm:$0xff] }
 0x215   : > { %v13686_v35 = vmax.f32 %v5961_v20, 0.0  ;;  %v13685_v31 = vmax.f32 %v5892_v21, 0.0  ;;  %16938 = vmatprep.subr.bf16.mxu1 %v16937_v3  ;;  %v16949_v19 = vpack.c.bf16 %v1091_v55, %v820_v49  ;;  %v16959_v44 = vpack.c.bf16 %v1093_v57, %v822_v56  ;;  %v1097_v49 = vld [vmem:[%s18393_s4 + $0xde8] sm:$0xff]  ;;  %v1638_v55 = vld [vmem:[%s18393_s4 + $0x1ed0] sm:$0x1] }
 0x216   : > { %15409 = vst [vmem:[%s19355_s26 + $0x60] sm:$0xff] %v14394_v25  ;;  %v13687_v37 = vmax.f32 %v5963_v4, 0.0  ;;  %15913 = vmatmul.mubr.msk.f32.vlgmr.msra.gmra.mrb[80].mxu0 %vm3159_vm3, %v19747_v63  ;;  %v16951_v50 = vpack.c.bf16 %v1634_v1, %v1363_v0  ;;  %v1364_v25 = vld [vmem:[%s18393_s4 + $0x1640] sm:$0xff] }
 0x217   : > { %v14395_v45 = vcombine.low %v13684_v26, %v13685_v31  ;;  %15916 = vmatmul.mubr.msk.f32.vlgmr.msra.gmra.mrb[80].mxu1 %vm3159_vm3, %v19747_v63  ;;  %16930 = vmatpush1.bf16.msra.mxu0 %v16929_v23  ;;  %v1362_v23 = vld [vmem:[%s18393_s4 + $0x1630] sm:$0xff]  ;;  %v2047_v31 = vrot.slane %v19867_v24, %v19276_v40  ;;  %v16964_v43 = vpack.c.bf16 %v1635_v28, %v1364_v25  ;;  %v1640_v0 = vld [vmem:[%s18393_s4 + $0x1ee0] sm:$0x1] }
 0x218   : > { %v14396_v51 = vcombine.low %v13686_v35, %v13687_v37  ;;  %16940 = vmatpush1.bf16.msra.mxu1 %v16939_v53  ;;  %16933 = vmatprep.subr.msk.bf16.mxu0 %vm18389_vm2, %v16931_v27  ;;  %v1633_v53 = vld [vmem:[%s18393_s4 + $0x1ea8] sm:$0x1]  ;;  %v16961_v27 = vpack.c.bf16 %v1636_v9, %v1365_v8  ;;  %v19952_v8 = vld [vmem:[%s19220_s25 + $0x40] sm:$0xff] }
 0x219   : > { %v14403_v58 = vrot.slane %v14395_v45, %v19304_v6  ;;  %v6031_v61 = vpop.f32.mrb[28].mxu0  ;;  %16943 = vmatprep.subr.msk.bf16.mxu1 %vm18389_vm2, %v16941_v32  ;;  %9863 = vmatprep.mubr.f32.mxu0 %v17840_v16  ;;  %v2055_v32 = vrot.slane %v19867_v24, %v19283_v46  ;;  %v16967_v45 = vpack.c.bf16 %v1096_v30, %v825_v29  ;;  %v1100_v25 = vld [vmem:[%s18393_s4 + $0xe00] sm:$0xff]  ;;  %v831_v29 = vld [vmem:[%s18393_s4 + $0x598] sm:$0xff]  ;;  %v1102_v30 = vld [vmem:[%s18393_s4 + $0xe10] sm:$0xff] }
 0x21a   : > { %v14410_v2 = vrot.slane %v14396_v51, %v19304_v6  ;;  %v6032_v33 = vadd.f32 %v6031_v61, %v2031_v38  ;;  %v6102_v5 = vpop.f32.mrb[28].mxu1  ;;  %v6033_v3 = vpop.f32.mrb[29].mxu0  ;;  %9934 = vmatprep.mubr.f32.mxu1 %v17840_v16  ;;  %v2059_v38 = vrot.slane %v19867_v24, %v19296_v59  ;;  %v16977_v24 = vpack.c.bf16 %v1098_v36, %v827_v34 }
 0x21b   : > { %v6103_v10 = vadd.f32 %v6102_v5, %v2039_v39  ;;  %v6034_v14 = vadd.f32 %v6033_v3, %v2035_v41  ;;  %v6104_v18 = vpop.f32.mrb[29].mxu1  ;;  %16936 = vmatpush1.bf16.msk.msra.mxu0 %vm18389_vm2, %v16934_v48  ;;  %v16954_v39 = vpack.c.bf16 %v1633_v53, %v1362_v23  ;;  %v824_v41 = vld [vmem:[%s18393_s4 + $0x560] sm:$0xff]  ;;  %v826_v48 = vld [vmem:[%s18393_s4 + $0x570] sm:$0xff]  ;;  %v1639_v23 = vld [vmem:[%s18393_s4 + $0x1ed8] sm:$0x1]  ;;  %v2067_v28 = vrot.slane %v19952_v8, %v19243_v13 }
 0x21c   : > { %v14411_v60 = vcombine.low %v14403_v58, %v14410_v2  ;;  %v13688_v20 = vmax.f32 %v6032_v33, 0.0  ;;  %v6105_v21 = vadd.f32 %v6104_v18, %v2043_v47  ;;  %16946 = vmatpush1.bf16.msk.msra.mxu1 %vm18389_vm2, %v16944_v22  ;;  %16948 = vmatprep.subr.bf16.mxu0 %v16947_v54  ;;  %v1095_v47 = vld [vmem:[%s18393_s4 + $0xdd8] sm:$0xff]  ;;  %v16979_v3 = vpack.c.bf16 %v1097_v49, %v826_v48  ;;  %v829_v53 = vld [vmem:[%s18393_s4 + $0x588] sm:$0xff]  ;;  %v1642_v48 = vld [vmem:[%s18393_s4 + $0x1ef0] sm:$0x1] }
 0x21d   : > { %v13690_v26 = vmax.f32 %v6103_v10, 0.0  ;;  %v13689_v4 = vmax.f32 %v6034_v14, 0.0  ;;  %16958 = vmatprep.subr.bf16.mxu1 %v16957_v62  ;;  %v1367_v54 = vld [vmem:[%s18393_s4 + $0x1658] sm:$0xff]  ;;  %v1369_v62 = vld [vmem:[%s18393_s4 + $0x1668] sm:$0xff]  ;;  %v16969_v5 = vpack.c.bf16 %v1095_v47, %v824_v41 }
 0x21e   : > { %15410 = vst [vmem:[%s19355_s26 + $0x68] sm:$0xff] %v14411_v60  ;;  %v13691_v35 = vmax.f32 %v6105_v21, 0.0  ;;  %15919 = vmatmul.mubr.msk.f32.vlgmr.msra.gmra.mrb[82].mxu0 %vm3159_vm3, %v19747_v63  ;;  %v16971_v18 = vpack.c.bf16 %v1638_v55, %v1367_v54  ;;  %v1368_v60 = vld [vmem:[%s18393_s4 + $0x1660] sm:$0xff]  ;;  %v1101_v41 = vld [vmem:[%s18393_s4 + $0xe08] sm:$0xff]  ;;  %v1371_v47 = vld [vmem:[%s18393_s4 + $0x1678] sm:$0xff] }
 0x21f   : > { %v14412_v37 = vcombine.low %v13688_v20, %v13689_v4  ;;  %15922 = vmatmul.mubr.msk.f32.vlgmr.msra.gmra.mrb[82].mxu1 %vm3159_vm3, %v19747_v63  ;;  %16950 = vmatpush1.bf16.msra.mxu0 %v16949_v19  ;;  %v1366_v19 = vld [vmem:[%s18393_s4 + $0x1650] sm:$0xff]  ;;  %v2063_v4 = vrot.slane %v19952_v8, %v19230_v7  ;;  %v16984_v36 = vpack.c.bf16 %v1639_v23, %v1368_v60  ;;  %v1373_v54 = vld [vmem:[%s18393_s4 + $0x1688] sm:$0xff]  ;;  %v1644_v55 = vld [vmem:[%s18393_s4 + $0x1f00] sm:$0x1] }
 0x220   : > { %v14413_v42 = vcombine.low %v13690_v26, %v13691_v35  ;;  %16960 = vmatpush1.bf16.msra.mxu1 %v16959_v44  ;;  %16953 = vmatprep.subr.msk.bf16.mxu0 %vm18389_vm2, %v16951_v50  ;;  %v1637_v44 = vld [vmem:[%s18393_s4 + $0x1ec8] sm:$0x1]  ;;  %v16981_v50 = vpack.c.bf16 %v1640_v0, %v1369_v62  ;;  %v1104_v60 = vld [vmem:[%s18393_s4 + $0xe20] sm:$0xff]  ;;  %v2083_v23 = vrot.slane %v19952_v8, %v19289_v52 }
 0x221   : > { %v14420_v51 = vrot.slane %v14412_v37, %v19304_v6  ;;  %v6173_v22 = vpop.f32.mrb[30].mxu0  ;;  %16963 = vmatprep.subr.msk.bf16.mxu1 %vm18389_vm2, %v16961_v27  ;;  %10005 = vmatprep.mubr.f32.mxu0 %v17840_v16  ;;  %v2071_v27 = vrot.slane %v19952_v8, %v19240_v12  ;;  %v16987_v37 = vpack.c.bf16 %v1100_v25, %v829_v53  ;;  %v835_v53 = vld [vmem:[%s18393_s4 + $0x5b8] sm:$0xff]  ;;  %v1106_v25 = vld [vmem:[%s18393_s4 + $0xe30] sm:$0xff] }
 0x222   : > { %v14427_v56 = vrot.slane %v14413_v42, %v19304_v6  ;;  %v6174_v57 = vadd.f32 %v6173_v22, %v2047_v31  ;;  %v6244_v58 = vpop.f32.mrb[30].mxu1  ;;  %v6175_v61 = vpop.f32.mrb[31].mxu0  ;;  %10076 = vmatprep.mubr.f32.mxu1 %v17840_v16  ;;  %v2075_v31 = vrot.slane %v19952_v8, %v19248_v15 }
 0x223   : > { %v6245_v1 = vadd.f32 %v6244_v58, %v2055_v32  ;;  %v6176_v2 = vadd.f32 %v6175_v61, %v2051_v11  ;;  %v6246_v33 = vpop.f32.mrb[31].mxu1  ;;  %16956 = vmatpush1.bf16.msk.msra.mxu0 %vm18389_vm2, %v16954_v39  ;;  %v16974_v32 = vpack.c.bf16 %v1637_v44, %v1366_v19  ;;  %v828_v11 = vld [vmem:[%s18393_s4 + $0x580] sm:$0xff]  ;;  %v830_v39 = vld [vmem:[%s18393_s4 + $0x590] sm:$0xff]  ;;  %v1643_v19 = vld [vmem:[%s18393_s4 + $0x1ef8] sm:$0x1] }
 0x224   : > { %v14428_v9 = vcombine.low %v14420_v51, %v14427_v56  ;;  %v13692_v10 = vmax.f32 %v6174_v57, 0.0  ;;  %v6247_v14 = vadd.f32 %v6246_v33, %v2059_v38  ;;  %16966 = vmatpush1.bf16.msk.msra.mxu1 %vm18389_vm2, %v16964_v43  ;;  %16968 = vmatprep.subr.bf16.mxu0 %v16967_v45  ;;  %v1099_v38 = vld [vmem:[%s18393_s4 + $0xdf8] sm:$0xff]  ;;  %v16997_v45 = vpack.c.bf16 %v1102_v30, %v831_v29  ;;  %v833_v44 = vld [vmem:[%s18393_s4 + $0x5a8] sm:$0xff] }
 0x225   : > { %v13694_v20 = vmax.f32 %v6245_v1, 0.0  ;;  %v13693_v21 = vmax.f32 %v6176_v2, 0.0  ;;  %16978 = vmatprep.subr.bf16.mxu1 %v16977_v24  ;;  %v16989_v61 = vpack.c.bf16 %v1099_v38, %v828_v11  ;;  %v16999_v62 = vpack.c.bf16 %v1101_v41, %v830_v39  ;;  %v1105_v11 = vld [vmem:[%s18393_s4 + $0xe28] sm:$0xff]  ;;  %v1646_v38 = vld [vmem:[%s18393_s4 + $0x1f10] sm:$0x1] }
 0x226   : > { %15411 = vst [vmem:[%s19355_s26 + $0x70] sm:$0xff] %v14428_v9  ;;  %v13695_v26 = vmax.f32 %v6247_v14, 0.0  ;;  %15925 = vmatmul.mubr.msk.f32.vlgmr.msra.gmra.mrb[84].mxu0 %vm3159_vm3, %v19747_v63  ;;  %v16991_v33 = vpack.c.bf16 %v1642_v48, %v1371_v47  ;;  %v1372_v9 = vld [vmem:[%s18393_s4 + $0x1680] sm:$0xff] }
 0x227   : > { %v14429_v35 = vcombine.low %v13692_v10, %v13693_v21  ;;  %15928 = vmatmul.mubr.msk.f32.vlgmr.msra.gmra.mrb[84].mxu1 %vm3159_vm3, %v19747_v63  ;;  %16970 = vmatpush1.bf16.msra.mxu0 %v16969_v5  ;;  %v1370_v5 = vld [vmem:[%s18393_s4 + $0x1670] sm:$0xff]  ;;  %v2079_v21 = vrot.slane %v19952_v8, %v19276_v40  ;;  %v17004_v30 = vpack.c.bf16 %v1643_v19, %v1372_v9  ;;  %v1648_v47 = vld [vmem:[%s18393_s4 + $0x1f20] sm:$0x1] }
 0x228   : > { %v14430_v34 = vcombine.low %v13694_v20, %v13695_v26  ;;  %16980 = vmatpush1.bf16.msra.mxu1 %v16979_v3  ;;  %16973 = vmatprep.subr.msk.bf16.mxu0 %vm18389_vm2, %v16971_v18  ;;  %v1641_v3 = vld [vmem:[%s18393_s4 + $0x1ee8] sm:$0x1]  ;;  %v17001_v18 = vpack.c.bf16 %v1644_v55, %v1373_v54  ;;  %v1108_v9 = vld [vmem:[%s18393_s4 + $0xe40] sm:$0xff] }
 0x229   : > { %v14437_v42 = vrot.slane %v14429_v35, %v19304_v6  ;;  %v6315_v43 = vpop.f32.mrb[32].mxu0  ;;  %16983 = vmatprep.subr.msk.bf16.mxu1 %vm18389_vm2, %v16981_v50  ;;  %10147 = vmatprep.mubr.f32.mxu0 %v17840_v16  ;;  %v2087_v50 = vrot.slane %v19952_v8, %v19283_v46  ;;  %v17007_v35 = vpack.c.bf16 %v1104_v60, %v833_v44  ;;  %v20037_v54 = vld [vmem:[%s19220_s25 + $0x48] sm:$0xff]  ;;  %v839_v44 = vld [vmem:[%s18393_s4 + $0x5d8] sm:$0xff]  ;;  %v1110_v60 = vld [vmem:[%s18393_s4 + $0xe50] sm:$0xff] }
 0x22a   : > { %v14444_v49 = vrot.slane %v14430_v34, %v19304_v6  ;;  %v6316_v51 = vadd.f32 %v6315_v43, %v2063_v4  ;;  %v6386_v22 = vpop.f32.mrb[32].mxu1  ;;  %v6317_v24 = vpop.f32.mrb[33].mxu0  ;;  %10218 = vmatprep.mubr.f32.mxu1 %v17840_v16  ;;  %v2091_v4 = vrot.slane %v19952_v8, %v19296_v59  ;;  %v17017_v8 = vpack.c.bf16 %v1106_v25, %v835_v53 }
 0x22b   : > { %v6387_v56 = vadd.f32 %v6386_v22, %v2071_v27  ;;  %v6318_v57 = vadd.f32 %v6317_v24, %v2067_v28  ;;  %v6388_v58 = vpop.f32.mrb[33].mxu1  ;;  %16976 = vmatpush1.bf16.msk.msra.mxu0 %vm18389_vm2, %v16974_v32  ;;  %v16994_v27 = vpack.c.bf16 %v1641_v3, %v1370_v5  ;;  %v832_v28 = vld [vmem:[%s18393_s4 + $0x5a0] sm:$0xff]  ;;  %v834_v32 = vld [vmem:[%s18393_s4 + $0x5b0] sm:$0xff]  ;;  %v1647_v5 = vld [vmem:[%s18393_s4 + $0x1f18] sm:$0x1]  ;;  %v2099_v19 = vrot.slane %v20037_v54, %v19243_v13 }
 0x22c   : > { %v14445_v0 = vcombine.low %v14437_v42, %v14444_v49  ;;  %v13696_v1 = vmax.f32 %v6316_v51, 0.0  ;;  %v6389_v2 = vadd.f32 %v6388_v58, %v2075_v31  ;;  %16986 = vmatpush1.bf16.msk.msra.mxu1 %vm18389_vm2, %v16984_v36  ;;  %16988 = vmatprep.subr.bf16.mxu0 %v16987_v37  ;;  %v1103_v31 = vld [vmem:[%s18393_s4 + $0xe18] sm:$0xff]  ;;  %v17019_v24 = vpack.c.bf16 %v1105_v11, %v834_v32  ;;  %v837_v3 = vld [vmem:[%s18393_s4 + $0x5c8] sm:$0xff]  ;;  %v1650_v32 = vld [vmem:[%s18393_s4 + $0x1f30] sm:$0x1] }
 0x22d   : > { %v13698_v10 = vmax.f32 %v6387_v56, 0.0  ;;  %v13697_v14 = vmax.f32 %v6318_v57, 0.0  ;;  %16998 = vmatprep.subr.bf16.mxu1 %v16997_v45  ;;  %v1375_v37 = vld [vmem:[%s18393_s4 + $0x1698] sm:$0xff]  ;;  %v1377_v45 = vld [vmem:[%s18393_s4 + $0x16a8] sm:$0xff]  ;;  %v17009_v22 = vpack.c.bf16 %v1103_v31, %v832_v28 }
 0x22e   : > { %15412 = vst [vmem:[%s19355_s26 + $0x78] sm:$0xff] %v14445_v0  ;;  %v13699_v20 = vmax.f32 %v6389_v2, 0.0  ;;  %15931 = vmatmul.mubr.msk.f32.vlgmr.msra.gmra.mrb[86].mxu0 %vm3159_vm3, %v19747_v63  ;;  %v17011_v58 = vpack.c.bf16 %v1646_v38, %v1375_v37  ;;  %v1376_v0 = vld [vmem:[%s18393_s4 + $0x16a0] sm:$0xff]  ;;  %v1109_v28 = vld [vmem:[%s18393_s4 + $0xe48] sm:$0xff]  ;;  %v1379_v31 = vld [vmem:[%s18393_s4 + $0x16b8] sm:$0xff] }
 0x22f   : > { %v14446_v26 = vcombine.low %v13696_v1, %v13697_v14  ;;  %15934 = vmatmul.mubr.msk.f32.vlgmr.msra.gmra.mrb[86].mxu1 %vm3159_vm3, %v19747_v63  ;;  %16990 = vmatpush1.bf16.msra.mxu0 %v16989_v61  ;;  %v1374_v61 = vld [vmem:[%s18393_s4 + $0x1690] sm:$0xff]  ;;  %v2095_v14 = vrot.slane %v20037_v54, %v19230_v7  ;;  %v17024_v25 = vpack.c.bf16 %v1647_v5, %v1376_v0  ;;  %v1381_v37 = vld [vmem:[%s18393_s4 + $0x16c8] sm:$0xff]  ;;  %v1652_v38 = vld [vmem:[%s18393_s4 + $0x1f40] sm:$0x1] }
 0x230   : > { %v14447_v29 = vcombine.low %v13698_v10, %v13699_v20  ;;  %17000 = vmatpush1.bf16.msra.mxu1 %v16999_v62  ;;  %16993 = vmatprep.subr.msk.bf16.mxu0 %vm18389_vm2, %v16991_v33  ;;  %v1645_v62 = vld [vmem:[%s18393_s4 + $0x1f08] sm:$0x1]  ;;  %v17021_v33 = vpack.c.bf16 %v1648_v47, %v1377_v45  ;;  %v1112_v0 = vld [vmem:[%s18393_s4 + $0xe60] sm:$0xff]  ;;  %v2115_v5 = vrot.slane %v20037_v54, %v19289_v52 }
 0x231   : > { %v14454_v34 = vrot.slane %v14446_v26, %v19304_v6  ;;  %v6457_v36 = vpop.f32.mrb[34].mxu0  ;;  %17003 = vmatprep.subr.msk.bf16.mxu1 %vm18389_vm2, %v17001_v18  ;;  %10289 = vmatprep.mubr.f32.mxu0 %v17840_v16  ;;  %v2103_v18 = vrot.slane %v20037_v54, %v19240_v12  ;;  %v17027_v26 = vpack.c.bf16 %v1108_v9, %v837_v3  ;;  %v843_v3 = vld [vmem:[%s18393_s4 + $0x5f8] sm:$0xff]  ;;  %v1114_v9 = vld [vmem:[%s18393_s4 + $0xe70] sm:$0xff] }
 0x232   : > { %v14461_v39 = vrot.slane %v14447_v29, %v19304_v6  ;;  %v6458_v41 = vadd.f32 %v6457_v36, %v2079_v21  ;;  %v6528_v42 = vpop.f32.mrb[34].mxu1  ;;  %v6459_v43 = vpop.f32.mrb[35].mxu0  ;;  %10360 = vmatprep.mubr.f32.mxu1 %v17840_v16  ;;  %v2107_v21 = vrot.slane %v20037_v54, %v19248_v15 }
 0x233   : > { %v6529_v48 = vadd.f32 %v6528_v42, %v2087_v50  ;;  %v6460_v49 = vadd.f32 %v6459_v43, %v2083_v23  ;;  %v6530_v51 = vpop.f32.mrb[35].mxu1  ;;  %16996 = vmatpush1.bf16.msk.msra.mxu0 %vm18389_vm2, %v16994_v27  ;;  %v17014_v50 = vpack.c.bf16 %v1645_v62, %v1374_v61  ;;  %v836_v23 = vld [vmem:[%s18393_s4 + $0x5c0] sm:$0xff]  ;;  %v838_v27 = vld [vmem:[%s18393_s4 + $0x5d0] sm:$0xff]  ;;  %v1651_v61 = vld [vmem:[%s18393_s4 + $0x1f38] sm:$0x1] }
 0x234   : > { %v14462_v55 = vcombine.low %v14454_v34, %v14461_v39  ;;  %v13700_v56 = vmax.f32 %v6458_v41, 0.0  ;;  %v6531_v57 = vadd.f32 %v6530_v51, %v2091_v4  ;;  %17006 = vmatpush1.bf16.msk.msra.mxu1 %vm18389_vm2, %v17004_v30  ;;  %17008 = vmatprep.subr.bf16.mxu0 %v17007_v35  ;;  %v1107_v4 = vld [vmem:[%s18393_s4 + $0xe38] sm:$0xff]  ;;  %v17037_v35 = vpack.c.bf16 %v1110_v60, %v839_v44  ;;  %v841_v62 = vld [vmem:[%s18393_s4 + $0x5e8] sm:$0xff] }
 0x235   : > { %v13702_v1 = vmax.f32 %v6529_v48, 0.0  ;;  %v13701_v2 = vmax.f32 %v6460_v49, 0.0  ;;  %17018 = vmatprep.subr.bf16.mxu1 %v17017_v8  ;;  %v17029_v43 = vpack.c.bf16 %v1107_v4, %v836_v23  ;;  %v17039_v45 = vpack.c.bf16 %v1109_v28, %v838_v27 }
 0x236   : > { %15413 = vst [vmem:[%s19355_s26 + $0x80] sm:$0xff] %v14462_v55  ;;  %v13703_v10 = vmax.f32 %v6531_v57, 0.0  ;;  %15937 = vmatmul.mubr.msk.f32.vlgmr.msra.gmra.mrb[88].mxu0 %vm3159_vm3, %v19747_v63  ;;  %v17031_v51 = vpack.c.bf16 %v1650_v32, %v1379_v31  ;;  %v1380_v55 = vld [vmem:[%s18393_s4 + $0x16c0] sm:$0xff] }
 0x237   : > { %v14463_v20 = vcombine.low %v13700_v56, %v13701_v2  ;;  %15940 = vmatmul.mubr.msk.f32.vlgmr.msra.gmra.mrb[88].mxu1 %vm3159_vm3, %v19747_v63  ;;  %17010 = vmatpush1.bf16.msra.mxu0 %v17009_v22  ;;  %v1378_v22 = vld [vmem:[%s18393_s4 + $0x16b0] sm:$0xff]  ;;  %v2111_v2 = vrot.slane %v20037_v54, %v19276_v40  ;;  %v17044_v60 = vpack.c.bf16 %v1651_v61, %v1380_v55 }
 0x238   : > { %v14464_v53 = vcombine.low %v13702_v1, %v13703_v10  ;;  %17020 = vmatpush1.bf16.msra.mxu1 %v17019_v24  ;;  %17013 = vmatprep.subr.msk.bf16.mxu0 %vm18389_vm2, %v17011_v58  ;;  %v1649_v24 = vld [vmem:[%s18393_s4 + $0x1f28] sm:$0x1]  ;;  %v17041_v58 = vpack.c.bf16 %v1652_v38, %v1381_v37 }
 0x239   : > { %v14471_v29 = vrot.slane %v14463_v20, %v19304_v6  ;;  %v6599_v30 = vpop.f32.mrb[36].mxu0  ;;  %17023 = vmatprep.subr.msk.bf16.mxu1 %vm18389_vm2, %v17021_v33  ;;  %10431 = vmatprep.mubr.f32.mxu0 %v17840_v16  ;;  %v2119_v33 = vrot.slane %v20037_v54, %v19283_v46  ;;  %v17047_v20 = vpack.c.bf16 %v1112_v0, %v841_v62  ;;  %v847_v62 = vld [vmem:[%s18393_s4 + $0x618] sm:$0xff]  ;;  %v1118_v0 = vld [vmem:[%s18393_s4 + $0xe90] sm:$0xff] }
 0x23a   : > { %v14478_v11 = vrot.slane %v14464_v53, %v19304_v6  ;;  %v6600_v34 = vadd.f32 %v6599_v30, %v2095_v14  ;;  %v6670_v36 = vpop.f32.mrb[36].mxu1  ;;  %v6601_v8 = vpop.f32.mrb[37].mxu0  ;;  %10502 = vmatprep.mubr.f32.mxu1 %v17840_v16  ;;  %v2123_v14 = vrot.slane %v20037_v54, %v19296_v59  ;;  %v17057_v54 = vpack.c.bf16 %v1114_v9, %v843_v3  ;;  %v1385_v30 = vld [vmem:[%s18393_s4 + $0x16e8] sm:$0xff] }
 0x23b   : > { %v6671_v39 = vadd.f32 %v6670_v36, %v2103_v18  ;;  %v6602_v41 = vadd.f32 %v6601_v8, %v2099_v19  ;;  %v6672_v42 = vpop.f32.mrb[37].mxu1  ;;  %17016 = vmatpush1.bf16.msk.msra.mxu0 %vm18389_vm2, %v17014_v50  ;;  %v17034_v18 = vpack.c.bf16 %v1649_v24, %v1378_v22  ;;  %v840_v19 = vld [vmem:[%s18393_s4 + $0x5e0] sm:$0xff]  ;;  %v842_v50 = vld [vmem:[%s18393_s4 + $0x5f0] sm:$0xff]  ;;  %v845_v22 = vld [vmem:[%s18393_s4 + $0x608] sm:$0xff] }
 0x23c   : > { %v14479_v47 = vcombine.low %v14471_v29, %v14478_v11  ;;  %v13704_v48 = vmax.f32 %v6600_v34, 0.0  ;;  %v6673_v49 = vadd.f32 %v6672_v42, %v2107_v21  ;;  %17026 = vmatpush1.bf16.msk.msra.mxu1 %vm18389_vm2, %v17024_v25  ;;  %17028 = vmatprep.subr.bf16.mxu0 %v17027_v26  ;;  %v1111_v21 = vld [vmem:[%s18393_s4 + $0xe58] sm:$0xff]  ;;  %v1654_v26 = vld [vmem:[%s18393_s4 + $0x1f50] sm:$0x1]  ;;  %v1116_v24 = vld [vmem:[%s18393_s4 + $0xe80] sm:$0xff] }
 0x23d   : > { %v13706_v56 = vmax.f32 %v6671_v39, 0.0  ;;  %v13705_v57 = vmax.f32 %v6602_v41, 0.0  ;;  %17038 = vmatprep.subr.bf16.mxu1 %v17037_v35  ;;  %v1383_v25 = vld [vmem:[%s18393_s4 + $0x16d8] sm:$0xff]  ;;  %v1656_v35 = vld [vmem:[%s18393_s4 + $0x1f60] sm:$0x1]  ;;  %v17049_v34 = vpack.c.bf16 %v1111_v21, %v840_v19  ;;  %v20122_v8 = vld [vmem:[%s19220_s25 + $0x50] sm:$0xff] }
 0x23e   : > { %15414 = vst [vmem:[%s19355_s26 + $0x88] sm:$0xff] %v14479_v47  ;;  %v13707_v1 = vmax.f32 %v6673_v49, 0.0  ;;  %15943 = vmatmul.mubr.msk.f32.vlgmr.msra.gmra.mrb[90].mxu0 %vm3159_vm3, %v19747_v63  ;;  %v17051_v41 = vpack.c.bf16 %v1654_v26, %v1383_v25  ;;  %v1382_v42 = vld [vmem:[%s18393_s4 + $0x16d0] sm:$0xff]  ;;  %v17061_v49 = vpack.c.bf16 %v1656_v35, %v1385_v30  ;;  %v2131_v61 = vrot.slane %v20122_v8, %v19243_v13  ;;  %v1117_v19 = vld [vmem:[%s18393_s4 + $0xe88] sm:$0xff]  ;;  %v1387_v21 = vld [vmem:[%s18393_s4 + $0x16f8] sm:$0xff] }
 0x23f   : > { %v14480_v10 = vcombine.low %v13704_v48, %v13705_v57  ;;  %15946 = vmatmul.mubr.msk.f32.vlgmr.msra.gmra.mrb[90].mxu1 %vm3159_vm3, %v19747_v63  ;;  %17030 = vmatpush1.bf16.msra.mxu0 %v17029_v43  ;;  %v1113_v63 = vld [vmem:[%s18393_s4 + $0xe68] sm:$0xff]  ;;  %v2127_v57 = vrot.slane %v20122_v8, %v19230_v7  ;;  %v1660_v26 = vld [vmem:[%s18393_s4 + $0x1f80] sm:$0x1] }
 0x240   : > { %v14481_v44 = vcombine.low %v13706_v56, %v13707_v1  ;;  %17040 = vmatpush1.bf16.msra.mxu1 %v17039_v45  ;;  %17033 = vmatprep.subr.msk.bf16.mxu0 %vm18389_vm2, %v17031_v51  ;;  %v17059_v36 = vpack.c.bf16 %v1113_v63, %v842_v50  ;;  %v1653_v43 = vld [vmem:[%s18393_s4 + $0x1f48] sm:$0x1]  ;;  %v1384_v45 = vld [vmem:[%s18393_s4 + $0x16e0] sm:$0xff]  ;;  %v1655_v51 = vld [vmem:[%s18393_s4 + $0x1f58] sm:$0x1] }
 0x241   : > { %v14488_v23 = vrot.slane %v14480_v10, %v19304_v6  ;;  %v6741_v53 = vpop.f32.mrb[38].mxu0  ;;  %17043 = vmatprep.subr.msk.bf16.mxu1 %vm18389_vm2, %v17041_v58  ;;  %10573 = vmatprep.mubr.f32.mxu0 %v17840_v16  ;;  %v20136_v56 = vld [vmem:[%s21283_s0] sm:$0x3]  ;;  %v2135_v58 = vrot.slane %v20122_v8, %v19240_v12  ;;  %v17064_v9 = vpack.c.bf16 %v1655_v51, %v1384_v45  ;;  %v1658_v50 = vld [vmem:[%s18393_s4 + $0x1f70] sm:$0x1]  ;;  %v1389_v25 = vld [vmem:[%s18393_s4 + $0x1708] sm:$0xff] }
 0x242   : > { %v14495_v4 = vrot.slane %v14481_v44, %v19304_v6  ;;  %v6742_v27 = vadd.f32 %v6741_v53, %v2111_v2  ;;  %v6812_v28 = vpop.f32.mrb[38].mxu1  ;;  %v6743_v29 = vpop.f32.mrb[39].mxu0  ;;  %10644 = vmatprep.mubr.f32.mxu1 %v17840_v16  ;;  %v2139_v2 = vrot.slane %v20122_v8, %v19248_v15  ;;  %v17067_v10 = vpack.c.bf16 %v1116_v24, %v845_v22  ;;  %v1120_v45 = vld [vmem:[%s18393_s4 + $0xea0] sm:$0xff]  ;;  %v851_v22 = vld [vmem:[%s18393_s4 + $0x638] sm:$0xff]  ;;  %v1122_v24 = vld [vmem:[%s18393_s4 + $0xeb0] sm:$0xff] }
 0x243   : > { %v6813_v31 = vadd.f32 %v6812_v28, %v2119_v33  ;;  %v6744_v32 = vadd.f32 %v6743_v29, %v2115_v5  ;;  %v6814_v11 = vpop.f32.mrb[39].mxu1  ;;  %17036 = vmatpush1.bf16.msk.msra.mxu0 %vm18389_vm2, %v17034_v18  ;;  %v17054_v33 = vpack.c.bf16 %v1653_v43, %v1382_v42  ;;  %v844_v5 = vld [vmem:[%s18393_s4 + $0x600] sm:$0xff]  ;;  %v846_v18 = vld [vmem:[%s18393_s4 + $0x610] sm:$0xff]  ;;  %v1659_v42 = vld [vmem:[%s18393_s4 + $0x1f78] sm:$0x1]  ;;  %v2147_v51 = vrot.slane %v20122_v8, %v19289_v52 }
 0x244   : > { %v14496_v37 = vcombine.low %v14488_v23, %v14495_v4  ;;  %v13708_v38 = vmax.f32 %v6742_v27, 0.0  ;;  %v6815_v39 = vadd.f32 %v6814_v11, %v2123_v14  ;;  %17046 = vmatpush1.bf16.msk.msra.mxu1 %vm18389_vm2, %v17044_v60  ;;  %17048 = vmatprep.subr.bf16.mxu0 %v17047_v20  ;;  %v1115_v14 = vld [vmem:[%s18393_s4 + $0xe78] sm:$0xff]  ;;  %v17077_v20 = vpack.c.bf16 %v1118_v0, %v847_v62  ;;  %v849_v43 = vld [vmem:[%s18393_s4 + $0x628] sm:$0xff] }
 0x245   : > { %v13710_v47 = vmax.f32 %v6813_v31, 0.0  ;;  %v13709_v48 = vmax.f32 %v6744_v32, 0.0  ;;  %17058 = vmatprep.subr.bf16.mxu1 %v17057_v54  ;;  %v17069_v29 = vpack.c.bf16 %v1115_v14, %v844_v5  ;;  %v17079_v30 = vpack.c.bf16 %v1117_v19, %v846_v18  ;;  %v1121_v5 = vld [vmem:[%s18393_s4 + $0xea8] sm:$0xff]  ;;  %v1662_v14 = vld [vmem:[%s18393_s4 + $0x1f90] sm:$0x1] }
 0x246   : > { %15415 = vst [vmem:[%s19355_s26 + $0x90] sm:$0xff] %v14496_v37  ;;  %v13711_v55 = vmax.f32 %v6815_v39, 0.0  ;;  %15949 = vmatmul.mubr.msk.f32.vlgmr.msra.gmra.mrb[92].mxu0 %vm3159_vm3, %v20136_v56  ;;  %v17071_v11 = vpack.c.bf16 %v1658_v50, %v1387_v21  ;;  %v1388_v37 = vld [vmem:[%s18393_s4 + $0x1700] sm:$0xff] }
 0x247   : > { %v14497_v1 = vcombine.low %v13708_v38, %v13709_v48  ;;  %15952 = vmatmul.mubr.msk.f32.vlgmr.msra.gmra.mrb[92].mxu1 %vm3159_vm3, %v20136_v56  ;;  %17050 = vmatpush1.bf16.msra.mxu0 %v17049_v34  ;;  %v1386_v34 = vld [vmem:[%s18393_s4 + $0x16f0] sm:$0xff]  ;;  %v2143_v48 = vrot.slane %v20122_v8, %v19276_v40  ;;  %v17084_v0 = vpack.c.bf16 %v1659_v42, %v1388_v37  ;;  %v1664_v21 = vld [vmem:[%s18393_s4 + $0x1fa0] sm:$0x1] }
 0x248   : > { %v14498_v3 = vcombine.low %v13710_v47, %v13711_v55  ;;  %17060 = vmatpush1.bf16.msra.mxu1 %v17059_v36  ;;  %17053 = vmatprep.subr.msk.bf16.mxu0 %vm18389_vm2, %v17051_v41  ;;  %v1657_v36 = vld [vmem:[%s18393_s4 + $0x1f68] sm:$0x1]  ;;  %v17081_v41 = vpack.c.bf16 %v1660_v26, %v1389_v25  ;;  %v20212_v25 = vld [vmem:[%s19220_s25 + $0x58] sm:$0xff]  ;;  %v1124_v37 = vld [vmem:[%s18393_s4 + $0xec0] sm:$0xff] }
 0x249   : > { %v14505_v44 = vrot.slane %v14497_v1, %v19304_v6  ;;  %v6883_v60 = vpop.f32.mrb[40].mxu0  ;;  %17063 = vmatprep.subr.msk.bf16.mxu1 %vm18389_vm2, %v17061_v49  ;;  %10715 = vmatprep.mubr.f32.mxu0 %v17840_v16  ;;  %v2151_v49 = vrot.slane %v20122_v8, %v19283_v46  ;;  %v17087_v1 = vpack.c.bf16 %v1120_v45, %v849_v43  ;;  %v855_v43 = vld [vmem:[%s18393_s4 + $0x658] sm:$0xff]  ;;  %v1126_v45 = vld [vmem:[%s18393_s4 + $0xed0] sm:$0xff] }
 0x24a   : > { %v14512_v63 = vrot.slane %v14498_v3, %v19304_v6  ;;  %v6884_v23 = vadd.f32 %v6883_v60, %v2127_v57  ;;  %v6954_v53 = vpop.f32.mrb[40].mxu1  ;;  %v6885_v54 = vpop.f32.mrb[41].mxu0  ;;  %10786 = vmatprep.mubr.f32.mxu1 %v17840_v16  ;;  %v2155_v57 = vrot.slane %v20122_v8, %v19296_v59  ;;  %v17097_v8 = vpack.c.bf16 %v1122_v24, %v851_v22 }
 0x24b   : > { %v6955_v4 = vadd.f32 %v6954_v53, %v2135_v58  ;;  %v6886_v27 = vadd.f32 %v6885_v54, %v2131_v61  ;;  %v6956_v28 = vpop.f32.mrb[41].mxu1  ;;  %17056 = vmatpush1.bf16.msk.msra.mxu0 %vm18389_vm2, %v17054_v33  ;;  %v17074_v58 = vpack.c.bf16 %v1657_v36, %v1386_v34  ;;  %v848_v61 = vld [vmem:[%s18393_s4 + $0x620] sm:$0xff]  ;;  %v850_v33 = vld [vmem:[%s18393_s4 + $0x630] sm:$0xff]  ;;  %v1663_v34 = vld [vmem:[%s18393_s4 + $0x1f98] sm:$0x1]  ;;  %v2163_v42 = vrot.slane %v20212_v25, %v19243_v13 }
 0x24c   : > { %v14513_v35 = vcombine.low %v14505_v44, %v14512_v63  ;;  %v13712_v31 = vmax.f32 %v6884_v23, 0.0  ;;  %v6957_v32 = vadd.f32 %v6956_v28, %v2139_v2  ;;  %17066 = vmatpush1.bf16.msk.msra.mxu1 %vm18389_vm2, %v17064_v9  ;;  %17068 = vmatprep.subr.bf16.mxu0 %v17067_v10  ;;  %v1119_v2 = vld [vmem:[%s18393_s4 + $0xe98] sm:$0xff]  ;;  %v17099_v54 = vpack.c.bf16 %v1121_v5, %v850_v33  ;;  %v853_v36 = vld [vmem:[%s18393_s4 + $0x648] sm:$0xff]  ;;  %v1666_v33 = vld [vmem:[%s18393_s4 + $0x1fb0] sm:$0x1] }
 0x24d   : > { %v13714_v38 = vmax.f32 %v6955_v4, 0.0  ;;  %v13713_v39 = vmax.f32 %v6886_v27, 0.0  ;;  %17078 = vmatprep.subr.bf16.mxu1 %v17077_v20  ;;  %v1391_v10 = vld [vmem:[%s18393_s4 + $0x1718] sm:$0xff]  ;;  %v1393_v20 = vld [vmem:[%s18393_s4 + $0x1728] sm:$0xff]  ;;  %v17089_v53 = vpack.c.bf16 %v1119_v2, %v848_v61 }
 0x24e   : > { %15416 = vst [vmem:[%s19355_s26 + $0x98] sm:$0xff] %v14513_v35  ;;  %v13715_v47 = vmax.f32 %v6957_v32, 0.0  ;;  %15955 = vmatmul.mubr.msk.f32.vlgmr.msra.gmra.mrb[94].mxu0 %vm3159_vm3, %v20136_v56  ;;  %v17091_v28 = vpack.c.bf16 %v1662_v14, %v1391_v10  ;;  %v1392_v35 = vld [vmem:[%s18393_s4 + $0x1720] sm:$0xff]  ;;  %v1125_v61 = vld [vmem:[%s18393_s4 + $0xec8] sm:$0xff]  ;;  %v1395_v2 = vld [vmem:[%s18393_s4 + $0x1738] sm:$0xff] }
 0x24f   : > { %v14514_v55 = vcombine.low %v13712_v31, %v13713_v39  ;;  %15958 = vmatmul.mubr.msk.f32.vlgmr.msra.gmra.mrb[94].mxu1 %vm3159_vm3, %v20136_v56  ;;  %17070 = vmatpush1.bf16.msra.mxu0 %v17069_v29  ;;  %v1390_v29 = vld [vmem:[%s18393_s4 + $0x1710] sm:$0xff]  ;;  %v2159_v39 = vrot.slane %v20212_v25, %v19230_v7  ;;  %v17104_v24 = vpack.c.bf16 %v1663_v34, %v1392_v35  ;;  %v1397_v10 = vld [vmem:[%s18393_s4 + $0x1748] sm:$0xff]  ;;  %v1668_v14 = vld [vmem:[%s18393_s4 + $0x1fc0] sm:$0x1] }
 0x250   : > { %v14515_v62 = vcombine.low %v13714_v38, %v13715_v47  ;;  %17080 = vmatpush1.bf16.msra.mxu1 %v17079_v30  ;;  %17073 = vmatprep.subr.msk.bf16.mxu0 %vm18389_vm2, %v17071_v11  ;;  %v1661_v30 = vld [vmem:[%s18393_s4 + $0x1f88] sm:$0x1]  ;;  %v17101_v11 = vpack.c.bf16 %v1664_v21, %v1393_v20  ;;  %v1128_v35 = vld [vmem:[%s18393_s4 + $0xee0] sm:$0xff]  ;;  %v2179_v34 = vrot.slane %v20212_v25, %v19289_v52 }
 0x251   : > { %v14522_v3 = vrot.slane %v14514_v55, %v19304_v6  ;;  %v7025_v9 = vpop.f32.mrb[42].mxu0  ;;  %17083 = vmatprep.subr.msk.bf16.mxu1 %vm18389_vm2, %v17081_v41  ;;  %10857 = vmatprep.mubr.f32.mxu0 %v17840_v16  ;;  %v2167_v41 = vrot.slane %v20212_v25, %v19240_v12  ;;  %v17107_v55 = vpack.c.bf16 %v1124_v37, %v853_v36  ;;  %v859_v36 = vld [vmem:[%s18393_s4 + $0x678] sm:$0xff]  ;;  %v1130_v37 = vld [vmem:[%s18393_s4 + $0xef0] sm:$0xff] }
 0x252   : > { %v14529_v18 = vrot.slane %v14515_v62, %v19304_v6  ;;  %v7026_v19 = vadd.f32 %v7025_v9, %v2143_v48  ;;  %v7096_v44 = vpop.f32.mrb[42].mxu1  ;;  %v7027_v60 = vpop.f32.mrb[43].mxu0  ;;  %10928 = vmatprep.mubr.f32.mxu1 %v17840_v16  ;;  %v2171_v48 = vrot.slane %v20212_v25, %v19248_v15 }
 0x253   : > { %v7097_v50 = vadd.f32 %v7096_v44, %v2151_v49  ;;  %v7028_v63 = vadd.f32 %v7027_v60, %v2147_v51  ;;  %v7098_v23 = vpop.f32.mrb[43].mxu1  ;;  %17076 = vmatpush1.bf16.msk.msra.mxu0 %vm18389_vm2, %v17074_v58  ;;  %v17094_v49 = vpack.c.bf16 %v1661_v30, %v1390_v29  ;;  %v852_v51 = vld [vmem:[%s18393_s4 + $0x640] sm:$0xff]  ;;  %v854_v58 = vld [vmem:[%s18393_s4 + $0x650] sm:$0xff]  ;;  %v1667_v29 = vld [vmem:[%s18393_s4 + $0x1fb8] sm:$0x1] }
 0x254   : > { %v14530_v26 = vcombine.low %v14522_v3, %v14529_v18  ;;  %v13716_v4 = vmax.f32 %v7026_v19, 0.0  ;;  %v7099_v27 = vadd.f32 %v7098_v23, %v2155_v57  ;;  %17086 = vmatpush1.bf16.msk.msra.mxu1 %vm18389_vm2, %v17084_v0  ;;  %17088 = vmatprep.subr.bf16.mxu0 %v17087_v1  ;;  %v1123_v57 = vld [vmem:[%s18393_s4 + $0xeb8] sm:$0xff]  ;;  %v17117_v1 = vpack.c.bf16 %v1126_v45, %v855_v43  ;;  %v857_v30 = vld [vmem:[%s18393_s4 + $0x668] sm:$0xff] }
 0x255   : > { %v13718_v31 = vmax.f32 %v7097_v50, 0.0  ;;  %v13717_v32 = vmax.f32 %v7028_v63, 0.0  ;;  %17098 = vmatprep.subr.bf16.mxu1 %v17097_v8  ;;  %v17109_v60 = vpack.c.bf16 %v1123_v57, %v852_v51  ;;  %v17119_v20 = vpack.c.bf16 %v1125_v61, %v854_v58  ;;  %v1129_v51 = vld [vmem:[%s18393_s4 + $0xee8] sm:$0xff]  ;;  %v1670_v57 = vld [vmem:[%s18393_s4 + $0x1fd0] sm:$0x1] }
 0x256   : > { %15417 = vst [vmem:[%s19355_s26 + $0xa0] sm:$0xff] %v14530_v26  ;;  %v13719_v38 = vmax.f32 %v7099_v27, 0.0  ;;  %15961 = vmatmul.mubr.msk.f32.vlgmr.msra.gmra.mrb[96].mxu0 %vm3159_vm3, %v20136_v56  ;;  %v17111_v23 = vpack.c.bf16 %v1666_v33, %v1395_v2  ;;  %v1396_v26 = vld [vmem:[%s18393_s4 + $0x1740] sm:$0xff] }
 0x257   : > { %v14531_v47 = vcombine.low %v13716_v4, %v13717_v32  ;;  %15964 = vmatmul.mubr.msk.f32.vlgmr.msra.gmra.mrb[96].mxu1 %vm3159_vm3, %v20136_v56  ;;  %17090 = vmatpush1.bf16.msra.mxu0 %v17089_v53  ;;  %v1394_v53 = vld [vmem:[%s18393_s4 + $0x1730] sm:$0xff]  ;;  %v2175_v32 = vrot.slane %v20212_v25, %v19276_v40  ;;  %v17124_v45 = vpack.c.bf16 %v1667_v29, %v1396_v26  ;;  %v1672_v2 = vld [vmem:[%s18393_s4 + $0x1fe0] sm:$0x1] }
 0x258   : > { %v14532_v22 = vcombine.low %v13718_v31, %v13719_v38  ;;  %17100 = vmatpush1.bf16.msra.mxu1 %v17099_v54  ;;  %17093 = vmatprep.subr.msk.bf16.mxu0 %vm18389_vm2, %v17091_v28  ;;  %v1665_v54 = vld [vmem:[%s18393_s4 + $0x1fa8] sm:$0x1]  ;;  %v17121_v28 = vpack.c.bf16 %v1668_v14, %v1397_v10  ;;  %v20297_v10 = vld [vmem:[%s19220_s25 + $0x60] sm:$0xff] }
 0x259   : > { %v14539_v62 = vrot.slane %v14531_v47, %v19304_v6  ;;  %v7167_v0 = vpop.f32.mrb[44].mxu0  ;;  %17103 = vmatprep.subr.msk.bf16.mxu1 %vm18389_vm2, %v17101_v11  ;;  %10999 = vmatprep.mubr.f32.mxu0 %v17840_v16  ;;  %v2183_v11 = vrot.slane %v20212_v25, %v19283_v46  ;;  %v17127_v47 = vpack.c.bf16 %v1128_v35, %v857_v30  ;;  %v1132_v26 = vld [vmem:[%s18393_s4 + $0xf00] sm:$0xff]  ;;  %v863_v30 = vld [vmem:[%s18393_s4 + $0x698] sm:$0xff]  ;;  %v1134_v35 = vld [vmem:[%s18393_s4 + $0xf10] sm:$0xff] }
 0x25a   : > { %v14546_v5 = vrot.slane %v14532_v22, %v19304_v6  ;;  %v7168_v3 = vadd.f32 %v7167_v0, %v2159_v39  ;;  %v7238_v9 = vpop.f32.mrb[44].mxu1  ;;  %v7169_v8 = vpop.f32.mrb[45].mxu0  ;;  %11070 = vmatprep.mubr.f32.mxu1 %v17840_v16  ;;  %v2187_v39 = vrot.slane %v20212_v25, %v19296_v59  ;;  %v17137_v25 = vpack.c.bf16 %v1130_v37, %v859_v36 }
 0x25b   : > { %v7239_v18 = vadd.f32 %v7238_v9, %v2167_v41  ;;  %v7170_v19 = vadd.f32 %v7169_v8, %v2163_v42  ;;  %v7240_v44 = vpop.f32.mrb[45].mxu1  ;;  %17096 = vmatpush1.bf16.msk.msra.mxu0 %vm18389_vm2, %v17094_v49  ;;  %v17114_v41 = vpack.c.bf16 %v1665_v54, %v1394_v53  ;;  %v856_v42 = vld [vmem:[%s18393_s4 + $0x660] sm:$0xff]  ;;  %v858_v49 = vld [vmem:[%s18393_s4 + $0x670] sm:$0xff]  ;;  %v1671_v53 = vld [vmem:[%s18393_s4 + $0x1fd8] sm:$0x1]  ;;  %v2195_v29 = vrot.slane %v20297_v10, %v19243_v13 }
 0x25c   : > { %v14547_v21 = vcombine.low %v14539_v62, %v14546_v5  ;;  %v13720_v50 = vmax.f32 %v7168_v3, 0.0  ;;  %v7241_v63 = vadd.f32 %v7240_v44, %v2171_v48  ;;  %17106 = vmatpush1.bf16.msk.msra.mxu1 %vm18389_vm2, %v17104_v24  ;;  %17108 = vmatprep.subr.bf16.mxu0 %v17107_v55  ;;  %v1127_v48 = vld [vmem:[%s18393_s4 + $0xed8] sm:$0xff]  ;;  %v17139_v8 = vpack.c.bf16 %v1129_v51, %v858_v49  ;;  %v861_v54 = vld [vmem:[%s18393_s4 + $0x688] sm:$0xff]  ;;  %v1674_v49 = vld [vmem:[%s18393_s4 + $0x1ff0] sm:$0x1] }
 0x25d   : > { %v13722_v4 = vmax.f32 %v7239_v18, 0.0  ;;  %v13721_v27 = vmax.f32 %v7170_v19, 0.0  ;;  %17118 = vmatprep.subr.bf16.mxu1 %v17117_v1  ;;  %v1399_v55 = vld [vmem:[%s18393_s4 + $0x1758] sm:$0xff]  ;;  %v1401_v1 = vld [vmem:[%s18393_s4 + $0x1768] sm:$0xff]  ;;  %v17129_v9 = vpack.c.bf16 %v1127_v48, %v856_v42 }
 0x25e   : > { %15418 = vst [vmem:[%s19355_s26 + $0xa8] sm:$0xff] %v14547_v21  ;;  %v13723_v31 = vmax.f32 %v7241_v63, 0.0  ;;  %15967 = vmatmul.mubr.msk.f32.vlgmr.msra.gmra.mrb[98].mxu0 %vm3159_vm3, %v20136_v56  ;;  %v17131_v44 = vpack.c.bf16 %v1670_v57, %v1399_v55  ;;  %v1400_v21 = vld [vmem:[%s18393_s4 + $0x1760] sm:$0xff]  ;;  %v1133_v42 = vld [vmem:[%s18393_s4 + $0xf08] sm:$0xff]  ;;  %v1403_v48 = vld [vmem:[%s18393_s4 + $0x1778] sm:$0xff] }
 0x25f   : > { %v14548_v38 = vcombine.low %v13720_v50, %v13721_v27  ;;  %15970 = vmatmul.mubr.msk.f32.vlgmr.msra.gmra.mrb[98].mxu1 %vm3159_vm3, %v20136_v56  ;;  %17110 = vmatpush1.bf16.msra.mxu0 %v17109_v60  ;;  %v1398_v60 = vld [vmem:[%s18393_s4 + $0x1750] sm:$0xff]  ;;  %v2191_v27 = vrot.slane %v20297_v10, %v19230_v7  ;;  %v17144_v37 = vpack.c.bf16 %v1671_v53, %v1400_v21  ;;  %v1405_v55 = vld [vmem:[%s18393_s4 + $0x1788] sm:$0xff]  ;;  %v1676_v57 = vld [vmem:[%s18393_s4 + $0x2000] sm:$0x1] }
 0x260   : > { %v14549_v43 = vcombine.low %v13722_v4, %v13723_v31  ;;  %17120 = vmatpush1.bf16.msra.mxu1 %v17119_v20  ;;  %17113 = vmatprep.subr.msk.bf16.mxu0 %vm18389_vm2, %v17111_v23  ;;  %v1669_v20 = vld [vmem:[%s18393_s4 + $0x1fc8] sm:$0x1]  ;;  %v17141_v23 = vpack.c.bf16 %v1672_v2, %v1401_v1  ;;  %v1136_v21 = vld [vmem:[%s18393_s4 + $0xf20] sm:$0xff]  ;;  %v2211_v53 = vrot.slane %v20297_v10, %v19289_v52 }
 0x261   : > { %v14556_v22 = vrot.slane %v14548_v38, %v19304_v6  ;;  %v7309_v24 = vpop.f32.mrb[46].mxu0  ;;  %17123 = vmatprep.subr.msk.bf16.mxu1 %vm18389_vm2, %v17121_v28  ;;  %11141 = vmatprep.mubr.f32.mxu0 %v17840_v16  ;;  %v2199_v28 = vrot.slane %v20297_v10, %v19240_v12  ;;  %v17147_v38 = vpack.c.bf16 %v1132_v26, %v861_v54  ;;  %v867_v54 = vld [vmem:[%s18393_s4 + $0x6b8] sm:$0xff]  ;;  %v1138_v26 = vld [vmem:[%s18393_s4 + $0xf30] sm:$0xff] }
 0x262   : > { %v14563_v58 = vrot.slane %v14549_v43, %v19304_v6  ;;  %v7310_v61 = vadd.f32 %v7309_v24, %v2175_v32  ;;  %v7380_v62 = vpop.f32.mrb[46].mxu1  ;;  %v7311_v0 = vpop.f32.mrb[47].mxu0  ;;  %11212 = vmatprep.mubr.f32.mxu1 %v17840_v16  ;;  %v2203_v32 = vrot.slane %v20297_v10, %v19248_v15 }
 0x263   : > { %v7381_v33 = vadd.f32 %v7380_v62, %v2183_v11  ;;  %v7312_v5 = vadd.f32 %v7311_v0, %v2179_v34  ;;  %v7382_v3 = vpop.f32.mrb[47].mxu1  ;;  %17116 = vmatpush1.bf16.msk.msra.mxu0 %vm18389_vm2, %v17114_v41  ;;  %v17134_v11 = vpack.c.bf16 %v1669_v20, %v1398_v60  ;;  %v860_v34 = vld [vmem:[%s18393_s4 + $0x680] sm:$0xff]  ;;  %v862_v41 = vld [vmem:[%s18393_s4 + $0x690] sm:$0xff]  ;;  %v1675_v60 = vld [vmem:[%s18393_s4 + $0x1ff8] sm:$0x1] }
 0x264   : > { %v14564_v14 = vcombine.low %v14556_v22, %v14563_v58  ;;  %v13724_v18 = vmax.f32 %v7310_v61, 0.0  ;;  %v7383_v19 = vadd.f32 %v7382_v3, %v2187_v39  ;;  %17126 = vmatpush1.bf16.msk.msra.mxu1 %vm18389_vm2, %v17124_v45  ;;  %17128 = vmatprep.subr.bf16.mxu0 %v17127_v47  ;;  %v1131_v39 = vld [vmem:[%s18393_s4 + $0xef8] sm:$0xff]  ;;  %v17157_v47 = vpack.c.bf16 %v1134_v35, %v863_v30  ;;  %v865_v20 = vld [vmem:[%s18393_s4 + $0x6a8] sm:$0xff] }
 0x265   : > { %v13726_v50 = vmax.f32 %v7381_v33, 0.0  ;;  %v13725_v63 = vmax.f32 %v7312_v5, 0.0  ;;  %17138 = vmatprep.subr.bf16.mxu1 %v17137_v25  ;;  %v17149_v0 = vpack.c.bf16 %v1131_v39, %v860_v34  ;;  %v17159_v1 = vpack.c.bf16 %v1133_v42, %v862_v41  ;;  %v1137_v34 = vld [vmem:[%s18393_s4 + $0xf28] sm:$0xff]  ;;  %v1678_v39 = vld [vmem:[%s18393_s4 + $0x2010] sm:$0x1] }
 0x266   : > { %15419 = vst [vmem:[%s19355_s26 + $0xb0] sm:$0xff] %v14564_v14  ;;  %v13727_v4 = vmax.f32 %v7383_v19, 0.0  ;;  %15973 = vmatmul.mubr.msk.f32.vlgmr.msra.gmra.mrb[100].mxu0 %vm3159_vm3, %v20136_v56  ;;  %v17151_v3 = vpack.c.bf16 %v1674_v49, %v1403_v48  ;;  %v1404_v14 = vld [vmem:[%s18393_s4 + $0x1780] sm:$0xff] }
 0x267   : > { %v14565_v31 = vcombine.low %v13724_v18, %v13725_v63  ;;  %15976 = vmatmul.mubr.msk.f32.vlgmr.msra.gmra.mrb[100].mxu1 %vm3159_vm3, %v20136_v56  ;;  %17130 = vmatpush1.bf16.msra.mxu0 %v17129_v9  ;;  %v1402_v9 = vld [vmem:[%s18393_s4 + $0x1770] sm:$0xff]  ;;  %v2207_v63 = vrot.slane %v20297_v10, %v19276_v40  ;;  %v17164_v35 = vpack.c.bf16 %v1675_v60, %v1404_v14  ;;  %v1680_v48 = vld [vmem:[%s18393_s4 + $0x2020] sm:$0x1] }
 0x268   : > { %v14566_v36 = vcombine.low %v13726_v50, %v13727_v4  ;;  %17140 = vmatpush1.bf16.msra.mxu1 %v17139_v8  ;;  %17133 = vmatprep.subr.msk.bf16.mxu0 %vm18389_vm2, %v17131_v44  ;;  %v1673_v8 = vld [vmem:[%s18393_s4 + $0x1fe8] sm:$0x1]  ;;  %v17161_v44 = vpack.c.bf16 %v1676_v57, %v1405_v55  ;;  %v1140_v14 = vld [vmem:[%s18393_s4 + $0xf40] sm:$0xff] }
 0x269   : > { %v14573_v43 = vrot.slane %v14565_v31, %v19304_v6  ;;  %v7451_v45 = vpop.f32.mrb[48].mxu0  ;;  %17143 = vmatprep.subr.msk.bf16.mxu1 %vm18389_vm2, %v17141_v23  ;;  %11283 = vmatprep.mubr.f32.mxu0 %v17840_v16  ;;  %v2215_v23 = vrot.slane %v20297_v10, %v19283_v46  ;;  %v17167_v31 = vpack.c.bf16 %v1136_v21, %v865_v20  ;;  %v20382_v55 = vld [vmem:[%s19220_s25 + $0x68] sm:$0xff]  ;;  %v871_v20 = vld [vmem:[%s18393_s4 + $0x6d8] sm:$0xff]  ;;  %v1142_v21 = vld [vmem:[%s18393_s4 + $0xf50] sm:$0xff] }
 0x26a   : > { %v14580_v51 = vrot.slane %v14566_v36, %v19304_v6  ;;  %v7452_v22 = vadd.f32 %v7451_v45, %v2191_v27  ;;  %v7522_v24 = vpop.f32.mrb[48].mxu1  ;;  %v7453_v25 = vpop.f32.mrb[49].mxu0  ;;  %11354 = vmatprep.mubr.f32.mxu1 %v17840_v16  ;;  %v2219_v27 = vrot.slane %v20297_v10, %v19296_v59  ;;  %v17177_v10 = vpack.c.bf16 %v1138_v26, %v867_v54 }
 0x26b   : > { %v7523_v58 = vadd.f32 %v7522_v24, %v2199_v28  ;;  %v7454_v61 = vadd.f32 %v7453_v25, %v2195_v29  ;;  %v7524_v62 = vpop.f32.mrb[49].mxu1  ;;  %17136 = vmatpush1.bf16.msk.msra.mxu0 %vm18389_vm2, %v17134_v11  ;;  %v17154_v28 = vpack.c.bf16 %v1673_v8, %v1402_v9  ;;  %v864_v29 = vld [vmem:[%s18393_s4 + $0x6a0] sm:$0xff]  ;;  %v866_v11 = vld [vmem:[%s18393_s4 + $0x6b0] sm:$0xff]  ;;  %v1679_v9 = vld [vmem:[%s18393_s4 + $0x2018] sm:$0x1]  ;;  %v2227_v60 = vrot.slane %v20382_v55, %v19243_v13 }
 0x26c   : > { %v14581_v2 = vcombine.low %v14573_v43, %v14580_v51  ;;  %v13728_v33 = vmax.f32 %v7452_v22, 0.0  ;;  %v7525_v5 = vadd.f32 %v7524_v62, %v2203_v32  ;;  %17146 = vmatpush1.bf16.msk.msra.mxu1 %vm18389_vm2, %v17144_v37  ;;  %17148 = vmatprep.subr.bf16.mxu0 %v17147_v38  ;;  %v1135_v32 = vld [vmem:[%s18393_s4 + $0xf18] sm:$0xff]  ;;  %v17179_v25 = vpack.c.bf16 %v1137_v34, %v866_v11  ;;  %v869_v8 = vld [vmem:[%s18393_s4 + $0x6c8] sm:$0xff]  ;;  %v1682_v11 = vld [vmem:[%s18393_s4 + $0x2030] sm:$0x1] }
 0x26d   : > { %v13730_v18 = vmax.f32 %v7523_v58, 0.0  ;;  %v13729_v19 = vmax.f32 %v7454_v61, 0.0  ;;  %17158 = vmatprep.subr.bf16.mxu1 %v17157_v47  ;;  %v1407_v38 = vld [vmem:[%s18393_s4 + $0x1798] sm:$0xff]  ;;  %v1409_v47 = vld [vmem:[%s18393_s4 + $0x17a8] sm:$0xff]  ;;  %v17169_v24 = vpack.c.bf16 %v1135_v32, %v864_v29 }
 0x26e   : > { %15420 = vst [vmem:[%s19355_s26 + $0xb8] sm:$0xff] %v14581_v2  ;;  %v13731_v50 = vmax.f32 %v7525_v5, 0.0  ;;  %15979 = vmatmul.mubr.msk.f32.vlgmr.msra.gmra.mrb[102].mxu0 %vm3159_vm3, %v20136_v56  ;;  %v17171_v62 = vpack.c.bf16 %v1678_v39, %v1407_v38  ;;  %v1408_v2 = vld [vmem:[%s18393_s4 + $0x17a0] sm:$0xff]  ;;  %v1141_v29 = vld [vmem:[%s18393_s4 + $0xf48] sm:$0xff]  ;;  %v1411_v32 = vld [vmem:[%s18393_s4 + $0x17b8] sm:$0xff] }
 0x26f   : > { %v14582_v4 = vcombine.low %v13728_v33, %v13729_v19  ;;  %15982 = vmatmul.mubr.msk.f32.vlgmr.msra.gmra.mrb[102].mxu1 %vm3159_vm3, %v20136_v56  ;;  %17150 = vmatpush1.bf16.msra.mxu0 %v17149_v0  ;;  %v1406_v0 = vld [vmem:[%s18393_s4 + $0x1790] sm:$0xff]  ;;  %v2223_v19 = vrot.slane %v20382_v55, %v19230_v7  ;;  %v17184_v26 = vpack.c.bf16 %v1679_v9, %v1408_v2  ;;  %v1413_v38 = vld [vmem:[%s18393_s4 + $0x17c8] sm:$0xff]  ;;  %v1684_v39 = vld [vmem:[%s18393_s4 + $0x2040] sm:$0x1] }
 0x270   : > { %v14583_v30 = vcombine.low %v13730_v18, %v13731_v50  ;;  %17160 = vmatpush1.bf16.msra.mxu1 %v17159_v1  ;;  %17153 = vmatprep.subr.msk.bf16.mxu0 %vm18389_vm2, %v17151_v3  ;;  %v1677_v1 = vld [vmem:[%s18393_s4 + $0x2008] sm:$0x1]  ;;  %v17181_v3 = vpack.c.bf16 %v1680_v48, %v1409_v47  ;;  %v1144_v2 = vld [vmem:[%s18393_s4 + $0xf60] sm:$0xff]  ;;  %v2243_v9 = vrot.slane %v20382_v55, %v19289_v52 }
 0x271   : > { %v14590_v36 = vrot.slane %v14582_v4, %v19304_v6  ;;  %v7593_v37 = vpop.f32.mrb[50].mxu0  ;;  %17163 = vmatprep.subr.msk.bf16.mxu1 %vm18389_vm2, %v17161_v44  ;;  %11425 = vmatprep.mubr.f32.mxu0 %v17840_v16  ;;  %v2231_v44 = vrot.slane %v20382_v55, %v19240_v12  ;;  %v17187_v4 = vpack.c.bf16 %v1140_v14, %v869_v8  ;;  %v875_v8 = vld [vmem:[%s18393_s4 + $0x6f8] sm:$0xff]  ;;  %v1146_v14 = vld [vmem:[%s18393_s4 + $0xf70] sm:$0xff] }
 0x272   : > { %v14597_v41 = vrot.slane %v14583_v30, %v19304_v6  ;;  %v7594_v42 = vadd.f32 %v7593_v37, %v2207_v63  ;;  %v7664_v43 = vpop.f32.mrb[50].mxu1  ;;  %v7595_v45 = vpop.f32.mrb[51].mxu0  ;;  %11496 = vmatprep.mubr.f32.mxu1 %v17840_v16  ;;  %v2235_v63 = vrot.slane %v20382_v55, %v19248_v15 }
 0x273   : > { %v7665_v49 = vadd.f32 %v7664_v43, %v2215_v23  ;;  %v7596_v51 = vadd.f32 %v7595_v45, %v2211_v53  ;;  %v7666_v22 = vpop.f32.mrb[51].mxu1  ;;  %17156 = vmatpush1.bf16.msk.msra.mxu0 %vm18389_vm2, %v17154_v28  ;;  %v17174_v23 = vpack.c.bf16 %v1677_v1, %v1406_v0  ;;  %v868_v53 = vld [vmem:[%s18393_s4 + $0x6c0] sm:$0xff]  ;;  %v870_v28 = vld [vmem:[%s18393_s4 + $0x6d0] sm:$0xff]  ;;  %v1683_v0 = vld [vmem:[%s18393_s4 + $0x2038] sm:$0x1] }
 0x274   : > { %v14598_v57 = vcombine.low %v14590_v36, %v14597_v41  ;;  %v13732_v58 = vmax.f32 %v7594_v42, 0.0  ;;  %v7667_v61 = vadd.f32 %v7666_v22, %v2219_v27  ;;  %17166 = vmatpush1.bf16.msk.msra.mxu1 %vm18389_vm2, %v17164_v35  ;;  %17168 = vmatprep.subr.bf16.mxu0 %v17167_v31  ;;  %v1139_v27 = vld [vmem:[%s18393_s4 + $0xf38] sm:$0xff]  ;;  %v17197_v31 = vpack.c.bf16 %v1142_v21, %v871_v20  ;;  %v873_v1 = vld [vmem:[%s18393_s4 + $0x6e8] sm:$0xff] }
 0x275   : > { %v13734_v33 = vmax.f32 %v7665_v49, 0.0  ;;  %v13733_v5 = vmax.f32 %v7596_v51, 0.0  ;;  %17178 = vmatprep.subr.bf16.mxu1 %v17177_v10  ;;  %v17189_v45 = vpack.c.bf16 %v1139_v27, %v868_v53  ;;  %v17199_v47 = vpack.c.bf16 %v1141_v29, %v870_v28  ;;  %v1145_v53 = vld [vmem:[%s18393_s4 + $0xf68] sm:$0xff]  ;;  %v1686_v27 = vld [vmem:[%s18393_s4 + $0x2050] sm:$0x1] }
 0x276   : > { %15421 = vst [vmem:[%s19355_s26 + $0xc0] sm:$0xff] %v14598_v57  ;;  %v13735_v18 = vmax.f32 %v7667_v61, 0.0  ;;  %15985 = vmatmul.mubr.msk.f32.vlgmr.msra.gmra.mrb[104].mxu0 %vm3159_vm3, %v20136_v56  ;;  %v17191_v22 = vpack.c.bf16 %v1682_v11, %v1411_v32  ;;  %v1412_v57 = vld [vmem:[%s18393_s4 + $0x17c0] sm:$0xff] }
 0x277   : > { %v14599_v50 = vcombine.low %v13732_v58, %v13733_v5  ;;  %15988 = vmatmul.mubr.msk.f32.vlgmr.msra.gmra.mrb[104].mxu1 %vm3159_vm3, %v20136_v56  ;;  %17170 = vmatpush1.bf16.msra.mxu0 %v17169_v24  ;;  %v1410_v24 = vld [vmem:[%s18393_s4 + $0x17b0] sm:$0xff]  ;;  %v2239_v5 = vrot.slane %v20382_v55, %v19276_v40  ;;  %v17204_v21 = vpack.c.bf16 %v1683_v0, %v1412_v57  ;;  %v1688_v32 = vld [vmem:[%s18393_s4 + $0x2060] sm:$0x1] }
 0x278   : > { %v14600_v54 = vcombine.low %v13734_v33, %v13735_v18  ;;  %17180 = vmatpush1.bf16.msra.mxu1 %v17179_v25  ;;  %17173 = vmatprep.subr.msk.bf16.mxu0 %vm18389_vm2, %v17171_v62  ;;  %v1681_v25 = vld [vmem:[%s18393_s4 + $0x2028] sm:$0x1]  ;;  %v17201_v62 = vpack.c.bf16 %v1684_v39, %v1413_v38  ;;  %v20467_v38 = vld [vmem:[%s19220_s25 + $0x70] sm:$0xff]  ;;  %v1148_v57 = vld [vmem:[%s18393_s4 + $0xf80] sm:$0xff] }
 0x279   : > { %v14607_v30 = vrot.slane %v14599_v50, %v19304_v6  ;;  %v7735_v35 = vpop.f32.mrb[52].mxu0  ;;  %17183 = vmatprep.subr.msk.bf16.mxu1 %vm18389_vm2, %v17181_v3  ;;  %11567 = vmatprep.mubr.f32.mxu0 %v17840_v16  ;;  %v2247_v3 = vrot.slane %v20382_v55, %v19283_v46  ;;  %v17207_v50 = vpack.c.bf16 %v1144_v2, %v873_v1  ;;  %v879_v1 = vld [vmem:[%s18393_s4 + $0x718] sm:$0xff]  ;;  %v1150_v2 = vld [vmem:[%s18393_s4 + $0xf90] sm:$0xff] }
 0x27a   : > { %v14614_v34 = vrot.slane %v14600_v54, %v19304_v6  ;;  %v7736_v36 = vadd.f32 %v7735_v35, %v2223_v19  ;;  %v7806_v37 = vpop.f32.mrb[52].mxu1  ;;  %v7737_v10 = vpop.f32.mrb[53].mxu0  ;;  %11638 = vmatprep.mubr.f32.mxu1 %v17840_v16  ;;  %v2251_v19 = vrot.slane %v20382_v55, %v19296_v59  ;;  %v17217_v55 = vpack.c.bf16 %v1146_v14, %v875_v8 }
 0x27b   : > { %v7807_v41 = vadd.f32 %v7806_v37, %v2231_v44  ;;  %v7738_v42 = vadd.f32 %v7737_v10, %v2227_v60  ;;  %v7808_v43 = vpop.f32.mrb[53].mxu1  ;;  %17176 = vmatpush1.bf16.msk.msra.mxu0 %vm18389_vm2, %v17174_v23  ;;  %v17194_v44 = vpack.c.bf16 %v1681_v25, %v1410_v24  ;;  %v872_v60 = vld [vmem:[%s18393_s4 + $0x6e0] sm:$0xff]  ;;  %v874_v23 = vld [vmem:[%s18393_s4 + $0x6f0] sm:$0xff]  ;;  %v1687_v24 = vld [vmem:[%s18393_s4 + $0x2058] sm:$0x1]  ;;  %v2259_v0 = vrot.slane %v20467_v38, %v19243_v13 }
 0x27c   : > { %v14615_v48 = vcombine.low %v14607_v30, %v14614_v34  ;;  %v13736_v49 = vmax.f32 %v7736_v36, 0.0  ;;  %v7809_v51 = vadd.f32 %v7808_v43, %v2235_v63  ;;  %17186 = vmatpush1.bf16.msk.msra.mxu1 %vm18389_vm2, %v17184_v26  ;;  %17188 = vmatprep.subr.bf16.mxu0 %v17187_v4  ;;  %v1143_v63 = vld [vmem:[%s18393_s4 + $0xf58] sm:$0xff]  ;;  %v17219_v10 = vpack.c.bf16 %v1145_v53, %v874_v23  ;;  %v877_v25 = vld [vmem:[%s18393_s4 + $0x708] sm:$0xff] }
 0x27d   : > { %v13738_v58 = vmax.f32 %v7807_v41, 0.0  ;;  %v13737_v61 = vmax.f32 %v7738_v42, 0.0  ;;  %17198 = vmatprep.subr.bf16.mxu1 %v17197_v31  ;;  %v1415_v4 = vld [vmem:[%s18393_s4 + $0x17d8] sm:$0xff]  ;;  %v1417_v31 = vld [vmem:[%s18393_s4 + $0x17e8] sm:$0xff]  ;;  %v17209_v37 = vpack.c.bf16 %v1143_v63, %v872_v60  ;;  %v1690_v63 = vld [vmem:[%s18393_s4 + $0x2070] sm:$0x1] }
 0x27e   : > { %15422 = vst [vmem:[%s19355_s26 + $0xc8] sm:$0xff] %v14615_v48  ;;  %v13739_v33 = vmax.f32 %v7809_v51, 0.0  ;;  %15991 = vmatmul.mubr.msk.f32.vlgmr.msra.gmra.mrb[106].mxu0 %vm3159_vm3, %v20136_v56  ;;  %v17211_v43 = vpack.c.bf16 %v1686_v27, %v1415_v4  ;;  %v1416_v48 = vld [vmem:[%s18393_s4 + $0x17e0] sm:$0xff] }
 0x27f   : > { %v14616_v18 = vcombine.low %v13736_v49, %v13737_v61  ;;  %15994 = vmatmul.mubr.msk.f32.vlgmr.msra.gmra.mrb[106].mxu1 %vm3159_vm3, %v20136_v56  ;;  %17190 = vmatpush1.bf16.msra.mxu0 %v17189_v45  ;;  %v1414_v45 = vld [vmem:[%s18393_s4 + $0x17d0] sm:$0xff]  ;;  %v2255_v61 = vrot.slane %v20467_v38, %v19230_v7  ;;  %v17224_v14 = vpack.c.bf16 %v1687_v24, %v1416_v48  ;;  %v1692_v4 = vld [vmem:[%s18393_s4 + $0x2080] sm:$0x1] }
 0x280   : > { %v14617_v20 = vcombine.low %v13738_v58, %v13739_v33  ;;  %17200 = vmatpush1.bf16.msra.mxu1 %v17199_v47  ;;  %17193 = vmatprep.subr.msk.bf16.mxu0 %vm18389_vm2, %v17191_v22  ;;  %v1685_v47 = vld [vmem:[%s18393_s4 + $0x2048] sm:$0x1]  ;;  %v17221_v22 = vpack.c.bf16 %v1688_v32, %v1417_v31  ;;  %v2275_v24 = vrot.slane %v20467_v38, %v19289_v52 }
 0x281   : > { %v14624_v54 = vrot.slane %v14616_v18, %v19304_v6  ;;  %v7877_v26 = vpop.f32.mrb[54].mxu0  ;;  %17203 = vmatprep.subr.msk.bf16.mxu1 %vm18389_vm2, %v17201_v62  ;;  %11709 = vmatprep.mubr.f32.mxu0 %v17840_v16  ;;  %v2263_v62 = vrot.slane %v20467_v38, %v19240_v12  ;;  %v17227_v18 = vpack.c.bf16 %v1148_v57, %v877_v25  ;;  %v883_v25 = vld [vmem:[%s18393_s4 + $0x738] sm:$0xff]  ;;  %v1154_v57 = vld [vmem:[%s18393_s4 + $0xfb0] sm:$0xff] }
 0x282   : > { %v14631_v28 = vrot.slane %v14617_v20, %v19304_v6  ;;  %v7878_v29 = vadd.f32 %v7877_v26, %v2239_v5  ;;  %v7948_v30 = vpop.f32.mrb[54].mxu1  ;;  %v7879_v35 = vpop.f32.mrb[55].mxu0  ;;  %11780 = vmatprep.mubr.f32.mxu1 %v17840_v16  ;;  %v2267_v5 = vrot.slane %v20467_v38, %v19248_v15 }
 0x283   : > { %v7949_v11 = vadd.f32 %v7948_v30, %v2247_v3  ;;  %v7880_v34 = vadd.f32 %v7879_v35, %v2243_v9  ;;  %v7950_v36 = vpop.f32.mrb[55].mxu1  ;;  %17196 = vmatpush1.bf16.msk.msra.mxu0 %vm18389_vm2, %v17194_v44  ;;  %v17214_v3 = vpack.c.bf16 %v1685_v47, %v1414_v45  ;;  %v876_v9 = vld [vmem:[%s18393_s4 + $0x700] sm:$0xff]  ;;  %v878_v44 = vld [vmem:[%s18393_s4 + $0x710] sm:$0xff]  ;;  %v881_v45 = vld [vmem:[%s18393_s4 + $0x728] sm:$0xff] }
 0x284   : > { %v14632_v39 = vcombine.low %v14624_v54, %v14631_v28  ;;  %v13740_v41 = vmax.f32 %v7878_v29, 0.0  ;;  %v7951_v42 = vadd.f32 %v7950_v36, %v2251_v19  ;;  %17206 = vmatpush1.bf16.msk.msra.mxu1 %vm18389_vm2, %v17204_v21  ;;  %17208 = vmatprep.subr.bf16.mxu0 %v17207_v50  ;;  %v1147_v19 = vld [vmem:[%s18393_s4 + $0xf78] sm:$0xff]  ;;  %v17237_v21 = vpack.c.bf16 %v1150_v2, %v879_v1  ;;  %v1418_v36 = vld [vmem:[%s18393_s4 + $0x17f0] sm:$0xff]  ;;  %v1152_v47 = vld [vmem:[%s18393_s4 + $0xfa0] sm:$0xff] }
 0x285   : > { %v13742_v49 = vmax.f32 %v7949_v11, 0.0  ;;  %v13741_v51 = vmax.f32 %v7880_v34, 0.0  ;;  %17218 = vmatprep.subr.bf16.mxu1 %v17217_v55  ;;  %v1419_v50 = vld [vmem:[%s18393_s4 + $0x17f8] sm:$0xff]  ;;  %v1421_v55 = vld [vmem:[%s18393_s4 + $0x1808] sm:$0xff]  ;;  %v17229_v30 = vpack.c.bf16 %v1147_v19, %v876_v9  ;;  %v1694_v19 = vld [vmem:[%s18393_s4 + $0x2090] sm:$0x1] }
 0x286   : > { %15423 = vst [vmem:[%s19355_s26 + $0xd0] sm:$0xff] %v14632_v39  ;;  %v13743_v58 = vmax.f32 %v7951_v42, 0.0  ;;  %15997 = vmatmul.mubr.msk.f32.vlgmr.msra.gmra.mrb[108].mxu0 %vm3159_vm3, %v20136_v56  ;;  %v17231_v34 = vpack.c.bf16 %v1690_v63, %v1419_v50  ;;  %v17241_v42 = vpack.c.bf16 %v1692_v4, %v1421_v55  ;;  %v1153_v9 = vld [vmem:[%s18393_s4 + $0xfa8] sm:$0xff]  ;;  %v1696_v50 = vld [vmem:[%s18393_s4 + $0x20a0] sm:$0x1]  ;;  %v20557_v55 = vld [vmem:[%s19220_s25 + $0x78] sm:$0xff] }
 0x287   : > { %v14633_v33 = vcombine.low %v13740_v41, %v13741_v51  ;;  %16000 = vmatmul.mubr.msk.f32.vlgmr.msra.gmra.mrb[108].mxu1 %vm3159_vm3, %v20136_v56  ;;  %17210 = vmatpush1.bf16.msra.mxu0 %v17209_v37  ;;  %v1149_v56 = vld [vmem:[%s18393_s4 + $0xf88] sm:$0xff]  ;;  %v2271_v51 = vrot.slane %v20467_v38, %v19276_v40 }
 0x288   : > { %v14634_v8 = vcombine.low %v13742_v49, %v13743_v58  ;;  %17220 = vmatpush1.bf16.msra.mxu1 %v17219_v10  ;;  %17213 = vmatprep.subr.msk.bf16.mxu0 %vm18389_vm2, %v17211_v43  ;;  %v17239_v35 = vpack.c.bf16 %v1149_v56, %v878_v44  ;;  %v1689_v37 = vld [vmem:[%s18393_s4 + $0x2068] sm:$0x1]  ;;  %v1420_v10 = vld [vmem:[%s18393_s4 + $0x1800] sm:$0xff]  ;;  %v1691_v43 = vld [vmem:[%s18393_s4 + $0x2078] sm:$0x1] }
 0x289   : > { %v14641_v60 = vrot.slane %v14633_v33, %v19304_v6  ;;  %v8019_v20 = vpop.f32.mrb[56].mxu0  ;;  %17223 = vmatprep.subr.msk.bf16.mxu1 %vm18389_vm2, %v17221_v22  ;;  %11851 = vmatprep.mubr.f32.mxu0 %v17840_v16  ;;  %v20522_v49 = vld [vmem:[%s21283_s0] sm:$0x3]  ;;  %v2279_v22 = vrot.slane %v20467_v38, %v19283_v46  ;;  %v17244_v2 = vpack.c.bf16 %v1691_v43, %v1420_v10 }
 0x28a   : > { %v14648_v23 = vrot.slane %v14634_v8, %v19304_v6  ;;  %v8020_v53 = vadd.f32 %v8019_v20, %v2255_v61  ;;  %v8090_v54 = vpop.f32.mrb[56].mxu1  ;;  %v8021_v26 = vpop.f32.mrb[57].mxu0  ;;  %11922 = vmatprep.mubr.f32.mxu1 %v17840_v16  ;;  %v2283_v61 = vrot.slane %v20467_v38, %v19296_v59  ;;  %v17247_v33 = vpack.c.bf16 %v1152_v47, %v881_v45  ;;  %v1156_v10 = vld [vmem:[%s18393_s4 + $0xfc0] sm:$0xff]  ;;  %v887_v45 = vld [vmem:[%s18393_s4 + $0x758] sm:$0xff]  ;;  %v1158_v47 = vld [vmem:[%s18393_s4 + $0xfd0] sm:$0xff] }
 0x28b   : > { %v8091_v27 = vadd.f32 %v8090_v54, %v2263_v62  ;;  %v8022_v28 = vadd.f32 %v8021_v26, %v2259_v0  ;;  %v8092_v29 = vpop.f32.mrb[57].mxu1  ;;  %17216 = vmatpush1.bf16.msk.msra.mxu0 %vm18389_vm2, %v17214_v3  ;;  %v17234_v62 = vpack.c.bf16 %v1689_v37, %v1418_v36  ;;  %v880_v0 = vld [vmem:[%s18393_s4 + $0x720] sm:$0xff]  ;;  %v882_v3 = vld [vmem:[%s18393_s4 + $0x730] sm:$0xff]  ;;  %v17257_v38 = vpack.c.bf16 %v1154_v57, %v883_v25  ;;  %v1695_v36 = vld [vmem:[%s18393_s4 + $0x2098] sm:$0x1] }
 0x28c   : > { %v14649_v31 = vcombine.low %v14641_v60, %v14648_v23  ;;  %v13744_v32 = vmax.f32 %v8020_v53, 0.0  ;;  %v8093_v11 = vadd.f32 %v8092_v29, %v2267_v5  ;;  %17226 = vmatpush1.bf16.msk.msra.mxu1 %vm18389_vm2, %v17224_v14  ;;  %17228 = vmatprep.subr.bf16.mxu0 %v17227_v18  ;;  %v1151_v5 = vld [vmem:[%s18393_s4 + $0xf98] sm:$0xff]  ;;  %v17259_v26 = vpack.c.bf16 %v1153_v9, %v882_v3  ;;  %v885_v37 = vld [vmem:[%s18393_s4 + $0x748] sm:$0xff]  ;;  %v1698_v3 = vld [vmem:[%s18393_s4 + $0x20b0] sm:$0x1] }
 0x28d   : > { %v13746_v39 = vmax.f32 %v8091_v27, 0.0  ;;  %v13745_v41 = vmax.f32 %v8022_v28, 0.0  ;;  %17238 = vmatprep.subr.bf16.mxu1 %v17237_v21  ;;  %v1423_v18 = vld [vmem:[%s18393_s4 + $0x1818] sm:$0xff]  ;;  %v1425_v21 = vld [vmem:[%s18393_s4 + $0x1828] sm:$0xff]  ;;  %v17249_v54 = vpack.c.bf16 %v1151_v5, %v880_v0  ;;  %v2291_v43 = vrot.slane %v20557_v55, %v19243_v13 }
 0x28e   : > { %15424 = vst [vmem:[%s19355_s26 + $0xd8] sm:$0xff] %v14649_v31  ;;  %v13747_v48 = vmax.f32 %v8093_v11, 0.0  ;;  %16003 = vmatmul.mubr.msk.f32.vlgmr.msra.gmra.mrb[110].mxu0 %vm3159_vm3, %v20522_v49  ;;  %v17251_v29 = vpack.c.bf16 %v1694_v19, %v1423_v18  ;;  %v1424_v31 = vld [vmem:[%s18393_s4 + $0x1820] sm:$0xff]  ;;  %v1157_v0 = vld [vmem:[%s18393_s4 + $0xfc8] sm:$0xff]  ;;  %v1427_v5 = vld [vmem:[%s18393_s4 + $0x1838] sm:$0xff] }
 0x28f   : > { %v14650_v58 = vcombine.low %v13744_v32, %v13745_v41  ;;  %16006 = vmatmul.mubr.msk.f32.vlgmr.msra.gmra.mrb[110].mxu1 %vm3159_vm3, %v20522_v49  ;;  %17230 = vmatpush1.bf16.msra.mxu0 %v17229_v30  ;;  %v1422_v30 = vld [vmem:[%s18393_s4 + $0x1810] sm:$0xff]  ;;  %v2287_v41 = vrot.slane %v20557_v55, %v19230_v7  ;;  %v17264_v57 = vpack.c.bf16 %v1695_v36, %v1424_v31  ;;  %v1429_v18 = vld [vmem:[%s18393_s4 + $0x1848] sm:$0xff]  ;;  %v1700_v19 = vld [vmem:[%s18393_s4 + $0x20c0] sm:$0x1] }
 0x290   : > { %v14651_v1 = vcombine.low %v13746_v39, %v13747_v48  ;;  %17240 = vmatpush1.bf16.msra.mxu1 %v17239_v35  ;;  %17233 = vmatprep.subr.msk.bf16.mxu0 %vm18389_vm2, %v17231_v34  ;;  %v1693_v35 = vld [vmem:[%s18393_s4 + $0x2088] sm:$0x1]  ;;  %v17261_v34 = vpack.c.bf16 %v1696_v50, %v1425_v21  ;;  %v1160_v31 = vld [vmem:[%s18393_s4 + $0xfe0] sm:$0xff]  ;;  %v2307_v36 = vrot.slane %v20557_v55, %v19289_v52 }
 0x291   : > { %v14658_v8 = vrot.slane %v14650_v58, %v19304_v6  ;;  %v8161_v14 = vpop.f32.mrb[58].mxu0  ;;  %17243 = vmatprep.subr.msk.bf16.mxu1 %vm18389_vm2, %v17241_v42  ;;  %11993 = vmatprep.mubr.f32.mxu0 %v17840_v16  ;;  %v2295_v42 = vrot.slane %v20557_v55, %v19240_v12  ;;  %v17267_v58 = vpack.c.bf16 %v1156_v10, %v885_v37  ;;  %v891_v37 = vld [vmem:[%s18393_s4 + $0x778] sm:$0xff]  ;;  %v1162_v10 = vld [vmem:[%s18393_s4 + $0xff0] sm:$0xff] }
 0x292   : > { %v14665_v44 = vrot.slane %v14651_v1, %v19304_v6  ;;  %v8162_v56 = vadd.f32 %v8161_v14, %v2271_v51  ;;  %v8232_v60 = vpop.f32.mrb[58].mxu1  ;;  %v8163_v20 = vpop.f32.mrb[59].mxu0  ;;  %12064 = vmatprep.mubr.f32.mxu1 %v17840_v16  ;;  %v2299_v51 = vrot.slane %v20557_v55, %v19248_v15 }
 0x293   : > { %v8233_v63 = vadd.f32 %v8232_v60, %v2279_v22  ;;  %v8164_v23 = vadd.f32 %v8163_v20, %v2275_v24  ;;  %v8234_v53 = vpop.f32.mrb[59].mxu1  ;;  %17236 = vmatpush1.bf16.msk.msra.mxu0 %vm18389_vm2, %v17234_v62  ;;  %v17254_v22 = vpack.c.bf16 %v1693_v35, %v1422_v30  ;;  %v884_v24 = vld [vmem:[%s18393_s4 + $0x740] sm:$0xff]  ;;  %v886_v62 = vld [vmem:[%s18393_s4 + $0x750] sm:$0xff]  ;;  %v1699_v30 = vld [vmem:[%s18393_s4 + $0x20b8] sm:$0x1] }
 0x294   : > { %v14666_v4 = vcombine.low %v14658_v8, %v14665_v44  ;;  %v13748_v27 = vmax.f32 %v8162_v56, 0.0  ;;  %v8235_v28 = vadd.f32 %v8234_v53, %v2283_v61  ;;  %17246 = vmatpush1.bf16.msk.msra.mxu1 %vm18389_vm2, %v17244_v2  ;;  %17248 = vmatprep.subr.bf16.mxu0 %v17247_v33  ;;  %v1155_v61 = vld [vmem:[%s18393_s4 + $0xfb8] sm:$0xff]  ;;  %v17277_v33 = vpack.c.bf16 %v1158_v47, %v887_v45  ;;  %v889_v35 = vld [vmem:[%s18393_s4 + $0x768] sm:$0xff] }
 0x295   : > { %v13750_v32 = vmax.f32 %v8233_v63, 0.0  ;;  %v13749_v11 = vmax.f32 %v8164_v23, 0.0  ;;  %17258 = vmatprep.subr.bf16.mxu1 %v17257_v38  ;;  %v17269_v20 = vpack.c.bf16 %v1155_v61, %v884_v24  ;;  %v17279_v21 = vpack.c.bf16 %v1157_v0, %v886_v62  ;;  %v1161_v24 = vld [vmem:[%s18393_s4 + $0xfe8] sm:$0xff]  ;;  %v1702_v61 = vld [vmem:[%s18393_s4 + $0x20d0] sm:$0x1] }
 0x296   : > { %15425 = vst [vmem:[%s19355_s26 + $0xe0] sm:$0xff] %v14666_v4  ;;  %v13751_v39 = vmax.f32 %v8235_v28, 0.0  ;;  %16009 = vmatmul.mubr.msk.f32.vlgmr.msra.gmra.mrb[112].mxu0 %vm3159_vm3, %v20522_v49  ;;  %v17271_v53 = vpack.c.bf16 %v1698_v3, %v1427_v5  ;;  %v1428_v4 = vld [vmem:[%s18393_s4 + $0x1840] sm:$0xff] }
 0x297   : > { %v14667_v48 = vcombine.low %v13748_v27, %v13749_v11  ;;  %16012 = vmatmul.mubr.msk.f32.vlgmr.msra.gmra.mrb[112].mxu1 %vm3159_vm3, %v20522_v49  ;;  %17250 = vmatpush1.bf16.msra.mxu0 %v17249_v54  ;;  %v1426_v54 = vld [vmem:[%s18393_s4 + $0x1830] sm:$0xff]  ;;  %v2303_v11 = vrot.slane %v20557_v55, %v19276_v40  ;;  %v17284_v47 = vpack.c.bf16 %v1699_v30, %v1428_v4  ;;  %v1704_v5 = vld [vmem:[%s18393_s4 + $0x20e0] sm:$0x1] }
 0x298   : > { %v14668_v25 = vcombine.low %v13750_v32, %v13751_v39  ;;  %17260 = vmatpush1.bf16.msra.mxu1 %v17259_v26  ;;  %17253 = vmatprep.subr.msk.bf16.mxu0 %vm18389_vm2, %v17251_v29  ;;  %v1697_v26 = vld [vmem:[%s18393_s4 + $0x20a8] sm:$0x1]  ;;  %v17281_v29 = vpack.c.bf16 %v1700_v19, %v1429_v18  ;;  %v20642_v18 = vld [vmem:[%s19220_s25 + $0x80] sm:$0xff] }
 0x299   : > { %v14675_v1 = vrot.slane %v14667_v48, %v19304_v6  ;;  %v8303_v2 = vpop.f32.mrb[60].mxu0  ;;  %17263 = vmatprep.subr.msk.bf16.mxu1 %vm18389_vm2, %v17261_v34  ;;  %12135 = vmatprep.mubr.f32.mxu0 %v17840_v16  ;;  %v2311_v34 = vrot.slane %v20557_v55, %v19283_v46  ;;  %v17287_v48 = vpack.c.bf16 %v1160_v31, %v889_v35  ;;  %v1164_v4 = vld [vmem:[%s18393_s4 + $0x1000] sm:$0xff]  ;;  %v895_v35 = vld [vmem:[%s18393_s4 + $0x798] sm:$0xff]  ;;  %v1166_v31 = vld [vmem:[%s18393_s4 + $0x1010] sm:$0xff] }
 0x29a   : > { %v14682_v9 = vrot.slane %v14668_v25, %v19304_v6  ;;  %v8304_v8 = vadd.f32 %v8303_v2, %v2287_v41  ;;  %v8374_v14 = vpop.f32.mrb[60].mxu1  ;;  %v8305_v38 = vpop.f32.mrb[61].mxu0  ;;  %12206 = vmatprep.mubr.f32.mxu1 %v17840_v16  ;;  %v2315_v41 = vrot.slane %v20557_v55, %v19296_v59  ;;  %v17297_v55 = vpack.c.bf16 %v1162_v10, %v891_v37 }
 0x29b   : > { %v8375_v44 = vadd.f32 %v8374_v14, %v2295_v42  ;;  %v8306_v56 = vadd.f32 %v8305_v38, %v2291_v43  ;;  %v8376_v60 = vpop.f32.mrb[61].mxu1  ;;  %17256 = vmatpush1.bf16.msk.msra.mxu0 %vm18389_vm2, %v17254_v22  ;;  %v17274_v42 = vpack.c.bf16 %v1697_v26, %v1426_v54  ;;  %v888_v43 = vld [vmem:[%s18393_s4 + $0x760] sm:$0xff]  ;;  %v890_v22 = vld [vmem:[%s18393_s4 + $0x770] sm:$0xff]  ;;  %v1703_v54 = vld [vmem:[%s18393_s4 + $0x20d8] sm:$0x1]  ;;  %v2323_v30 = vrot.slane %v20642_v18, %v19243_v13 }
 0x29c   : > { %v14683_v50 = vcombine.low %v14675_v1, %v14682_v9  ;;  %v13752_v63 = vmax.f32 %v8304_v8, 0.0  ;;  %v8377_v23 = vadd.f32 %v8376_v60, %v2299_v51  ;;  %17266 = vmatpush1.bf16.msk.msra.mxu1 %vm18389_vm2, %v17264_v57  ;;  %17268 = vmatprep.subr.bf16.mxu0 %v17267_v58  ;;  %v1159_v51 = vld [vmem:[%s18393_s4 + $0xfd8] sm:$0xff]  ;;  %v17299_v38 = vpack.c.bf16 %v1161_v24, %v890_v22  ;;  %v893_v26 = vld [vmem:[%s18393_s4 + $0x788] sm:$0xff]  ;;  %v1706_v22 = vld [vmem:[%s18393_s4 + $0x20f0] sm:$0x1] }
 0x29d   : > { %v13754_v27 = vmax.f32 %v8375_v44, 0.0  ;;  %v13753_v28 = vmax.f32 %v8306_v56, 0.0  ;;  %17278 = vmatprep.subr.bf16.mxu1 %v17277_v33  ;;  %v1431_v58 = vld [vmem:[%s18393_s4 + $0x1858] sm:$0xff]  ;;  %v1433_v33 = vld [vmem:[%s18393_s4 + $0x1868] sm:$0xff]  ;;  %v17289_v14 = vpack.c.bf16 %v1159_v51, %v888_v43 }
 0x29e   : > { %15426 = vst [vmem:[%s19355_s26 + $0xe8] sm:$0xff] %v14683_v50  ;;  %v13755_v32 = vmax.f32 %v8377_v23, 0.0  ;;  %16015 = vmatmul.mubr.msk.f32.vlgmr.msra.gmra.mrb[114].mxu0 %vm3159_vm3, %v20522_v49  ;;  %v17291_v60 = vpack.c.bf16 %v1702_v61, %v1431_v58  ;;  %v1432_v50 = vld [vmem:[%s18393_s4 + $0x1860] sm:$0xff]  ;;  %v1165_v43 = vld [vmem:[%s18393_s4 + $0x1008] sm:$0xff]  ;;  %v1435_v51 = vld [vmem:[%s18393_s4 + $0x1878] sm:$0xff] }
 0x29f   : > { %v14684_v39 = vcombine.low %v13752_v63, %v13753_v28  ;;  %16018 = vmatmul.mubr.msk.f32.vlgmr.msra.gmra.mrb[114].mxu1 %vm3159_vm3, %v20522_v49  ;;  %17270 = vmatpush1.bf16.msra.mxu0 %v17269_v20  ;;  %v1430_v20 = vld [vmem:[%s18393_s4 + $0x1850] sm:$0xff]  ;;  %v2319_v28 = vrot.slane %v20642_v18, %v19230_v7  ;;  %v17304_v10 = vpack.c.bf16 %v1703_v54, %v1432_v50  ;;  %v1437_v58 = vld [vmem:[%s18393_s4 + $0x1888] sm:$0xff]  ;;  %v1708_v61 = vld [vmem:[%s18393_s4 + $0x2100] sm:$0x1] }
 0x2a0   : > { %v14685_v45 = vcombine.low %v13754_v27, %v13755_v32  ;;  %17280 = vmatpush1.bf16.msra.mxu1 %v17279_v21  ;;  %17273 = vmatprep.subr.msk.bf16.mxu0 %vm18389_vm2, %v17271_v53  ;;  %v1701_v21 = vld [vmem:[%s18393_s4 + $0x20c8] sm:$0x1]  ;;  %v17301_v53 = vpack.c.bf16 %v1704_v5, %v1433_v33  ;;  %v1168_v50 = vld [vmem:[%s18393_s4 + $0x1020] sm:$0xff]  ;;  %v2339_v54 = vrot.slane %v20642_v18, %v19289_v52 }
 0x2a1   : > { %v14692_v25 = vrot.slane %v14684_v39, %v19304_v6  ;;  %v8445_v57 = vpop.f32.mrb[62].mxu0  ;;  %17283 = vmatprep.subr.msk.bf16.mxu1 %vm18389_vm2, %v17281_v29  ;;  %12277 = vmatprep.mubr.f32.mxu0 %v17840_v16  ;;  %v2327_v29 = vrot.slane %v20642_v18, %v19240_v12  ;;  %v17307_v39 = vpack.c.bf16 %v1164_v4, %v893_v26  ;;  %v899_v26 = vld [vmem:[%s18393_s4 + $0x7b8] sm:$0xff]  ;;  %v1170_v4 = vld [vmem:[%s18393_s4 + $0x1030] sm:$0xff] }
 0x2a2   : > { %v14699_v62 = vrot.slane %v14685_v45, %v19304_v6  ;;  %v8446_v0 = vadd.f32 %v8445_v57, %v2303_v11  ;;  %v8516_v1 = vpop.f32.mrb[62].mxu1  ;;  %v8447_v2 = vpop.f32.mrb[63].mxu0  ;;  %12348 = vmatprep.mubr.f32.mxu1 %v17840_v16  ;;  %v2331_v11 = vrot.slane %v20642_v18, %v19248_v15 }
 0x2a3   : > { %v8517_v3 = vadd.f32 %v8516_v1, %v2311_v34  ;;  %v8448_v9 = vadd.f32 %v8447_v2, %v2307_v36  ;;  %v8518_v8 = vpop.f32.mrb[63].mxu1  ;;  %17276 = vmatpush1.bf16.msk.msra.mxu0 %vm18389_vm2, %v17274_v42  ;;  %v17294_v34 = vpack.c.bf16 %v1701_v21, %v1430_v20  ;;  %v892_v36 = vld [vmem:[%s18393_s4 + $0x780] sm:$0xff]  ;;  %v894_v42 = vld [vmem:[%s18393_s4 + $0x790] sm:$0xff]  ;;  %v1707_v20 = vld [vmem:[%s18393_s4 + $0x20f8] sm:$0x1] }
 0x2a4   : > { %v14700_v19 = vcombine.low %v14692_v25, %v14699_v62  ;;  %v13756_v44 = vmax.f32 %v8446_v0, 0.0  ;;  %v8519_v56 = vadd.f32 %v8518_v8, %v2315_v41  ;;  %17286 = vmatpush1.bf16.msk.msra.mxu1 %vm18389_vm2, %v17284_v47  ;;  %17288 = vmatprep.subr.bf16.mxu0 %v17287_v48  ;;  %v1163_v41 = vld [vmem:[%s18393_s4 + $0xff8] sm:$0xff]  ;;  %v17317_v48 = vpack.c.bf16 %v1166_v31, %v895_v35  ;;  %v897_v21 = vld [vmem:[%s18393_s4 + $0x7a8] sm:$0xff] }
 0x2a5   : > { %v13758_v63 = vmax.f32 %v8517_v3, 0.0  ;;  %v13757_v23 = vmax.f32 %v8448_v9, 0.0  ;;  %17298 = vmatprep.subr.bf16.mxu1 %v17297_v55  ;;  %v17309_v2 = vpack.c.bf16 %v1163_v41, %v892_v36  ;;  %v17319_v33 = vpack.c.bf16 %v1165_v43, %v894_v42  ;;  %v1169_v36 = vld [vmem:[%s18393_s4 + $0x1028] sm:$0xff]  ;;  %v1710_v41 = vld [vmem:[%s18393_s4 + $0x2110] sm:$0x1] }
 0x2a6   : > { %15427 = vst [vmem:[%s19355_s26 + $0xf0] sm:$0xff] %v14700_v19  ;;  %v13759_v27 = vmax.f32 %v8519_v56, 0.0  ;;  %16021 = vmatmul.mubr.msk.f32.vlgmr.msra.gmra.mrb[116].mxu0 %vm3159_vm3, %v20522_v49  ;;  %v17311_v8 = vpack.c.bf16 %v1706_v22, %v1435_v51  ;;  %v1436_v19 = vld [vmem:[%s18393_s4 + $0x1880] sm:$0xff] }
 0x2a7   : > { %v14701_v32 = vcombine.low %v13756_v44, %v13757_v23  ;;  %16024 = vmatmul.mubr.msk.f32.vlgmr.msra.gmra.mrb[116].mxu1 %vm3159_vm3, %v20522_v49  ;;  %17290 = vmatpush1.bf16.msra.mxu0 %v17289_v14  ;;  %v1434_v14 = vld [vmem:[%s18393_s4 + $0x1870] sm:$0xff]  ;;  %v2335_v23 = vrot.slane %v20642_v18, %v19276_v40  ;;  %v17324_v31 = vpack.c.bf16 %v1707_v20, %v1436_v19  ;;  %v1712_v51 = vld [vmem:[%s18393_s4 + $0x2120] sm:$0x1] }
 0x2a8   : > { %v14702_v37 = vcombine.low %v13758_v63, %v13759_v27  ;;  %17300 = vmatpush1.bf16.msra.mxu1 %v17299_v38  ;;  %17293 = vmatprep.subr.msk.bf16.mxu0 %vm18389_vm2, %v17291_v60  ;;  %v1705_v38 = vld [vmem:[%s18393_s4 + $0x20e8] sm:$0x1]  ;;  %v17321_v60 = vpack.c.bf16 %v1708_v61, %v1437_v58  ;;  %v1172_v19 = vld [vmem:[%s18393_s4 + $0x1040] sm:$0xff] }
 0x2a9   : > { %v14709_v45 = vrot.slane %v14701_v32, %v19304_v6  ;;  %v8587_v47 = vpop.f32.mrb[64].mxu0  ;;  %17303 = vmatprep.subr.msk.bf16.mxu1 %vm18389_vm2, %v17301_v53  ;;  %12419 = vmatprep.mubr.f32.mxu0 %v17840_v16  ;;  %v2343_v53 = vrot.slane %v20642_v18, %v19283_v46  ;;  %v17327_v32 = vpack.c.bf16 %v1168_v50, %v897_v21  ;;  %v20727_v58 = vld [vmem:[%s19220_s25 + $0x88] sm:$0xff]  ;;  %v903_v21 = vld [vmem:[%s18393_s4 + $0x7d8] sm:$0xff]  ;;  %v1174_v50 = vld [vmem:[%s18393_s4 + $0x1050] sm:$0xff] }
 0x2aa   : > { %v14716_v24 = vrot.slane %v14702_v37, %v19304_v6  ;;  %v8588_v25 = vadd.f32 %v8587_v47, %v2319_v28  ;;  %v8658_v57 = vpop.f32.mrb[64].mxu1  ;;  %v8589_v55 = vpop.f32.mrb[65].mxu0  ;;  %12490 = vmatprep.mubr.f32.mxu1 %v17840_v16  ;;  %v2347_v28 = vrot.slane %v20642_v18, %v19296_v59  ;;  %v17337_v18 = vpack.c.bf16 %v1170_v4, %v899_v26 }
 0x2ab   : > { %v8659_v62 = vadd.f32 %v8658_v57, %v2327_v29  ;;  %v8590_v0 = vadd.f32 %v8589_v55, %v2323_v30  ;;  %v8660_v1 = vpop.f32.mrb[65].mxu1  ;;  %17296 = vmatpush1.bf16.msk.msra.mxu0 %vm18389_vm2, %v17294_v34  ;;  %v17314_v29 = vpack.c.bf16 %v1705_v38, %v1434_v14  ;;  %v896_v30 = vld [vmem:[%s18393_s4 + $0x7a0] sm:$0xff]  ;;  %v898_v34 = vld [vmem:[%s18393_s4 + $0x7b0] sm:$0xff]  ;;  %v1711_v14 = vld [vmem:[%s18393_s4 + $0x2118] sm:$0x1]  ;;  %v2355_v20 = vrot.slane %v20727_v58, %v19243_v13 }
 0x2ac   : > { %v14717_v5 = vcombine.low %v14709_v45, %v14716_v24  ;;  %v13760_v3 = vmax.f32 %v8588_v25, 0.0  ;;  %v8661_v9 = vadd.f32 %v8660_v1, %v2331_v11  ;;  %17306 = vmatpush1.bf16.msk.msra.mxu1 %vm18389_vm2, %v17304_v10  ;;  %17308 = vmatprep.subr.bf16.mxu0 %v17307_v39  ;;  %v1167_v11 = vld [vmem:[%s18393_s4 + $0x1018] sm:$0xff]  ;;  %v17339_v55 = vpack.c.bf16 %v1169_v36, %v898_v34  ;;  %v901_v38 = vld [vmem:[%s18393_s4 + $0x7c8] sm:$0xff]  ;;  %v1714_v34 = vld [vmem:[%s18393_s4 + $0x2130] sm:$0x1] }
 0x2ad   : > { %v13762_v44 = vmax.f32 %v8659_v62, 0.0  ;;  %v13761_v56 = vmax.f32 %v8590_v0, 0.0  ;;  %17318 = vmatprep.subr.bf16.mxu1 %v17317_v48  ;;  %v1439_v39 = vld [vmem:[%s18393_s4 + $0x1898] sm:$0xff]  ;;  %v1441_v48 = vld [vmem:[%s18393_s4 + $0x18a8] sm:$0xff]  ;;  %v17329_v57 = vpack.c.bf16 %v1167_v11, %v896_v30 }
 0x2ae   : > { %15428 = vst [vmem:[%s19355_s26 + $0xf8] sm:$0xff] %v14717_v5  ;;  %v13763_v63 = vmax.f32 %v8661_v9, 0.0  ;;  %16027 = vmatmul.mubr.msk.f32.vlgmr.msra.gmra.mrb[118].mxu0 %vm3159_vm3, %v20522_v49  ;;  %v17331_v1 = vpack.c.bf16 %v1710_v41, %v1439_v39  ;;  %v1440_v5 = vld [vmem:[%s18393_s4 + $0x18a0] sm:$0xff]  ;;  %v1173_v30 = vld [vmem:[%s18393_s4 + $0x1048] sm:$0xff]  ;;  %v1443_v11 = vld [vmem:[%s18393_s4 + $0x18b8] sm:$0xff] }
 0x2af   : > { %v14718_v27 = vcombine.low %v13760_v3, %v13761_v56  ;;  %16030 = vmatmul.mubr.msk.f32.vlgmr.msra.gmra.mrb[118].mxu1 %vm3159_vm3, %v20522_v49  ;;  %17310 = vmatpush1.bf16.msra.mxu0 %v17309_v2  ;;  %v1438_v2 = vld [vmem:[%s18393_s4 + $0x1890] sm:$0xff]  ;;  %v2351_v56 = vrot.slane %v20727_v58, %v19230_v7  ;;  %v17344_v4 = vpack.c.bf16 %v1711_v14, %v1440_v5  ;;  %v1445_v39 = vld [vmem:[%s18393_s4 + $0x18c8] sm:$0xff]  ;;  %v1716_v41 = vld [vmem:[%s18393_s4 + $0x2140] sm:$0x1] }
 0x2b0   : > { %v14719_v35 = vcombine.low %v13762_v44, %v13763_v63  ;;  %17320 = vmatpush1.bf16.msra.mxu1 %v17319_v33  ;;  %17313 = vmatprep.subr.msk.bf16.mxu0 %vm18389_vm2, %v17311_v8  ;;  %v1709_v33 = vld [vmem:[%s18393_s4 + $0x2108] sm:$0x1]  ;;  %v17341_v8 = vpack.c.bf16 %v1712_v51, %v1441_v48  ;;  %v1176_v5 = vld [vmem:[%s18393_s4 + $0x1060] sm:$0xff]  ;;  %v2371_v14 = vrot.slane %v20727_v58, %v19289_v52 }
 0x2b1   : > { %v14726_v37 = vrot.slane %v14718_v27, %v19304_v6  ;;  %v8729_v10 = vpop.f32.mrb[66].mxu0  ;;  %17323 = vmatprep.subr.msk.bf16.mxu1 %vm18389_vm2, %v17321_v60  ;;  %12561 = vmatprep.mubr.f32.mxu0 %v17840_v16  ;;  %v2359_v60 = vrot.slane %v20727_v58, %v19240_v12  ;;  %v17347_v27 = vpack.c.bf16 %v1172_v19, %v901_v38  ;;  %v907_v38 = vld [vmem:[%s18393_s4 + $0x7f8] sm:$0xff]  ;;  %v1178_v19 = vld [vmem:[%s18393_s4 + $0x1070] sm:$0xff] }
 0x2b2   : > { %v14733_v42 = vrot.slane %v14719_v35, %v19304_v6  ;;  %v8730_v43 = vadd.f32 %v8729_v10, %v2335_v23  ;;  %v8800_v45 = vpop.f32.mrb[66].mxu1  ;;  %v8731_v47 = vpop.f32.mrb[67].mxu0  ;;  %12632 = vmatprep.mubr.f32.mxu1 %v17840_v16  ;;  %v2363_v23 = vrot.slane %v20727_v58, %v19248_v15 }
 0x2b3   : > { %v8801_v22 = vadd.f32 %v8800_v45, %v2343_v53  ;;  %v8732_v24 = vadd.f32 %v8731_v47, %v2339_v54  ;;  %v8802_v25 = vpop.f32.mrb[67].mxu1  ;;  %17316 = vmatpush1.bf16.msk.msra.mxu0 %vm18389_vm2, %v17314_v29  ;;  %v17334_v53 = vpack.c.bf16 %v1709_v33, %v1438_v2  ;;  %v900_v54 = vld [vmem:[%s18393_s4 + $0x7c0] sm:$0xff]  ;;  %v902_v29 = vld [vmem:[%s18393_s4 + $0x7d0] sm:$0xff]  ;;  %v1715_v2 = vld [vmem:[%s18393_s4 + $0x2138] sm:$0x1] }
 0x2b4   : > { %v14734_v61 = vcombine.low %v14726_v37, %v14733_v42  ;;  %v13764_v62 = vmax.f32 %v8730_v43, 0.0  ;;  %v8803_v0 = vadd.f32 %v8802_v25, %v2347_v28  ;;  %17326 = vmatpush1.bf16.msk.msra.mxu1 %vm18389_vm2, %v17324_v31  ;;  %17328 = vmatprep.subr.bf16.mxu0 %v17327_v32  ;;  %v1171_v28 = vld [vmem:[%s18393_s4 + $0x1038] sm:$0xff]  ;;  %v17357_v32 = vpack.c.bf16 %v1174_v50, %v903_v21  ;;  %v905_v33 = vld [vmem:[%s18393_s4 + $0x7e8] sm:$0xff] }
 0x2b5   : > { %v13766_v3 = vmax.f32 %v8801_v22, 0.0  ;;  %v13765_v9 = vmax.f32 %v8732_v24, 0.0  ;;  %17338 = vmatprep.subr.bf16.mxu1 %v17337_v18  ;;  %v17349_v47 = vpack.c.bf16 %v1171_v28, %v900_v54  ;;  %v17359_v48 = vpack.c.bf16 %v1173_v30, %v902_v29  ;;  %v1177_v54 = vld [vmem:[%s18393_s4 + $0x1068] sm:$0xff]  ;;  %v1718_v28 = vld [vmem:[%s18393_s4 + $0x2150] sm:$0x1] }
 0x2b6   : > { %15429 = vst [vmem:[%s19355_s26 + $0x100] sm:$0xff] %v14734_v61  ;;  %v13767_v44 = vmax.f32 %v8803_v0, 0.0  ;;  %16033 = vmatmul.mubr.msk.f32.vlgmr.msra.gmra.mrb[120].mxu0 %vm3159_vm3, %v20522_v49  ;;  %v17351_v25 = vpack.c.bf16 %v1714_v34, %v1443_v11  ;;  %v1444_v61 = vld [vmem:[%s18393_s4 + $0x18c0] sm:$0xff] }
 0x2b7   : > { %v14735_v63 = vcombine.low %v13764_v62, %v13765_v9  ;;  %16036 = vmatmul.mubr.msk.f32.vlgmr.msra.gmra.mrb[120].mxu1 %vm3159_vm3, %v20522_v49  ;;  %17330 = vmatpush1.bf16.msra.mxu0 %v17329_v57  ;;  %v1442_v57 = vld [vmem:[%s18393_s4 + $0x18b0] sm:$0xff]  ;;  %v2367_v9 = vrot.slane %v20727_v58, %v19276_v40  ;;  %v17364_v50 = vpack.c.bf16 %v1715_v2, %v1444_v61  ;;  %v1720_v11 = vld [vmem:[%s18393_s4 + $0x2160] sm:$0x1] }
 0x2b8   : > { %v14736_v26 = vcombine.low %v13766_v3, %v13767_v44  ;;  %17340 = vmatpush1.bf16.msra.mxu1 %v17339_v55  ;;  %17333 = vmatprep.subr.msk.bf16.mxu0 %vm18389_vm2, %v17331_v1  ;;  %v1713_v55 = vld [vmem:[%s18393_s4 + $0x2128] sm:$0x1]  ;;  %v17361_v1 = vpack.c.bf16 %v1716_v41, %v1445_v39  ;;  %v20812_v39 = vld [vmem:[%s19220_s25 + $0x90] sm:$0xff]  ;;  %v1180_v61 = vld [vmem:[%s18393_s4 + $0x1080] sm:$0xff] }
 0x2b9   : > { %v14743_v35 = vrot.slane %v14735_v63, %v19304_v6  ;;  %v8871_v31 = vpop.f32.mrb[68].mxu0  ;;  %17343 = vmatprep.subr.msk.bf16.mxu1 %vm18389_vm2, %v17341_v8  ;;  %12703 = vmatprep.mubr.f32.mxu0 %v17840_v16  ;;  %v2375_v8 = vrot.slane %v20727_v58, %v19283_v46  ;;  %v17367_v63 = vpack.c.bf16 %v1176_v5, %v905_v33  ;;  %v911_v33 = vld [vmem:[%s18393_s4 + $0x818] sm:$0xff]  ;;  %v1182_v5 = vld [vmem:[%s18393_s4 + $0x1090] sm:$0xff] }
 0x2ba   : > { %v14750_v36 = vrot.slane %v14736_v26, %v19304_v6  ;;  %v8872_v37 = vadd.f32 %v8871_v31, %v2351_v56  ;;  %v8942_v10 = vpop.f32.mrb[68].mxu1  ;;  %v8873_v18 = vpop.f32.mrb[69].mxu0  ;;  %12774 = vmatprep.mubr.f32.mxu1 %v17840_v16  ;;  %v2379_v56 = vrot.slane %v20727_v58, %v19296_v59  ;;  %v17377_v58 = vpack.c.bf16 %v1178_v19, %v907_v38 }
 0x2bb   : > { %v8943_v42 = vadd.f32 %v8942_v10, %v2359_v60  ;;  %v8874_v43 = vadd.f32 %v8873_v18, %v2355_v20  ;;  %v8944_v45 = vpop.f32.mrb[69].mxu1  ;;  %17336 = vmatpush1.bf16.msk.msra.mxu0 %vm18389_vm2, %v17334_v53  ;;  %v17354_v60 = vpack.c.bf16 %v1713_v55, %v1442_v57  ;;  %v904_v20 = vld [vmem:[%s18393_s4 + $0x7e0] sm:$0xff]  ;;  %v906_v53 = vld [vmem:[%s18393_s4 + $0x7f0] sm:$0xff]  ;;  %v1719_v57 = vld [vmem:[%s18393_s4 + $0x2158] sm:$0x1]  ;;  %v2387_v2 = vrot.slane %v20812_v39, %v19243_v13 }
 0x2bc   : > { %v14751_v51 = vcombine.low %v14743_v35, %v14750_v36  ;;  %v13768_v22 = vmax.f32 %v8872_v37, 0.0  ;;  %v8945_v24 = vadd.f32 %v8944_v45, %v2363_v23  ;;  %17346 = vmatpush1.bf16.msk.msra.mxu1 %vm18389_vm2, %v17344_v4  ;;  %17348 = vmatprep.subr.bf16.mxu0 %v17347_v27  ;;  %v1175_v23 = vld [vmem:[%s18393_s4 + $0x1058] sm:$0xff]  ;;  %v17379_v18 = vpack.c.bf16 %v1177_v54, %v906_v53  ;;  %v909_v55 = vld [vmem:[%s18393_s4 + $0x808] sm:$0xff]  ;;  %v1722_v53 = vld [vmem:[%s18393_s4 + $0x2170] sm:$0x1] }
 0x2bd   : > { %v13770_v62 = vmax.f32 %v8943_v42, 0.0  ;;  %v13769_v0 = vmax.f32 %v8874_v43, 0.0  ;;  %17358 = vmatprep.subr.bf16.mxu1 %v17357_v32  ;;  %v1447_v27 = vld [vmem:[%s18393_s4 + $0x18d8] sm:$0xff]  ;;  %v1449_v32 = vld [vmem:[%s18393_s4 + $0x18e8] sm:$0xff]  ;;  %v17369_v10 = vpack.c.bf16 %v1175_v23, %v904_v20 }
 0x2be   : > { %15430 = vst [vmem:[%s19355_s26 + $0x108] sm:$0xff] %v14751_v51  ;;  %v13771_v3 = vmax.f32 %v8945_v24, 0.0  ;;  %16039 = vmatmul.mubr.msk.f32.vlgmr.msra.gmra.mrb[122].mxu0 %vm3159_vm3, %v20522_v49  ;;  %v17371_v45 = vpack.c.bf16 %v1718_v28, %v1447_v27  ;;  %v1448_v51 = vld [vmem:[%s18393_s4 + $0x18e0] sm:$0xff]  ;;  %v1181_v20 = vld [vmem:[%s18393_s4 + $0x1088] sm:$0xff]  ;;  %v1451_v23 = vld [vmem:[%s18393_s4 + $0x18f8] sm:$0xff] }
 0x2bf   : > { %v14752_v44 = vcombine.low %v13768_v22, %v13769_v0  ;;  %16042 = vmatmul.mubr.msk.f32.vlgmr.msra.gmra.mrb[122].mxu1 %vm3159_vm3, %v20522_v49  ;;  %17350 = vmatpush1.bf16.msra.mxu0 %v17349_v47  ;;  %v1446_v47 = vld [vmem:[%s18393_s4 + $0x18d0] sm:$0xff]  ;;  %v2383_v0 = vrot.slane %v20812_v39, %v19230_v7  ;;  %v17384_v19 = vpack.c.bf16 %v1719_v57, %v1448_v51  ;;  %v1453_v27 = vld [vmem:[%s18393_s4 + $0x1908] sm:$0xff]  ;;  %v1724_v28 = vld [vmem:[%s18393_s4 + $0x2180] sm:$0x1] }
 0x2c0   : > { %v14753_v21 = vcombine.low %v13770_v62, %v13771_v3  ;;  %17360 = vmatpush1.bf16.msra.mxu1 %v17359_v48  ;;  %17353 = vmatprep.subr.msk.bf16.mxu0 %vm18389_vm2, %v17351_v25  ;;  %v1717_v48 = vld [vmem:[%s18393_s4 + $0x2148] sm:$0x1]  ;;  %v17381_v25 = vpack.c.bf16 %v1720_v11, %v1449_v32  ;;  %v1184_v51 = vld [vmem:[%s18393_s4 + $0x10a0] sm:$0xff]  ;;  %v2403_v57 = vrot.slane %v20812_v39, %v19289_v52 }
 0x2c1   : > { %v14760_v26 = vrot.slane %v14752_v44, %v19304_v6  ;;  %v9013_v4 = vpop.f32.mrb[70].mxu0  ;;  %17363 = vmatprep.subr.msk.bf16.mxu1 %vm18389_vm2, %v17361_v1  ;;  %12845 = vmatprep.mubr.f32.mxu0 %v17840_v16  ;;  %v2391_v1 = vrot.slane %v20812_v39, %v19240_v12  ;;  %v17387_v44 = vpack.c.bf16 %v1180_v61, %v909_v55  ;;  %v915_v55 = vld [vmem:[%s18393_s4 + $0x838] sm:$0xff]  ;;  %v1186_v61 = vld [vmem:[%s18393_s4 + $0x10b0] sm:$0xff] }
 0x2c2   : > { %v14767_v29 = vrot.slane %v14753_v21, %v19304_v6  ;;  %v9014_v30 = vadd.f32 %v9013_v4, %v2367_v9  ;;  %v9084_v35 = vpop.f32.mrb[70].mxu1  ;;  %v9015_v31 = vpop.f32.mrb[71].mxu0  ;;  %12916 = vmatprep.mubr.f32.mxu1 %v17840_v16  ;;  %v2395_v9 = vrot.slane %v20812_v39, %v19248_v15 }
 0x2c3   : > { %v9085_v34 = vadd.f32 %v9084_v35, %v2375_v8  ;;  %v9016_v36 = vadd.f32 %v9015_v31, %v2371_v14  ;;  %v9086_v37 = vpop.f32.mrb[71].mxu1  ;;  %17356 = vmatpush1.bf16.msk.msra.mxu0 %vm18389_vm2, %v17354_v60  ;;  %v17374_v8 = vpack.c.bf16 %v1717_v48, %v1446_v47  ;;  %v908_v14 = vld [vmem:[%s18393_s4 + $0x800] sm:$0xff]  ;;  %v910_v60 = vld [vmem:[%s18393_s4 + $0x810] sm:$0xff]  ;;  %v1723_v47 = vld [vmem:[%s18393_s4 + $0x2178] sm:$0x1] }
 0x2c4   : > { %v14768_v41 = vcombine.low %v14760_v26, %v14767_v29  ;;  %v13772_v42 = vmax.f32 %v9014_v30, 0.0  ;;  %v9087_v43 = vadd.f32 %v9086_v37, %v2379_v56  ;;  %17366 = vmatpush1.bf16.msk.msra.mxu1 %vm18389_vm2, %v17364_v50  ;;  %17368 = vmatprep.subr.bf16.mxu0 %v17367_v63  ;;  %v1179_v56 = vld [vmem:[%s18393_s4 + $0x1078] sm:$0xff]  ;;  %v17397_v63 = vpack.c.bf16 %v1182_v5, %v911_v33  ;;  %v913_v48 = vld [vmem:[%s18393_s4 + $0x828] sm:$0xff] }
 0x2c5   : > { %v13774_v22 = vmax.f32 %v9085_v34, 0.0  ;;  %v13773_v24 = vmax.f32 %v9016_v36, 0.0  ;;  %17378 = vmatprep.subr.bf16.mxu1 %v17377_v58  ;;  %v17389_v31 = vpack.c.bf16 %v1179_v56, %v908_v14  ;;  %v17399_v32 = vpack.c.bf16 %v1181_v20, %v910_v60 }
 0x2c6   : > { %15431 = vst [vmem:[%s19355_s26 + $0x110] sm:$0xff] %v14768_v41  ;;  %v13775_v62 = vmax.f32 %v9087_v43, 0.0  ;;  %16045 = vmatmul.mubr.msk.f32.vlgmr.msra.gmra.mrb[124].mxu0 %vm3159_vm3, %v20522_v49  ;;  %v17391_v37 = vpack.c.bf16 %v1722_v53, %v1451_v23  ;;  %v1452_v41 = vld [vmem:[%s18393_s4 + $0x1900] sm:$0xff] }
 0x2c7   : > { %v14769_v3 = vcombine.low %v13772_v42, %v13773_v24  ;;  %16048 = vmatmul.mubr.msk.f32.vlgmr.msra.gmra.mrb[124].mxu1 %vm3159_vm3, %v20522_v49  ;;  %17370 = vmatpush1.bf16.msra.mxu0 %v17369_v10  ;;  %v1450_v10 = vld [vmem:[%s18393_s4 + $0x18f0] sm:$0xff]  ;;  %v2399_v24 = vrot.slane %v20812_v39, %v19276_v40  ;;  %v17404_v5 = vpack.c.bf16 %v1723_v47, %v1452_v41 }
 0x2c8   : > { %v14770_v38 = vcombine.low %v13774_v22, %v13775_v62  ;;  %17380 = vmatpush1.bf16.msra.mxu1 %v17379_v18  ;;  %17373 = vmatprep.subr.msk.bf16.mxu0 %vm18389_vm2, %v17371_v45  ;;  %v1721_v18 = vld [vmem:[%s18393_s4 + $0x2168] sm:$0x1]  ;;  %v17401_v45 = vpack.c.bf16 %v1724_v28, %v1453_v27 }
 0x2c9   : > { %v14777_v21 = vrot.slane %v14769_v3, %v19304_v6  ;;  %v9155_v50 = vpop.f32.mrb[72].mxu0  ;;  %17383 = vmatprep.subr.msk.bf16.mxu1 %vm18389_vm2, %v17381_v25  ;;  %12987 = vmatprep.mubr.f32.mxu0 %v17840_v16  ;;  %v2407_v25 = vrot.slane %v20812_v39, %v19283_v46  ;;  %v17407_v3 = vpack.c.bf16 %v1184_v51, %v913_v48  ;;  %v919_v48 = vld [vmem:[%s18393_s4 + $0x858] sm:$0xff]  ;;  %v1190_v51 = vld [vmem:[%s18393_s4 + $0x10d0] sm:$0xff] }
 0x2ca   : > { %v14784_v54 = vrot.slane %v14770_v38, %v19304_v6  ;;  %v9156_v26 = vadd.f32 %v9155_v50, %v2383_v0  ;;  %v9226_v4 = vpop.f32.mrb[72].mxu1  ;;  %v9157_v58 = vpop.f32.mrb[73].mxu0  ;;  %13058 = vmatprep.mubr.f32.mxu1 %v17840_v16  ;;  %v2411_v0 = vrot.slane %v20812_v39, %v19296_v59  ;;  %v17417_v39 = vpack.c.bf16 %v1186_v61, %v915_v55  ;;  %v1457_v50 = vld [vmem:[%s18393_s4 + $0x1928] sm:$0xff] }
 0x2cb   : > { %v9227_v29 = vadd.f32 %v9226_v4, %v2391_v1  ;;  %v9158_v30 = vadd.f32 %v9157_v58, %v2387_v2  ;;  %v9228_v35 = vpop.f32.mrb[73].mxu1  ;;  %17376 = vmatpush1.bf16.msk.msra.mxu0 %vm18389_vm2, %v17374_v8  ;;  %v17394_v1 = vpack.c.bf16 %v1721_v18, %v1450_v10  ;;  %v912_v2 = vld [vmem:[%s18393_s4 + $0x820] sm:$0xff]  ;;  %v914_v8 = vld [vmem:[%s18393_s4 + $0x830] sm:$0xff]  ;;  %v20897_v58 = vld [vmem:[%s19220_s25 + $0x98] sm:$0xff] }
 0x2cc   : > { %v14785_v11 = vcombine.low %v14777_v21, %v14784_v54  ;;  %v13776_v34 = vmax.f32 %v9156_v26, 0.0  ;;  %v9229_v36 = vadd.f32 %v9228_v35, %v2395_v9  ;;  %17386 = vmatpush1.bf16.msk.msra.mxu1 %vm18389_vm2, %v17384_v19  ;;  %17388 = vmatprep.subr.bf16.mxu0 %v17387_v44  ;;  %v1183_v9 = vld [vmem:[%s18393_s4 + $0x1098] sm:$0xff]  ;;  %v1726_v44 = vld [vmem:[%s18393_s4 + $0x2190] sm:$0x1]  ;;  %v917_v10 = vld [vmem:[%s18393_s4 + $0x848] sm:$0xff]  ;;  %v2419_v47 = vrot.slane %v20897_v58, %v19243_v13 }
 0x2cd   : > { %v13778_v42 = vmax.f32 %v9227_v29, 0.0  ;;  %v13777_v43 = vmax.f32 %v9158_v30, 0.0  ;;  %17398 = vmatprep.subr.bf16.mxu1 %v17397_v63  ;;  %v1455_v19 = vld [vmem:[%s18393_s4 + $0x1918] sm:$0xff]  ;;  %v1728_v63 = vld [vmem:[%s18393_s4 + $0x21a0] sm:$0x1]  ;;  %v17409_v26 = vpack.c.bf16 %v1183_v9, %v912_v2  ;;  %v1454_v35 = vld [vmem:[%s18393_s4 + $0x1910] sm:$0xff] }
 0x2ce   : > { %15432 = vst [vmem:[%s19355_s26 + $0x118] sm:$0xff] %v14785_v11  ;;  %v13779_v22 = vmax.f32 %v9229_v36, 0.0  ;;  %16051 = vmatmul.mubr.msk.f32.vlgmr.msra.gmra.mrb[126].mxu0 %vm3159_vm3, %v20522_v49  ;;  %v17411_v30 = vpack.c.bf16 %v1726_v44, %v1455_v19  ;;  %v17421_v36 = vpack.c.bf16 %v1728_v63, %v1457_v50  ;;  %v1188_v18 = vld [vmem:[%s18393_s4 + $0x10c0] sm:$0xff]  ;;  %v1189_v2 = vld [vmem:[%s18393_s4 + $0x10c8] sm:$0xff]  ;;  %v1459_v9 = vld [vmem:[%s18393_s4 + $0x1938] sm:$0xff] }
 0x2cf   : > { %v14786_v62 = vcombine.low %v13776_v34, %v13777_v43  ;;  %16054 = vmatmul.mubr.msk.f32.vlgmr.msra.gmra.mrb[126].mxu1 %vm3159_vm3, %v20522_v49  ;;  %17390 = vmatpush1.bf16.msra.mxu0 %v17389_v31  ;;  %v1185_v49 = vld [vmem:[%s18393_s4 + $0x10a8] sm:$0xff]  ;;  %v2415_v43 = vrot.slane %v20897_v58, %v19230_v7  ;;  %v1732_v44 = vld [vmem:[%s18393_s4 + $0x21c0] sm:$0x1] }
 0x2d0   : > { %v14787_v33 = vcombine.low %v13778_v42, %v13779_v22  ;;  %17400 = vmatpush1.bf16.msra.mxu1 %v17399_v32  ;;  %17393 = vmatprep.subr.msk.bf16.mxu0 %vm18389_vm2, %v17391_v37  ;;  %v17419_v4 = vpack.c.bf16 %v1185_v49, %v914_v8  ;;  %v1725_v31 = vld [vmem:[%s18393_s4 + $0x2188] sm:$0x1]  ;;  %v1456_v32 = vld [vmem:[%s18393_s4 + $0x1920] sm:$0xff]  ;;  %v1727_v37 = vld [vmem:[%s18393_s4 + $0x2198] sm:$0x1] }
 0x2d1   : > { %v14794_v14 = vrot.slane %v14786_v62, %v19304_v6  ;;  %v9297_v38 = vpop.f32.mrb[74].mxu0  ;;  %17403 = vmatprep.subr.msk.bf16.mxu1 %vm18389_vm2, %v17401_v45  ;;  %13129 = vmatprep.mubr.f32.mxu0 %v17840_v16  ;;  %v20911_v42 = vld [vmem:[%s21283_s0] sm:$0x3]  ;;  %v2423_v45 = vrot.slane %v20897_v58, %v19240_v12  ;;  %v17424_v61 = vpack.c.bf16 %v1727_v37, %v1456_v32  ;;  %v1730_v8 = vld [vmem:[%s18393_s4 + $0x21b0] sm:$0x1]  ;;  %v1461_v19 = vld [vmem:[%s18393_s4 + $0x1948] sm:$0xff] }
 0x2d2   : > { %v14801_v56 = vrot.slane %v14787_v33, %v19304_v6  ;;  %v9298_v60 = vadd.f32 %v9297_v38, %v2399_v24  ;;  %v9368_v20 = vpop.f32.mrb[74].mxu1  ;;  %v9299_v21 = vpop.f32.mrb[75].mxu0  ;;  %13200 = vmatprep.mubr.f32.mxu1 %v17840_v16  ;;  %v2427_v24 = vrot.slane %v20897_v58, %v19248_v15  ;;  %v17427_v62 = vpack.c.bf16 %v1188_v18, %v917_v10  ;;  %v1192_v32 = vld [vmem:[%s18393_s4 + $0x10e0] sm:$0xff] }
 0x2d3   : > { %v9369_v23 = vadd.f32 %v9368_v20, %v2407_v25  ;;  %v9300_v53 = vadd.f32 %v9299_v21, %v2403_v57  ;;  %v9370_v54 = vpop.f32.mrb[75].mxu1  ;;  %17396 = vmatpush1.bf16.msk.msra.mxu0 %vm18389_vm2, %v17394_v1  ;;  %v17414_v25 = vpack.c.bf16 %v1725_v31, %v1454_v35  ;;  %v916_v57 = vld [vmem:[%s18393_s4 + $0x840] sm:$0xff]  ;;  %v918_v1 = vld [vmem:[%s18393_s4 + $0x850] sm:$0xff]  ;;  %v1731_v35 = vld [vmem:[%s18393_s4 + $0x21b8] sm:$0x1]  ;;  %v2435_v37 = vrot.slane %v20897_v58, %v19289_v52 }
 0x2d4   : > { %v14802_v27 = vcombine.low %v14794_v14, %v14801_v56  ;;  %v13780_v28 = vmax.f32 %v9298_v60, 0.0  ;;  %v9371_v29 = vadd.f32 %v9370_v54, %v2411_v0  ;;  %17406 = vmatpush1.bf16.msk.msra.mxu1 %vm18389_vm2, %v17404_v5  ;;  %17408 = vmatprep.subr.bf16.mxu0 %v17407_v3  ;;  %v1187_v0 = vld [vmem:[%s18393_s4 + $0x10b8] sm:$0xff]  ;;  %v17437_v3 = vpack.c.bf16 %v1190_v51, %v919_v48  ;;  %v921_v31 = vld [vmem:[%s18393_s4 + $0x868] sm:$0xff] }
 0x2d5   : > { %v13782_v11 = vmax.f32 %v9369_v23, 0.0  ;;  %v13781_v34 = vmax.f32 %v9300_v53, 0.0  ;;  %17418 = vmatprep.subr.bf16.mxu1 %v17417_v39  ;;  %v17429_v21 = vpack.c.bf16 %v1187_v0, %v916_v57  ;;  %v17439_v50 = vpack.c.bf16 %v1189_v2, %v918_v1  ;;  %v1191_v51 = vld [vmem:[%s18393_s4 + $0x10d8] sm:$0xff] }
 0x2d6   : > { %15433 = vst [vmem:[%s19355_s26 + $0x120] sm:$0xff] %v14802_v27  ;;  %v13783_v41 = vmax.f32 %v9371_v29, 0.0  ;;  %16057 = vmatmul.mubr.msk.f32.vlgmr.msra.gmra.mrb[128].mxu0 %vm3159_vm3, %v20911_v42  ;;  %v17431_v54 = vpack.c.bf16 %v1730_v8, %v1459_v9  ;;  %v1460_v27 = vld [vmem:[%s18393_s4 + $0x1940] sm:$0xff]  ;;  %v2443_v18 = vrot.slane %v20897_v58, %v19296_v59  ;;  %v17447_v48 = vpack.c.bf16 %v1192_v32, %v921_v31 }
 0x2d7   : > { %v14803_v22 = vcombine.low %v13780_v28, %v13781_v34  ;;  %16060 = vmatmul.mubr.msk.f32.vlgmr.msra.gmra.mrb[128].mxu1 %vm3159_vm3, %v20911_v42  ;;  %17410 = vmatpush1.bf16.msra.mxu0 %v17409_v26  ;;  %v1458_v26 = vld [vmem:[%s18393_s4 + $0x1930] sm:$0xff]  ;;  %v2431_v34 = vrot.slane %v20897_v58, %v19276_v40  ;;  %v20983_v9 = vld [vmem:[%s19220_s25 + $0xa0] sm:$0xff] }
 0x2d8   : > { %v14804_v55 = vcombine.low %v13782_v11, %v13783_v41  ;;  %17420 = vmatpush1.bf16.msra.mxu1 %v17419_v4  ;;  %17413 = vmatprep.subr.msk.bf16.mxu0 %vm18389_vm2, %v17411_v30  ;;  %v1729_v4 = vld [vmem:[%s18393_s4 + $0x21a8] sm:$0x1]  ;;  %v17441_v30 = vpack.c.bf16 %v1732_v44, %v1461_v19  ;;  %v1462_v19 = vld [vmem:[%s18393_s4 + $0x1950] sm:$0xff]  ;;  %v2467_v17 = vrot.slane %v20983_v9, %v19289_v52 }
 0x2d9   : > { %v14811_v33 = vrot.slane %v14803_v22, %v19304_v6  ;;  %v9439_v5 = vpop.f32.mrb[76].mxu0  ;;  %17423 = vmatprep.subr.msk.bf16.mxu1 %vm18389_vm2, %v17421_v36  ;;  %13271 = vmatprep.mubr.f32.mxu0 %v17840_v16  ;;  %v2439_v36 = vrot.slane %v20897_v58, %v19283_v46  ;;  %v17434_v41 = vpack.c.bf16 %v1729_v4, %v1458_v26  ;;  %v922_v22 = vld [vmem:[%s18393_s4 + $0x870] sm:$0xff]  ;;  %v1463_v58 = vld [vmem:[%s18393_s4 + $0x1958] sm:$0xff]  ;;  %v1733_v44 = vld [vmem:[%s18393_s4 + $0x21c8] sm:$0x1] }
 0x2da   : > { %v14818_v49 = vrot.slane %v14804_v55, %v19304_v6  ;;  %v9440_v14 = vadd.f32 %v9439_v5, %v2415_v43  ;;  %v9510_v38 = vpop.f32.mrb[76].mxu1  ;;  %v9441_v39 = vpop.f32.mrb[77].mxu0  ;;  %13342 = vmatprep.mubr.f32.mxu1 %v17840_v16  ;;  %v920_v43 = vld [vmem:[%s18393_s4 + $0x860] sm:$0xff]  ;;  %v1734_v55 = vld [vmem:[%s18393_s4 + $0x21d0] sm:$0x1]  ;;  %v2451_v26 = vrot.slane %v20983_v9, %v19243_v13  ;;  %v17454_v4 = vpack.c.bf16 %v1733_v44, %v1462_v19 }
 0x2db   : > { %v9511_v56 = vadd.f32 %v9510_v38, %v2423_v45  ;;  %v9442_v60 = vadd.f32 %v9441_v39, %v2419_v47  ;;  %v9512_v20 = vpop.f32.mrb[77].mxu1  ;;  %17416 = vmatpush1.bf16.msk.msra.mxu0 %vm18389_vm2, %v17414_v25  ;;  %v17444_v47 = vpack.c.bf16 %v1731_v35, %v1460_v27  ;;  %v17451_v39 = vpack.c.bf16 %v1734_v55, %v1463_v58 }
 0x2dc   : > { %v14819_v63 = vcombine.low %v14811_v33, %v14818_v49  ;;  %v13784_v23 = vmax.f32 %v9440_v14, 0.0  ;;  %v9513_v53 = vadd.f32 %v9512_v20, %v2427_v24  ;;  %17426 = vmatpush1.bf16.msk.msra.mxu1 %vm18389_vm2, %v17424_v61  ;;  %17428 = vmatprep.subr.bf16.mxu0 %v17427_v62  ;;  %v1193_v24 = vld [vmem:[%s18393_s4 + $0x10e8] sm:$0xff]  ;;  %v17843_v20 = vmov 0.0|0.0  }
 0x2dd   : > { %v13786_v28 = vmax.f32 %v9511_v56, 0.0  ;;  %v13785_v29 = vmax.f32 %v9442_v60, 0.0  ;;  %17438 = vmatprep.subr.bf16.mxu1 %v17437_v3  ;;  %v17449_v3 = vpack.c.bf16 %v1191_v51, %v920_v43  ;;  %v17458_v8 = vpack.c.bf16 %v1193_v24, %v922_v22 }
 0x2de   : > { %15434 = vst [vmem:[%s19355_s26 + $0x128] sm:$0xff] %v14819_v63  ;;  %v13787_v11 = vmax.f32 %v9513_v53, 0.0  ;;  %16063 = vmatmul.mubr.msk.f32.vlgmr.msra.gmra.mrb[130].mxu0 %vm3159_vm3, %v20911_v42  ;;  %v2455_v53 = vrot.slane %v20983_v9, %v19240_v12  ;;  %v2471_v22 = vrot.slane %v20983_v9, %v19283_v46 }
 0x2df   : > { %v14820_v10 = vcombine.low %v13784_v23, %v13785_v29  ;;  %16066 = vmatmul.mubr.msk.f32.vlgmr.msra.gmra.mrb[130].mxu1 %vm3159_vm3, %v20911_v42  ;;  %17430 = vmatpush1.bf16.msra.mxu0 %v17429_v21  ;;  %v1464_v21 = vld [vmem:[%s18393_s4 + $0x1960] sm:$0xff]  ;;  %v2447_v23 = vrot.slane %v20983_v9, %v19230_v7 }
 0x2e0   : > { %v14821_v45 = vcombine.low %v13786_v28, %v13787_v11  ;;  %17440 = vmatpush1.bf16.msra.mxu1 %v17439_v50  ;;  %17433 = vmatprep.subr.msk.bf16.mxu0 %vm18389_vm2, %v17431_v54  ;;  %v1735_v50 = vld [vmem:[%s18393_s4 + $0x21d8] sm:$0x1]  ;;  %v2459_v28 = vrot.slane %v20983_v9, %v19248_v15  ;;  %s15466_s4 = scalar_lea.sflag [#allocation4], %s18384_s6 }
 0x2e1   : > { %v14828_v25 = vrot.slane %v14820_v10, %v19304_v6  ;;  %v9581_v57 = vpop.f32.mrb[78].mxu0  ;;  %17443 = vmatprep.subr.msk.bf16.mxu1 %vm18389_vm2, %v17441_v30  ;;  %13413 = vmatprep.mubr.f32.mxu0 %v17840_v16  ;;  %v17461_v29 = vpack.c.bf16 %v1735_v50, %v1464_v21 }
 0x2e2   : > { %v14835_v61 = vrot.slane %v14821_v45, %v19304_v6  ;;  %v9582_v62 = vadd.f32 %v9581_v57, %v2431_v34  ;;  %v9652_v0 = vpop.f32.mrb[78].mxu1  ;;  %v9583_v1 = vpop.f32.mrb[79].mxu0  ;;  %13484 = vmatprep.mubr.f32.mxu1 %v17840_v16 }
 0x2e3   : > { %v9653_v2 = vadd.f32 %v9652_v0, %v2439_v36  ;;  %v9584_v33 = vadd.f32 %v9583_v1, %v2435_v37  ;;  %v9654_v5 = vpop.f32.mrb[79].mxu1  ;;  %17436 = vmatpush1.bf16.msk.msra.mxu0 %vm18389_vm2, %v17434_v41 }
 0x2e4   : > { %v14836_v49 = vcombine.low %v14828_v25, %v14835_v61  ;;  %v13788_v14 = vmax.f32 %v9582_v62, 0.0  ;;  %v9655_v38 = vadd.f32 %v9654_v5, %v2443_v18  ;;  %17446 = vmatpush1.bf16.msk.msra.mxu1 %vm18389_vm2, %v17444_v47  ;;  %17448 = vmatprep.subr.bf16.mxu0 %v17447_v48  ;;  %v2475_v25 = vrot.slane %v20983_v9, %v19296_v59 }
 0x2e5   : > { %v13790_v56 = vmax.f32 %v9653_v2, 0.0  ;;  %v13789_v60 = vmax.f32 %v9584_v33, 0.0  ;;  %17457 = vmatprep.subr.bf16.mxu1 %v17843_v20  ;;  %v1757_v33 = vld [vmem:[%s19220_s25 + $0xa8] sm:$0xff] }
 0x2e6   : > { %15435 = vst [vmem:[%s19355_s26 + $0x130] sm:$0xff] %v14836_v49  ;;  %v13791_v63 = vmax.f32 %v9655_v38, 0.0  ;;  %16069 = vmatmul.mubr.msk.f32.vlgmr.msra.gmra.mrb[132].mxu0 %vm3159_vm3, %v20911_v42  ;;  %v2479_v38 = vrot.slane %v1757_v33, %v19230_v7  ;;  %v2487_v19 = vrot.slane %v1757_v33, %v19240_v12  ;;  %v2483_v44 = vrot.slane %v1757_v33, %v19243_v13 }
 0x2e7   : > { %v14837_v54 = vcombine.low %v13788_v14, %v13789_v60  ;;  %16072 = vmatmul.mubr.msk.f32.vlgmr.msra.gmra.mrb[132].mxu1 %vm3159_vm3, %v20911_v42  ;;  %17450 = vmatpush1.bf16.msra.mxu0 %v17449_v3  ;;  %v2491_v60 = vrot.slane %v1757_v33, %v19248_v15 }
 0x2e8   : > { %v14838_v27 = vcombine.low %v13790_v56, %v13791_v63  ;;  %17459 = vmatpush3.bf16.msra.mxu1 %v17458_v8  ;;  %17453 = vmatprep.subr.msk.bf16.mxu0 %vm18389_vm2, %v17451_v39 }
 0x2e9   : > { %v14845_v30 = vrot.slane %v14837_v54, %v19304_v6  ;;  %v9723_v35 = vpop.f32.mrb[80].mxu0  ;;  %17460 = vmatprep.subr.bf16.mxu1 %v17843_v20  ;;  %13555 = vmatprep.mubr.f32.mxu0 %v17840_v16 }
 0x2ea   : > { %v14852_v31 = vrot.slane %v14838_v27, %v19304_v6  ;;  %v9724_v32 = vadd.f32 %v9723_v35, %v2447_v23  ;;  %v9794_v11 = vpop.f32.mrb[80].mxu1  ;;  %v9725_v34 = vpop.f32.mrb[81].mxu0  ;;  %16104 = vmatprep.mubr.msk.f32.mxu1 %vm17844_vm4, %v17840_v16  ;;  %v2463_v16 = vrot.slane %v20983_v9, %v19276_v40 }
 0x2eb   : > { %v9795_v36 = vadd.f32 %v9794_v11, %v2455_v53  ;;  %v9726_v37 = vadd.f32 %v9725_v34, %v2451_v26  ;;  %v9796_v10 = vpop.f32.mrb[81].mxu1  ;;  %17456 = vmatpush1.bf16.msk.msra.mxu0 %vm18389_vm2, %v17454_v4  ;;  %v2503_v34 = vrot.slane %v1757_v33, %v19283_v46 }
 0x2ec   : > { %v14853_v18 = vcombine.low %v14845_v30, %v14852_v31  ;;  %v13792_v41 = vmax.f32 %v9724_v32, 0.0  ;;  %v9797_v43 = vadd.f32 %v9796_v10, %v2459_v28  ;;  %17463 = vmatpush3.bf16.msk.msra.mxu1 %vm18389_vm2, %v17461_v29  ;;  %v2495_v32 = vrot.slane %v1757_v33, %v19276_v40 }
 0x2ed   : > { %v13794_v45 = vmax.f32 %v9795_v36, 0.0  ;;  %v13793_v47 = vmax.f32 %v9726_v37, 0.0  ;;  %v2499_v36 = vrot.slane %v1757_v33, %v19289_v52  ;;  %v2507_v10 = vrot.slane %v1757_v33, %v19296_v59 }
 0x2ee   : > { %15436 = vst [vmem:[%s19355_s26 + $0x138] sm:$0xff] %v14853_v18  ;;  %v13795_v48 = vmax.f32 %v9797_v43, 0.0  ;;  %16075 = vmatmul.mubr.msk.f32.vlgmr.msra.gmra.mrb[134].mxu0 %vm3159_vm3, %v20911_v42 }
 0x2ef   : > { %v14854_v51 = vcombine.low %v13792_v41, %v13793_v47  ;;  %16105 = vmatmul.mubr.msk.f32.vlgmr.msra.gmra.mrb[134].mxu1 %vm3159_vm3, %v20911_v42 }
 0x2f0   : > { %v14855_v24 = vcombine.low %v13794_v45, %v13795_v48 }
 0x2f1   : > { %v14862_v57 = vrot.slane %v14854_v51, %v19304_v6  ;;  %v9865_v58 = vpop.f32.mrb[82].mxu0 }
 0x2f2   : > { %v14869_v55 = vrot.slane %v14855_v24, %v19304_v6  ;;  %v9866_v61 = vadd.f32 %v9865_v58, %v2463_v16  ;;  %v9936_v62 = vpop.f32.mrb[82].mxu1  ;;  %v9867_v0 = vpop.f32.mrb[83].mxu0 }
 0x2f3   : > { %v9937_v42 = vadd.f32 %v9936_v62, %v2471_v22  ;;  %v9868_v1 = vadd.f32 %v9867_v0, %v2467_v17  ;;  %v9938_v2 = vpop.f32.mrb[83].mxu1  ;;  %v1758_v17 = vld [vmem:[%s19220_s25 + $0xb0] sm:$0xff] }
 0x2f4   : > { %v14870_v5 = vcombine.low %v14862_v57, %v14869_v55  ;;  %v13796_v3 = vmax.f32 %v9866_v61, 0.0  ;;  %v9939_v8 = vadd.f32 %v9938_v2, %v2475_v25  ;;  %v2511_v62 = vrot.slane %v1758_v17, %v19230_v7 }
 0x2f5   : > { %v13798_v49 = vmax.f32 %v9937_v42, 0.0  ;;  %v13797_v14 = vmax.f32 %v9868_v1, 0.0  ;;  %v2519_v42 = vrot.slane %v1758_v17, %v19240_v12  ;;  %v2515_v1 = vrot.slane %v1758_v17, %v19243_v13 }
 0x2f6   : > { %15437 = vst [vmem:[%s19355_s26 + $0x140] sm:$0xff] %v14870_v5  ;;  %v13799_v9 = vmax.f32 %v9939_v8, 0.0  ;;  %v2523_v33 = vrot.slane %v1758_v17, %v19248_v15 }
 0x2f7   : > { %v14871_v39 = vcombine.low %v13796_v3, %v13797_v14 }
 0x2f8   : > { %v14872_v56 = vcombine.low %v13798_v49, %v13799_v9 }
 0x2f9   : > { %v14879_v20 = vrot.slane %v14871_v39, %v19304_v6  ;;  %v10007_v21 = vpop.f32.mrb[84].mxu0 }
 0x2fa   : > { %v14886_v50 = vrot.slane %v14872_v56, %v19304_v6  ;;  %v10008_v63 = vadd.f32 %v10007_v21, %v2479_v38  ;;  %v10078_v23 = vpop.f32.mrb[84].mxu1  ;;  %v10009_v53 = vpop.f32.mrb[85].mxu0 }
 0x2fb   : > { %v10079_v54 = vadd.f32 %v10078_v23, %v2487_v19  ;;  %v10010_v26 = vadd.f32 %v10009_v53, %v2483_v44  ;;  %v10080_v4 = vpop.f32.mrb[85].mxu1  ;;  %v2535_v53 = vrot.slane %v1758_v17, %v19283_v46 }
 0x2fc   : > { %v14887_v27 = vcombine.low %v14879_v20, %v14886_v50  ;;  %v13800_v28 = vmax.f32 %v10008_v63, 0.0  ;;  %v10081_v29 = vadd.f32 %v10080_v4, %v2491_v60  ;;  %v2527_v63 = vrot.slane %v1758_v17, %v19276_v40 }
 0x2fd   : > { %v13802_v30 = vmax.f32 %v10079_v54, 0.0  ;;  %v13801_v35 = vmax.f32 %v10010_v26, 0.0  ;;  %v2531_v54 = vrot.slane %v1758_v17, %v19289_v52  ;;  %v2539_v4 = vrot.slane %v1758_v17, %v19296_v59 }
 0x2fe   : > { %15438 = vst [vmem:[%s19355_s26 + $0x148] sm:$0xff] %v14887_v27  ;;  %v13803_v31 = vmax.f32 %v10081_v29, 0.0 }
 0x2ff   : > { %v14888_v11 = vcombine.low %v13800_v28, %v13801_v35 }
 0x300   : > { %v14889_v37 = vcombine.low %v13802_v30, %v13803_v31 }
 0x301   : > { %v14896_v18 = vrot.slane %v14888_v11, %v19304_v6  ;;  %v10149_v41 = vpop.f32.mrb[86].mxu0 }
 0x302   : > { %v14903_v43 = vrot.slane %v14889_v37, %v19304_v6  ;;  %v10150_v45 = vadd.f32 %v10149_v41, %v2495_v32  ;;  %v10220_v47 = vpop.f32.mrb[86].mxu1  ;;  %v10151_v48 = vpop.f32.mrb[87].mxu0 }
 0x303   : > { %v10221_v16 = vadd.f32 %v10220_v47, %v2503_v34  ;;  %v10152_v51 = vadd.f32 %v10151_v48, %v2499_v36  ;;  %v10222_v22 = vpop.f32.mrb[87].mxu1  ;;  %v1759_v36 = vld [vmem:[%s19220_s25 + $0xb8] sm:$0xff] }
 0x304   : > { %v14904_v24 = vcombine.low %v14896_v18, %v14903_v43  ;;  %v13804_v25 = vmax.f32 %v10150_v45, 0.0  ;;  %v10223_v57 = vadd.f32 %v10222_v22, %v2507_v10  ;;  %v2543_v47 = vrot.slane %v1759_v36, %v19230_v7 }
 0x305   : > { %v13806_v58 = vmax.f32 %v10221_v16, 0.0  ;;  %v13805_v55 = vmax.f32 %v10152_v51, 0.0  ;;  %v2551_v16 = vrot.slane %v1759_v36, %v19240_v12  ;;  %v2547_v51 = vrot.slane %v1759_v36, %v19243_v13 }
 0x306   : > { %15439 = vst [vmem:[%s19355_s26 + $0x150] sm:$0xff] %v14904_v24  ;;  %v13807_v61 = vmax.f32 %v10223_v57, 0.0  ;;  %v2555_v17 = vrot.slane %v1759_v36, %v19248_v15 }
 0x307   : > { %v14905_v0 = vcombine.low %v13804_v25, %v13805_v55 }
 0x308   : > { %v14906_v2 = vcombine.low %v13806_v58, %v13807_v61 }
 0x309   : > { %v14913_v5 = vrot.slane %v14905_v0, %v19304_v6  ;;  %v10291_v3 = vpop.f32.mrb[88].mxu0 }
 0x30a   : > { %v14920_v8 = vrot.slane %v14906_v2, %v19304_v6  ;;  %v10292_v49 = vadd.f32 %v10291_v3, %v2511_v62  ;;  %v10362_v14 = vpop.f32.mrb[88].mxu1  ;;  %v10293_v9 = vpop.f32.mrb[89].mxu0 }
 0x30b   : > { %v10363_v38 = vadd.f32 %v10362_v14, %v2519_v42  ;;  %v10294_v39 = vadd.f32 %v10293_v9, %v2515_v1  ;;  %v10364_v19 = vpop.f32.mrb[89].mxu1  ;;  %v2567_v9 = vrot.slane %v1759_v36, %v19283_v46 }
 0x30c   : > { %v14921_v44 = vcombine.low %v14913_v5, %v14920_v8  ;;  %v13808_v56 = vmax.f32 %v10292_v49, 0.0  ;;  %v10365_v60 = vadd.f32 %v10364_v19, %v2523_v33  ;;  %v2559_v49 = vrot.slane %v1759_v36, %v19276_v40 }
 0x30d   : > { %v13810_v20 = vmax.f32 %v10363_v38, 0.0  ;;  %v13809_v21 = vmax.f32 %v10294_v39, 0.0  ;;  %v2563_v38 = vrot.slane %v1759_v36, %v19289_v52  ;;  %v2571_v19 = vrot.slane %v1759_v36, %v19296_v59 }
 0x30e   : > { %15440 = vst [vmem:[%s19355_s26 + $0x158] sm:$0xff] %v14921_v44  ;;  %v13811_v50 = vmax.f32 %v10365_v60, 0.0 }
 0x30f   : > { %v14922_v23 = vcombine.low %v13808_v56, %v13809_v21 }
 0x310   : > { %v14923_v26 = vcombine.low %v13810_v20, %v13811_v50 }
 0x311   : > { %v14930_v27 = vrot.slane %v14922_v23, %v19304_v6  ;;  %v10433_v28 = vpop.f32.mrb[90].mxu0 }
 0x312   : > { %v14937_v29 = vrot.slane %v14923_v26, %v19304_v6  ;;  %v10434_v30 = vadd.f32 %v10433_v28, %v2527_v63  ;;  %v10504_v35 = vpop.f32.mrb[90].mxu1  ;;  %v10435_v31 = vpop.f32.mrb[91].mxu0 }
 0x313   : > { %v10505_v32 = vadd.f32 %v10504_v35, %v2535_v53  ;;  %v10436_v11 = vadd.f32 %v10435_v31, %v2531_v54  ;;  %v10506_v34 = vpop.f32.mrb[91].mxu1  ;;  %v1760_v54 = vld [vmem:[%s19220_s25 + $0xc0] sm:$0xff] }
 0x314   : > { %v14938_v37 = vcombine.low %v14930_v27, %v14937_v29  ;;  %v13812_v10 = vmax.f32 %v10434_v30, 0.0  ;;  %v10507_v18 = vadd.f32 %v10506_v34, %v2539_v4  ;;  %v2575_v35 = vrot.slane %v1760_v54, %v19230_v7 }
 0x315   : > { %v13814_v41 = vmax.f32 %v10505_v32, 0.0  ;;  %v13813_v43 = vmax.f32 %v10436_v11, 0.0  ;;  %v2583_v32 = vrot.slane %v1760_v54, %v19240_v12  ;;  %v2579_v11 = vrot.slane %v1760_v54, %v19243_v13 }
 0x316   : > { %15441 = vst [vmem:[%s19355_s26 + $0x160] sm:$0xff] %v14938_v37  ;;  %v13815_v45 = vmax.f32 %v10507_v18, 0.0  ;;  %v2587_v36 = vrot.slane %v1760_v54, %v19248_v15 }
 0x317   : > { %v14939_v48 = vcombine.low %v13812_v10, %v13813_v43 }
 0x318   : > { %v14940_v22 = vcombine.low %v13814_v41, %v13815_v45 }
 0x319   : > { %v14947_v24 = vrot.slane %v14939_v48, %v19304_v6  ;;  %v10575_v25 = vpop.f32.mrb[92].mxu0 }
 0x31a   : > { %v14954_v57 = vrot.slane %v14940_v22, %v19304_v6  ;;  %v10576_v58 = vadd.f32 %v10575_v25, %v2543_v47  ;;  %v10646_v55 = vpop.f32.mrb[92].mxu1  ;;  %v10577_v61 = vpop.f32.mrb[93].mxu0 }
 0x31b   : > { %v10647_v62 = vadd.f32 %v10646_v55, %v2551_v16  ;;  %v10578_v0 = vadd.f32 %v10577_v61, %v2547_v51  ;;  %v10648_v42 = vpop.f32.mrb[93].mxu1  ;;  %v2599_v61 = vrot.slane %v1760_v54, %v19283_v46 }
 0x31c   : > { %v14955_v1 = vcombine.low %v14947_v24, %v14954_v57  ;;  %v13816_v2 = vmax.f32 %v10576_v58, 0.0  ;;  %v10649_v33 = vadd.f32 %v10648_v42, %v2555_v17  ;;  %v2591_v58 = vrot.slane %v1760_v54, %v19276_v40 }
 0x31d   : > { %v13818_v5 = vmax.f32 %v10647_v62, 0.0  ;;  %v13817_v3 = vmax.f32 %v10578_v0, 0.0  ;;  %v2595_v62 = vrot.slane %v1760_v54, %v19289_v52  ;;  %v2603_v42 = vrot.slane %v1760_v54, %v19296_v59 }
 0x31e   : > { %15442 = vst [vmem:[%s19355_s26 + $0x168] sm:$0xff] %v14955_v1  ;;  %v13819_v8 = vmax.f32 %v10649_v33, 0.0 }
 0x31f   : > { %v14956_v14 = vcombine.low %v13816_v2, %v13817_v3 }
 0x320   : > { %v14957_v39 = vcombine.low %v13818_v5, %v13819_v8 }
 0x321   : > { %v14964_v44 = vrot.slane %v14956_v14, %v19304_v6  ;;  %v10717_v56 = vpop.f32.mrb[94].mxu0 }
 0x322   : > { %v14971_v60 = vrot.slane %v14957_v39, %v19304_v6  ;;  %v10718_v20 = vadd.f32 %v10717_v56, %v2559_v49  ;;  %v10788_v21 = vpop.f32.mrb[94].mxu1  ;;  %v10719_v50 = vpop.f32.mrb[95].mxu0 }
 0x323   : > { %v10789_v63 = vadd.f32 %v10788_v21, %v2567_v9  ;;  %v10720_v23 = vadd.f32 %v10719_v50, %v2563_v38  ;;  %v10790_v53 = vpop.f32.mrb[95].mxu1  ;;  %v1761_v38 = vld [vmem:[%s19220_s25 + $0xc8] sm:$0xff] }
 0x324   : > { %v14972_v26 = vcombine.low %v14964_v44, %v14971_v60  ;;  %v13820_v4 = vmax.f32 %v10718_v20, 0.0  ;;  %v10791_v27 = vadd.f32 %v10790_v53, %v2571_v19  ;;  %v2607_v21 = vrot.slane %v1761_v38, %v19230_v7 }
 0x325   : > { %v13822_v28 = vmax.f32 %v10789_v63, 0.0  ;;  %v13821_v29 = vmax.f32 %v10720_v23, 0.0  ;;  %v2615_v63 = vrot.slane %v1761_v38, %v19240_v12  ;;  %v2611_v23 = vrot.slane %v1761_v38, %v19243_v13 }
 0x326   : > { %15443 = vst [vmem:[%s19355_s26 + $0x170] sm:$0xff] %v14972_v26  ;;  %v13823_v30 = vmax.f32 %v10791_v27, 0.0  ;;  %v2619_v54 = vrot.slane %v1761_v38, %v19248_v15 }
 0x327   : > { %v14973_v31 = vcombine.low %v13820_v4, %v13821_v29 }
 0x328   : > { %v14974_v34 = vcombine.low %v13822_v28, %v13823_v30 }
 0x329   : > { %v14981_v37 = vrot.slane %v14973_v31, %v19304_v6  ;;  %v10859_v10 = vpop.f32.mrb[96].mxu0 }
 0x32a   : > { %v14988_v18 = vrot.slane %v14974_v34, %v19304_v6  ;;  %v10860_v41 = vadd.f32 %v10859_v10, %v2575_v35  ;;  %v10930_v43 = vpop.f32.mrb[96].mxu1  ;;  %v10861_v45 = vpop.f32.mrb[97].mxu0 }
 0x32b   : > { %v10931_v47 = vadd.f32 %v10930_v43, %v2583_v32  ;;  %v10862_v48 = vadd.f32 %v10861_v45, %v2579_v11  ;;  %v10932_v16 = vpop.f32.mrb[97].mxu1  ;;  %v2631_v45 = vrot.slane %v1761_v38, %v19283_v46 }
 0x32c   : > { %v14989_v51 = vcombine.low %v14981_v37, %v14988_v18  ;;  %v13824_v22 = vmax.f32 %v10860_v41, 0.0  ;;  %v10933_v17 = vadd.f32 %v10932_v16, %v2587_v36  ;;  %v2623_v41 = vrot.slane %v1761_v38, %v19276_v40 }
 0x32d   : > { %v13826_v24 = vmax.f32 %v10931_v47, 0.0  ;;  %v13825_v25 = vmax.f32 %v10862_v48, 0.0  ;;  %v2627_v47 = vrot.slane %v1761_v38, %v19289_v52  ;;  %v2635_v16 = vrot.slane %v1761_v38, %v19296_v59 }
 0x32e   : > { %15444 = vst [vmem:[%s19355_s26 + $0x178] sm:$0xff] %v14989_v51  ;;  %v13827_v57 = vmax.f32 %v10933_v17, 0.0 }
 0x32f   : > { %v14990_v55 = vcombine.low %v13824_v22, %v13825_v25 }
 0x330   : > { %v14991_v0 = vcombine.low %v13826_v24, %v13827_v57 }
 0x331   : > { %v14998_v1 = vrot.slane %v14990_v55, %v19304_v6  ;;  %v11001_v2 = vpop.f32.mrb[98].mxu0 }
 0x332   : > { %v15005_v33 = vrot.slane %v14991_v0, %v19304_v6  ;;  %v11002_v5 = vadd.f32 %v11001_v2, %v2591_v58  ;;  %v11072_v3 = vpop.f32.mrb[98].mxu1  ;;  %v11003_v8 = vpop.f32.mrb[99].mxu0 }
 0x333   : > { %v11073_v49 = vadd.f32 %v11072_v3, %v2599_v61  ;;  %v11004_v14 = vadd.f32 %v11003_v8, %v2595_v62  ;;  %v11074_v9 = vpop.f32.mrb[99].mxu1  ;;  %v1762_v62 = vld [vmem:[%s19220_s25 + $0xd0] sm:$0xff] }
 0x334   : > { %v15006_v39 = vcombine.low %v14998_v1, %v15005_v33  ;;  %v13828_v19 = vmax.f32 %v11002_v5, 0.0  ;;  %v11075_v44 = vadd.f32 %v11074_v9, %v2603_v42  ;;  %v2639_v3 = vrot.slane %v1762_v62, %v19230_v7 }
 0x335   : > { %v13830_v56 = vmax.f32 %v11073_v49, 0.0  ;;  %v13829_v60 = vmax.f32 %v11004_v14, 0.0  ;;  %v2647_v49 = vrot.slane %v1762_v62, %v19240_v12  ;;  %v2643_v14 = vrot.slane %v1762_v62, %v19243_v13 }
 0x336   : > { %15445 = vst [vmem:[%s19355_s26 + $0x180] sm:$0xff] %v15006_v39  ;;  %v13831_v20 = vmax.f32 %v11075_v44, 0.0  ;;  %v2651_v38 = vrot.slane %v1762_v62, %v19248_v15 }
 0x337   : > { %v15007_v50 = vcombine.low %v13828_v19, %v13829_v60 }
 0x338   : > { %v15008_v53 = vcombine.low %v13830_v56, %v13831_v20 }
 0x339   : > { %v15015_v26 = vrot.slane %v15007_v50, %v19304_v6  ;;  %v11143_v4 = vpop.f32.mrb[100].mxu0 }
 0x33a   : > { %v15022_v27 = vrot.slane %v15008_v53, %v19304_v6  ;;  %v11144_v28 = vadd.f32 %v11143_v4, %v2607_v21  ;;  %v11214_v29 = vpop.f32.mrb[100].mxu1  ;;  %v11145_v30 = vpop.f32.mrb[101].mxu0 }
 0x33b   : > { %v11215_v35 = vadd.f32 %v11214_v29, %v2615_v63  ;;  %v11146_v31 = vadd.f32 %v11145_v30, %v2611_v23  ;;  %v11216_v32 = vpop.f32.mrb[101].mxu1  ;;  %v2663_v30 = vrot.slane %v1762_v62, %v19283_v46 }
 0x33c   : > { %v15023_v11 = vcombine.low %v15015_v26, %v15022_v27  ;;  %v13832_v34 = vmax.f32 %v11144_v28, 0.0  ;;  %v11217_v36 = vadd.f32 %v11216_v32, %v2619_v54  ;;  %v2655_v28 = vrot.slane %v1762_v62, %v19276_v40 }
 0x33d   : > { %v13834_v37 = vmax.f32 %v11215_v35, 0.0  ;;  %v13833_v10 = vmax.f32 %v11146_v31, 0.0  ;;  %v2659_v35 = vrot.slane %v1762_v62, %v19289_v52  ;;  %v2667_v32 = vrot.slane %v1762_v62, %v19296_v59 }
 0x33e   : > { %15446 = vst [vmem:[%s19355_s26 + $0x188] sm:$0xff] %v15023_v11  ;;  %v13835_v18 = vmax.f32 %v11217_v36, 0.0 }
 0x33f   : > { %v15024_v43 = vcombine.low %v13832_v34, %v13833_v10 }
 0x340   : > { %v15025_v48 = vcombine.low %v13834_v37, %v13835_v18 }
 0x341   : > { %v15032_v51 = vrot.slane %v15024_v43, %v19304_v6  ;;  %v11285_v22 = vpop.f32.mrb[102].mxu0 }
 0x342   : > { %v15039_v17 = vrot.slane %v15025_v48, %v19304_v6  ;;  %v11286_v24 = vadd.f32 %v11285_v22, %v2623_v41  ;;  %v11356_v25 = vpop.f32.mrb[102].mxu1  ;;  %v11287_v57 = vpop.f32.mrb[103].mxu0 }
 0x343   : > { %v11357_v58 = vadd.f32 %v11356_v25, %v2631_v45  ;;  %v11288_v55 = vadd.f32 %v11287_v57, %v2627_v47  ;;  %v11358_v61 = vpop.f32.mrb[103].mxu1  ;;  %v1763_v47 = vld [vmem:[%s19220_s25 + $0xd8] sm:$0xff] }
 0x344   : > { %v15040_v0 = vcombine.low %v15032_v51, %v15039_v17  ;;  %v13836_v42 = vmax.f32 %v11286_v24, 0.0  ;;  %v11359_v1 = vadd.f32 %v11358_v61, %v2635_v16  ;;  %v2671_v25 = vrot.slane %v1763_v47, %v19230_v7 }
 0x345   : > { %v13838_v2 = vmax.f32 %v11357_v58, 0.0  ;;  %v13837_v33 = vmax.f32 %v11288_v55, 0.0  ;;  %v2679_v58 = vrot.slane %v1763_v47, %v19240_v12  ;;  %v2675_v55 = vrot.slane %v1763_v47, %v19243_v13 }
 0x346   : > { %15447 = vst [vmem:[%s19355_s26 + $0x190] sm:$0xff] %v15040_v0  ;;  %v13839_v5 = vmax.f32 %v11359_v1, 0.0  ;;  %v2683_v62 = vrot.slane %v1763_v47, %v19248_v15 }
 0x347   : > { %v15041_v8 = vcombine.low %v13836_v42, %v13837_v33 }
 0x348   : > { %v15042_v9 = vcombine.low %v13838_v2, %v13839_v5 }
 0x349   : > { %v15049_v39 = vrot.slane %v15041_v8, %v19304_v6  ;;  %v11427_v19 = vpop.f32.mrb[104].mxu0 }
 0x34a   : > { %v15056_v44 = vrot.slane %v15042_v9, %v19304_v6  ;;  %v11428_v56 = vadd.f32 %v11427_v19, %v2639_v3  ;;  %v11498_v60 = vpop.f32.mrb[104].mxu1  ;;  %v11429_v20 = vpop.f32.mrb[105].mxu0 }
 0x34b   : > { %v11499_v21 = vadd.f32 %v11498_v60, %v2647_v49  ;;  %v11430_v50 = vadd.f32 %v11429_v20, %v2643_v14  ;;  %v11500_v63 = vpop.f32.mrb[105].mxu1  ;;  %v2695_v20 = vrot.slane %v1763_v47, %v19283_v46 }
 0x34c   : > { %v15057_v23 = vcombine.low %v15049_v39, %v15056_v44  ;;  %v13840_v53 = vmax.f32 %v11428_v56, 0.0  ;;  %v11501_v54 = vadd.f32 %v11500_v63, %v2651_v38  ;;  %v2687_v56 = vrot.slane %v1763_v47, %v19276_v40 }
 0x34d   : > { %v13842_v26 = vmax.f32 %v11499_v21, 0.0  ;;  %v13841_v4 = vmax.f32 %v11430_v50, 0.0  ;;  %v2691_v21 = vrot.slane %v1763_v47, %v19289_v52  ;;  %v2699_v63 = vrot.slane %v1763_v47, %v19296_v59 }
 0x34e   : > { %15448 = vst [vmem:[%s19355_s26 + $0x198] sm:$0xff] %v15057_v23  ;;  %v13843_v27 = vmax.f32 %v11501_v54, 0.0 }
 0x34f   : > { %v15058_v29 = vcombine.low %v13840_v53, %v13841_v4 }
 0x350   : > { %v15059_v31 = vcombine.low %v13842_v26, %v13843_v27 }
 0x351   : > { %v15066_v11 = vrot.slane %v15058_v29, %v19304_v6  ;;  %v11569_v34 = vpop.f32.mrb[106].mxu0 }
 0x352   : > { %v15073_v36 = vrot.slane %v15059_v31, %v19304_v6  ;;  %v11570_v37 = vadd.f32 %v11569_v34, %v2655_v28  ;;  %v11640_v10 = vpop.f32.mrb[106].mxu1  ;;  %v11571_v18 = vpop.f32.mrb[107].mxu0 }
 0x353   : > { %v11641_v41 = vadd.f32 %v11640_v10, %v2663_v30  ;;  %v11572_v43 = vadd.f32 %v11571_v18, %v2659_v35  ;;  %v11642_v45 = vpop.f32.mrb[107].mxu1  ;;  %v1764_v35 = vld [vmem:[%s19220_s25 + $0xe0] sm:$0xff] }
 0x354   : > { %v15074_v48 = vcombine.low %v15066_v11, %v15073_v36  ;;  %v13844_v16 = vmax.f32 %v11570_v37, 0.0  ;;  %v11643_v51 = vadd.f32 %v11642_v45, %v2667_v32  ;;  %v2703_v10 = vrot.slane %v1764_v35, %v19230_v7 }
 0x355   : > { %v13846_v22 = vmax.f32 %v11641_v41, 0.0  ;;  %v13845_v17 = vmax.f32 %v11572_v43, 0.0  ;;  %v2711_v41 = vrot.slane %v1764_v35, %v19240_v12  ;;  %v2707_v43 = vrot.slane %v1764_v35, %v19243_v13 }
 0x356   : > { %15449 = vst [vmem:[%s19355_s26 + $0x1a0] sm:$0xff] %v15074_v48  ;;  %v13847_v24 = vmax.f32 %v11643_v51, 0.0  ;;  %v2715_v47 = vrot.slane %v1764_v35, %v19248_v15 }
 0x357   : > { %v15075_v57 = vcombine.low %v13844_v16, %v13845_v17 }
 0x358   : > { %v15076_v61 = vcombine.low %v13846_v22, %v13847_v24 }
 0x359   : > { %v15083_v0 = vrot.slane %v15075_v57, %v19304_v6  ;;  %v11711_v42 = vpop.f32.mrb[108].mxu0 }
 0x35a   : > { %v15090_v1 = vrot.slane %v15076_v61, %v19304_v6  ;;  %v11712_v2 = vadd.f32 %v11711_v42, %v2671_v25  ;;  %v11782_v33 = vpop.f32.mrb[108].mxu1  ;;  %v11713_v5 = vpop.f32.mrb[109].mxu0 }
 0x35b   : > { %v11783_v3 = vadd.f32 %v11782_v33, %v2679_v58  ;;  %v11714_v8 = vadd.f32 %v11713_v5, %v2675_v55  ;;  %v11784_v49 = vpop.f32.mrb[109].mxu1  ;;  %v2727_v5 = vrot.slane %v1764_v35, %v19283_v46 }
 0x35c   : > { %v15091_v14 = vcombine.low %v15083_v0, %v15090_v1  ;;  %v13848_v9 = vmax.f32 %v11712_v2, 0.0  ;;  %v11785_v38 = vadd.f32 %v11784_v49, %v2683_v62  ;;  %v2719_v2 = vrot.slane %v1764_v35, %v19276_v40 }
 0x35d   : > { %v13850_v39 = vmax.f32 %v11783_v3, 0.0  ;;  %v13849_v19 = vmax.f32 %v11714_v8, 0.0  ;;  %v2723_v3 = vrot.slane %v1764_v35, %v19289_v52  ;;  %v2731_v49 = vrot.slane %v1764_v35, %v19296_v59 }
 0x35e   : > { %15450 = vst [vmem:[%s19355_s26 + $0x1a8] sm:$0xff] %v15091_v14  ;;  %v13851_v44 = vmax.f32 %v11785_v38, 0.0 }
 0x35f   : > { %v15092_v60 = vcombine.low %v13848_v9, %v13849_v19 }
 0x360   : > { %v15093_v50 = vcombine.low %v13850_v39, %v13851_v44 }
 0x361   : > { %v15100_v23 = vrot.slane %v15092_v60, %v19304_v6  ;;  %v11853_v53 = vpop.f32.mrb[110].mxu0 }
 0x362   : > { %v15107_v54 = vrot.slane %v15093_v50, %v19304_v6  ;;  %v11854_v26 = vadd.f32 %v11853_v53, %v2687_v56  ;;  %v11924_v4 = vpop.f32.mrb[110].mxu1  ;;  %v11855_v27 = vpop.f32.mrb[111].mxu0 }
 0x363   : > { %v11925_v28 = vadd.f32 %v11924_v4, %v2695_v20  ;;  %v11856_v29 = vadd.f32 %v11855_v27, %v2691_v21  ;;  %v11926_v30 = vpop.f32.mrb[111].mxu1  ;;  %v1765_v21 = vld [vmem:[%s19220_s25 + $0xe8] sm:$0xff] }
 0x364   : > { %v15108_v31 = vcombine.low %v15100_v23, %v15107_v54  ;;  %v13852_v32 = vmax.f32 %v11854_v26, 0.0  ;;  %v11927_v11 = vadd.f32 %v11926_v30, %v2699_v63  ;;  %v2735_v4 = vrot.slane %v1765_v21, %v19230_v7 }
 0x365   : > { %v13854_v34 = vmax.f32 %v11925_v28, 0.0  ;;  %v13853_v36 = vmax.f32 %v11856_v29, 0.0  ;;  %v2743_v28 = vrot.slane %v1765_v21, %v19240_v12  ;;  %v2739_v29 = vrot.slane %v1765_v21, %v19243_v13 }
 0x366   : > { %15451 = vst [vmem:[%s19355_s26 + $0x1b0] sm:$0xff] %v15108_v31  ;;  %v13855_v37 = vmax.f32 %v11927_v11, 0.0  ;;  %v2747_v35 = vrot.slane %v1765_v21, %v19248_v15 }
 0x367   : > { %v15109_v18 = vcombine.low %v13852_v32, %v13853_v36 }
 0x368   : > { %v15110_v45 = vcombine.low %v13854_v34, %v13855_v37 }
 0x369   : > { %v15117_v48 = vrot.slane %v15109_v18, %v19304_v6  ;;  %v11995_v16 = vpop.f32.mrb[112].mxu0 }
 0x36a   : > { %v15124_v51 = vrot.slane %v15110_v45, %v19304_v6  ;;  %v11996_v22 = vadd.f32 %v11995_v16, %v2703_v10  ;;  %v12066_v17 = vpop.f32.mrb[112].mxu1  ;;  %v11997_v24 = vpop.f32.mrb[113].mxu0 }
 0x36b   : > { %v12067_v25 = vadd.f32 %v12066_v17, %v2711_v41  ;;  %v11998_v57 = vadd.f32 %v11997_v24, %v2707_v43  ;;  %v12068_v58 = vpop.f32.mrb[113].mxu1  ;;  %v2759_v24 = vrot.slane %v1765_v21, %v19283_v46 }
 0x36c   : > { %v15125_v55 = vcombine.low %v15117_v48, %v15124_v51  ;;  %v13856_v61 = vmax.f32 %v11996_v22, 0.0  ;;  %v12069_v62 = vadd.f32 %v12068_v58, %v2715_v47  ;;  %v2751_v22 = vrot.slane %v1765_v21, %v19276_v40 }
 0x36d   : > { %v13858_v0 = vmax.f32 %v12067_v25, 0.0  ;;  %v13857_v42 = vmax.f32 %v11998_v57, 0.0  ;;  %v2755_v25 = vrot.slane %v1765_v21, %v19289_v52  ;;  %v2763_v58 = vrot.slane %v1765_v21, %v19296_v59 }
 0x36e   : > { %15452 = vst [vmem:[%s19355_s26 + $0x1b8] sm:$0xff] %v15125_v55  ;;  %v13859_v1 = vmax.f32 %v12069_v62, 0.0 }
 0x36f   : > { %v15126_v33 = vcombine.low %v13856_v61, %v13857_v42 }
 0x370   : > { %v15127_v8 = vcombine.low %v13858_v0, %v13859_v1 }
 0x371   : > { %v15134_v14 = vrot.slane %v15126_v33, %v19304_v6  ;;  %v12137_v9 = vpop.f32.mrb[114].mxu0 }
 0x372   : > { %v15141_v38 = vrot.slane %v15127_v8, %v19304_v6  ;;  %v12138_v39 = vadd.f32 %v12137_v9, %v2719_v2  ;;  %v12208_v19 = vpop.f32.mrb[114].mxu1  ;;  %v12139_v44 = vpop.f32.mrb[115].mxu0 }
 0x373   : > { %v12209_v56 = vadd.f32 %v12208_v19, %v2727_v5  ;;  %v12140_v60 = vadd.f32 %v12139_v44, %v2723_v3  ;;  %v12210_v20 = vpop.f32.mrb[115].mxu1  ;;  %v1766_v3 = vld [vmem:[%s19220_s25 + $0xf0] sm:$0xff] }
 0x374   : > { %v15142_v50 = vcombine.low %v15134_v14, %v15141_v38  ;;  %v13860_v63 = vmax.f32 %v12138_v39, 0.0  ;;  %v12211_v23 = vadd.f32 %v12210_v20, %v2731_v49  ;;  %v2767_v19 = vrot.slane %v1766_v3, %v19230_v7 }
 0x375   : > { %v13862_v53 = vmax.f32 %v12209_v56, 0.0  ;;  %v13861_v54 = vmax.f32 %v12140_v60, 0.0  ;;  %v2775_v56 = vrot.slane %v1766_v3, %v19240_v12  ;;  %v2771_v60 = vrot.slane %v1766_v3, %v19243_v13 }
 0x376   : > { %15453 = vst [vmem:[%s19355_s26 + $0x1c0] sm:$0xff] %v15142_v50  ;;  %v13863_v26 = vmax.f32 %v12211_v23, 0.0  ;;  %v2779_v21 = vrot.slane %v1766_v3, %v19248_v15 }
 0x377   : > { %v15143_v27 = vcombine.low %v13860_v63, %v13861_v54 }
 0x378   : > { %v15144_v30 = vcombine.low %v13862_v53, %v13863_v26 }
 0x379   : > { %v15151_v31 = vrot.slane %v15143_v27, %v19304_v6  ;;  %v12279_v32 = vpop.f32.mrb[116].mxu0 }
 0x37a   : > { %v15158_v11 = vrot.slane %v15144_v30, %v19304_v6  ;;  %v12280_v34 = vadd.f32 %v12279_v32, %v2735_v4  ;;  %v12350_v36 = vpop.f32.mrb[116].mxu1  ;;  %v12281_v37 = vpop.f32.mrb[117].mxu0 }
 0x37b   : > { %v12351_v10 = vadd.f32 %v12350_v36, %v2743_v28  ;;  %v12282_v18 = vadd.f32 %v12281_v37, %v2739_v29  ;;  %v12352_v41 = vpop.f32.mrb[117].mxu1  ;;  %v2791_v37 = vrot.slane %v1766_v3, %v19283_v46 }
 0x37c   : > { %v15159_v43 = vcombine.low %v15151_v31, %v15158_v11  ;;  %v13864_v45 = vmax.f32 %v12280_v34, 0.0  ;;  %v12353_v47 = vadd.f32 %v12352_v41, %v2747_v35  ;;  %v2783_v34 = vrot.slane %v1766_v3, %v19276_v40 }
 0x37d   : > { %v13866_v48 = vmax.f32 %v12351_v10, 0.0  ;;  %v13865_v16 = vmax.f32 %v12282_v18, 0.0  ;;  %v2787_v10 = vrot.slane %v1766_v3, %v19289_v52  ;;  %v2795_v41 = vrot.slane %v1766_v3, %v19296_v59 }
 0x37e   : > { %15454 = vst [vmem:[%s19355_s26 + $0x1c8] sm:$0xff] %v15159_v43  ;;  %v13867_v51 = vmax.f32 %v12353_v47, 0.0 }
 0x37f   : > { %v15160_v17 = vcombine.low %v13864_v45, %v13865_v16 }
 0x380   : > { %v15161_v57 = vcombine.low %v13866_v48, %v13867_v51 }
 0x381   : > { %v15168_v55 = vrot.slane %v15160_v17, %v19304_v6  ;;  %v12421_v61 = vpop.f32.mrb[118].mxu0 }
 0x382   : > { %v15175_v62 = vrot.slane %v15161_v57, %v19304_v6  ;;  %v12422_v0 = vadd.f32 %v12421_v61, %v2751_v22  ;;  %v12492_v42 = vpop.f32.mrb[118].mxu1  ;;  %v12423_v1 = vpop.f32.mrb[119].mxu0 }
 0x383   : > { %v12493_v2 = vadd.f32 %v12492_v42, %v2759_v24  ;;  %v12424_v33 = vadd.f32 %v12423_v1, %v2755_v25  ;;  %v12494_v5 = vpop.f32.mrb[119].mxu1  ;;  %v1767_v25 = vld [vmem:[%s19220_s25 + $0xf8] sm:$0xff] }
 0x384   : > { %v15176_v8 = vcombine.low %v15168_v55, %v15175_v62  ;;  %v13868_v49 = vmax.f32 %v12422_v0, 0.0  ;;  %v12495_v14 = vadd.f32 %v12494_v5, %v2763_v58  ;;  %v2799_v42 = vrot.slane %v1767_v25, %v19230_v7 }
 0x385   : > { %v13870_v9 = vmax.f32 %v12493_v2, 0.0  ;;  %v13869_v38 = vmax.f32 %v12424_v33, 0.0  ;;  %v2807_v2 = vrot.slane %v1767_v25, %v19240_v12  ;;  %v2803_v33 = vrot.slane %v1767_v25, %v19243_v13 }
 0x386   : > { %15455 = vst [vmem:[%s19355_s26 + $0x1d0] sm:$0xff] %v15176_v8  ;;  %v13871_v39 = vmax.f32 %v12495_v14, 0.0  ;;  %v2811_v3 = vrot.slane %v1767_v25, %v19248_v15 }
 0x387   : > { %v15177_v44 = vcombine.low %v13868_v49, %v13869_v38 }
 0x388   : > { %v15178_v20 = vcombine.low %v13870_v9, %v13871_v39 }
 0x389   : > { %v15185_v50 = vrot.slane %v15177_v44, %v19304_v6  ;;  %v12563_v63 = vpop.f32.mrb[120].mxu0 }
 0x38a   : > { %v15192_v23 = vrot.slane %v15178_v20, %v19304_v6  ;;  %v12564_v53 = vadd.f32 %v12563_v63, %v2767_v19  ;;  %v12634_v54 = vpop.f32.mrb[120].mxu1  ;;  %v12565_v26 = vpop.f32.mrb[121].mxu0 }
 0x38b   : > { %v12635_v4 = vadd.f32 %v12634_v54, %v2775_v56  ;;  %v12566_v27 = vadd.f32 %v12565_v26, %v2771_v60  ;;  %v12636_v28 = vpop.f32.mrb[121].mxu1  ;;  %v2823_v26 = vrot.slane %v1767_v25, %v19283_v46 }
 0x38c   : > { %v15193_v29 = vcombine.low %v15185_v50, %v15192_v23  ;;  %v13872_v30 = vmax.f32 %v12564_v53, 0.0  ;;  %v12637_v35 = vadd.f32 %v12636_v28, %v2779_v21  ;;  %v2815_v53 = vrot.slane %v1767_v25, %v19276_v40 }
 0x38d   : > { %v13874_v31 = vmax.f32 %v12635_v4, 0.0  ;;  %v13873_v32 = vmax.f32 %v12566_v27, 0.0  ;;  %v2819_v4 = vrot.slane %v1767_v25, %v19289_v52  ;;  %v2827_v28 = vrot.slane %v1767_v25, %v19296_v59 }
 0x38e   : > { %15456 = vst [vmem:[%s19355_s26 + $0x1d8] sm:$0xff] %v15193_v29  ;;  %v13875_v11 = vmax.f32 %v12637_v35, 0.0 }
 0x38f   : > { %v15194_v36 = vcombine.low %v13872_v30, %v13873_v32 }
 0x390   : > { %v15195_v18 = vcombine.low %v13874_v31, %v13875_v11 }
 0x391   : > { %v15202_v43 = vrot.slane %v15194_v36, %v19304_v6  ;;  %v12705_v45 = vpop.f32.mrb[122].mxu0 }
 0x392   : > { %v15209_v47 = vrot.slane %v15195_v18, %v19304_v6  ;;  %v12706_v48 = vadd.f32 %v12705_v45, %v2783_v34  ;;  %v12776_v16 = vpop.f32.mrb[122].mxu1  ;;  %v12707_v51 = vpop.f32.mrb[123].mxu0 }
 0x393   : > { %v12777_v22 = vadd.f32 %v12776_v16, %v2791_v37  ;;  %v12708_v17 = vadd.f32 %v12707_v51, %v2787_v10  ;;  %v12778_v24 = vpop.f32.mrb[123].mxu1  ;;  %v1768_v10 = vld [vmem:[%s19220_s25 + $0x100] sm:$0xff] }
 0x394   : > { %v15210_v57 = vcombine.low %v15202_v43, %v15209_v47  ;;  %v13876_v58 = vmax.f32 %v12706_v48, 0.0  ;;  %v12779_v55 = vadd.f32 %v12778_v24, %v2795_v41  ;;  %v2831_v16 = vrot.slane %v1768_v10, %v19230_v7 }
 0x395   : > { %v13878_v61 = vmax.f32 %v12777_v22, 0.0  ;;  %v13877_v62 = vmax.f32 %v12708_v17, 0.0  ;;  %v2839_v22 = vrot.slane %v1768_v10, %v19240_v12  ;;  %v2835_v17 = vrot.slane %v1768_v10, %v19243_v13 }
 0x396   : > { %15457 = vst [vmem:[%s19355_s26 + $0x1e0] sm:$0xff] %v15210_v57  ;;  %v13879_v0 = vmax.f32 %v12779_v55, 0.0  ;;  %v2843_v25 = vrot.slane %v1768_v10, %v19248_v15 }
 0x397   : > { %v15211_v1 = vcombine.low %v13876_v58, %v13877_v62 }
 0x398   : > { %v15212_v5 = vcombine.low %v13878_v61, %v13879_v0 }
 0x399   : > { %v15219_v8 = vrot.slane %v15211_v1, %v19304_v6  ;;  %v12847_v49 = vpop.f32.mrb[124].mxu0 }
 0x39a   : > { %v15226_v14 = vrot.slane %v15212_v5, %v19304_v6  ;;  %v12848_v9 = vadd.f32 %v12847_v49, %v2799_v42  ;;  %v12918_v38 = vpop.f32.mrb[124].mxu1  ;;  %v12849_v39 = vpop.f32.mrb[125].mxu0 }
 0x39b   : > { %v12919_v19 = vadd.f32 %v12918_v38, %v2807_v2  ;;  %v12850_v44 = vadd.f32 %v12849_v39, %v2803_v33  ;;  %v12920_v56 = vpop.f32.mrb[125].mxu1  ;;  %v2855_v39 = vrot.slane %v1768_v10, %v19283_v46 }
 0x39c   : > { %v15227_v60 = vcombine.low %v15219_v8, %v15226_v14  ;;  %v13880_v20 = vmax.f32 %v12848_v9, 0.0  ;;  %v12921_v21 = vadd.f32 %v12920_v56, %v2811_v3  ;;  %v2847_v9 = vrot.slane %v1768_v10, %v19276_v40 }
 0x39d   : > { %v13882_v50 = vmax.f32 %v12919_v19, 0.0  ;;  %v13881_v63 = vmax.f32 %v12850_v44, 0.0  ;;  %v2851_v19 = vrot.slane %v1768_v10, %v19289_v52  ;;  %v2859_v56 = vrot.slane %v1768_v10, %v19296_v59 }
 0x39e   : > { %15458 = vst [vmem:[%s19355_s26 + $0x1e8] sm:$0xff] %v15227_v60  ;;  %v13883_v23 = vmax.f32 %v12921_v21, 0.0 }
 0x39f   : > { %v15228_v54 = vcombine.low %v13880_v20, %v13881_v63 }
 0x3a0   : > { %v15229_v27 = vcombine.low %v13882_v50, %v13883_v23 }
 0x3a1   : > { %v15236_v29 = vrot.slane %v15228_v54, %v19304_v6  ;;  %v12989_v30 = vpop.f32.mrb[126].mxu0 }
 0x3a2   : > { %v15243_v35 = vrot.slane %v15229_v27, %v19304_v6  ;;  %v12990_v31 = vadd.f32 %v12989_v30, %v2815_v53  ;;  %v13060_v32 = vpop.f32.mrb[126].mxu1  ;;  %v12991_v11 = vpop.f32.mrb[127].mxu0 }
 0x3a3   : > { %v13061_v34 = vadd.f32 %v13060_v32, %v2823_v26  ;;  %v12992_v36 = vadd.f32 %v12991_v11, %v2819_v4  ;;  %v13062_v37 = vpop.f32.mrb[127].mxu1  ;;  %v1769_v4 = vld [vmem:[%s19220_s25 + $0x108] sm:$0xff] }
 0x3a4   : > { %v15244_v18 = vcombine.low %v15236_v29, %v15243_v35  ;;  %v13884_v41 = vmax.f32 %v12990_v31, 0.0  ;;  %v13063_v43 = vadd.f32 %v13062_v37, %v2827_v28  ;;  %v2863_v31 = vrot.slane %v1769_v4, %v19230_v7 }
 0x3a5   : > { %v13886_v45 = vmax.f32 %v13061_v34, 0.0  ;;  %v13885_v47 = vmax.f32 %v12992_v36, 0.0  ;;  %v2871_v11 = vrot.slane %v1769_v4, %v19240_v12  ;;  %v2867_v34 = vrot.slane %v1769_v4, %v19243_v13 }
 0x3a6   : > { %15459 = vst [vmem:[%s19355_s26 + $0x1f0] sm:$0xff] %v15244_v18  ;;  %v13887_v48 = vmax.f32 %v13063_v43, 0.0  ;;  %v2875_v37 = vrot.slane %v1769_v4, %v19248_v15  ;;  %v2879_v15 = vrot.slane %v1769_v4, %v19276_v40 }
 0x3a7   : > { %v15245_v51 = vcombine.low %v13884_v41, %v13885_v47 }
 0x3a8   : > { %v15246_v24 = vcombine.low %v13886_v45, %v13887_v48 }
 0x3a9   : > { %v15253_v57 = vrot.slane %v15245_v51, %v19304_v6  ;;  %v13131_v58 = vpop.f32.mrb[128].mxu0 }
 0x3aa   : > { %v15260_v55 = vrot.slane %v15246_v24, %v19304_v6  ;;  %v13132_v61 = vadd.f32 %v13131_v58, %v2831_v16  ;;  %v13202_v62 = vpop.f32.mrb[128].mxu1  ;;  %v13133_v0 = vpop.f32.mrb[129].mxu0  ;;  %v2887_v58 = vrot.slane %v1769_v4, %v19283_v46 }
 0x3ab   : > { %v13203_v42 = vadd.f32 %v13202_v62, %v2839_v22  ;;  %v13134_v1 = vadd.f32 %v13133_v0, %v2835_v17  ;;  %v13204_v2 = vpop.f32.mrb[129].mxu1 }
 0x3ac   : > { %v15261_v33 = vcombine.low %v15253_v57, %v15260_v55  ;;  %v13888_v5 = vmax.f32 %v13132_v61, 0.0  ;;  %v13205_v3 = vadd.f32 %v13204_v2, %v2843_v25  ;;  %v2883_v57 = vrot.slane %v1769_v4, %v19289_v52 }
 0x3ad   : > { %v13890_v8 = vmax.f32 %v13203_v42, 0.0  ;;  %v13889_v49 = vmax.f32 %v13134_v1, 0.0 }
 0x3ae   : > { %15460 = vst [vmem:[%s19355_s26 + $0x1f8] sm:$0xff] %v15261_v33  ;;  %v13891_v14 = vmax.f32 %v13205_v3, 0.0 }
 0x3af   : > { %v15262_v38 = vcombine.low %v13888_v5, %v13889_v49 }
 0x3b0   : > { %v15263_v44 = vcombine.low %v13890_v8, %v13891_v14 }
 0x3b1   : > { %v15270_v60 = vrot.slane %v15262_v38, %v19304_v6  ;;  %v13273_v20 = vpop.f32.mrb[130].mxu0 }
 0x3b2   : > { %v15277_v21 = vrot.slane %v15263_v44, %v19304_v6  ;;  %v13274_v50 = vadd.f32 %v13273_v20, %v2847_v9  ;;  %v13344_v63 = vpop.f32.mrb[130].mxu1  ;;  %v13275_v23 = vpop.f32.mrb[131].mxu0 }
 0x3b3   : > { %v13345_v53 = vadd.f32 %v13344_v63, %v2855_v39  ;;  %v13276_v54 = vadd.f32 %v13275_v23, %v2851_v19  ;;  %v13346_v26 = vpop.f32.mrb[131].mxu1 }
 0x3b4   : > { %v15278_v27 = vcombine.low %v15270_v60, %v15277_v21  ;;  %v13892_v28 = vmax.f32 %v13274_v50, 0.0  ;;  %v13347_v29 = vadd.f32 %v13346_v26, %v2859_v56 }
 0x3b5   : > { %v13894_v30 = vmax.f32 %v13345_v53, 0.0  ;;  %v13893_v35 = vmax.f32 %v13276_v54, 0.0 }
 0x3b6   : > { %15461 = vst [vmem:[%s19355_s26 + $0x200] sm:$0xff] %v15278_v27  ;;  %v13895_v59 = vmax.f32 %v13347_v29, 0.0 }
 0x3b7   : > { %v15279_v32 = vcombine.low %v13892_v28, %v13893_v35 }
 0x3b8   : > { %v15280_v36 = vcombine.low %v13894_v30, %v13895_v59 }
 0x3b9   : > { %v15287_v10 = vrot.slane %v15279_v32, %v19304_v6  ;;  %v13415_v18 = vpop.f32.mrb[132].mxu0 }
 0x3ba   : > { %v15294_v41 = vrot.slane %v15280_v36, %v19304_v6  ;;  %v13416_v43 = vadd.f32 %v13415_v18, %v2863_v31  ;;  %v13486_v45 = vpop.f32.mrb[132].mxu1  ;;  %v13417_v47 = vpop.f32.mrb[133].mxu0 }
 0x3bb   : > { %v13487_v48 = vadd.f32 %v13486_v45, %v2871_v11  ;;  %v13418_v16 = vadd.f32 %v13417_v47, %v2867_v34  ;;  %v13488_v7 = vpop.f32.mrb[133].mxu1 }
 0x3bc   : > { %v15295_v51 = vcombine.low %v15287_v10, %v15294_v41  ;;  %v13896_v22 = vmax.f32 %v13416_v43, 0.0  ;;  %v13489_v12 = vadd.f32 %v13488_v7, %v2875_v37 }
 0x3bd   : > { %v13898_v17 = vmax.f32 %v13487_v48, 0.0  ;;  %v13897_v13 = vmax.f32 %v13418_v16, 0.0 }
 0x3be   : > { %15462 = vst [vmem:[%s19355_s26 + $0x208] sm:$0xff] %v15295_v51  ;;  %v13899_v24 = vmax.f32 %v13489_v12, 0.0 }
 0x3bf   : > { %v15296_v25 = vcombine.low %v13896_v22, %v13897_v13 }
 0x3c0   : > { %v15297_v55 = vcombine.low %v13898_v17, %v13899_v24 }
 0x3c1   : > { %v15304_v61 = vrot.slane %v15296_v25, %v19304_v6  ;;  %v13557_v62 = vpop.f32.mrb[134].mxu0 }
 0x3c2   : > { %v15311_v0 = vrot.slane %v15297_v55, %v19304_v6  ;;  %v13558_v42 = vadd.f32 %v13557_v62, %v2879_v15  ;;  %v13559_v1 = vpop.f32.mrb[135].mxu0  ;;  %v13628_v2 = vpop.f32.mrb[134].mxu1 }
 0x3c3   : > { %v13560_v33 = vadd.f32 %v13559_v1, %v2883_v57  ;;  %v13629_v5 = vadd.f32 %v13628_v2, %v2887_v58  ;;  %v16106_v40 = vpop.f32.mrb[135].mxu1 }
 0x3c4   : > { %v15312_v3 = vcombine.low %v15304_v61, %v15311_v0  ;;  %v13900_v8 = vmax.f32 %v13558_v42, 0.0 }
 0x3c5   : > { %v13901_v52 = vmax.f32 %v13560_v33, 0.0  ;;  %v13902_v49 = vmax.f32 %v13629_v5, 0.0 }
 0x3c6   : > { %15463 = vst [vmem:[%s19355_s26 + $0x210] sm:$0xff] %v15312_v3 }
 0x3c7   : > { %v15313_v46 = vcombine.low %v13900_v8, %v13901_v52  ;;  %v15327_v14 = vrot.slane %v13902_v49, %v19304_v6  ;;  %15472 = sbr.rel (!%p17905_p6) target bundleno = 1001 (0x3e9), region = 102 }
 0x3c9   : > { %v15320_v9 = vrot.slane %v15313_v46, %v19304_v6 }
 0x3cb   : > { %v15328_v38 = vcombine.low %v15320_v9, %v15327_v14 }
 0x3cd   : > { %15464 = vst [vmem:[%s19355_s26 + $0x218] sm:$0x3f] %v15328_v38 }
 0x3ce   : > { %s21324_s9 = smov (!%p15475_p7, %s15474_s9), 271 }
 0x3cf   : > { %s21231_s28 = sshll.u32 %s21324_s9, 5 }
 0x3d0   : > { %s15479_s5 = ssub.s32 8672, %s21231_s28 }
 0x3d1   : > { %15480 = vsyncadd %s15466_s4, %s15479_s5  ;;  %p16079_p9 = scmp.ne.s32.totalorder %s21231_s28, 0  ;;  %s16090_s25 = smul.u32 8672, %s17887_s16 }
 0x3d2   : > { %s15486_s22 = sshll.u32 %s19355_s26, 4  ;;  %s17845_s20 = smov [#allocation3]   ;;  %s15487_s22 = int_to_ptr.vmem [resolvable:$true] %s15486_s22 }
 0x3d3   : > { %s21242_s19 = scalar_lea.hbm %s21286_s3, %s16090_s25  ;;  %s17646_s17 = scalar_lea.vmem %s15487_s22, %s21231_s28 }
 0x3d4   : > { %p17647_p6 = scmp.ne.s32.totalorder %s15487_s22, %s17646_s17  ;;  %s17650_s1 = sshll.u32 %s17845_s20, 4  ;;  %s17651_s1 = int_to_ptr.vmem [resolvable:$false] %s17650_s1 }
 0x3d5   : > { %s17652_s8 = scalar_lea.vmem %s17651_s1, 17344  ;;  %p17653_p12 = scmp.lt.s32.totalorder %s15487_s22, %s17651_s1 }
 0x3d6   : > { %p17648_p10 = pnand %p17647_p6, %p16079_p9  ;;  %p17654_p13 = scmp.lt.s32.totalorder %s17652_s8, %s17646_s17 }
 0x3d8   : > { %p17649_p11 = pneg %p17648_p10  ;;  %p17655_p0 = por %p17654_p13, %p17653_p12 }
 0x3da   : > { %p17656_p1 = pnand %p17655_p0, %p17649_p11 }
 0x3dc   : > { %17659 = shalt.err (!%p17656_p1)
}
 0x3dd   : > { %s17660_s16 = scalar_lea.hbm %s21242_s19, %s21231_s28  ;;  %s17664_s7 = scalar_lea.hbm %s21286_s3, 34624 }
 0x3de   : > { %p17661_p2 = scmp.ne.s32.totalorder %s21242_s19, %s17660_s16  ;;  %p17665_p5 = scmp.lt.u32.totalorder %s21242_s19, %s21286_s3 }
 0x3df   : > { %p17666_p7 = scmp.lt.u32.totalorder %s17664_s7, %s17660_s16  ;;  %p17668_p10 = scmp.lt.u32.totalorder %s17660_s16, %s21242_s19 }
 0x3e0   : > { %p17662_p3 = pnand %p17661_p2, %p16079_p9 }
 0x3e1   : > { %p17667_p6 = por %p17666_p7, %p17665_p5 }
 0x3e2   : > { %p17663_p4 = pneg %p17662_p3 }
 0x3e3   : > { %p17669_p11 = por %p17668_p10, %p17667_p6 }
 0x3e5   : > { %p17670_p12 = pnand %p17669_p11, %p17663_p4 }
 0x3e7   : > { %17673 = shalt.err (!%p17670_p12)
}
 0x3e8   : > { %15489 = dma.vmem_to_hbm [thread:$0]  (%p16079_p9), %s15487_s22, %s21231_s28, %s21242_s19, %s15466_s4  }
 0x3e9 PF: > { %p17472_p13 = scmp.ge.s32.totalorder %s17772_s15, 2  ;;  %s15498_s24 = sand.u32 1, %s17760_s12  }
 0x3ea   : > { %s15499_s9 = scalar_lea.sflag [#allocation4], %s15498_s24 }
 0x3eb   : > { %p17469_p0 = pnand %p17472_p13, %p17909_p8 }
 0x3ed   : > { %17755 = dma.done.wait (!%p17469_p0), %s15499_s9, 8672  }
 0x3ee   : > { %17757 = vsyncadd (!%p17469_p0), %s15499_s9, 4294958624  ;;  %p13_p1 = scmp.ge.s32.totalorder %s17891_s18, 6   ;;  %s21309_s12 = smov %s17764_s13 }
 0x3ef   : > { %s21310_s13 = smov %s17768_s14  ;;  %s21311_s14 = smov %s17903_s21 }
 0x3f0   : > { %s21312_s15 = smov %s17891_s18  ;;  %15 = sbr.rel (!%p13_p1) target bundleno = 5 (0x5), region = 203 }
 0x3f7   :  { %15504 = vsyncpa [#allocation4], 1 }
 0x3f8   :  { %15506 = vsyncpa [#allocation4 + $0x1], 1 }

</bundles_post_ra>
